<compile_context>
chip_gen: v6e
topology: v6e:2x2x1
jax: 0.10.0
libtpu: 0.0.40
codegen_flags: <defaults>
</compile_context>

<pallas_src>
import jax
import jax.numpy as jnp
from jax.experimental import pallas as pl
from jax.experimental.pallas import tpu as pltpu


# ---------------------------------------------------------------------------
# Fused forward-pass kernel (one grid step per batch element)
# ---------------------------------------------------------------------------
def _convnet_kernel(
    xph00, xph01, xph10, xph11,        # input phases, each (10, 13, 1) f32
    w1_ref, b1_ref,                    # (9, 16) f32, (1, 16) f32
    w2_ref, b2_ref,                    # (144, 32) bf16, (1, 32) f32
    w3_ref, b3_ref,                    # (288, 64) bf16, (1, 64) f32
    wf1_ref, bf1_ref,                  # (6, 64, 256) bf16, (1, 256) f32
    wf2_ref, bf2_ref,                  # (256, 128) bf16, (1, 128) f32
    wf3_ref, bf3_ref,                  # (128, 128) bf16, (1, 128) f32
    out_ref,                           # (1, 128) f32
    col2_ref, a2_ref, col3_ref, a3_ref,  # VMEM scratch
):
    f32 = jnp.float32
    bf16 = jnp.bfloat16
    xph = ((xph00, xph01), (xph10, xph11))

    # ---- conv1 (Cin=1, stride 1) + ReLU, computed directly in the 2x2
    #      polyphase form needed by conv2's stride-2 window (pure VPU work).
    b1 = b1_ref[...]                                   # (1, 16)
    p1 = [[None, None], [None, None]]                  # each (9, 12, 16)
    for ro in range(2):
        for co in range(2):
            acc = jnp.zeros((9, 12, 16), f32)
            for i in range(3):
                for j in range(3):
                    rho, dr = (ro + i) % 2, (ro + i) // 2
                    gam, dc = (co + j) % 2, (co + j) // 2
                    xs = xph[rho][gam][dr:dr + 9, dc:dc + 12, :]   # (9,12,1)
                    wv = w1_ref[i * 3 + j:i * 3 + j + 1, :]        # (1,16)
                    acc = acc + xs * wv
            p1[ro][co] = jnp.maximum(acc + b1, 0.0)

    # ---- conv2 (stride 2) + ReLU: im2col into VMEM scratch, then one
    #      (11,144) x (144,32) MXU matmul per output row.
    for i in range(3):
        for j in range(3):
            k = i * 3 + j
            patch = p1[i % 2][j % 2][i // 2:i // 2 + 8, j // 2:j // 2 + 11, :]
            col2_ref[:, :, 16 * k:16 * k + 16] = patch.astype(bf16)
    w2 = w2_ref[...]
    b2 = b2_ref[...]
    for h in range(8):
        row = jnp.dot(col2_ref[h], w2, preferred_element_type=f32)
        a2_ref[h] = jnp.maximum(row + b2, 0.0)                     # (11, 32)

    # ---- conv3 (stride 1) + ReLU: same im2col-in-scratch scheme.
    for i in range(3):
        for j in range(3):
            k = i * 3 + j
            col3_ref[:, :, 32 * k:32 * k + 32] = (
                a2_ref[i:i + 6, j:j + 9, :].astype(bf16))
    w3 = w3_ref[...]
    b3 = b3_ref[...]
    for h in range(6):
        row = jnp.dot(col3_ref[h], w3, preferred_element_type=f32)
        a3_ref[h] = jnp.maximum(row + b3, 0.0)                     # (9, 64)

    # ---- MaxPool(3,3) fused epilogue + fc1 (chunked over the 6 spatial
    #      cells; fc1 weights were pre-permuted to the NHWC cell order so the
    #      PyTorch NCHW flatten needs no transpose here).
    a3 = a3_ref[...]                                               # (6, 9, 64)
    acc1 = bf1_ref[...]                                            # (1, 256)
    for pr in range(2):
        for pc in range(3):
            m = a3[3 * pr, 3 * pc:3 * pc + 1, :]                   # (1, 64)
            for dr in range(3):
                for dc in range(3):
                    if dr == 0 and dc == 0:
                        continue
                    m = jnp.maximum(
                        m, a3[3 * pr + dr, 3 * pc + dc:3 * pc + dc + 1, :])
            s = pr * 3 + pc
            acc1 = acc1 + jnp.dot(m.astype(bf16), wf1_ref[s],
                                  preferred_element_type=f32)
    # TODO(synk): Dropout(0.5) after fc1 is identity in eval mode;
    # training-mode dropout is not implemented.

    # ---- fc2, fc3 (fc3 zero-padded to 128 output lanes for a dense store).
    h2 = jnp.dot(acc1.astype(bf16), wf2_ref[...],
                 preferred_element_type=f32) + bf2_ref[...]
    h3 = jnp.dot(h2.astype(bf16), wf3_ref[...],
                 preferred_element_type=f32) + bf3_ref[...]
    out_ref[...] = h3.astype(out_ref.dtype)


# ---------------------------------------------------------------------------
# Wrapper: weight re-layout (one-time, JAX-side) + the single pallas_call
# ---------------------------------------------------------------------------
def convnet_forward(params, x):
    """x: (B, 1, 20, 26) f32 NCHW (PyTorch layout) -> (B, 47) f32 logits."""
    B = x.shape[0]
    assert x.shape[1:] == (1, 20, 26), x.shape
    bf16 = jnp.bfloat16

    # Input: 2x2 polyphase split (rows/cols parity), each (B, 10, 13, 1).
    xs = x[:, 0]
    xph = [xs[:, ri::2, cj::2][..., None] for ri in range(2) for cj in range(2)]

    # Weights re-laid-out once for the in-kernel im2col / chunked-fc layout.
    w1 = params["conv1_w"].reshape(16, 9).T                        # (9, 16)
    b1 = params["conv1_b"].reshape(1, 16)
    w2 = params["conv2_w"].transpose(2, 3, 1, 0).reshape(144, 32).astype(bf16)
    b2 = params["conv2_b"].reshape(1, 32)
    w3 = params["conv3_w"].transpose(2, 3, 1, 0).reshape(288, 64).astype(bf16)
    b3 = params["conv3_b"].reshape(1, 64)
    wf1 = params["fc1_w"].reshape(256, 64, 6).transpose(2, 1, 0).astype(bf16)
    bf1 = params["fc1_b"].reshape(1, 256)
    wf2 = params["fc2_w"].T.astype(bf16)                           # (256, 128)
    bf2 = params["fc2_b"].reshape(1, 128)
    wf3 = jnp.zeros((128, 128), jnp.float32).at[:, :47].set(
        params["fc3_w"].T).astype(bf16)                            # lane-padded
    bf3 = jnp.zeros((1, 128), jnp.float32).at[:, :47].set(
        params["fc3_b"].reshape(1, 47))

    phase_spec = pl.BlockSpec((None, 10, 13, 1), lambda b: (b, 0, 0, 0))

    def _rep(shape):  # whole array, VMEM-resident across grid steps
        zeros = (0,) * len(shape)
        return pl.BlockSpec(shape, lambda b, z=zeros: z)

    in_specs = [phase_spec] * 4 + [
        _rep(w1.shape), _rep(b1.shape),
        _rep(w2.shape), _rep(b2.shape),
        _rep(w3.shape), _rep(b3.shape),
        _rep(wf1.shape), _rep(bf1.shape),
        _rep(wf2.shape), _rep(bf2.shape),
        _rep(wf3.shape), _rep(bf3.shape),
    ]

    out = pl.pallas_call(
        _convnet_kernel,
        out_shape=jax.ShapeDtypeStruct((B, 1, 128), jnp.float32),
        grid=(B,),
        in_specs=in_specs,
        out_specs=pl.BlockSpec((None, 1, 128), lambda b: (b, 0, 0)),
        scratch_shapes=[
            pltpu.VMEM((8, 11, 144), jnp.bfloat16),   # conv2 im2col columns
            pltpu.VMEM((8, 11, 32), jnp.float32),     # conv2 output
            pltpu.VMEM((6, 9, 288), jnp.bfloat16),    # conv3 im2col columns
            pltpu.VMEM((6, 9, 64), jnp.float32),      # conv3 output
        ],
        compiler_params=pltpu.CompilerParams(
            dimension_semantics=("parallel",)),
    )(xph[0], xph[1], xph[2], xph[3],
      w1, b1, w2, b2, w3, b3, wf1, bf1, wf2, bf2, wf3, bf3)

    return out[:, 0, :47]


# ---------------------------------------------------------------------------
# Parameters (deterministic synthetic init — shapes from ConvNet.__init__)
# ---------------------------------------------------------------------------
def init_params(key):
    ks = jax.random.split(key, 12)

    def u(k, shape, fan_in):
        bound = 1.0 / jnp.sqrt(fan_in)
        return jax.random.uniform(k, shape, jnp.float32, -bound, bound)

    return {
        "conv1_w": u(ks[0], (16, 1, 3, 3), 1 * 9),
        "conv1_b": u(ks[1], (16,), 1 * 9),
        "conv2_w": u(ks[2], (32, 16, 3, 3), 16 * 9),
        "conv2_b": u(ks[3], (32,), 16 * 9),
        "conv3_w": u(ks[4], (64, 32, 3, 3), 32 * 9),
        "conv3_b": u(ks[5], (64,), 32 * 9),
        "fc1_w": u(ks[6], (256, 384), 384),
        "fc1_b": u(ks[7], (256,), 384),
        "fc2_w": u(ks[8], (128, 256), 256),
        "fc2_b": u(ks[9], (128,), 256),
        "fc3_w": u(ks[10], (47, 128), 128),
        "fc3_b": u(ks[11], (47,), 128),
    }


# ---------------------------------------------------------------------------
# Pure-JAX reference (same bf16 operand rounding as the kernel's MXU path)
# ---------------------------------------------------------------------------
def convnet_reference(params, x):
    hp = jax.lax.Precision.HIGHEST
    rb = lambda t: t.astype(jnp.bfloat16).astype(jnp.float32)

    def conv(inp, w, b, stride):
        y = jax.lax.conv_general_dilated(
            inp, w, window_strides=(stride, stride), padding="VALID",
            dimension_numbers=("NCHW", "OIHW", "NCHW"), precision=hp)
        return jnp.maximum(y + b[None, :, None, None], 0.0)

    a1 = conv(x, params["conv1_w"], params["conv1_b"], 1)
    a2 = conv(rb(a1), rb(params["conv2_w"]), params["conv2_b"], 2)
    a3 = conv(rb(a2), rb(params["conv3_w"]), params["conv3_b"], 1)
    B = x.shape[0]
    pooled = a3.reshape(B, 64, 2, 3, 3, 3).max(axis=(3, 5))
    flat = pooled.reshape(B, 384)
    h1 = jnp.dot(rb(flat), rb(params["fc1_w"]).T, precision=hp) + params["fc1_b"]
    h2 = jnp.dot(rb(h1), rb(params["fc2_w"]).T, precision=hp) + params["fc2_b"]
    return jnp.dot(rb(h2), rb(params["fc3_w"]).T, precision=hp) + params["fc3_b"]


# ---------------------------------------------------------------------------
if __name__ == "__main__":
    key = jax.random.PRNGKey(0)
    pkey, xkey = jax.random.split(key)
    params = init_params(pkey)

    # (B=2, C=1, H=20, W=26) -> (B, 47)
    x = jax.random.normal(xkey, (2, 1, 20, 26), dtype=jnp.float32)

    out = jax.jit(convnet_forward)(params, x)
    out = jax.block_until_ready(out)

    ref = convnet_reference(params, x)

    assert out.shape == (2, 47), out.shape
    assert out.dtype == jnp.float32
    assert bool(jnp.all(jnp.isfinite(out)))
    assert bool(jnp.allclose(out, ref, atol=1e-2, rtol=1e-2)), (
        float(jnp.max(jnp.abs(out - ref))))
    print("KERNEL_OK")
</pallas_src>

<mosaic_0001>
module attributes {stable_mosaic.version = 11 : i64} {
  func.func @_convnet_kernel(%arg0: i32, %arg1: memref<1x10x13x1xf32, #tpu.memory_space<vmem>>, %arg2: memref<1x10x13x1xf32, #tpu.memory_space<vmem>>, %arg3: memref<1x10x13x1xf32, #tpu.memory_space<vmem>>, %arg4: memref<1x10x13x1xf32, #tpu.memory_space<vmem>>, %arg5: memref<9x16xf32, #tpu.memory_space<vmem>>, %arg6: memref<1x16xf32, #tpu.memory_space<vmem>>, %arg7: memref<144x32xbf16, #tpu.memory_space<vmem>>, %arg8: memref<1x32xf32, #tpu.memory_space<vmem>>, %arg9: memref<288x64xbf16, #tpu.memory_space<vmem>>, %arg10: memref<1x64xf32, #tpu.memory_space<vmem>>, %arg11: memref<6x64x256xbf16, #tpu.memory_space<vmem>>, %arg12: memref<1x256xf32, #tpu.memory_space<vmem>>, %arg13: memref<256x128xbf16, #tpu.memory_space<vmem>>, %arg14: memref<1x128xf32, #tpu.memory_space<vmem>>, %arg15: memref<128x128xbf16, #tpu.memory_space<vmem>>, %arg16: memref<1x128xf32, #tpu.memory_space<vmem>>, %arg17: memref<1x1x128xf32, #tpu.memory_space<vmem>>, %arg18: memref<8x11x144xbf16, #tpu.memory_space<vmem>>, %arg19: memref<8x11x32xf32, #tpu.memory_space<vmem>>, %arg20: memref<6x9x288xbf16, #tpu.memory_space<vmem>>, %arg21: memref<6x9x64xf32, #tpu.memory_space<vmem>>) attributes {dimension_semantics = [#tpu.dimension_semantics<parallel>], iteration_bounds = array<i64: 2>, scalar_prefetch = 0 : i64, scratch_operands = 4 : i64, tpu.core_type = #tpu.core_type<tc>, window_params = [{transform_indices = @transform_0, window_bounds = array<i64: 1, 10, 13, 1>}, {transform_indices = @transform_1, window_bounds = array<i64: 1, 10, 13, 1>}, {transform_indices = @transform_2, window_bounds = array<i64: 1, 10, 13, 1>}, {transform_indices = @transform_3, window_bounds = array<i64: 1, 10, 13, 1>}, {pipeline_mode = #tpu.pipeline_mode<synchronous>, transform_indices = @transform_4, window_bounds = array<i64: 9, 16>}, {pipeline_mode = #tpu.pipeline_mode<synchronous>, transform_indices = @transform_5, window_bounds = array<i64: 1, 16>}, {pipeline_mode = #tpu.pipeline_mode<synchronous>, transform_indices = @transform_6, window_bounds = array<i64: 144, 32>}, {pipeline_mode = #tpu.pipeline_mode<synchronous>, transform_indices = @transform_7, window_bounds = array<i64: 1, 32>}, {pipeline_mode = #tpu.pipeline_mode<synchronous>, transform_indices = @transform_8, window_bounds = array<i64: 288, 64>}, {pipeline_mode = #tpu.pipeline_mode<synchronous>, transform_indices = @transform_9, window_bounds = array<i64: 1, 64>}, {pipeline_mode = #tpu.pipeline_mode<synchronous>, transform_indices = @transform_10, window_bounds = array<i64: 6, 64, 256>}, {pipeline_mode = #tpu.pipeline_mode<synchronous>, transform_indices = @transform_11, window_bounds = array<i64: 1, 256>}, {pipeline_mode = #tpu.pipeline_mode<synchronous>, transform_indices = @transform_12, window_bounds = array<i64: 256, 128>}, {pipeline_mode = #tpu.pipeline_mode<synchronous>, transform_indices = @transform_13, window_bounds = array<i64: 1, 128>}, {pipeline_mode = #tpu.pipeline_mode<synchronous>, transform_indices = @transform_14, window_bounds = array<i64: 128, 128>}, {pipeline_mode = #tpu.pipeline_mode<synchronous>, transform_indices = @transform_15, window_bounds = array<i64: 1, 128>}, {transform_indices = @transform_16, window_bounds = array<i64: 1, 1, 128>}]} {
    %c0 = arith.constant 0 : index
    %c0_0 = arith.constant 0 : index
    %0 = vector.load %arg6[%c0, %c0_0] : memref<1x16xf32, #tpu.memory_space<vmem>>, vector<1x16xf32>
    %cst = arith.constant 0.000000e+00 : f32
    %1 = vector.broadcast %cst : f32 to vector<9x12x16xf32>
    %c0_1 = arith.constant 0 : index
    %c0_2 = arith.constant 0 : index
    %c0_3 = arith.constant 0 : index
    %c0_4 = arith.constant 0 : index
    %2 = vector.load %arg1[%c0_1, %c0_2, %c0_3, %c0_4] : memref<1x10x13x1xf32, #tpu.memory_space<vmem>>, vector<1x9x12x1xf32>
    %3 = vector.shape_cast %2 : vector<1x9x12x1xf32> to vector<9x12x1xf32>
    %c0_5 = arith.constant 0 : index
    %c0_6 = arith.constant 0 : index
    %4 = vector.load %arg5[%c0_5, %c0_6] : memref<9x16xf32, #tpu.memory_space<vmem>>, vector<1x16xf32>
    %5 = vector.shape_cast %4 : vector<1x16xf32> to vector<1x1x16xf32>
    %6 = vector.broadcast %3 : vector<9x12x1xf32> to vector<9x12x16xf32>
    %7 = vector.broadcast %5 : vector<1x1x16xf32> to vector<9x12x16xf32>
    %8 = arith.mulf %6, %7 : vector<9x12x16xf32>
    %9 = arith.addf %1, %8 : vector<9x12x16xf32>
    %c0_7 = arith.constant 0 : index
    %c0_8 = arith.constant 0 : index
    %c0_9 = arith.constant 0 : index
    %c0_10 = arith.constant 0 : index
    %10 = vector.load %arg2[%c0_7, %c0_8, %c0_9, %c0_10] : memref<1x10x13x1xf32, #tpu.memory_space<vmem>>, vector<1x9x12x1xf32>
    %11 = vector.shape_cast %10 : vector<1x9x12x1xf32> to vector<9x12x1xf32>
    %c1 = arith.constant 1 : index
    %c0_11 = arith.constant 0 : index
    %12 = vector.load %arg5[%c1, %c0_11] : memref<9x16xf32, #tpu.memory_space<vmem>>, vector<1x16xf32>
    %13 = vector.shape_cast %12 : vector<1x16xf32> to vector<1x1x16xf32>
    %14 = vector.broadcast %11 : vector<9x12x1xf32> to vector<9x12x16xf32>
    %15 = vector.broadcast %13 : vector<1x1x16xf32> to vector<9x12x16xf32>
    %16 = arith.mulf %14, %15 : vector<9x12x16xf32>
    %17 = arith.addf %9, %16 : vector<9x12x16xf32>
    %c0_12 = arith.constant 0 : index
    %c0_13 = arith.constant 0 : index
    %c1_14 = arith.constant 1 : index
    %c0_15 = arith.constant 0 : index
    %18 = vector.load %arg1[%c0_12, %c0_13, %c1_14, %c0_15] : memref<1x10x13x1xf32, #tpu.memory_space<vmem>>, vector<1x9x12x1xf32>
    %19 = vector.shape_cast %18 : vector<1x9x12x1xf32> to vector<9x12x1xf32>
    %c2 = arith.constant 2 : index
    %c0_16 = arith.constant 0 : index
    %20 = vector.load %arg5[%c2, %c0_16] : memref<9x16xf32, #tpu.memory_space<vmem>>, vector<1x16xf32>
    %21 = vector.shape_cast %20 : vector<1x16xf32> to vector<1x1x16xf32>
    %22 = vector.broadcast %19 : vector<9x12x1xf32> to vector<9x12x16xf32>
    %23 = vector.broadcast %21 : vector<1x1x16xf32> to vector<9x12x16xf32>
    %24 = arith.mulf %22, %23 : vector<9x12x16xf32>
    %25 = arith.addf %17, %24 : vector<9x12x16xf32>
    %c0_17 = arith.constant 0 : index
    %c0_18 = arith.constant 0 : index
    %c0_19 = arith.constant 0 : index
    %c0_20 = arith.constant 0 : index
    %26 = vector.load %arg3[%c0_17, %c0_18, %c0_19, %c0_20] : memref<1x10x13x1xf32, #tpu.memory_space<vmem>>, vector<1x9x12x1xf32>
    %27 = vector.shape_cast %26 : vector<1x9x12x1xf32> to vector<9x12x1xf32>
    %c3 = arith.constant 3 : index
    %c0_21 = arith.constant 0 : index
    %28 = vector.load %arg5[%c3, %c0_21] : memref<9x16xf32, #tpu.memory_space<vmem>>, vector<1x16xf32>
    %29 = vector.shape_cast %28 : vector<1x16xf32> to vector<1x1x16xf32>
    %30 = vector.broadcast %27 : vector<9x12x1xf32> to vector<9x12x16xf32>
    %31 = vector.broadcast %29 : vector<1x1x16xf32> to vector<9x12x16xf32>
    %32 = arith.mulf %30, %31 : vector<9x12x16xf32>
    %33 = arith.addf %25, %32 : vector<9x12x16xf32>
    %c0_22 = arith.constant 0 : index
    %c0_23 = arith.constant 0 : index
    %c0_24 = arith.constant 0 : index
    %c0_25 = arith.constant 0 : index
    %34 = vector.load %arg4[%c0_22, %c0_23, %c0_24, %c0_25] : memref<1x10x13x1xf32, #tpu.memory_space<vmem>>, vector<1x9x12x1xf32>
    %35 = vector.shape_cast %34 : vector<1x9x12x1xf32> to vector<9x12x1xf32>
    %c4 = arith.constant 4 : index
    %c0_26 = arith.constant 0 : index
    %36 = vector.load %arg5[%c4, %c0_26] : memref<9x16xf32, #tpu.memory_space<vmem>>, vector<1x16xf32>
    %37 = vector.shape_cast %36 : vector<1x16xf32> to vector<1x1x16xf32>
    %38 = vector.broadcast %35 : vector<9x12x1xf32> to vector<9x12x16xf32>
    %39 = vector.broadcast %37 : vector<1x1x16xf32> to vector<9x12x16xf32>
    %40 = arith.mulf %38, %39 : vector<9x12x16xf32>
    %41 = arith.addf %33, %40 : vector<9x12x16xf32>
    %c0_27 = arith.constant 0 : index
    %c0_28 = arith.constant 0 : index
    %c1_29 = arith.constant 1 : index
    %c0_30 = arith.constant 0 : index
    %42 = vector.load %arg3[%c0_27, %c0_28, %c1_29, %c0_30] : memref<1x10x13x1xf32, #tpu.memory_space<vmem>>, vector<1x9x12x1xf32>
    %43 = vector.shape_cast %42 : vector<1x9x12x1xf32> to vector<9x12x1xf32>
    %c5 = arith.constant 5 : index
    %c0_31 = arith.constant 0 : index
    %44 = vector.load %arg5[%c5, %c0_31] : memref<9x16xf32, #tpu.memory_space<vmem>>, vector<1x16xf32>
    %45 = vector.shape_cast %44 : vector<1x16xf32> to vector<1x1x16xf32>
    %46 = vector.broadcast %43 : vector<9x12x1xf32> to vector<9x12x16xf32>
    %47 = vector.broadcast %45 : vector<1x1x16xf32> to vector<9x12x16xf32>
    %48 = arith.mulf %46, %47 : vector<9x12x16xf32>
    %49 = arith.addf %41, %48 : vector<9x12x16xf32>
    %c0_32 = arith.constant 0 : index
    %c1_33 = arith.constant 1 : index
    %c0_34 = arith.constant 0 : index
    %c0_35 = arith.constant 0 : index
    %50 = vector.load %arg1[%c0_32, %c1_33, %c0_34, %c0_35] : memref<1x10x13x1xf32, #tpu.memory_space<vmem>>, vector<1x9x12x1xf32>
    %51 = vector.shape_cast %50 : vector<1x9x12x1xf32> to vector<9x12x1xf32>
    %c6 = arith.constant 6 : index
    %c0_36 = arith.constant 0 : index
    %52 = vector.load %arg5[%c6, %c0_36] : memref<9x16xf32, #tpu.memory_space<vmem>>, vector<1x16xf32>
    %53 = vector.shape_cast %52 : vector<1x16xf32> to vector<1x1x16xf32>
    %54 = vector.broadcast %51 : vector<9x12x1xf32> to vector<9x12x16xf32>
    %55 = vector.broadcast %53 : vector<1x1x16xf32> to vector<9x12x16xf32>
    %56 = arith.mulf %54, %55 : vector<9x12x16xf32>
    %57 = arith.addf %49, %56 : vector<9x12x16xf32>
    %c0_37 = arith.constant 0 : index
    %c1_38 = arith.constant 1 : index
    %c0_39 = arith.constant 0 : index
    %c0_40 = arith.constant 0 : index
    %58 = vector.load %arg2[%c0_37, %c1_38, %c0_39, %c0_40] : memref<1x10x13x1xf32, #tpu.memory_space<vmem>>, vector<1x9x12x1xf32>
    %59 = vector.shape_cast %58 : vector<1x9x12x1xf32> to vector<9x12x1xf32>
    %c7 = arith.constant 7 : index
    %c0_41 = arith.constant 0 : index
    %60 = vector.load %arg5[%c7, %c0_41] : memref<9x16xf32, #tpu.memory_space<vmem>>, vector<1x16xf32>
    %61 = vector.shape_cast %60 : vector<1x16xf32> to vector<1x1x16xf32>
    %62 = vector.broadcast %59 : vector<9x12x1xf32> to vector<9x12x16xf32>
    %63 = vector.broadcast %61 : vector<1x1x16xf32> to vector<9x12x16xf32>
    %64 = arith.mulf %62, %63 : vector<9x12x16xf32>
    %65 = arith.addf %57, %64 : vector<9x12x16xf32>
    %c0_42 = arith.constant 0 : index
    %c1_43 = arith.constant 1 : index
    %c1_44 = arith.constant 1 : index
    %c0_45 = arith.constant 0 : index
    %66 = vector.load %arg1[%c0_42, %c1_43, %c1_44, %c0_45] : memref<1x10x13x1xf32, #tpu.memory_space<vmem>>, vector<1x9x12x1xf32>
    %67 = vector.shape_cast %66 : vector<1x9x12x1xf32> to vector<9x12x1xf32>
    %c8 = arith.constant 8 : index
    %c0_46 = arith.constant 0 : index
    %68 = vector.load %arg5[%c8, %c0_46] : memref<9x16xf32, #tpu.memory_space<vmem>>, vector<1x16xf32>
    %69 = vector.shape_cast %68 : vector<1x16xf32> to vector<1x1x16xf32>
    %70 = vector.broadcast %67 : vector<9x12x1xf32> to vector<9x12x16xf32>
    %71 = vector.broadcast %69 : vector<1x1x16xf32> to vector<9x12x16xf32>
    %72 = arith.mulf %70, %71 : vector<9x12x16xf32>
    %73 = arith.addf %65, %72 : vector<9x12x16xf32>
    %74 = vector.shape_cast %0 : vector<1x16xf32> to vector<1x1x16xf32>
    %75 = vector.broadcast %74 : vector<1x1x16xf32> to vector<9x12x16xf32>
    %76 = arith.addf %73, %75 : vector<9x12x16xf32>
    %cst_47 = arith.constant 0.000000e+00 : f32
    %77 = vector.broadcast %cst_47 : f32 to vector<9x12x16xf32>
    %78 = arith.maximumf %76, %77 : vector<9x12x16xf32>
    %cst_48 = arith.constant 0.000000e+00 : f32
    %79 = vector.broadcast %cst_48 : f32 to vector<9x12x16xf32>
    %c0_49 = arith.constant 0 : index
    %c0_50 = arith.constant 0 : index
    %c0_51 = arith.constant 0 : index
    %c0_52 = arith.constant 0 : index
    %80 = vector.load %arg2[%c0_49, %c0_50, %c0_51, %c0_52] : memref<1x10x13x1xf32, #tpu.memory_space<vmem>>, vector<1x9x12x1xf32>
    %81 = vector.shape_cast %80 : vector<1x9x12x1xf32> to vector<9x12x1xf32>
    %c0_53 = arith.constant 0 : index
    %c0_54 = arith.constant 0 : index
    %82 = vector.load %arg5[%c0_53, %c0_54] : memref<9x16xf32, #tpu.memory_space<vmem>>, vector<1x16xf32>
    %83 = vector.shape_cast %82 : vector<1x16xf32> to vector<1x1x16xf32>
    %84 = vector.broadcast %81 : vector<9x12x1xf32> to vector<9x12x16xf32>
    %85 = vector.broadcast %83 : vector<1x1x16xf32> to vector<9x12x16xf32>
    %86 = arith.mulf %84, %85 : vector<9x12x16xf32>
    %87 = arith.addf %79, %86 : vector<9x12x16xf32>
    %c0_55 = arith.constant 0 : index
    %c0_56 = arith.constant 0 : index
    %c1_57 = arith.constant 1 : index
    %c0_58 = arith.constant 0 : index
    %88 = vector.load %arg1[%c0_55, %c0_56, %c1_57, %c0_58] : memref<1x10x13x1xf32, #tpu.memory_space<vmem>>, vector<1x9x12x1xf32>
    %89 = vector.shape_cast %88 : vector<1x9x12x1xf32> to vector<9x12x1xf32>
    %c1_59 = arith.constant 1 : index
    %c0_60 = arith.constant 0 : index
    %90 = vector.load %arg5[%c1_59, %c0_60] : memref<9x16xf32, #tpu.memory_space<vmem>>, vector<1x16xf32>
    %91 = vector.shape_cast %90 : vector<1x16xf32> to vector<1x1x16xf32>
    %92 = vector.broadcast %89 : vector<9x12x1xf32> to vector<9x12x16xf32>
    %93 = vector.broadcast %91 : vector<1x1x16xf32> to vector<9x12x16xf32>
    %94 = arith.mulf %92, %93 : vector<9x12x16xf32>
    %95 = arith.addf %87, %94 : vector<9x12x16xf32>
    %c0_61 = arith.constant 0 : index
    %c0_62 = arith.constant 0 : index
    %c1_63 = arith.constant 1 : index
    %c0_64 = arith.constant 0 : index
    %96 = vector.load %arg2[%c0_61, %c0_62, %c1_63, %c0_64] : memref<1x10x13x1xf32, #tpu.memory_space<vmem>>, vector<1x9x12x1xf32>
    %97 = vector.shape_cast %96 : vector<1x9x12x1xf32> to vector<9x12x1xf32>
    %c2_65 = arith.constant 2 : index
    %c0_66 = arith.constant 0 : index
    %98 = vector.load %arg5[%c2_65, %c0_66] : memref<9x16xf32, #tpu.memory_space<vmem>>, vector<1x16xf32>
    %99 = vector.shape_cast %98 : vector<1x16xf32> to vector<1x1x16xf32>
    %100 = vector.broadcast %97 : vector<9x12x1xf32> to vector<9x12x16xf32>
    %101 = vector.broadcast %99 : vector<1x1x16xf32> to vector<9x12x16xf32>
    %102 = arith.mulf %100, %101 : vector<9x12x16xf32>
    %103 = arith.addf %95, %102 : vector<9x12x16xf32>
    %c0_67 = arith.constant 0 : index
    %c0_68 = arith.constant 0 : index
    %c0_69 = arith.constant 0 : index
    %c0_70 = arith.constant 0 : index
    %104 = vector.load %arg4[%c0_67, %c0_68, %c0_69, %c0_70] : memref<1x10x13x1xf32, #tpu.memory_space<vmem>>, vector<1x9x12x1xf32>
    %105 = vector.shape_cast %104 : vector<1x9x12x1xf32> to vector<9x12x1xf32>
    %c3_71 = arith.constant 3 : index
    %c0_72 = arith.constant 0 : index
    %106 = vector.load %arg5[%c3_71, %c0_72] : memref<9x16xf32, #tpu.memory_space<vmem>>, vector<1x16xf32>
    %107 = vector.shape_cast %106 : vector<1x16xf32> to vector<1x1x16xf32>
    %108 = vector.broadcast %105 : vector<9x12x1xf32> to vector<9x12x16xf32>
    %109 = vector.broadcast %107 : vector<1x1x16xf32> to vector<9x12x16xf32>
    %110 = arith.mulf %108, %109 : vector<9x12x16xf32>
    %111 = arith.addf %103, %110 : vector<9x12x16xf32>
    %c0_73 = arith.constant 0 : index
    %c0_74 = arith.constant 0 : index
    %c1_75 = arith.constant 1 : index
    %c0_76 = arith.constant 0 : index
    %112 = vector.load %arg3[%c0_73, %c0_74, %c1_75, %c0_76] : memref<1x10x13x1xf32, #tpu.memory_space<vmem>>, vector<1x9x12x1xf32>
    %113 = vector.shape_cast %112 : vector<1x9x12x1xf32> to vector<9x12x1xf32>
    %c4_77 = arith.constant 4 : index
    %c0_78 = arith.constant 0 : index
    %114 = vector.load %arg5[%c4_77, %c0_78] : memref<9x16xf32, #tpu.memory_space<vmem>>, vector<1x16xf32>
    %115 = vector.shape_cast %114 : vector<1x16xf32> to vector<1x1x16xf32>
    %116 = vector.broadcast %113 : vector<9x12x1xf32> to vector<9x12x16xf32>
    %117 = vector.broadcast %115 : vector<1x1x16xf32> to vector<9x12x16xf32>
    %118 = arith.mulf %116, %117 : vector<9x12x16xf32>
    %119 = arith.addf %111, %118 : vector<9x12x16xf32>
    %c0_79 = arith.constant 0 : index
    %c0_80 = arith.constant 0 : index
    %c1_81 = arith.constant 1 : index
    %c0_82 = arith.constant 0 : index
    %120 = vector.load %arg4[%c0_79, %c0_80, %c1_81, %c0_82] : memref<1x10x13x1xf32, #tpu.memory_space<vmem>>, vector<1x9x12x1xf32>
    %121 = vector.shape_cast %120 : vector<1x9x12x1xf32> to vector<9x12x1xf32>
    %c5_83 = arith.constant 5 : index
    %c0_84 = arith.constant 0 : index
    %122 = vector.load %arg5[%c5_83, %c0_84] : memref<9x16xf32, #tpu.memory_space<vmem>>, vector<1x16xf32>
    %123 = vector.shape_cast %122 : vector<1x16xf32> to vector<1x1x16xf32>
    %124 = vector.broadcast %121 : vector<9x12x1xf32> to vector<9x12x16xf32>
    %125 = vector.broadcast %123 : vector<1x1x16xf32> to vector<9x12x16xf32>
    %126 = arith.mulf %124, %125 : vector<9x12x16xf32>
    %127 = arith.addf %119, %126 : vector<9x12x16xf32>
    %c0_85 = arith.constant 0 : index
    %c1_86 = arith.constant 1 : index
    %c0_87 = arith.constant 0 : index
    %c0_88 = arith.constant 0 : index
    %128 = vector.load %arg2[%c0_85, %c1_86, %c0_87, %c0_88] : memref<1x10x13x1xf32, #tpu.memory_space<vmem>>, vector<1x9x12x1xf32>
    %129 = vector.shape_cast %128 : vector<1x9x12x1xf32> to vector<9x12x1xf32>
    %c6_89 = arith.constant 6 : index
    %c0_90 = arith.constant 0 : index
    %130 = vector.load %arg5[%c6_89, %c0_90] : memref<9x16xf32, #tpu.memory_space<vmem>>, vector<1x16xf32>
    %131 = vector.shape_cast %130 : vector<1x16xf32> to vector<1x1x16xf32>
    %132 = vector.broadcast %129 : vector<9x12x1xf32> to vector<9x12x16xf32>
    %133 = vector.broadcast %131 : vector<1x1x16xf32> to vector<9x12x16xf32>
    %134 = arith.mulf %132, %133 : vector<9x12x16xf32>
    %135 = arith.addf %127, %134 : vector<9x12x16xf32>
    %c0_91 = arith.constant 0 : index
    %c1_92 = arith.constant 1 : index
    %c1_93 = arith.constant 1 : index
    %c0_94 = arith.constant 0 : index
    %136 = vector.load %arg1[%c0_91, %c1_92, %c1_93, %c0_94] : memref<1x10x13x1xf32, #tpu.memory_space<vmem>>, vector<1x9x12x1xf32>
    %137 = vector.shape_cast %136 : vector<1x9x12x1xf32> to vector<9x12x1xf32>
    %c7_95 = arith.constant 7 : index
    %c0_96 = arith.constant 0 : index
    %138 = vector.load %arg5[%c7_95, %c0_96] : memref<9x16xf32, #tpu.memory_space<vmem>>, vector<1x16xf32>
    %139 = vector.shape_cast %138 : vector<1x16xf32> to vector<1x1x16xf32>
    %140 = vector.broadcast %137 : vector<9x12x1xf32> to vector<9x12x16xf32>
    %141 = vector.broadcast %139 : vector<1x1x16xf32> to vector<9x12x16xf32>
    %142 = arith.mulf %140, %141 : vector<9x12x16xf32>
    %143 = arith.addf %135, %142 : vector<9x12x16xf32>
    %c0_97 = arith.constant 0 : index
    %c1_98 = arith.constant 1 : index
    %c1_99 = arith.constant 1 : index
    %c0_100 = arith.constant 0 : index
    %144 = vector.load %arg2[%c0_97, %c1_98, %c1_99, %c0_100] : memref<1x10x13x1xf32, #tpu.memory_space<vmem>>, vector<1x9x12x1xf32>
    %145 = vector.shape_cast %144 : vector<1x9x12x1xf32> to vector<9x12x1xf32>
    %c8_101 = arith.constant 8 : index
    %c0_102 = arith.constant 0 : index
    %146 = vector.load %arg5[%c8_101, %c0_102] : memref<9x16xf32, #tpu.memory_space<vmem>>, vector<1x16xf32>
    %147 = vector.shape_cast %146 : vector<1x16xf32> to vector<1x1x16xf32>
    %148 = vector.broadcast %145 : vector<9x12x1xf32> to vector<9x12x16xf32>
    %149 = vector.broadcast %147 : vector<1x1x16xf32> to vector<9x12x16xf32>
    %150 = arith.mulf %148, %149 : vector<9x12x16xf32>
    %151 = arith.addf %143, %150 : vector<9x12x16xf32>
    %152 = vector.shape_cast %0 : vector<1x16xf32> to vector<1x1x16xf32>
    %153 = vector.broadcast %152 : vector<1x1x16xf32> to vector<9x12x16xf32>
    %154 = arith.addf %151, %153 : vector<9x12x16xf32>
    %cst_103 = arith.constant 0.000000e+00 : f32
    %155 = vector.broadcast %cst_103 : f32 to vector<9x12x16xf32>
    %156 = arith.maximumf %154, %155 : vector<9x12x16xf32>
    %cst_104 = arith.constant 0.000000e+00 : f32
    %157 = vector.broadcast %cst_104 : f32 to vector<9x12x16xf32>
    %c0_105 = arith.constant 0 : index
    %c0_106 = arith.constant 0 : index
    %c0_107 = arith.constant 0 : index
    %c0_108 = arith.constant 0 : index
    %158 = vector.load %arg3[%c0_105, %c0_106, %c0_107, %c0_108] : memref<1x10x13x1xf32, #tpu.memory_space<vmem>>, vector<1x9x12x1xf32>
    %159 = vector.shape_cast %158 : vector<1x9x12x1xf32> to vector<9x12x1xf32>
    %c0_109 = arith.constant 0 : index
    %c0_110 = arith.constant 0 : index
    %160 = vector.load %arg5[%c0_109, %c0_110] : memref<9x16xf32, #tpu.memory_space<vmem>>, vector<1x16xf32>
    %161 = vector.shape_cast %160 : vector<1x16xf32> to vector<1x1x16xf32>
    %162 = vector.broadcast %159 : vector<9x12x1xf32> to vector<9x12x16xf32>
    %163 = vector.broadcast %161 : vector<1x1x16xf32> to vector<9x12x16xf32>
    %164 = arith.mulf %162, %163 : vector<9x12x16xf32>
    %165 = arith.addf %157, %164 : vector<9x12x16xf32>
    %c0_111 = arith.constant 0 : index
    %c0_112 = arith.constant 0 : index
    %c0_113 = arith.constant 0 : index
    %c0_114 = arith.constant 0 : index
    %166 = vector.load %arg4[%c0_111, %c0_112, %c0_113, %c0_114] : memref<1x10x13x1xf32, #tpu.memory_space<vmem>>, vector<1x9x12x1xf32>
    %167 = vector.shape_cast %166 : vector<1x9x12x1xf32> to vector<9x12x1xf32>
    %c1_115 = arith.constant 1 : index
    %c0_116 = arith.constant 0 : index
    %168 = vector.load %arg5[%c1_115, %c0_116] : memref<9x16xf32, #tpu.memory_space<vmem>>, vector<1x16xf32>
    %169 = vector.shape_cast %168 : vector<1x16xf32> to vector<1x1x16xf32>
    %170 = vector.broadcast %167 : vector<9x12x1xf32> to vector<9x12x16xf32>
    %171 = vector.broadcast %169 : vector<1x1x16xf32> to vector<9x12x16xf32>
    %172 = arith.mulf %170, %171 : vector<9x12x16xf32>
    %173 = arith.addf %165, %172 : vector<9x12x16xf32>
    %c0_117 = arith.constant 0 : index
    %c0_118 = arith.constant 0 : index
    %c1_119 = arith.constant 1 : index
    %c0_120 = arith.constant 0 : index
    %174 = vector.load %arg3[%c0_117, %c0_118, %c1_119, %c0_120] : memref<1x10x13x1xf32, #tpu.memory_space<vmem>>, vector<1x9x12x1xf32>
    %175 = vector.shape_cast %174 : vector<1x9x12x1xf32> to vector<9x12x1xf32>
    %c2_121 = arith.constant 2 : index
    %c0_122 = arith.constant 0 : index
    %176 = vector.load %arg5[%c2_121, %c0_122] : memref<9x16xf32, #tpu.memory_space<vmem>>, vector<1x16xf32>
    %177 = vector.shape_cast %176 : vector<1x16xf32> to vector<1x1x16xf32>
    %178 = vector.broadcast %175 : vector<9x12x1xf32> to vector<9x12x16xf32>
    %179 = vector.broadcast %177 : vector<1x1x16xf32> to vector<9x12x16xf32>
    %180 = arith.mulf %178, %179 : vector<9x12x16xf32>
    %181 = arith.addf %173, %180 : vector<9x12x16xf32>
    %c0_123 = arith.constant 0 : index
    %c1_124 = arith.constant 1 : index
    %c0_125 = arith.constant 0 : index
    %c0_126 = arith.constant 0 : index
    %182 = vector.load %arg1[%c0_123, %c1_124, %c0_125, %c0_126] : memref<1x10x13x1xf32, #tpu.memory_space<vmem>>, vector<1x9x12x1xf32>
    %183 = vector.shape_cast %182 : vector<1x9x12x1xf32> to vector<9x12x1xf32>
    %c3_127 = arith.constant 3 : index
    %c0_128 = arith.constant 0 : index
    %184 = vector.load %arg5[%c3_127, %c0_128] : memref<9x16xf32, #tpu.memory_space<vmem>>, vector<1x16xf32>
    %185 = vector.shape_cast %184 : vector<1x16xf32> to vector<1x1x16xf32>
    %186 = vector.broadcast %183 : vector<9x12x1xf32> to vector<9x12x16xf32>
    %187 = vector.broadcast %185 : vector<1x1x16xf32> to vector<9x12x16xf32>
    %188 = arith.mulf %186, %187 : vector<9x12x16xf32>
    %189 = arith.addf %181, %188 : vector<9x12x16xf32>
    %c0_129 = arith.constant 0 : index
    %c1_130 = arith.constant 1 : index
    %c0_131 = arith.constant 0 : index
    %c0_132 = arith.constant 0 : index
    %190 = vector.load %arg2[%c0_129, %c1_130, %c0_131, %c0_132] : memref<1x10x13x1xf32, #tpu.memory_space<vmem>>, vector<1x9x12x1xf32>
    %191 = vector.shape_cast %190 : vector<1x9x12x1xf32> to vector<9x12x1xf32>
    %c4_133 = arith.constant 4 : index
    %c0_134 = arith.constant 0 : index
    %192 = vector.load %arg5[%c4_133, %c0_134] : memref<9x16xf32, #tpu.memory_space<vmem>>, vector<1x16xf32>
    %193 = vector.shape_cast %192 : vector<1x16xf32> to vector<1x1x16xf32>
    %194 = vector.broadcast %191 : vector<9x12x1xf32> to vector<9x12x16xf32>
    %195 = vector.broadcast %193 : vector<1x1x16xf32> to vector<9x12x16xf32>
    %196 = arith.mulf %194, %195 : vector<9x12x16xf32>
    %197 = arith.addf %189, %196 : vector<9x12x16xf32>
    %c0_135 = arith.constant 0 : index
    %c1_136 = arith.constant 1 : index
    %c1_137 = arith.constant 1 : index
    %c0_138 = arith.constant 0 : index
    %198 = vector.load %arg1[%c0_135, %c1_136, %c1_137, %c0_138] : memref<1x10x13x1xf32, #tpu.memory_space<vmem>>, vector<1x9x12x1xf32>
    %199 = vector.shape_cast %198 : vector<1x9x12x1xf32> to vector<9x12x1xf32>
    %c5_139 = arith.constant 5 : index
    %c0_140 = arith.constant 0 : index
    %200 = vector.load %arg5[%c5_139, %c0_140] : memref<9x16xf32, #tpu.memory_space<vmem>>, vector<1x16xf32>
    %201 = vector.shape_cast %200 : vector<1x16xf32> to vector<1x1x16xf32>
    %202 = vector.broadcast %199 : vector<9x12x1xf32> to vector<9x12x16xf32>
    %203 = vector.broadcast %201 : vector<1x1x16xf32> to vector<9x12x16xf32>
    %204 = arith.mulf %202, %203 : vector<9x12x16xf32>
    %205 = arith.addf %197, %204 : vector<9x12x16xf32>
    %c0_141 = arith.constant 0 : index
    %c1_142 = arith.constant 1 : index
    %c0_143 = arith.constant 0 : index
    %c0_144 = arith.constant 0 : index
    %206 = vector.load %arg3[%c0_141, %c1_142, %c0_143, %c0_144] : memref<1x10x13x1xf32, #tpu.memory_space<vmem>>, vector<1x9x12x1xf32>
    %207 = vector.shape_cast %206 : vector<1x9x12x1xf32> to vector<9x12x1xf32>
    %c6_145 = arith.constant 6 : index
    %c0_146 = arith.constant 0 : index
    %208 = vector.load %arg5[%c6_145, %c0_146] : memref<9x16xf32, #tpu.memory_space<vmem>>, vector<1x16xf32>
    %209 = vector.shape_cast %208 : vector<1x16xf32> to vector<1x1x16xf32>
    %210 = vector.broadcast %207 : vector<9x12x1xf32> to vector<9x12x16xf32>
    %211 = vector.broadcast %209 : vector<1x1x16xf32> to vector<9x12x16xf32>
    %212 = arith.mulf %210, %211 : vector<9x12x16xf32>
    %213 = arith.addf %205, %212 : vector<9x12x16xf32>
    %c0_147 = arith.constant 0 : index
    %c1_148 = arith.constant 1 : index
    %c0_149 = arith.constant 0 : index
    %c0_150 = arith.constant 0 : index
    %214 = vector.load %arg4[%c0_147, %c1_148, %c0_149, %c0_150] : memref<1x10x13x1xf32, #tpu.memory_space<vmem>>, vector<1x9x12x1xf32>
    %215 = vector.shape_cast %214 : vector<1x9x12x1xf32> to vector<9x12x1xf32>
    %c7_151 = arith.constant 7 : index
    %c0_152 = arith.constant 0 : index
    %216 = vector.load %arg5[%c7_151, %c0_152] : memref<9x16xf32, #tpu.memory_space<vmem>>, vector<1x16xf32>
    %217 = vector.shape_cast %216 : vector<1x16xf32> to vector<1x1x16xf32>
    %218 = vector.broadcast %215 : vector<9x12x1xf32> to vector<9x12x16xf32>
    %219 = vector.broadcast %217 : vector<1x1x16xf32> to vector<9x12x16xf32>
    %220 = arith.mulf %218, %219 : vector<9x12x16xf32>
    %221 = arith.addf %213, %220 : vector<9x12x16xf32>
    %c0_153 = arith.constant 0 : index
    %c1_154 = arith.constant 1 : index
    %c1_155 = arith.constant 1 : index
    %c0_156 = arith.constant 0 : index
    %222 = vector.load %arg3[%c0_153, %c1_154, %c1_155, %c0_156] : memref<1x10x13x1xf32, #tpu.memory_space<vmem>>, vector<1x9x12x1xf32>
    %223 = vector.shape_cast %222 : vector<1x9x12x1xf32> to vector<9x12x1xf32>
    %c8_157 = arith.constant 8 : index
    %c0_158 = arith.constant 0 : index
    %224 = vector.load %arg5[%c8_157, %c0_158] : memref<9x16xf32, #tpu.memory_space<vmem>>, vector<1x16xf32>
    %225 = vector.shape_cast %224 : vector<1x16xf32> to vector<1x1x16xf32>
    %226 = vector.broadcast %223 : vector<9x12x1xf32> to vector<9x12x16xf32>
    %227 = vector.broadcast %225 : vector<1x1x16xf32> to vector<9x12x16xf32>
    %228 = arith.mulf %226, %227 : vector<9x12x16xf32>
    %229 = arith.addf %221, %228 : vector<9x12x16xf32>
    %230 = vector.shape_cast %0 : vector<1x16xf32> to vector<1x1x16xf32>
    %231 = vector.broadcast %230 : vector<1x1x16xf32> to vector<9x12x16xf32>
    %232 = arith.addf %229, %231 : vector<9x12x16xf32>
    %cst_159 = arith.constant 0.000000e+00 : f32
    %233 = vector.broadcast %cst_159 : f32 to vector<9x12x16xf32>
    %234 = arith.maximumf %232, %233 : vector<9x12x16xf32>
    %cst_160 = arith.constant 0.000000e+00 : f32
    %235 = vector.broadcast %cst_160 : f32 to vector<9x12x16xf32>
    %c0_161 = arith.constant 0 : index
    %c0_162 = arith.constant 0 : index
    %c0_163 = arith.constant 0 : index
    %c0_164 = arith.constant 0 : index
    %236 = vector.load %arg4[%c0_161, %c0_162, %c0_163, %c0_164] : memref<1x10x13x1xf32, #tpu.memory_space<vmem>>, vector<1x9x12x1xf32>
    %237 = vector.shape_cast %236 : vector<1x9x12x1xf32> to vector<9x12x1xf32>
    %c0_165 = arith.constant 0 : index
    %c0_166 = arith.constant 0 : index
    %238 = vector.load %arg5[%c0_165, %c0_166] : memref<9x16xf32, #tpu.memory_space<vmem>>, vector<1x16xf32>
    %239 = vector.shape_cast %238 : vector<1x16xf32> to vector<1x1x16xf32>
    %240 = vector.broadcast %237 : vector<9x12x1xf32> to vector<9x12x16xf32>
    %241 = vector.broadcast %239 : vector<1x1x16xf32> to vector<9x12x16xf32>
    %242 = arith.mulf %240, %241 : vector<9x12x16xf32>
    %243 = arith.addf %235, %242 : vector<9x12x16xf32>
    %c0_167 = arith.constant 0 : index
    %c0_168 = arith.constant 0 : index
    %c1_169 = arith.constant 1 : index
    %c0_170 = arith.constant 0 : index
    %244 = vector.load %arg3[%c0_167, %c0_168, %c1_169, %c0_170] : memref<1x10x13x1xf32, #tpu.memory_space<vmem>>, vector<1x9x12x1xf32>
    %245 = vector.shape_cast %244 : vector<1x9x12x1xf32> to vector<9x12x1xf32>
    %c1_171 = arith.constant 1 : index
    %c0_172 = arith.constant 0 : index
    %246 = vector.load %arg5[%c1_171, %c0_172] : memref<9x16xf32, #tpu.memory_space<vmem>>, vector<1x16xf32>
    %247 = vector.shape_cast %246 : vector<1x16xf32> to vector<1x1x16xf32>
    %248 = vector.broadcast %245 : vector<9x12x1xf32> to vector<9x12x16xf32>
    %249 = vector.broadcast %247 : vector<1x1x16xf32> to vector<9x12x16xf32>
    %250 = arith.mulf %248, %249 : vector<9x12x16xf32>
    %251 = arith.addf %243, %250 : vector<9x12x16xf32>
    %c0_173 = arith.constant 0 : index
    %c0_174 = arith.constant 0 : index
    %c1_175 = arith.constant 1 : index
    %c0_176 = arith.constant 0 : index
    %252 = vector.load %arg4[%c0_173, %c0_174, %c1_175, %c0_176] : memref<1x10x13x1xf32, #tpu.memory_space<vmem>>, vector<1x9x12x1xf32>
    %253 = vector.shape_cast %252 : vector<1x9x12x1xf32> to vector<9x12x1xf32>
    %c2_177 = arith.constant 2 : index
    %c0_178 = arith.constant 0 : index
    %254 = vector.load %arg5[%c2_177, %c0_178] : memref<9x16xf32, #tpu.memory_space<vmem>>, vector<1x16xf32>
    %255 = vector.shape_cast %254 : vector<1x16xf32> to vector<1x1x16xf32>
    %256 = vector.broadcast %253 : vector<9x12x1xf32> to vector<9x12x16xf32>
    %257 = vector.broadcast %255 : vector<1x1x16xf32> to vector<9x12x16xf32>
    %258 = arith.mulf %256, %257 : vector<9x12x16xf32>
    %259 = arith.addf %251, %258 : vector<9x12x16xf32>
    %c0_179 = arith.constant 0 : index
    %c1_180 = arith.constant 1 : index
    %c0_181 = arith.constant 0 : index
    %c0_182 = arith.constant 0 : index
    %260 = vector.load %arg2[%c0_179, %c1_180, %c0_181, %c0_182] : memref<1x10x13x1xf32, #tpu.memory_space<vmem>>, vector<1x9x12x1xf32>
    %261 = vector.shape_cast %260 : vector<1x9x12x1xf32> to vector<9x12x1xf32>
    %c3_183 = arith.constant 3 : index
    %c0_184 = arith.constant 0 : index
    %262 = vector.load %arg5[%c3_183, %c0_184] : memref<9x16xf32, #tpu.memory_space<vmem>>, vector<1x16xf32>
    %263 = vector.shape_cast %262 : vector<1x16xf32> to vector<1x1x16xf32>
    %264 = vector.broadcast %261 : vector<9x12x1xf32> to vector<9x12x16xf32>
    %265 = vector.broadcast %263 : vector<1x1x16xf32> to vector<9x12x16xf32>
    %266 = arith.mulf %264, %265 : vector<9x12x16xf32>
    %267 = arith.addf %259, %266 : vector<9x12x16xf32>
    %c0_185 = arith.constant 0 : index
    %c1_186 = arith.constant 1 : index
    %c1_187 = arith.constant 1 : index
    %c0_188 = arith.constant 0 : index
    %268 = vector.load %arg1[%c0_185, %c1_186, %c1_187, %c0_188] : memref<1x10x13x1xf32, #tpu.memory_space<vmem>>, vector<1x9x12x1xf32>
    %269 = vector.shape_cast %268 : vector<1x9x12x1xf32> to vector<9x12x1xf32>
    %c4_189 = arith.constant 4 : index
    %c0_190 = arith.constant 0 : index
    %270 = vector.load %arg5[%c4_189, %c0_190] : memref<9x16xf32, #tpu.memory_space<vmem>>, vector<1x16xf32>
    %271 = vector.shape_cast %270 : vector<1x16xf32> to vector<1x1x16xf32>
    %272 = vector.broadcast %269 : vector<9x12x1xf32> to vector<9x12x16xf32>
    %273 = vector.broadcast %271 : vector<1x1x16xf32> to vector<9x12x16xf32>
    %274 = arith.mulf %272, %273 : vector<9x12x16xf32>
    %275 = arith.addf %267, %274 : vector<9x12x16xf32>
    %c0_191 = arith.constant 0 : index
    %c1_192 = arith.constant 1 : index
    %c1_193 = arith.constant 1 : index
    %c0_194 = arith.constant 0 : index
    %276 = vector.load %arg2[%c0_191, %c1_192, %c1_193, %c0_194] : memref<1x10x13x1xf32, #tpu.memory_space<vmem>>, vector<1x9x12x1xf32>
    %277 = vector.shape_cast %276 : vector<1x9x12x1xf32> to vector<9x12x1xf32>
    %c5_195 = arith.constant 5 : index
    %c0_196 = arith.constant 0 : index
    %278 = vector.load %arg5[%c5_195, %c0_196] : memref<9x16xf32, #tpu.memory_space<vmem>>, vector<1x16xf32>
    %279 = vector.shape_cast %278 : vector<1x16xf32> to vector<1x1x16xf32>
    %280 = vector.broadcast %277 : vector<9x12x1xf32> to vector<9x12x16xf32>
    %281 = vector.broadcast %279 : vector<1x1x16xf32> to vector<9x12x16xf32>
    %282 = arith.mulf %280, %281 : vector<9x12x16xf32>
    %283 = arith.addf %275, %282 : vector<9x12x16xf32>
    %c0_197 = arith.constant 0 : index
    %c1_198 = arith.constant 1 : index
    %c0_199 = arith.constant 0 : index
    %c0_200 = arith.constant 0 : index
    %284 = vector.load %arg4[%c0_197, %c1_198, %c0_199, %c0_200] : memref<1x10x13x1xf32, #tpu.memory_space<vmem>>, vector<1x9x12x1xf32>
    %285 = vector.shape_cast %284 : vector<1x9x12x1xf32> to vector<9x12x1xf32>
    %c6_201 = arith.constant 6 : index
    %c0_202 = arith.constant 0 : index
    %286 = vector.load %arg5[%c6_201, %c0_202] : memref<9x16xf32, #tpu.memory_space<vmem>>, vector<1x16xf32>
    %287 = vector.shape_cast %286 : vector<1x16xf32> to vector<1x1x16xf32>
    %288 = vector.broadcast %285 : vector<9x12x1xf32> to vector<9x12x16xf32>
    %289 = vector.broadcast %287 : vector<1x1x16xf32> to vector<9x12x16xf32>
    %290 = arith.mulf %288, %289 : vector<9x12x16xf32>
    %291 = arith.addf %283, %290 : vector<9x12x16xf32>
    %c0_203 = arith.constant 0 : index
    %c1_204 = arith.constant 1 : index
    %c1_205 = arith.constant 1 : index
    %c0_206 = arith.constant 0 : index
    %292 = vector.load %arg3[%c0_203, %c1_204, %c1_205, %c0_206] : memref<1x10x13x1xf32, #tpu.memory_space<vmem>>, vector<1x9x12x1xf32>
    %293 = vector.shape_cast %292 : vector<1x9x12x1xf32> to vector<9x12x1xf32>
    %c7_207 = arith.constant 7 : index
    %c0_208 = arith.constant 0 : index
    %294 = vector.load %arg5[%c7_207, %c0_208] : memref<9x16xf32, #tpu.memory_space<vmem>>, vector<1x16xf32>
    %295 = vector.shape_cast %294 : vector<1x16xf32> to vector<1x1x16xf32>
    %296 = vector.broadcast %293 : vector<9x12x1xf32> to vector<9x12x16xf32>
    %297 = vector.broadcast %295 : vector<1x1x16xf32> to vector<9x12x16xf32>
    %298 = arith.mulf %296, %297 : vector<9x12x16xf32>
    %299 = arith.addf %291, %298 : vector<9x12x16xf32>
    %c0_209 = arith.constant 0 : index
    %c1_210 = arith.constant 1 : index
    %c1_211 = arith.constant 1 : index
    %c0_212 = arith.constant 0 : index
    %300 = vector.load %arg4[%c0_209, %c1_210, %c1_211, %c0_212] : memref<1x10x13x1xf32, #tpu.memory_space<vmem>>, vector<1x9x12x1xf32>
    %301 = vector.shape_cast %300 : vector<1x9x12x1xf32> to vector<9x12x1xf32>
    %c8_213 = arith.constant 8 : index
    %c0_214 = arith.constant 0 : index
    %302 = vector.load %arg5[%c8_213, %c0_214] : memref<9x16xf32, #tpu.memory_space<vmem>>, vector<1x16xf32>
    %303 = vector.shape_cast %302 : vector<1x16xf32> to vector<1x1x16xf32>
    %304 = vector.broadcast %301 : vector<9x12x1xf32> to vector<9x12x16xf32>
    %305 = vector.broadcast %303 : vector<1x1x16xf32> to vector<9x12x16xf32>
    %306 = arith.mulf %304, %305 : vector<9x12x16xf32>
    %307 = arith.addf %299, %306 : vector<9x12x16xf32>
    %308 = vector.shape_cast %0 : vector<1x16xf32> to vector<1x1x16xf32>
    %309 = vector.broadcast %308 : vector<1x1x16xf32> to vector<9x12x16xf32>
    %310 = arith.addf %307, %309 : vector<9x12x16xf32>
    %cst_215 = arith.constant 0.000000e+00 : f32
    %311 = vector.broadcast %cst_215 : f32 to vector<9x12x16xf32>
    %312 = arith.maximumf %310, %311 : vector<9x12x16xf32>
    %313 = vector.extract_strided_slice %78 {offsets = [0, 0, 0], sizes = [8, 11, 16], strides = [1, 1, 1]} : vector<9x12x16xf32> to vector<8x11x16xf32>
    %314 = arith.truncf %313 : vector<8x11x16xf32> to vector<8x11x16xbf16>
    %c0_216 = arith.constant 0 : index
    %c0_217 = arith.constant 0 : index
    %c0_218 = arith.constant 0 : index
    %315 = vector.load %arg18[%c0_216, %c0_217, %c0_218] : memref<8x11x144xbf16, #tpu.memory_space<vmem>>, vector<8x11x16xbf16>
    tpu.vector_store %arg18[%c0_216, %c0_217, %c0_218], %314 {strides = array<i32>} : memref<8x11x144xbf16, #tpu.memory_space<vmem>>, vector<8x11x16xbf16>,
    %316 = vector.extract_strided_slice %156 {offsets = [0, 0, 0], sizes = [8, 11, 16], strides = [1, 1, 1]} : vector<9x12x16xf32> to vector<8x11x16xf32>
    %317 = arith.truncf %316 : vector<8x11x16xf32> to vector<8x11x16xbf16>
    %c0_219 = arith.constant 0 : index
    %c0_220 = arith.constant 0 : index
    %c16 = arith.constant 16 : index
    %318 = vector.load %arg18[%c0_219, %c0_220, %c16] : memref<8x11x144xbf16, #tpu.memory_space<vmem>>, vector<8x11x16xbf16>
    tpu.vector_store %arg18[%c0_219, %c0_220, %c16], %317 {strides = array<i32>} : memref<8x11x144xbf16, #tpu.memory_space<vmem>>, vector<8x11x16xbf16>,
    %319 = vector.extract_strided_slice %78 {offsets = [0, 1, 0], sizes = [8, 11, 16], strides = [1, 1, 1]} : vector<9x12x16xf32> to vector<8x11x16xf32>
    %320 = arith.truncf %319 : vector<8x11x16xf32> to vector<8x11x16xbf16>
    %c0_221 = arith.constant 0 : index
    %c0_222 = arith.constant 0 : index
    %c32 = arith.constant 32 : index
    %321 = vector.load %arg18[%c0_221, %c0_222, %c32] : memref<8x11x144xbf16, #tpu.memory_space<vmem>>, vector<8x11x16xbf16>
    tpu.vector_store %arg18[%c0_221, %c0_222, %c32], %320 {strides = array<i32>} : memref<8x11x144xbf16, #tpu.memory_space<vmem>>, vector<8x11x16xbf16>,
    %322 = vector.extract_strided_slice %234 {offsets = [0, 0, 0], sizes = [8, 11, 16], strides = [1, 1, 1]} : vector<9x12x16xf32> to vector<8x11x16xf32>
    %323 = arith.truncf %322 : vector<8x11x16xf32> to vector<8x11x16xbf16>
    %c0_223 = arith.constant 0 : index
    %c0_224 = arith.constant 0 : index
    %c48 = arith.constant 48 : index
    %324 = vector.load %arg18[%c0_223, %c0_224, %c48] : memref<8x11x144xbf16, #tpu.memory_space<vmem>>, vector<8x11x16xbf16>
    tpu.vector_store %arg18[%c0_223, %c0_224, %c48], %323 {strides = array<i32>} : memref<8x11x144xbf16, #tpu.memory_space<vmem>>, vector<8x11x16xbf16>,
    %325 = vector.extract_strided_slice %312 {offsets = [0, 0, 0], sizes = [8, 11, 16], strides = [1, 1, 1]} : vector<9x12x16xf32> to vector<8x11x16xf32>
    %326 = arith.truncf %325 : vector<8x11x16xf32> to vector<8x11x16xbf16>
    %c0_225 = arith.constant 0 : index
    %c0_226 = arith.constant 0 : index
    %c64 = arith.constant 64 : index
    %327 = vector.load %arg18[%c0_225, %c0_226, %c64] : memref<8x11x144xbf16, #tpu.memory_space<vmem>>, vector<8x11x16xbf16>
    tpu.vector_store %arg18[%c0_225, %c0_226, %c64], %326 {strides = array<i32>} : memref<8x11x144xbf16, #tpu.memory_space<vmem>>, vector<8x11x16xbf16>,
    %328 = vector.extract_strided_slice %234 {offsets = [0, 1, 0], sizes = [8, 11, 16], strides = [1, 1, 1]} : vector<9x12x16xf32> to vector<8x11x16xf32>
    %329 = arith.truncf %328 : vector<8x11x16xf32> to vector<8x11x16xbf16>
    %c0_227 = arith.constant 0 : index
    %c0_228 = arith.constant 0 : index
    %c80 = arith.constant 80 : index
    %330 = vector.load %arg18[%c0_227, %c0_228, %c80] : memref<8x11x144xbf16, #tpu.memory_space<vmem>>, vector<8x11x16xbf16>
    tpu.vector_store %arg18[%c0_227, %c0_228, %c80], %329 {strides = array<i32>} : memref<8x11x144xbf16, #tpu.memory_space<vmem>>, vector<8x11x16xbf16>,
    %331 = vector.extract_strided_slice %78 {offsets = [1, 0, 0], sizes = [8, 11, 16], strides = [1, 1, 1]} : vector<9x12x16xf32> to vector<8x11x16xf32>
    %332 = arith.truncf %331 : vector<8x11x16xf32> to vector<8x11x16xbf16>
    %c0_229 = arith.constant 0 : index
    %c0_230 = arith.constant 0 : index
    %c96 = arith.constant 96 : index
    %333 = vector.load %arg18[%c0_229, %c0_230, %c96] : memref<8x11x144xbf16, #tpu.memory_space<vmem>>, vector<8x11x16xbf16>
    tpu.vector_store %arg18[%c0_229, %c0_230, %c96], %332 {strides = array<i32>} : memref<8x11x144xbf16, #tpu.memory_space<vmem>>, vector<8x11x16xbf16>,
    %334 = vector.extract_strided_slice %156 {offsets = [1, 0, 0], sizes = [8, 11, 16], strides = [1, 1, 1]} : vector<9x12x16xf32> to vector<8x11x16xf32>
    %335 = arith.truncf %334 : vector<8x11x16xf32> to vector<8x11x16xbf16>
    %c0_231 = arith.constant 0 : index
    %c0_232 = arith.constant 0 : index
    %c112 = arith.constant 112 : index
    %336 = vector.load %arg18[%c0_231, %c0_232, %c112] : memref<8x11x144xbf16, #tpu.memory_space<vmem>>, vector<8x11x16xbf16>
    tpu.vector_store %arg18[%c0_231, %c0_232, %c112], %335 {strides = array<i32>} : memref<8x11x144xbf16, #tpu.memory_space<vmem>>, vector<8x11x16xbf16>,
    %337 = vector.extract_strided_slice %78 {offsets = [1, 1, 0], sizes = [8, 11, 16], strides = [1, 1, 1]} : vector<9x12x16xf32> to vector<8x11x16xf32>
    %338 = arith.truncf %337 : vector<8x11x16xf32> to vector<8x11x16xbf16>
    %c0_233 = arith.constant 0 : index
    %c0_234 = arith.constant 0 : index
    %c128 = arith.constant 128 : index
    %339 = vector.load %arg18[%c0_233, %c0_234, %c128] : memref<8x11x144xbf16, #tpu.memory_space<vmem>>, vector<8x11x16xbf16>
    tpu.vector_store %arg18[%c0_233, %c0_234, %c128], %338 {strides = array<i32>} : memref<8x11x144xbf16, #tpu.memory_space<vmem>>, vector<8x11x16xbf16>,
    %c0_235 = arith.constant 0 : index
    %c0_236 = arith.constant 0 : index
    %340 = vector.load %arg7[%c0_235, %c0_236] : memref<144x32xbf16, #tpu.memory_space<vmem>>, vector<144x32xbf16>
    %c0_237 = arith.constant 0 : index
    %c0_238 = arith.constant 0 : index
    %341 = vector.load %arg8[%c0_237, %c0_238] : memref<1x32xf32, #tpu.memory_space<vmem>>, vector<1x32xf32>
    %c0_239 = arith.constant 0 : index
    %c0_240 = arith.constant 0 : index
    %c0_241 = arith.constant 0 : index
    %342 = vector.load %arg18[%c0_239, %c0_240, %c0_241] : memref<8x11x144xbf16, #tpu.memory_space<vmem>>, vector<1x11x144xbf16>
    %343 = vector.shape_cast %342 : vector<1x11x144xbf16> to vector<11x144xbf16>
    %cst_242 = arith.constant dense<0.000000e+00> : vector<11x32xf32>
    %344 = tpu.matmul %343, %340, %cst_242 {dimension_numbers = #tpu.dot_dimension_numbers<[1], [0], [0], [1], [0, 0, 1, 1], [], []>} : vector<11x144xbf16>, vector<144x32xbf16>, vector<11x32xf32> -> vector<11x32xf32>
    %345 = vector.broadcast %341 : vector<1x32xf32> to vector<11x32xf32>
    %346 = arith.addf %344, %345 : vector<11x32xf32>
    %cst_243 = arith.constant 0.000000e+00 : f32
    %347 = vector.broadcast %cst_243 : f32 to vector<11x32xf32>
    %348 = arith.maximumf %346, %347 : vector<11x32xf32>
    %c0_244 = arith.constant 0 : index
    %c0_245 = arith.constant 0 : index
    %c0_246 = arith.constant 0 : index
    %349 = vector.load %arg19[%c0_244, %c0_245, %c0_246] : memref<8x11x32xf32, #tpu.memory_space<vmem>>, vector<1x11x32xf32>
    %350 = vector.shape_cast %349 : vector<1x11x32xf32> to vector<11x32xf32>
    %351 = vector.shape_cast %348 : vector<11x32xf32> to vector<1x11x32xf32>
    tpu.vector_store %arg19[%c0_244, %c0_245, %c0_246], %351 {strides = array<i32>} : memref<8x11x32xf32, #tpu.memory_space<vmem>>, vector<1x11x32xf32>,
    %c1_247 = arith.constant 1 : index
    %c0_248 = arith.constant 0 : index
    %c0_249 = arith.constant 0 : index
    %352 = vector.load %arg18[%c1_247, %c0_248, %c0_249] : memref<8x11x144xbf16, #tpu.memory_space<vmem>>, vector<1x11x144xbf16>
    %353 = vector.shape_cast %352 : vector<1x11x144xbf16> to vector<11x144xbf16>
    %cst_250 = arith.constant dense<0.000000e+00> : vector<11x32xf32>
    %354 = tpu.matmul %353, %340, %cst_250 {dimension_numbers = #tpu.dot_dimension_numbers<[1], [0], [0], [1], [0, 0, 1, 1], [], []>} : vector<11x144xbf16>, vector<144x32xbf16>, vector<11x32xf32> -> vector<11x32xf32>
    %355 = vector.broadcast %341 : vector<1x32xf32> to vector<11x32xf32>
    %356 = arith.addf %354, %355 : vector<11x32xf32>
    %cst_251 = arith.constant 0.000000e+00 : f32
    %357 = vector.broadcast %cst_251 : f32 to vector<11x32xf32>
    %358 = arith.maximumf %356, %357 : vector<11x32xf32>
    %c1_252 = arith.constant 1 : index
    %c0_253 = arith.constant 0 : index
    %c0_254 = arith.constant 0 : index
    %359 = vector.load %arg19[%c1_252, %c0_253, %c0_254] : memref<8x11x32xf32, #tpu.memory_space<vmem>>, vector<1x11x32xf32>
    %360 = vector.shape_cast %359 : vector<1x11x32xf32> to vector<11x32xf32>
    %361 = vector.shape_cast %358 : vector<11x32xf32> to vector<1x11x32xf32>
    tpu.vector_store %arg19[%c1_252, %c0_253, %c0_254], %361 {strides = array<i32>} : memref<8x11x32xf32, #tpu.memory_space<vmem>>, vector<1x11x32xf32>,
    %c2_255 = arith.constant 2 : index
    %c0_256 = arith.constant 0 : index
    %c0_257 = arith.constant 0 : index
    %362 = vector.load %arg18[%c2_255, %c0_256, %c0_257] : memref<8x11x144xbf16, #tpu.memory_space<vmem>>, vector<1x11x144xbf16>
    %363 = vector.shape_cast %362 : vector<1x11x144xbf16> to vector<11x144xbf16>
    %cst_258 = arith.constant dense<0.000000e+00> : vector<11x32xf32>
    %364 = tpu.matmul %363, %340, %cst_258 {dimension_numbers = #tpu.dot_dimension_numbers<[1], [0], [0], [1], [0, 0, 1, 1], [], []>} : vector<11x144xbf16>, vector<144x32xbf16>, vector<11x32xf32> -> vector<11x32xf32>
    %365 = vector.broadcast %341 : vector<1x32xf32> to vector<11x32xf32>
    %366 = arith.addf %364, %365 : vector<11x32xf32>
    %cst_259 = arith.constant 0.000000e+00 : f32
    %367 = vector.broadcast %cst_259 : f32 to vector<11x32xf32>
    %368 = arith.maximumf %366, %367 : vector<11x32xf32>
    %c2_260 = arith.constant 2 : index
    %c0_261 = arith.constant 0 : index
    %c0_262 = arith.constant 0 : index
    %369 = vector.load %arg19[%c2_260, %c0_261, %c0_262] : memref<8x11x32xf32, #tpu.memory_space<vmem>>, vector<1x11x32xf32>
    %370 = vector.shape_cast %369 : vector<1x11x32xf32> to vector<11x32xf32>
    %371 = vector.shape_cast %368 : vector<11x32xf32> to vector<1x11x32xf32>
    tpu.vector_store %arg19[%c2_260, %c0_261, %c0_262], %371 {strides = array<i32>} : memref<8x11x32xf32, #tpu.memory_space<vmem>>, vector<1x11x32xf32>,
    %c3_263 = arith.constant 3 : index
    %c0_264 = arith.constant 0 : index
    %c0_265 = arith.constant 0 : index
    %372 = vector.load %arg18[%c3_263, %c0_264, %c0_265] : memref<8x11x144xbf16, #tpu.memory_space<vmem>>, vector<1x11x144xbf16>
    %373 = vector.shape_cast %372 : vector<1x11x144xbf16> to vector<11x144xbf16>
    %cst_266 = arith.constant dense<0.000000e+00> : vector<11x32xf32>
    %374 = tpu.matmul %373, %340, %cst_266 {dimension_numbers = #tpu.dot_dimension_numbers<[1], [0], [0], [1], [0, 0, 1, 1], [], []>} : vector<11x144xbf16>, vector<144x32xbf16>, vector<11x32xf32> -> vector<11x32xf32>
    %375 = vector.broadcast %341 : vector<1x32xf32> to vector<11x32xf32>
    %376 = arith.addf %374, %375 : vector<11x32xf32>
    %cst_267 = arith.constant 0.000000e+00 : f32
    %377 = vector.broadcast %cst_267 : f32 to vector<11x32xf32>
    %378 = arith.maximumf %376, %377 : vector<11x32xf32>
    %c3_268 = arith.constant 3 : index
    %c0_269 = arith.constant 0 : index
    %c0_270 = arith.constant 0 : index
    %379 = vector.load %arg19[%c3_268, %c0_269, %c0_270] : memref<8x11x32xf32, #tpu.memory_space<vmem>>, vector<1x11x32xf32>
    %380 = vector.shape_cast %379 : vector<1x11x32xf32> to vector<11x32xf32>
    %381 = vector.shape_cast %378 : vector<11x32xf32> to vector<1x11x32xf32>
    tpu.vector_store %arg19[%c3_268, %c0_269, %c0_270], %381 {strides = array<i32>} : memref<8x11x32xf32, #tpu.memory_space<vmem>>, vector<1x11x32xf32>,
    %c4_271 = arith.constant 4 : index
    %c0_272 = arith.constant 0 : index
    %c0_273 = arith.constant 0 : index
    %382 = vector.load %arg18[%c4_271, %c0_272, %c0_273] : memref<8x11x144xbf16, #tpu.memory_space<vmem>>, vector<1x11x144xbf16>
    %383 = vector.shape_cast %382 : vector<1x11x144xbf16> to vector<11x144xbf16>
    %cst_274 = arith.constant dense<0.000000e+00> : vector<11x32xf32>
    %384 = tpu.matmul %383, %340, %cst_274 {dimension_numbers = #tpu.dot_dimension_numbers<[1], [0], [0], [1], [0, 0, 1, 1], [], []>} : vector<11x144xbf16>, vector<144x32xbf16>, vector<11x32xf32> -> vector<11x32xf32>
    %385 = vector.broadcast %341 : vector<1x32xf32> to vector<11x32xf32>
    %386 = arith.addf %384, %385 : vector<11x32xf32>
    %cst_275 = arith.constant 0.000000e+00 : f32
    %387 = vector.broadcast %cst_275 : f32 to vector<11x32xf32>
    %388 = arith.maximumf %386, %387 : vector<11x32xf32>
    %c4_276 = arith.constant 4 : index
    %c0_277 = arith.constant 0 : index
    %c0_278 = arith.constant 0 : index
    %389 = vector.load %arg19[%c4_276, %c0_277, %c0_278] : memref<8x11x32xf32, #tpu.memory_space<vmem>>, vector<1x11x32xf32>
    %390 = vector.shape_cast %389 : vector<1x11x32xf32> to vector<11x32xf32>
    %391 = vector.shape_cast %388 : vector<11x32xf32> to vector<1x11x32xf32>
    tpu.vector_store %arg19[%c4_276, %c0_277, %c0_278], %391 {strides = array<i32>} : memref<8x11x32xf32, #tpu.memory_space<vmem>>, vector<1x11x32xf32>,
    %c5_279 = arith.constant 5 : index
    %c0_280 = arith.constant 0 : index
    %c0_281 = arith.constant 0 : index
    %392 = vector.load %arg18[%c5_279, %c0_280, %c0_281] : memref<8x11x144xbf16, #tpu.memory_space<vmem>>, vector<1x11x144xbf16>
    %393 = vector.shape_cast %392 : vector<1x11x144xbf16> to vector<11x144xbf16>
    %cst_282 = arith.constant dense<0.000000e+00> : vector<11x32xf32>
    %394 = tpu.matmul %393, %340, %cst_282 {dimension_numbers = #tpu.dot_dimension_numbers<[1], [0], [0], [1], [0, 0, 1, 1], [], []>} : vector<11x144xbf16>, vector<144x32xbf16>, vector<11x32xf32> -> vector<11x32xf32>
    %395 = vector.broadcast %341 : vector<1x32xf32> to vector<11x32xf32>
    %396 = arith.addf %394, %395 : vector<11x32xf32>
    %cst_283 = arith.constant 0.000000e+00 : f32
    %397 = vector.broadcast %cst_283 : f32 to vector<11x32xf32>
    %398 = arith.maximumf %396, %397 : vector<11x32xf32>
    %c5_284 = arith.constant 5 : index
    %c0_285 = arith.constant 0 : index
    %c0_286 = arith.constant 0 : index
    %399 = vector.load %arg19[%c5_284, %c0_285, %c0_286] : memref<8x11x32xf32, #tpu.memory_space<vmem>>, vector<1x11x32xf32>
    %400 = vector.shape_cast %399 : vector<1x11x32xf32> to vector<11x32xf32>
    %401 = vector.shape_cast %398 : vector<11x32xf32> to vector<1x11x32xf32>
    tpu.vector_store %arg19[%c5_284, %c0_285, %c0_286], %401 {strides = array<i32>} : memref<8x11x32xf32, #tpu.memory_space<vmem>>, vector<1x11x32xf32>,
    %c6_287 = arith.constant 6 : index
    %c0_288 = arith.constant 0 : index
    %c0_289 = arith.constant 0 : index
    %402 = vector.load %arg18[%c6_287, %c0_288, %c0_289] : memref<8x11x144xbf16, #tpu.memory_space<vmem>>, vector<1x11x144xbf16>
    %403 = vector.shape_cast %402 : vector<1x11x144xbf16> to vector<11x144xbf16>
    %cst_290 = arith.constant dense<0.000000e+00> : vector<11x32xf32>
    %404 = tpu.matmul %403, %340, %cst_290 {dimension_numbers = #tpu.dot_dimension_numbers<[1], [0], [0], [1], [0, 0, 1, 1], [], []>} : vector<11x144xbf16>, vector<144x32xbf16>, vector<11x32xf32> -> vector<11x32xf32>
    %405 = vector.broadcast %341 : vector<1x32xf32> to vector<11x32xf32>
    %406 = arith.addf %404, %405 : vector<11x32xf32>
    %cst_291 = arith.constant 0.000000e+00 : f32
    %407 = vector.broadcast %cst_291 : f32 to vector<11x32xf32>
    %408 = arith.maximumf %406, %407 : vector<11x32xf32>
    %c6_292 = arith.constant 6 : index
    %c0_293 = arith.constant 0 : index
    %c0_294 = arith.constant 0 : index
    %409 = vector.load %arg19[%c6_292, %c0_293, %c0_294] : memref<8x11x32xf32, #tpu.memory_space<vmem>>, vector<1x11x32xf32>
    %410 = vector.shape_cast %409 : vector<1x11x32xf32> to vector<11x32xf32>
    %411 = vector.shape_cast %408 : vector<11x32xf32> to vector<1x11x32xf32>
    tpu.vector_store %arg19[%c6_292, %c0_293, %c0_294], %411 {strides = array<i32>} : memref<8x11x32xf32, #tpu.memory_space<vmem>>, vector<1x11x32xf32>,
    %c7_295 = arith.constant 7 : index
    %c0_296 = arith.constant 0 : index
    %c0_297 = arith.constant 0 : index
    %412 = vector.load %arg18[%c7_295, %c0_296, %c0_297] : memref<8x11x144xbf16, #tpu.memory_space<vmem>>, vector<1x11x144xbf16>
    %413 = vector.shape_cast %412 : vector<1x11x144xbf16> to vector<11x144xbf16>
    %cst_298 = arith.constant dense<0.000000e+00> : vector<11x32xf32>
    %414 = tpu.matmul %413, %340, %cst_298 {dimension_numbers = #tpu.dot_dimension_numbers<[1], [0], [0], [1], [0, 0, 1, 1], [], []>} : vector<11x144xbf16>, vector<144x32xbf16>, vector<11x32xf32> -> vector<11x32xf32>
    %415 = vector.broadcast %341 : vector<1x32xf32> to vector<11x32xf32>
    %416 = arith.addf %414, %415 : vector<11x32xf32>
    %cst_299 = arith.constant 0.000000e+00 : f32
    %417 = vector.broadcast %cst_299 : f32 to vector<11x32xf32>
    %418 = arith.maximumf %416, %417 : vector<11x32xf32>
    %c7_300 = arith.constant 7 : index
    %c0_301 = arith.constant 0 : index
    %c0_302 = arith.constant 0 : index
    %419 = vector.load %arg19[%c7_300, %c0_301, %c0_302] : memref<8x11x32xf32, #tpu.memory_space<vmem>>, vector<1x11x32xf32>
    %420 = vector.shape_cast %419 : vector<1x11x32xf32> to vector<11x32xf32>
    %421 = vector.shape_cast %418 : vector<11x32xf32> to vector<1x11x32xf32>
    tpu.vector_store %arg19[%c7_300, %c0_301, %c0_302], %421 {strides = array<i32>} : memref<8x11x32xf32, #tpu.memory_space<vmem>>, vector<1x11x32xf32>,
    %c0_303 = arith.constant 0 : index
    %c0_304 = arith.constant 0 : index
    %c0_305 = arith.constant 0 : index
    %422 = vector.load %arg19[%c0_303, %c0_304, %c0_305] : memref<8x11x32xf32, #tpu.memory_space<vmem>>, vector<6x9x32xf32>
    %423 = arith.truncf %422 : vector<6x9x32xf32> to vector<6x9x32xbf16>
    %c0_306 = arith.constant 0 : index
    %c0_307 = arith.constant 0 : index
    %c0_308 = arith.constant 0 : index
    %424 = vector.load %arg20[%c0_306, %c0_307, %c0_308] : memref<6x9x288xbf16, #tpu.memory_space<vmem>>, vector<6x9x32xbf16>
    tpu.vector_store %arg20[%c0_306, %c0_307, %c0_308], %423 {strides = array<i32>} : memref<6x9x288xbf16, #tpu.memory_space<vmem>>, vector<6x9x32xbf16>,
    %c0_309 = arith.constant 0 : index
    %c1_310 = arith.constant 1 : index
    %c0_311 = arith.constant 0 : index
    %425 = vector.load %arg19[%c0_309, %c1_310, %c0_311] : memref<8x11x32xf32, #tpu.memory_space<vmem>>, vector<6x9x32xf32>
    %426 = arith.truncf %425 : vector<6x9x32xf32> to vector<6x9x32xbf16>
    %c0_312 = arith.constant 0 : index
    %c0_313 = arith.constant 0 : index
    %c32_314 = arith.constant 32 : index
    %427 = vector.load %arg20[%c0_312, %c0_313, %c32_314] : memref<6x9x288xbf16, #tpu.memory_space<vmem>>, vector<6x9x32xbf16>
    tpu.vector_store %arg20[%c0_312, %c0_313, %c32_314], %426 {strides = array<i32>} : memref<6x9x288xbf16, #tpu.memory_space<vmem>>, vector<6x9x32xbf16>,
    %c0_315 = arith.constant 0 : index
    %c2_316 = arith.constant 2 : index
    %c0_317 = arith.constant 0 : index
    %428 = vector.load %arg19[%c0_315, %c2_316, %c0_317] : memref<8x11x32xf32, #tpu.memory_space<vmem>>, vector<6x9x32xf32>
    %429 = arith.truncf %428 : vector<6x9x32xf32> to vector<6x9x32xbf16>
    %c0_318 = arith.constant 0 : index
    %c0_319 = arith.constant 0 : index
    %c64_320 = arith.constant 64 : index
    %430 = vector.load %arg20[%c0_318, %c0_319, %c64_320] : memref<6x9x288xbf16, #tpu.memory_space<vmem>>, vector<6x9x32xbf16>
    tpu.vector_store %arg20[%c0_318, %c0_319, %c64_320], %429 {strides = array<i32>} : memref<6x9x288xbf16, #tpu.memory_space<vmem>>, vector<6x9x32xbf16>,
    %c1_321 = arith.constant 1 : index
    %c0_322 = arith.constant 0 : index
    %c0_323 = arith.constant 0 : index
    %431 = vector.load %arg19[%c1_321, %c0_322, %c0_323] : memref<8x11x32xf32, #tpu.memory_space<vmem>>, vector<6x9x32xf32>
    %432 = arith.truncf %431 : vector<6x9x32xf32> to vector<6x9x32xbf16>
    %c0_324 = arith.constant 0 : index
    %c0_325 = arith.constant 0 : index
    %c96_326 = arith.constant 96 : index
    %433 = vector.load %arg20[%c0_324, %c0_325, %c96_326] : memref<6x9x288xbf16, #tpu.memory_space<vmem>>, vector<6x9x32xbf16>
    tpu.vector_store %arg20[%c0_324, %c0_325, %c96_326], %432 {strides = array<i32>} : memref<6x9x288xbf16, #tpu.memory_space<vmem>>, vector<6x9x32xbf16>,
    %c1_327 = arith.constant 1 : index
    %c1_328 = arith.constant 1 : index
    %c0_329 = arith.constant 0 : index
    %434 = vector.load %arg19[%c1_327, %c1_328, %c0_329] : memref<8x11x32xf32, #tpu.memory_space<vmem>>, vector<6x9x32xf32>
    %435 = arith.truncf %434 : vector<6x9x32xf32> to vector<6x9x32xbf16>
    %c0_330 = arith.constant 0 : index
    %c0_331 = arith.constant 0 : index
    %c128_332 = arith.constant 128 : index
    %436 = vector.load %arg20[%c0_330, %c0_331, %c128_332] : memref<6x9x288xbf16, #tpu.memory_space<vmem>>, vector<6x9x32xbf16>
    tpu.vector_store %arg20[%c0_330, %c0_331, %c128_332], %435 {strides = array<i32>} : memref<6x9x288xbf16, #tpu.memory_space<vmem>>, vector<6x9x32xbf16>,
    %c1_333 = arith.constant 1 : index
    %c2_334 = arith.constant 2 : index
    %c0_335 = arith.constant 0 : index
    %437 = vector.load %arg19[%c1_333, %c2_334, %c0_335] : memref<8x11x32xf32, #tpu.memory_space<vmem>>, vector<6x9x32xf32>
    %438 = arith.truncf %437 : vector<6x9x32xf32> to vector<6x9x32xbf16>
    %c0_336 = arith.constant 0 : index
    %c0_337 = arith.constant 0 : index
    %c160 = arith.constant 160 : index
    %439 = vector.load %arg20[%c0_336, %c0_337, %c160] : memref<6x9x288xbf16, #tpu.memory_space<vmem>>, vector<6x9x32xbf16>
    tpu.vector_store %arg20[%c0_336, %c0_337, %c160], %438 {strides = array<i32>} : memref<6x9x288xbf16, #tpu.memory_space<vmem>>, vector<6x9x32xbf16>,
    %c2_338 = arith.constant 2 : index
    %c0_339 = arith.constant 0 : index
    %c0_340 = arith.constant 0 : index
    %440 = vector.load %arg19[%c2_338, %c0_339, %c0_340] : memref<8x11x32xf32, #tpu.memory_space<vmem>>, vector<6x9x32xf32>
    %441 = arith.truncf %440 : vector<6x9x32xf32> to vector<6x9x32xbf16>
    %c0_341 = arith.constant 0 : index
    %c0_342 = arith.constant 0 : index
    %c192 = arith.constant 192 : index
    %442 = vector.load %arg20[%c0_341, %c0_342, %c192] : memref<6x9x288xbf16, #tpu.memory_space<vmem>>, vector<6x9x32xbf16>
    tpu.vector_store %arg20[%c0_341, %c0_342, %c192], %441 {strides = array<i32>} : memref<6x9x288xbf16, #tpu.memory_space<vmem>>, vector<6x9x32xbf16>,
    %c2_343 = arith.constant 2 : index
    %c1_344 = arith.constant 1 : index
    %c0_345 = arith.constant 0 : index
    %443 = vector.load %arg19[%c2_343, %c1_344, %c0_345] : memref<8x11x32xf32, #tpu.memory_space<vmem>>, vector<6x9x32xf32>
    %444 = arith.truncf %443 : vector<6x9x32xf32> to vector<6x9x32xbf16>
    %c0_346 = arith.constant 0 : index
    %c0_347 = arith.constant 0 : index
    %c224 = arith.constant 224 : index
    %445 = vector.load %arg20[%c0_346, %c0_347, %c224] : memref<6x9x288xbf16, #tpu.memory_space<vmem>>, vector<6x9x32xbf16>
    tpu.vector_store %arg20[%c0_346, %c0_347, %c224], %444 {strides = array<i32>} : memref<6x9x288xbf16, #tpu.memory_space<vmem>>, vector<6x9x32xbf16>,
    %c2_348 = arith.constant 2 : index
    %c2_349 = arith.constant 2 : index
    %c0_350 = arith.constant 0 : index
    %446 = vector.load %arg19[%c2_348, %c2_349, %c0_350] : memref<8x11x32xf32, #tpu.memory_space<vmem>>, vector<6x9x32xf32>
    %447 = arith.truncf %446 : vector<6x9x32xf32> to vector<6x9x32xbf16>
    %c0_351 = arith.constant 0 : index
    %c0_352 = arith.constant 0 : index
    %c256 = arith.constant 256 : index
    %448 = vector.load %arg20[%c0_351, %c0_352, %c256] : memref<6x9x288xbf16, #tpu.memory_space<vmem>>, vector<6x9x32xbf16>
    tpu.vector_store %arg20[%c0_351, %c0_352, %c256], %447 {strides = array<i32>} : memref<6x9x288xbf16, #tpu.memory_space<vmem>>, vector<6x9x32xbf16>,
    %c0_353 = arith.constant 0 : index
    %c0_354 = arith.constant 0 : index
    %449 = vector.load %arg9[%c0_353, %c0_354] : memref<288x64xbf16, #tpu.memory_space<vmem>>, vector<288x64xbf16>
    %c0_355 = arith.constant 0 : index
    %c0_356 = arith.constant 0 : index
    %450 = vector.load %arg10[%c0_355, %c0_356] : memref<1x64xf32, #tpu.memory_space<vmem>>, vector<1x64xf32>
    %c0_357 = arith.constant 0 : index
    %c0_358 = arith.constant 0 : index
    %c0_359 = arith.constant 0 : index
    %451 = vector.load %arg20[%c0_357, %c0_358, %c0_359] : memref<6x9x288xbf16, #tpu.memory_space<vmem>>, vector<1x9x288xbf16>
    %452 = vector.shape_cast %451 : vector<1x9x288xbf16> to vector<9x288xbf16>
    %cst_360 = arith.constant dense<0.000000e+00> : vector<9x64xf32>
    %453 = tpu.matmul %452, %449, %cst_360 {dimension_numbers = #tpu.dot_dimension_numbers<[1], [0], [0], [1], [0, 0, 1, 1], [], []>} : vector<9x288xbf16>, vector<288x64xbf16>, vector<9x64xf32> -> vector<9x64xf32>
    %454 = vector.broadcast %450 : vector<1x64xf32> to vector<9x64xf32>
    %455 = arith.addf %453, %454 : vector<9x64xf32>
    %cst_361 = arith.constant 0.000000e+00 : f32
    %456 = vector.broadcast %cst_361 : f32 to vector<9x64xf32>
    %457 = arith.maximumf %455, %456 : vector<9x64xf32>
    %c0_362 = arith.constant 0 : index
    %c0_363 = arith.constant 0 : index
    %c0_364 = arith.constant 0 : index
    %458 = vector.load %arg21[%c0_362, %c0_363, %c0_364] : memref<6x9x64xf32, #tpu.memory_space<vmem>>, vector<1x9x64xf32>
    %459 = vector.shape_cast %458 : vector<1x9x64xf32> to vector<9x64xf32>
    %460 = vector.shape_cast %457 : vector<9x64xf32> to vector<1x9x64xf32>
    tpu.vector_store %arg21[%c0_362, %c0_363, %c0_364], %460 {strides = array<i32>} : memref<6x9x64xf32, #tpu.memory_space<vmem>>, vector<1x9x64xf32>,
    %c1_365 = arith.constant 1 : index
    %c0_366 = arith.constant 0 : index
    %c0_367 = arith.constant 0 : index
    %461 = vector.load %arg20[%c1_365, %c0_366, %c0_367] : memref<6x9x288xbf16, #tpu.memory_space<vmem>>, vector<1x9x288xbf16>
    %462 = vector.shape_cast %461 : vector<1x9x288xbf16> to vector<9x288xbf16>
    %cst_368 = arith.constant dense<0.000000e+00> : vector<9x64xf32>
    %463 = tpu.matmul %462, %449, %cst_368 {dimension_numbers = #tpu.dot_dimension_numbers<[1], [0], [0], [1], [0, 0, 1, 1], [], []>} : vector<9x288xbf16>, vector<288x64xbf16>, vector<9x64xf32> -> vector<9x64xf32>
    %464 = vector.broadcast %450 : vector<1x64xf32> to vector<9x64xf32>
    %465 = arith.addf %463, %464 : vector<9x64xf32>
    %cst_369 = arith.constant 0.000000e+00 : f32
    %466 = vector.broadcast %cst_369 : f32 to vector<9x64xf32>
    %467 = arith.maximumf %465, %466 : vector<9x64xf32>
    %c1_370 = arith.constant 1 : index
    %c0_371 = arith.constant 0 : index
    %c0_372 = arith.constant 0 : index
    %468 = vector.load %arg21[%c1_370, %c0_371, %c0_372] : memref<6x9x64xf32, #tpu.memory_space<vmem>>, vector<1x9x64xf32>
    %469 = vector.shape_cast %468 : vector<1x9x64xf32> to vector<9x64xf32>
    %470 = vector.shape_cast %467 : vector<9x64xf32> to vector<1x9x64xf32>
    tpu.vector_store %arg21[%c1_370, %c0_371, %c0_372], %470 {strides = array<i32>} : memref<6x9x64xf32, #tpu.memory_space<vmem>>, vector<1x9x64xf32>,
    %c2_373 = arith.constant 2 : index
    %c0_374 = arith.constant 0 : index
    %c0_375 = arith.constant 0 : index
    %471 = vector.load %arg20[%c2_373, %c0_374, %c0_375] : memref<6x9x288xbf16, #tpu.memory_space<vmem>>, vector<1x9x288xbf16>
    %472 = vector.shape_cast %471 : vector<1x9x288xbf16> to vector<9x288xbf16>
    %cst_376 = arith.constant dense<0.000000e+00> : vector<9x64xf32>
    %473 = tpu.matmul %472, %449, %cst_376 {dimension_numbers = #tpu.dot_dimension_numbers<[1], [0], [0], [1], [0, 0, 1, 1], [], []>} : vector<9x288xbf16>, vector<288x64xbf16>, vector<9x64xf32> -> vector<9x64xf32>
    %474 = vector.broadcast %450 : vector<1x64xf32> to vector<9x64xf32>
    %475 = arith.addf %473, %474 : vector<9x64xf32>
    %cst_377 = arith.constant 0.000000e+00 : f32
    %476 = vector.broadcast %cst_377 : f32 to vector<9x64xf32>
    %477 = arith.maximumf %475, %476 : vector<9x64xf32>
    %c2_378 = arith.constant 2 : index
    %c0_379 = arith.constant 0 : index
    %c0_380 = arith.constant 0 : index
    %478 = vector.load %arg21[%c2_378, %c0_379, %c0_380] : memref<6x9x64xf32, #tpu.memory_space<vmem>>, vector<1x9x64xf32>
    %479 = vector.shape_cast %478 : vector<1x9x64xf32> to vector<9x64xf32>
    %480 = vector.shape_cast %477 : vector<9x64xf32> to vector<1x9x64xf32>
    tpu.vector_store %arg21[%c2_378, %c0_379, %c0_380], %480 {strides = array<i32>} : memref<6x9x64xf32, #tpu.memory_space<vmem>>, vector<1x9x64xf32>,
    %c3_381 = arith.constant 3 : index
    %c0_382 = arith.constant 0 : index
    %c0_383 = arith.constant 0 : index
    %481 = vector.load %arg20[%c3_381, %c0_382, %c0_383] : memref<6x9x288xbf16, #tpu.memory_space<vmem>>, vector<1x9x288xbf16>
    %482 = vector.shape_cast %481 : vector<1x9x288xbf16> to vector<9x288xbf16>
    %cst_384 = arith.constant dense<0.000000e+00> : vector<9x64xf32>
    %483 = tpu.matmul %482, %449, %cst_384 {dimension_numbers = #tpu.dot_dimension_numbers<[1], [0], [0], [1], [0, 0, 1, 1], [], []>} : vector<9x288xbf16>, vector<288x64xbf16>, vector<9x64xf32> -> vector<9x64xf32>
    %484 = vector.broadcast %450 : vector<1x64xf32> to vector<9x64xf32>
    %485 = arith.addf %483, %484 : vector<9x64xf32>
    %cst_385 = arith.constant 0.000000e+00 : f32
    %486 = vector.broadcast %cst_385 : f32 to vector<9x64xf32>
    %487 = arith.maximumf %485, %486 : vector<9x64xf32>
    %c3_386 = arith.constant 3 : index
    %c0_387 = arith.constant 0 : index
    %c0_388 = arith.constant 0 : index
    %488 = vector.load %arg21[%c3_386, %c0_387, %c0_388] : memref<6x9x64xf32, #tpu.memory_space<vmem>>, vector<1x9x64xf32>
    %489 = vector.shape_cast %488 : vector<1x9x64xf32> to vector<9x64xf32>
    %490 = vector.shape_cast %487 : vector<9x64xf32> to vector<1x9x64xf32>
    tpu.vector_store %arg21[%c3_386, %c0_387, %c0_388], %490 {strides = array<i32>} : memref<6x9x64xf32, #tpu.memory_space<vmem>>, vector<1x9x64xf32>,
    %c4_389 = arith.constant 4 : index
    %c0_390 = arith.constant 0 : index
    %c0_391 = arith.constant 0 : index
    %491 = vector.load %arg20[%c4_389, %c0_390, %c0_391] : memref<6x9x288xbf16, #tpu.memory_space<vmem>>, vector<1x9x288xbf16>
    %492 = vector.shape_cast %491 : vector<1x9x288xbf16> to vector<9x288xbf16>
    %cst_392 = arith.constant dense<0.000000e+00> : vector<9x64xf32>
    %493 = tpu.matmul %492, %449, %cst_392 {dimension_numbers = #tpu.dot_dimension_numbers<[1], [0], [0], [1], [0, 0, 1, 1], [], []>} : vector<9x288xbf16>, vector<288x64xbf16>, vector<9x64xf32> -> vector<9x64xf32>
    %494 = vector.broadcast %450 : vector<1x64xf32> to vector<9x64xf32>
    %495 = arith.addf %493, %494 : vector<9x64xf32>
    %cst_393 = arith.constant 0.000000e+00 : f32
    %496 = vector.broadcast %cst_393 : f32 to vector<9x64xf32>
    %497 = arith.maximumf %495, %496 : vector<9x64xf32>
    %c4_394 = arith.constant 4 : index
    %c0_395 = arith.constant 0 : index
    %c0_396 = arith.constant 0 : index
    %498 = vector.load %arg21[%c4_394, %c0_395, %c0_396] : memref<6x9x64xf32, #tpu.memory_space<vmem>>, vector<1x9x64xf32>
    %499 = vector.shape_cast %498 : vector<1x9x64xf32> to vector<9x64xf32>
    %500 = vector.shape_cast %497 : vector<9x64xf32> to vector<1x9x64xf32>
    tpu.vector_store %arg21[%c4_394, %c0_395, %c0_396], %500 {strides = array<i32>} : memref<6x9x64xf32, #tpu.memory_space<vmem>>, vector<1x9x64xf32>,
    %c5_397 = arith.constant 5 : index
    %c0_398 = arith.constant 0 : index
    %c0_399 = arith.constant 0 : index
    %501 = vector.load %arg20[%c5_397, %c0_398, %c0_399] : memref<6x9x288xbf16, #tpu.memory_space<vmem>>, vector<1x9x288xbf16>
    %502 = vector.shape_cast %501 : vector<1x9x288xbf16> to vector<9x288xbf16>
    %cst_400 = arith.constant dense<0.000000e+00> : vector<9x64xf32>
    %503 = tpu.matmul %502, %449, %cst_400 {dimension_numbers = #tpu.dot_dimension_numbers<[1], [0], [0], [1], [0, 0, 1, 1], [], []>} : vector<9x288xbf16>, vector<288x64xbf16>, vector<9x64xf32> -> vector<9x64xf32>
    %504 = vector.broadcast %450 : vector<1x64xf32> to vector<9x64xf32>
    %505 = arith.addf %503, %504 : vector<9x64xf32>
    %cst_401 = arith.constant 0.000000e+00 : f32
    %506 = vector.broadcast %cst_401 : f32 to vector<9x64xf32>
    %507 = arith.maximumf %505, %506 : vector<9x64xf32>
    %c5_402 = arith.constant 5 : index
    %c0_403 = arith.constant 0 : index
    %c0_404 = arith.constant 0 : index
    %508 = vector.load %arg21[%c5_402, %c0_403, %c0_404] : memref<6x9x64xf32, #tpu.memory_space<vmem>>, vector<1x9x64xf32>
    %509 = vector.shape_cast %508 : vector<1x9x64xf32> to vector<9x64xf32>
    %510 = vector.shape_cast %507 : vector<9x64xf32> to vector<1x9x64xf32>
    tpu.vector_store %arg21[%c5_402, %c0_403, %c0_404], %510 {strides = array<i32>} : memref<6x9x64xf32, #tpu.memory_space<vmem>>, vector<1x9x64xf32>,
    %c0_405 = arith.constant 0 : index
    %c0_406 = arith.constant 0 : index
    %c0_407 = arith.constant 0 : index
    %511 = vector.load %arg21[%c0_405, %c0_406, %c0_407] : memref<6x9x64xf32, #tpu.memory_space<vmem>>, vector<6x9x64xf32>
    %c0_408 = arith.constant 0 : index
    %c0_409 = arith.constant 0 : index
    %512 = vector.load %arg12[%c0_408, %c0_409] : memref<1x256xf32, #tpu.memory_space<vmem>>, vector<1x256xf32>
    %513 = vector.extract_strided_slice %511 {offsets = [0, 0, 0], sizes = [1, 1, 64], strides = [1, 1, 1]} : vector<6x9x64xf32> to vector<1x1x64xf32>
    %514 = vector.shape_cast %513 : vector<1x1x64xf32> to vector<1x64xf32>
    %515 = vector.extract_strided_slice %511 {offsets = [0, 1, 0], sizes = [1, 1, 64], strides = [1, 1, 1]} : vector<6x9x64xf32> to vector<1x1x64xf32>
    %516 = vector.shape_cast %515 : vector<1x1x64xf32> to vector<1x64xf32>
    %517 = arith.maximumf %514, %516 : vector<1x64xf32>
    %518 = vector.extract_strided_slice %511 {offsets = [0, 2, 0], sizes = [1, 1, 64], strides = [1, 1, 1]} : vector<6x9x64xf32> to vector<1x1x64xf32>
    %519 = vector.shape_cast %518 : vector<1x1x64xf32> to vector<1x64xf32>
    %520 = arith.maximumf %517, %519 : vector<1x64xf32>
    %521 = vector.extract_strided_slice %511 {offsets = [1, 0, 0], sizes = [1, 1, 64], strides = [1, 1, 1]} : vector<6x9x64xf32> to vector<1x1x64xf32>
    %522 = vector.shape_cast %521 : vector<1x1x64xf32> to vector<1x64xf32>
    %523 = arith.maximumf %520, %522 : vector<1x64xf32>
    %524 = vector.extract_strided_slice %511 {offsets = [1, 1, 0], sizes = [1, 1, 64], strides = [1, 1, 1]} : vector<6x9x64xf32> to vector<1x1x64xf32>
    %525 = vector.shape_cast %524 : vector<1x1x64xf32> to vector<1x64xf32>
    %526 = arith.maximumf %523, %525 : vector<1x64xf32>
    %527 = vector.extract_strided_slice %511 {offsets = [1, 2, 0], sizes = [1, 1, 64], strides = [1, 1, 1]} : vector<6x9x64xf32> to vector<1x1x64xf32>
    %528 = vector.shape_cast %527 : vector<1x1x64xf32> to vector<1x64xf32>
    %529 = arith.maximumf %526, %528 : vector<1x64xf32>
    %530 = vector.extract_strided_slice %511 {offsets = [2, 0, 0], sizes = [1, 1, 64], strides = [1, 1, 1]} : vector<6x9x64xf32> to vector<1x1x64xf32>
    %531 = vector.shape_cast %530 : vector<1x1x64xf32> to vector<1x64xf32>
    %532 = arith.maximumf %529, %531 : vector<1x64xf32>
    %533 = vector.extract_strided_slice %511 {offsets = [2, 1, 0], sizes = [1, 1, 64], strides = [1, 1, 1]} : vector<6x9x64xf32> to vector<1x1x64xf32>
    %534 = vector.shape_cast %533 : vector<1x1x64xf32> to vector<1x64xf32>
    %535 = arith.maximumf %532, %534 : vector<1x64xf32>
    %536 = vector.extract_strided_slice %511 {offsets = [2, 2, 0], sizes = [1, 1, 64], strides = [1, 1, 1]} : vector<6x9x64xf32> to vector<1x1x64xf32>
    %537 = vector.shape_cast %536 : vector<1x1x64xf32> to vector<1x64xf32>
    %538 = arith.maximumf %535, %537 : vector<1x64xf32>
    %539 = arith.truncf %538 : vector<1x64xf32> to vector<1x64xbf16>
    %c0_410 = arith.constant 0 : index
    %c0_411 = arith.constant 0 : index
    %c0_412 = arith.constant 0 : index
    %540 = vector.load %arg11[%c0_410, %c0_411, %c0_412] : memref<6x64x256xbf16, #tpu.memory_space<vmem>>, vector<1x64x256xbf16>
    %541 = vector.shape_cast %540 : vector<1x64x256xbf16> to vector<64x256xbf16>
    %cst_413 = arith.constant dense<0.000000e+00> : vector<1x256xf32>
    %542 = tpu.matmul %539, %541, %cst_413 {dimension_numbers = #tpu.dot_dimension_numbers<[1], [0], [0], [1], [0, 0, 1, 1], [], []>} : vector<1x64xbf16>, vector<64x256xbf16>, vector<1x256xf32> -> vector<1x256xf32>
    %543 = arith.addf %512, %542 : vector<1x256xf32>
    %544 = vector.extract_strided_slice %511 {offsets = [0, 3, 0], sizes = [1, 1, 64], strides = [1, 1, 1]} : vector<6x9x64xf32> to vector<1x1x64xf32>
    %545 = vector.shape_cast %544 : vector<1x1x64xf32> to vector<1x64xf32>
    %546 = vector.extract_strided_slice %511 {offsets = [0, 4, 0], sizes = [1, 1, 64], strides = [1, 1, 1]} : vector<6x9x64xf32> to vector<1x1x64xf32>
    %547 = vector.shape_cast %546 : vector<1x1x64xf32> to vector<1x64xf32>
    %548 = arith.maximumf %545, %547 : vector<1x64xf32>
    %549 = vector.extract_strided_slice %511 {offsets = [0, 5, 0], sizes = [1, 1, 64], strides = [1, 1, 1]} : vector<6x9x64xf32> to vector<1x1x64xf32>
    %550 = vector.shape_cast %549 : vector<1x1x64xf32> to vector<1x64xf32>
    %551 = arith.maximumf %548, %550 : vector<1x64xf32>
    %552 = vector.extract_strided_slice %511 {offsets = [1, 3, 0], sizes = [1, 1, 64], strides = [1, 1, 1]} : vector<6x9x64xf32> to vector<1x1x64xf32>
    %553 = vector.shape_cast %552 : vector<1x1x64xf32> to vector<1x64xf32>
    %554 = arith.maximumf %551, %553 : vector<1x64xf32>
    %555 = vector.extract_strided_slice %511 {offsets = [1, 4, 0], sizes = [1, 1, 64], strides = [1, 1, 1]} : vector<6x9x64xf32> to vector<1x1x64xf32>
    %556 = vector.shape_cast %555 : vector<1x1x64xf32> to vector<1x64xf32>
    %557 = arith.maximumf %554, %556 : vector<1x64xf32>
    %558 = vector.extract_strided_slice %511 {offsets = [1, 5, 0], sizes = [1, 1, 64], strides = [1, 1, 1]} : vector<6x9x64xf32> to vector<1x1x64xf32>
    %559 = vector.shape_cast %558 : vector<1x1x64xf32> to vector<1x64xf32>
    %560 = arith.maximumf %557, %559 : vector<1x64xf32>
    %561 = vector.extract_strided_slice %511 {offsets = [2, 3, 0], sizes = [1, 1, 64], strides = [1, 1, 1]} : vector<6x9x64xf32> to vector<1x1x64xf32>
    %562 = vector.shape_cast %561 : vector<1x1x64xf32> to vector<1x64xf32>
    %563 = arith.maximumf %560, %562 : vector<1x64xf32>
    %564 = vector.extract_strided_slice %511 {offsets = [2, 4, 0], sizes = [1, 1, 64], strides = [1, 1, 1]} : vector<6x9x64xf32> to vector<1x1x64xf32>
    %565 = vector.shape_cast %564 : vector<1x1x64xf32> to vector<1x64xf32>
    %566 = arith.maximumf %563, %565 : vector<1x64xf32>
    %567 = vector.extract_strided_slice %511 {offsets = [2, 5, 0], sizes = [1, 1, 64], strides = [1, 1, 1]} : vector<6x9x64xf32> to vector<1x1x64xf32>
    %568 = vector.shape_cast %567 : vector<1x1x64xf32> to vector<1x64xf32>
    %569 = arith.maximumf %566, %568 : vector<1x64xf32>
    %570 = arith.truncf %569 : vector<1x64xf32> to vector<1x64xbf16>
    %c1_414 = arith.constant 1 : index
    %c0_415 = arith.constant 0 : index
    %c0_416 = arith.constant 0 : index
    %571 = vector.load %arg11[%c1_414, %c0_415, %c0_416] : memref<6x64x256xbf16, #tpu.memory_space<vmem>>, vector<1x64x256xbf16>
    %572 = vector.shape_cast %571 : vector<1x64x256xbf16> to vector<64x256xbf16>
    %cst_417 = arith.constant dense<0.000000e+00> : vector<1x256xf32>
    %573 = tpu.matmul %570, %572, %cst_417 {dimension_numbers = #tpu.dot_dimension_numbers<[1], [0], [0], [1], [0, 0, 1, 1], [], []>} : vector<1x64xbf16>, vector<64x256xbf16>, vector<1x256xf32> -> vector<1x256xf32>
    %574 = arith.addf %543, %573 : vector<1x256xf32>
    %575 = vector.extract_strided_slice %511 {offsets = [0, 6, 0], sizes = [1, 1, 64], strides = [1, 1, 1]} : vector<6x9x64xf32> to vector<1x1x64xf32>
    %576 = vector.shape_cast %575 : vector<1x1x64xf32> to vector<1x64xf32>
    %577 = vector.extract_strided_slice %511 {offsets = [0, 7, 0], sizes = [1, 1, 64], strides = [1, 1, 1]} : vector<6x9x64xf32> to vector<1x1x64xf32>
    %578 = vector.shape_cast %577 : vector<1x1x64xf32> to vector<1x64xf32>
    %579 = arith.maximumf %576, %578 : vector<1x64xf32>
    %580 = vector.extract_strided_slice %511 {offsets = [0, 8, 0], sizes = [1, 1, 64], strides = [1, 1, 1]} : vector<6x9x64xf32> to vector<1x1x64xf32>
    %581 = vector.shape_cast %580 : vector<1x1x64xf32> to vector<1x64xf32>
    %582 = arith.maximumf %579, %581 : vector<1x64xf32>
    %583 = vector.extract_strided_slice %511 {offsets = [1, 6, 0], sizes = [1, 1, 64], strides = [1, 1, 1]} : vector<6x9x64xf32> to vector<1x1x64xf32>
    %584 = vector.shape_cast %583 : vector<1x1x64xf32> to vector<1x64xf32>
    %585 = arith.maximumf %582, %584 : vector<1x64xf32>
    %586 = vector.extract_strided_slice %511 {offsets = [1, 7, 0], sizes = [1, 1, 64], strides = [1, 1, 1]} : vector<6x9x64xf32> to vector<1x1x64xf32>
    %587 = vector.shape_cast %586 : vector<1x1x64xf32> to vector<1x64xf32>
    %588 = arith.maximumf %585, %587 : vector<1x64xf32>
    %589 = vector.extract_strided_slice %511 {offsets = [1, 8, 0], sizes = [1, 1, 64], strides = [1, 1, 1]} : vector<6x9x64xf32> to vector<1x1x64xf32>
    %590 = vector.shape_cast %589 : vector<1x1x64xf32> to vector<1x64xf32>
    %591 = arith.maximumf %588, %590 : vector<1x64xf32>
    %592 = vector.extract_strided_slice %511 {offsets = [2, 6, 0], sizes = [1, 1, 64], strides = [1, 1, 1]} : vector<6x9x64xf32> to vector<1x1x64xf32>
    %593 = vector.shape_cast %592 : vector<1x1x64xf32> to vector<1x64xf32>
    %594 = arith.maximumf %591, %593 : vector<1x64xf32>
    %595 = vector.extract_strided_slice %511 {offsets = [2, 7, 0], sizes = [1, 1, 64], strides = [1, 1, 1]} : vector<6x9x64xf32> to vector<1x1x64xf32>
    %596 = vector.shape_cast %595 : vector<1x1x64xf32> to vector<1x64xf32>
    %597 = arith.maximumf %594, %596 : vector<1x64xf32>
    %598 = vector.extract_strided_slice %511 {offsets = [2, 8, 0], sizes = [1, 1, 64], strides = [1, 1, 1]} : vector<6x9x64xf32> to vector<1x1x64xf32>
    %599 = vector.shape_cast %598 : vector<1x1x64xf32> to vector<1x64xf32>
    %600 = arith.maximumf %597, %599 : vector<1x64xf32>
    %601 = arith.truncf %600 : vector<1x64xf32> to vector<1x64xbf16>
    %c2_418 = arith.constant 2 : index
    %c0_419 = arith.constant 0 : index
    %c0_420 = arith.constant 0 : index
    %602 = vector.load %arg11[%c2_418, %c0_419, %c0_420] : memref<6x64x256xbf16, #tpu.memory_space<vmem>>, vector<1x64x256xbf16>
    %603 = vector.shape_cast %602 : vector<1x64x256xbf16> to vector<64x256xbf16>
    %cst_421 = arith.constant dense<0.000000e+00> : vector<1x256xf32>
    %604 = tpu.matmul %601, %603, %cst_421 {dimension_numbers = #tpu.dot_dimension_numbers<[1], [0], [0], [1], [0, 0, 1, 1], [], []>} : vector<1x64xbf16>, vector<64x256xbf16>, vector<1x256xf32> -> vector<1x256xf32>
    %605 = arith.addf %574, %604 : vector<1x256xf32>
    %606 = vector.extract_strided_slice %511 {offsets = [3, 0, 0], sizes = [1, 1, 64], strides = [1, 1, 1]} : vector<6x9x64xf32> to vector<1x1x64xf32>
    %607 = vector.shape_cast %606 : vector<1x1x64xf32> to vector<1x64xf32>
    %608 = vector.extract_strided_slice %511 {offsets = [3, 1, 0], sizes = [1, 1, 64], strides = [1, 1, 1]} : vector<6x9x64xf32> to vector<1x1x64xf32>
    %609 = vector.shape_cast %608 : vector<1x1x64xf32> to vector<1x64xf32>
    %610 = arith.maximumf %607, %609 : vector<1x64xf32>
    %611 = vector.extract_strided_slice %511 {offsets = [3, 2, 0], sizes = [1, 1, 64], strides = [1, 1, 1]} : vector<6x9x64xf32> to vector<1x1x64xf32>
    %612 = vector.shape_cast %611 : vector<1x1x64xf32> to vector<1x64xf32>
    %613 = arith.maximumf %610, %612 : vector<1x64xf32>
    %614 = vector.extract_strided_slice %511 {offsets = [4, 0, 0], sizes = [1, 1, 64], strides = [1, 1, 1]} : vector<6x9x64xf32> to vector<1x1x64xf32>
    %615 = vector.shape_cast %614 : vector<1x1x64xf32> to vector<1x64xf32>
    %616 = arith.maximumf %613, %615 : vector<1x64xf32>
    %617 = vector.extract_strided_slice %511 {offsets = [4, 1, 0], sizes = [1, 1, 64], strides = [1, 1, 1]} : vector<6x9x64xf32> to vector<1x1x64xf32>
    %618 = vector.shape_cast %617 : vector<1x1x64xf32> to vector<1x64xf32>
    %619 = arith.maximumf %616, %618 : vector<1x64xf32>
    %620 = vector.extract_strided_slice %511 {offsets = [4, 2, 0], sizes = [1, 1, 64], strides = [1, 1, 1]} : vector<6x9x64xf32> to vector<1x1x64xf32>
    %621 = vector.shape_cast %620 : vector<1x1x64xf32> to vector<1x64xf32>
    %622 = arith.maximumf %619, %621 : vector<1x64xf32>
    %623 = vector.extract_strided_slice %511 {offsets = [5, 0, 0], sizes = [1, 1, 64], strides = [1, 1, 1]} : vector<6x9x64xf32> to vector<1x1x64xf32>
    %624 = vector.shape_cast %623 : vector<1x1x64xf32> to vector<1x64xf32>
    %625 = arith.maximumf %622, %624 : vector<1x64xf32>
    %626 = vector.extract_strided_slice %511 {offsets = [5, 1, 0], sizes = [1, 1, 64], strides = [1, 1, 1]} : vector<6x9x64xf32> to vector<1x1x64xf32>
    %627 = vector.shape_cast %626 : vector<1x1x64xf32> to vector<1x64xf32>
    %628 = arith.maximumf %625, %627 : vector<1x64xf32>
    %629 = vector.extract_strided_slice %511 {offsets = [5, 2, 0], sizes = [1, 1, 64], strides = [1, 1, 1]} : vector<6x9x64xf32> to vector<1x1x64xf32>
    %630 = vector.shape_cast %629 : vector<1x1x64xf32> to vector<1x64xf32>
    %631 = arith.maximumf %628, %630 : vector<1x64xf32>
    %632 = arith.truncf %631 : vector<1x64xf32> to vector<1x64xbf16>
    %c3_422 = arith.constant 3 : index
    %c0_423 = arith.constant 0 : index
    %c0_424 = arith.constant 0 : index
    %633 = vector.load %arg11[%c3_422, %c0_423, %c0_424] : memref<6x64x256xbf16, #tpu.memory_space<vmem>>, vector<1x64x256xbf16>
    %634 = vector.shape_cast %633 : vector<1x64x256xbf16> to vector<64x256xbf16>
    %cst_425 = arith.constant dense<0.000000e+00> : vector<1x256xf32>
    %635 = tpu.matmul %632, %634, %cst_425 {dimension_numbers = #tpu.dot_dimension_numbers<[1], [0], [0], [1], [0, 0, 1, 1], [], []>} : vector<1x64xbf16>, vector<64x256xbf16>, vector<1x256xf32> -> vector<1x256xf32>
    %636 = arith.addf %605, %635 : vector<1x256xf32>
    %637 = vector.extract_strided_slice %511 {offsets = [3, 3, 0], sizes = [1, 1, 64], strides = [1, 1, 1]} : vector<6x9x64xf32> to vector<1x1x64xf32>
    %638 = vector.shape_cast %637 : vector<1x1x64xf32> to vector<1x64xf32>
    %639 = vector.extract_strided_slice %511 {offsets = [3, 4, 0], sizes = [1, 1, 64], strides = [1, 1, 1]} : vector<6x9x64xf32> to vector<1x1x64xf32>
    %640 = vector.shape_cast %639 : vector<1x1x64xf32> to vector<1x64xf32>
    %641 = arith.maximumf %638, %640 : vector<1x64xf32>
    %642 = vector.extract_strided_slice %511 {offsets = [3, 5, 0], sizes = [1, 1, 64], strides = [1, 1, 1]} : vector<6x9x64xf32> to vector<1x1x64xf32>
    %643 = vector.shape_cast %642 : vector<1x1x64xf32> to vector<1x64xf32>
    %644 = arith.maximumf %641, %643 : vector<1x64xf32>
    %645 = vector.extract_strided_slice %511 {offsets = [4, 3, 0], sizes = [1, 1, 64], strides = [1, 1, 1]} : vector<6x9x64xf32> to vector<1x1x64xf32>
    %646 = vector.shape_cast %645 : vector<1x1x64xf32> to vector<1x64xf32>
    %647 = arith.maximumf %644, %646 : vector<1x64xf32>
    %648 = vector.extract_strided_slice %511 {offsets = [4, 4, 0], sizes = [1, 1, 64], strides = [1, 1, 1]} : vector<6x9x64xf32> to vector<1x1x64xf32>
    %649 = vector.shape_cast %648 : vector<1x1x64xf32> to vector<1x64xf32>
    %650 = arith.maximumf %647, %649 : vector<1x64xf32>
    %651 = vector.extract_strided_slice %511 {offsets = [4, 5, 0], sizes = [1, 1, 64], strides = [1, 1, 1]} : vector<6x9x64xf32> to vector<1x1x64xf32>
    %652 = vector.shape_cast %651 : vector<1x1x64xf32> to vector<1x64xf32>
    %653 = arith.maximumf %650, %652 : vector<1x64xf32>
    %654 = vector.extract_strided_slice %511 {offsets = [5, 3, 0], sizes = [1, 1, 64], strides = [1, 1, 1]} : vector<6x9x64xf32> to vector<1x1x64xf32>
    %655 = vector.shape_cast %654 : vector<1x1x64xf32> to vector<1x64xf32>
    %656 = arith.maximumf %653, %655 : vector<1x64xf32>
    %657 = vector.extract_strided_slice %511 {offsets = [5, 4, 0], sizes = [1, 1, 64], strides = [1, 1, 1]} : vector<6x9x64xf32> to vector<1x1x64xf32>
    %658 = vector.shape_cast %657 : vector<1x1x64xf32> to vector<1x64xf32>
    %659 = arith.maximumf %656, %658 : vector<1x64xf32>
    %660 = vector.extract_strided_slice %511 {offsets = [5, 5, 0], sizes = [1, 1, 64], strides = [1, 1, 1]} : vector<6x9x64xf32> to vector<1x1x64xf32>
    %661 = vector.shape_cast %660 : vector<1x1x64xf32> to vector<1x64xf32>
    %662 = arith.maximumf %659, %661 : vector<1x64xf32>
    %663 = arith.truncf %662 : vector<1x64xf32> to vector<1x64xbf16>
    %c4_426 = arith.constant 4 : index
    %c0_427 = arith.constant 0 : index
    %c0_428 = arith.constant 0 : index
    %664 = vector.load %arg11[%c4_426, %c0_427, %c0_428] : memref<6x64x256xbf16, #tpu.memory_space<vmem>>, vector<1x64x256xbf16>
    %665 = vector.shape_cast %664 : vector<1x64x256xbf16> to vector<64x256xbf16>
    %cst_429 = arith.constant dense<0.000000e+00> : vector<1x256xf32>
    %666 = tpu.matmul %663, %665, %cst_429 {dimension_numbers = #tpu.dot_dimension_numbers<[1], [0], [0], [1], [0, 0, 1, 1], [], []>} : vector<1x64xbf16>, vector<64x256xbf16>, vector<1x256xf32> -> vector<1x256xf32>
    %667 = arith.addf %636, %666 : vector<1x256xf32>
    %668 = vector.extract_strided_slice %511 {offsets = [3, 6, 0], sizes = [1, 1, 64], strides = [1, 1, 1]} : vector<6x9x64xf32> to vector<1x1x64xf32>
    %669 = vector.shape_cast %668 : vector<1x1x64xf32> to vector<1x64xf32>
    %670 = vector.extract_strided_slice %511 {offsets = [3, 7, 0], sizes = [1, 1, 64], strides = [1, 1, 1]} : vector<6x9x64xf32> to vector<1x1x64xf32>
    %671 = vector.shape_cast %670 : vector<1x1x64xf32> to vector<1x64xf32>
    %672 = arith.maximumf %669, %671 : vector<1x64xf32>
    %673 = vector.extract_strided_slice %511 {offsets = [3, 8, 0], sizes = [1, 1, 64], strides = [1, 1, 1]} : vector<6x9x64xf32> to vector<1x1x64xf32>
    %674 = vector.shape_cast %673 : vector<1x1x64xf32> to vector<1x64xf32>
    %675 = arith.maximumf %672, %674 : vector<1x64xf32>
    %676 = vector.extract_strided_slice %511 {offsets = [4, 6, 0], sizes = [1, 1, 64], strides = [1, 1, 1]} : vector<6x9x64xf32> to vector<1x1x64xf32>
    %677 = vector.shape_cast %676 : vector<1x1x64xf32> to vector<1x64xf32>
    %678 = arith.maximumf %675, %677 : vector<1x64xf32>
    %679 = vector.extract_strided_slice %511 {offsets = [4, 7, 0], sizes = [1, 1, 64], strides = [1, 1, 1]} : vector<6x9x64xf32> to vector<1x1x64xf32>
    %680 = vector.shape_cast %679 : vector<1x1x64xf32> to vector<1x64xf32>
    %681 = arith.maximumf %678, %680 : vector<1x64xf32>
    %682 = vector.extract_strided_slice %511 {offsets = [4, 8, 0], sizes = [1, 1, 64], strides = [1, 1, 1]} : vector<6x9x64xf32> to vector<1x1x64xf32>
    %683 = vector.shape_cast %682 : vector<1x1x64xf32> to vector<1x64xf32>
    %684 = arith.maximumf %681, %683 : vector<1x64xf32>
    %685 = vector.extract_strided_slice %511 {offsets = [5, 6, 0], sizes = [1, 1, 64], strides = [1, 1, 1]} : vector<6x9x64xf32> to vector<1x1x64xf32>
    %686 = vector.shape_cast %685 : vector<1x1x64xf32> to vector<1x64xf32>
    %687 = arith.maximumf %684, %686 : vector<1x64xf32>
    %688 = vector.extract_strided_slice %511 {offsets = [5, 7, 0], sizes = [1, 1, 64], strides = [1, 1, 1]} : vector<6x9x64xf32> to vector<1x1x64xf32>
    %689 = vector.shape_cast %688 : vector<1x1x64xf32> to vector<1x64xf32>
    %690 = arith.maximumf %687, %689 : vector<1x64xf32>
    %691 = vector.extract_strided_slice %511 {offsets = [5, 8, 0], sizes = [1, 1, 64], strides = [1, 1, 1]} : vector<6x9x64xf32> to vector<1x1x64xf32>
    %692 = vector.shape_cast %691 : vector<1x1x64xf32> to vector<1x64xf32>
    %693 = arith.maximumf %690, %692 : vector<1x64xf32>
    %694 = arith.truncf %693 : vector<1x64xf32> to vector<1x64xbf16>
    %c5_430 = arith.constant 5 : index
    %c0_431 = arith.constant 0 : index
    %c0_432 = arith.constant 0 : index
    %695 = vector.load %arg11[%c5_430, %c0_431, %c0_432] : memref<6x64x256xbf16, #tpu.memory_space<vmem>>, vector<1x64x256xbf16>
    %696 = vector.shape_cast %695 : vector<1x64x256xbf16> to vector<64x256xbf16>
    %cst_433 = arith.constant dense<0.000000e+00> : vector<1x256xf32>
    %697 = tpu.matmul %694, %696, %cst_433 {dimension_numbers = #tpu.dot_dimension_numbers<[1], [0], [0], [1], [0, 0, 1, 1], [], []>} : vector<1x64xbf16>, vector<64x256xbf16>, vector<1x256xf32> -> vector<1x256xf32>
    %698 = arith.addf %667, %697 : vector<1x256xf32>
    %699 = arith.truncf %698 : vector<1x256xf32> to vector<1x256xbf16>
    %c0_434 = arith.constant 0 : index
    %c0_435 = arith.constant 0 : index
    %700 = vector.load %arg13[%c0_434, %c0_435] : memref<256x128xbf16, #tpu.memory_space<vmem>>, vector<256x128xbf16>
    %cst_436 = arith.constant dense<0.000000e+00> : vector<1x128xf32>
    %701 = tpu.matmul %699, %700, %cst_436 {dimension_numbers = #tpu.dot_dimension_numbers<[1], [0], [0], [1], [0, 0, 1, 1], [], []>} : vector<1x256xbf16>, vector<256x128xbf16>, vector<1x128xf32> -> vector<1x128xf32>
    %c0_437 = arith.constant 0 : index
    %c0_438 = arith.constant 0 : index
    %702 = vector.load %arg14[%c0_437, %c0_438] : memref<1x128xf32, #tpu.memory_space<vmem>>, vector<1x128xf32>
    %703 = arith.addf %701, %702 : vector<1x128xf32>
    %704 = arith.truncf %703 : vector<1x128xf32> to vector<1x128xbf16>
    %c0_439 = arith.constant 0 : index
    %c0_440 = arith.constant 0 : index
    %705 = vector.load %arg15[%c0_439, %c0_440] : memref<128x128xbf16, #tpu.memory_space<vmem>>, vector<128x128xbf16>
    %cst_441 = arith.constant dense<0.000000e+00> : vector<1x128xf32>
    %706 = tpu.matmul %704, %705, %cst_441 {dimension_numbers = #tpu.dot_dimension_numbers<[1], [0], [0], [1], [0, 0, 1, 1], [], []>} : vector<1x128xbf16>, vector<128x128xbf16>, vector<1x128xf32> -> vector<1x128xf32>
    %c0_442 = arith.constant 0 : index
    %c0_443 = arith.constant 0 : index
    %707 = vector.load %arg16[%c0_442, %c0_443] : memref<1x128xf32, #tpu.memory_space<vmem>>, vector<1x128xf32>
    %708 = arith.addf %706, %707 : vector<1x128xf32>
    %c0_444 = arith.constant 0 : index
    %c0_445 = arith.constant 0 : index
    %c0_446 = arith.constant 0 : index
    %709 = vector.load %arg17[%c0_444, %c0_445, %c0_446] : memref<1x1x128xf32, #tpu.memory_space<vmem>>, vector<1x1x128xf32>
    %710 = vector.shape_cast %709 : vector<1x1x128xf32> to vector<1x128xf32>
    %711 = vector.shape_cast %708 : vector<1x128xf32> to vector<1x1x128xf32>
    tpu.vector_store %arg17[%c0_444, %c0_445, %c0_446], %711 {strides = array<i32>} : memref<1x1x128xf32, #tpu.memory_space<vmem>>, vector<1x1x128xf32>,
    return
  }
  func.func @transform_0(%arg0: i32) -> (i32, i32, i32, i32) {
    %c0_i32 = arith.constant 0 : i32
    %c0_i32_0 = arith.constant 0 : i32
    %c0_i32_1 = arith.constant 0 : i32
    %c0_i32_2 = arith.constant 0 : i32
    return %arg0, %c0_i32, %c0_i32_0, %c0_i32_1 : i32, i32, i32, i32
  }
  func.func @transform_1(%arg0: i32) -> (i32, i32, i32, i32) {
    %c0_i32 = arith.constant 0 : i32
    %c0_i32_0 = arith.constant 0 : i32
    %c0_i32_1 = arith.constant 0 : i32
    %c0_i32_2 = arith.constant 0 : i32
    return %arg0, %c0_i32, %c0_i32_0, %c0_i32_1 : i32, i32, i32, i32
  }
  func.func @transform_2(%arg0: i32) -> (i32, i32, i32, i32) {
    %c0_i32 = arith.constant 0 : i32
    %c0_i32_0 = arith.constant 0 : i32
    %c0_i32_1 = arith.constant 0 : i32
    %c0_i32_2 = arith.constant 0 : i32
    return %arg0, %c0_i32, %c0_i32_0, %c0_i32_1 : i32, i32, i32, i32
  }
  func.func @transform_3(%arg0: i32) -> (i32, i32, i32, i32) {
    %c0_i32 = arith.constant 0 : i32
    %c0_i32_0 = arith.constant 0 : i32
    %c0_i32_1 = arith.constant 0 : i32
    %c0_i32_2 = arith.constant 0 : i32
    return %arg0, %c0_i32, %c0_i32_0, %c0_i32_1 : i32, i32, i32, i32
  }
  func.func @transform_4(%arg0: i32) -> (i32, i32) {
    %c0_i32 = arith.constant 0 : i32
    %c0_i32_0 = arith.constant 0 : i32
    %c0_i32_1 = arith.constant 0 : i32
    return %c0_i32, %c0_i32_0 : i32, i32
  }
  func.func @transform_5(%arg0: i32) -> (i32, i32) {
    %c0_i32 = arith.constant 0 : i32
    %c0_i32_0 = arith.constant 0 : i32
    %c0_i32_1 = arith.constant 0 : i32
    return %c0_i32, %c0_i32_0 : i32, i32
  }
  func.func @transform_6(%arg0: i32) -> (i32, i32) {
    %c0_i32 = arith.constant 0 : i32
    %c0_i32_0 = arith.constant 0 : i32
    %c0_i32_1 = arith.constant 0 : i32
    return %c0_i32, %c0_i32_0 : i32, i32
  }
  func.func @transform_7(%arg0: i32) -> (i32, i32) {
    %c0_i32 = arith.constant 0 : i32
    %c0_i32_0 = arith.constant 0 : i32
    %c0_i32_1 = arith.constant 0 : i32
    return %c0_i32, %c0_i32_0 : i32, i32
  }
  func.func @transform_8(%arg0: i32) -> (i32, i32) {
    %c0_i32 = arith.constant 0 : i32
    %c0_i32_0 = arith.constant 0 : i32
    %c0_i32_1 = arith.constant 0 : i32
    return %c0_i32, %c0_i32_0 : i32, i32
  }
  func.func @transform_9(%arg0: i32) -> (i32, i32) {
    %c0_i32 = arith.constant 0 : i32
    %c0_i32_0 = arith.constant 0 : i32
    %c0_i32_1 = arith.constant 0 : i32
    return %c0_i32, %c0_i32_0 : i32, i32
  }
  func.func @transform_10(%arg0: i32) -> (i32, i32, i32) {
    %c0_i32 = arith.constant 0 : i32
    %c0_i32_0 = arith.constant 0 : i32
    %c0_i32_1 = arith.constant 0 : i32
    %c0_i32_2 = arith.constant 0 : i32
    return %c0_i32, %c0_i32_0, %c0_i32_1 : i32, i32, i32
  }
  func.func @transform_11(%arg0: i32) -> (i32, i32) {
    %c0_i32 = arith.constant 0 : i32
    %c0_i32_0 = arith.constant 0 : i32
    %c0_i32_1 = arith.constant 0 : i32
    return %c0_i32, %c0_i32_0 : i32, i32
  }
  func.func @transform_12(%arg0: i32) -> (i32, i32) {
    %c0_i32 = arith.constant 0 : i32
    %c0_i32_0 = arith.constant 0 : i32
    %c0_i32_1 = arith.constant 0 : i32
    return %c0_i32, %c0_i32_0 : i32, i32
  }
  func.func @transform_13(%arg0: i32) -> (i32, i32) {
    %c0_i32 = arith.constant 0 : i32
    %c0_i32_0 = arith.constant 0 : i32
    %c0_i32_1 = arith.constant 0 : i32
    return %c0_i32, %c0_i32_0 : i32, i32
  }
  func.func @transform_14(%arg0: i32) -> (i32, i32) {
    %c0_i32 = arith.constant 0 : i32
    %c0_i32_0 = arith.constant 0 : i32
    %c0_i32_1 = arith.constant 0 : i32
    return %c0_i32, %c0_i32_0 : i32, i32
  }
  func.func @transform_15(%arg0: i32) -> (i32, i32) {
    %c0_i32 = arith.constant 0 : i32
    %c0_i32_0 = arith.constant 0 : i32
    %c0_i32_1 = arith.constant 0 : i32
    return %c0_i32, %c0_i32_0 : i32, i32
  }
  func.func @transform_16(%arg0: i32) -> (i32, i32, i32) {
    %c0_i32 = arith.constant 0 : i32
    %c0_i32_0 = arith.constant 0 : i32
    %c0_i32_1 = arith.constant 0 : i32
    return %arg0, %c0_i32, %c0_i32_0 : i32, i32, i32
  }
}

</mosaic_0001>

<bundles_post_ra>
// kernel: convnet_forward.1
= control target key start
LH: loop header
LB: loop body
LE: loop exit
PB: predicated region body
PF: predicated region fallthrough
CT: control target
= control target key end

     0   :  { %s14317_s0 = inlined_call_operand.vmem [shape: f32[2,10,13,1], index: 0, kind: input, shape index: {}]   ;;  %s14318_s1 = inlined_call_operand.vmem [shape: f32[2,10,13,1], index: 1, kind: input, shape index: {}]   ;;  %s14319_s2 = inlined_call_operand.vmem [shape: f32[2,10,13,1], index: 2, kind: input, shape index: {}]   ;;  %s14320_s3 = inlined_call_operand.vmem [shape: f32[2,10,13,1], index: 3, kind: input, shape index: {}]   ;;  %s14321_s4 = inlined_call_operand.vmem [shape: f32[9,16], index: 4, kind: input, shape index: {}]   ;;  %s14322_s5 = inlined_call_operand.vmem [shape: f32[1,16], index: 5, kind: input, shape index: {}]   ;;  %s14323_s6 = inlined_call_operand.vmem [shape: bf16[144,32], index: 6, kind: input, shape index: {}]   ;;  %s14324_s7 = inlined_call_operand.vmem [shape: f32[1,32], index: 7, kind: input, shape index: {}]   ;;  %s14325_s8 = inlined_call_operand.vmem [shape: bf16[288,64], index: 8, kind: input, shape index: {}]   ;;  %s14326_s9 = inlined_call_operand.vmem [shape: f32[1,64], index: 9, kind: input, shape index: {}]   ;;  %s14327_s10 = inlined_call_operand.vmem [shape: bf16[6,64,256], index: 10, kind: input, shape index: {}]   ;;  %s14328_s11 = inlined_call_operand.vmem [shape: f32[1,256], index: 11, kind: input, shape index: {}]   ;;  %s14329_s12 = inlined_call_operand.vmem [shape: bf16[256,128], index: 12, kind: input, shape index: {}]   ;;  %s14330_s13 = inlined_call_operand.vmem [shape: f32[1,128], index: 13, kind: input, shape index: {}]   ;;  %s14331_s14 = inlined_call_operand.vmem [shape: bf16[128,128], index: 14, kind: input, shape index: {}]   ;;  %s14332_s15 = inlined_call_operand.vmem [shape: f32[1,128], index: 15, kind: input, shape index: {}]   ;;  %s14333_s16 = inlined_call_operand.hbm [shape: f32[2,1,128], index: 16, kind: output, shape index: {}]  }
   0x1   :  { %14619 = sst [smem:[#allocation119_spill]] %s14317_s0 }
   0x2   :  { %14620 = sst [smem:[#allocation120_spill]] %s14318_s1 }
   0x3   :  { %14621 = sst [smem:[#allocation121_spill]] %s14319_s2 }
   0x4   :  { %14622 = sst [smem:[#allocation122_spill]] %s14320_s3 }
   0x5   :  { %14623 = sst [smem:[#allocation123_spill]] %s14333_s16 }
   0x6   :  { %21 = vsyncpa [#allocation7], 0 }
   0x7   :  { %23 = vsyncpa [#allocation7 + $0x1], 0  ;;  %s9761_s21 = smov 0   ;;  %s9763_s22 = smov 0  }
   0x8   :  { %s9765_s23 = smov 0   ;;  %s9767_s24 = smov 0  }
   0x9 LB: > { %14624 = sst [smem:[#allocation9_spill]] %s9650_s21  ;;  %s9782_s25 = sadd.s32 4294967295, %s9662_s24   ;;  %s9662_s24 = sphi %s9767_s24, %s15206_s24   ;;  %s9658_s23 = sphi %s9765_s23, %s15208_s23   ;;  %s9654_s22 = sphi %s9763_s22, %s15210_s22   ;;  %s9650_s21 = sphi %s9761_s21, %s15209_s21  }
   0xa   : > { %14625 = sst [smem:[#allocation10_spill]] %s9658_s23  ;;  %s8348_s26 = sadd.s32 4294967294, %s9662_s24  }
   0xb   : > { %14626 = sst [smem:[#allocation11_spill]] %s9662_s24  ;;  %s9786_s27 = sadd.s32 1, %s9662_s24  }
   0xc   : > { %14627 = sst [smem:[#allocation12_spill]] %s9786_s27  ;;  %s392_s28 = sadd.s32 1, %s9658_s23 }
   0xd   : > { %s389_s29 = ssub.s32 %s9662_s24, %s9786_s27  ;;  %p402_p0 = scmp.ne.s32.totalorder %s9658_s23, %s9654_s22 }
   0xe   : > { %p390_p1 = scmp.eq.s32.totalorder %s389_s29, 0  ;;  %p403_p2 = scmp.eq.s32.totalorder %s9782_s25, 1 }
   0xf   : > { %p408_p3 = scmp.ne.s32.totalorder %s9654_s22, %s9650_s21  ;;  %p409_p4 = scmp.eq.s32.totalorder %s8348_s26, 1 }
  0x10   : > { %s9797_s30 = scalar_select %p390_p1, %s9658_s23, %s392_s28  }
  0x11   : > { %p9799_p5 = por %p403_p2, %p402_p0  ;;  %p9803_p6 = por %p409_p4, %p408_p3 }
  0x12   : > { %14628 = sst [smem:[#allocation13_spill]] %s9797_s30  ;;  %p8351_p7 = scmp.ge.s32.totalorder %s9662_s24, 1 }
  0x13   : > { %s14630_s17 = scalar_select %p9803_p6, 1, 0 }
  0x14   : > { %p495_p8 = scmp.lt.s32.totalorder %s9662_s24, 3 }
  0x15   : > { %14631 = sst [smem:[#allocation14_spill]] %s14630_s17 }
  0x16   : > { %p496_p9 = pnand %p8351_p7, %p495_p8 }
  0x18   : > { %499 = sbr.rel (%p496_p9) target bundleno = 2201 (0x899), region = 84 }
  0x1d   : > { %p559_p10 = scmp.lt.s32.totalorder %s9782_s25, 1  ;;  %v14335_v0 = vmov 0   ;;  %s14632_s28 = sld [smem:[#allocation119_spill]]  ;;  %vm3742_vm0 = vcmask 123904   ;;  %vm3743_vm1 = vsmask.f32 1280 }
  0x1e   : > { %9353 = vset.pattern.permute.xlu1 %v14335_v0  ;;  %9352 = vset.pattern.permute.xlu0 %v14335_v0  ;;  %s14633_s1 = sld [smem:[#allocation120_spill]]  ;;  %vm10056_vm2 = vmand %vm3742_vm0, %vm3743_vm1  ;;  %s14404_s30 = smov 16   ;;  %vm14566_vm3 = vcmask 125952   ;;  %vm3907_vm4 = vsmask.f32 3328  ;;  %vm3874_vm7 = vcmask 255104  }
  0x1f   : > { %s560_s18 = scalar_select %p559_p10, %s9782_s25, 1  ;;  %4981 = vmatprep.subr.bf16.mxu0 %v14335_v0  ;;  %5043 = vmatprep.subr.bf16.mxu1 %v14335_v0  ;;  %vm3908_vm5 = vsmask.f32 7440  ;;  %vm10784_vm8 = vmand %vm3874_vm7, %vm3743_vm1  ;;  %vm4112_vm9 = vcmask 386304   ;;  %vm4243_vm11 = vcmask 517504   ;;  %vm4374_vm13 = vcmask 648704  }
  0x20   : > { %s14634_s3 = sld [smem:[#allocation122_spill]]  ;;  %vm10468_vm6 = vmor %vm3907_vm4, %vm3908_vm5  ;;  %s14792_s20 = smov 32   ;;  %vm4609_vm15 = vcmask 779904   ;;  %vm4698_vm4 = vcmask 911104   ;;  %vm3872_vm7 = vcmask 257152  }
  0x21   : > { %s9301_s19 = smul.u32 160, %s560_s18  ;;  %s14635_s2 = sld [smem:[#allocation121_spill]]  ;;  %vm10945_vm10 = vmand %vm4112_vm9, %vm3743_vm1  ;;  %vm4110_vm9 = vcmask 388352  }
  0x22   : > { %s14487_s18 = smov 80   ;;  %vm11128_vm12 = vmand %vm4243_vm11, %vm3743_vm1  ;;  %s14864_s27 = smov 96   ;;  %vm14618_vm11 = vcmask 519552  }
  0x23   : > { %s9818_s29 = scalar_lea.vmem %s14632_s28, %s9301_s19  ;;  %s14485_s28 = smov 48   ;;  %vm11277_vm14 = vmand %vm4374_vm13, %vm3743_vm1  ;;  %vm14585_vm13 = vcmask 650752  }
  0x24   : > { %v9821_v1 = vld [vmem:[%s9818_s29 + $0x10] sm:$0xff]  ;;  %v581_v2 = vld [vmem:[%s9818_s29] sm:$0xff]  ;;  %v584_v3 = vld [vmem:[%s9818_s29 + $0x18] sm:$0xf]  ;;  %s9834_s26 = scalar_lea.vmem %s14633_s1, %s9301_s19  ;;  %s557_s17 = sand.u32 1, %s9654_s22  }
  0x25   : > { %612 = vperm.xlu1 %9353, %v9821_v1   ;;  %602 = vperm.xlu0 %9352, %v581_v2   ;;  %v582_v4 = vld [vmem:[%s9818_s29 + $0x8] sm:$0xf]  ;;  %v9829_v6 = vld [vmem:[%s9818_s29 + $0x20] sm:$0xff]  ;;  %v733_v13 = vld [vmem:[%s9834_s26 + $0x18] sm:$0xf] }
  0x26   : > { %v586_v5 = vld [vmem:[%s9818_s29 + $0x28] sm:$0xf]  ;;  %s9842_s23 = scalar_lea.vmem %s14634_s3, %s9301_s19  ;;  %v8382_v15 = vld [vmem:[%s9834_s26 + $0x18] sm:$0xf]  ;;  %v730_v40 = vld [vmem:[%s9834_s26] sm:$0xff]  ;;  %s14563_s3 = smov 112  }
  0x27   : > { %v880_v7 = vld [vmem:[%s9818_s29 + $0x9] sm:$0xf]  ;;  %s9849_s1 = scalar_lea.vmem %s14635_s2, %s9301_s19  ;;  %v882_v16 = vld [vmem:[%s9818_s29 + $0x19] sm:$0xf]  ;;  %v879_v44 = vld [vmem:[%s9818_s29 + $0x1] sm:$0xff]  ;;  %s14402_s19 = smov 32  }
  0x28   : > { %v731_v8 = vld [vmem:[%s9834_s26 + $0x8] sm:$0xf]  ;;  %v2041_v17 = vld [vmem:[%s9834_s26 + $0x19] sm:$0xf]  ;;  %v1177_v47 = vld [vmem:[%s9842_s23] sm:$0xff]  ;;  %s14853_s2 = smov 48  }
  0x29   : > { %617 = vperm.xlu1 %9353, %v584_v3   ;;  %607 = vperm.xlu0 %9352, %v582_v4   ;;  %v1178_v9 = vld [vmem:[%s9842_s23 + $0x8] sm:$0xf]  ;;  %v8363_v18 = vld [vmem:[%s9818_s29 + $0x18] sm:$0xf]  ;;  %v1028_v48 = vld [vmem:[%s9849_s1] sm:$0xff] }
  0x2a   : > { %v2039_v10 = vld [vmem:[%s9834_s26 + $0x9] sm:$0xf]  ;;  %v1180_v19 = vld [vmem:[%s9842_s23 + $0x18] sm:$0xf]  ;;  %v1326_v52 = vld [vmem:[%s9849_s1 + $0x1] sm:$0xff] }
  0x2b   : > { %v1327_v11 = vld [vmem:[%s9849_s1 + $0x9] sm:$0xf]  ;;  %v8401_v20 = vld [vmem:[%s9818_s29 + $0x19] sm:$0xf]  ;;  %v732_v59 = vld [vmem:[%s9834_s26 + $0x10] sm:$0xff] }
  0x2c   : > { %v1029_v12 = vld [vmem:[%s9849_s1 + $0x8] sm:$0xf]  ;;  %v8421_v21 = vld [vmem:[%s9834_s26 + $0x19] sm:$0xf]  ;;  %v881_v61 = vld [vmem:[%s9818_s29 + $0x11] sm:$0xff] }
  0x2d   : > { %627 = vperm.xlu1 %9353, %v586_v5   ;;  %622 = vperm.xlu0 %9352, %v9829_v6   ;;  %v2255_v14 = vld [vmem:[%s9842_s23 + $0x9] sm:$0xf]  ;;  %v1031_v22 = vld [vmem:[%s9849_s1 + $0x18] sm:$0xf]  ;;  %v2038_v62 = vld [vmem:[%s9834_s26 + $0x1] sm:$0xff] }
  0x2e   : > { %v2257_v23 = vld [vmem:[%s9842_s23 + $0x19] sm:$0xf]  ;;  %v8365_v25 = vld [vmem:[%s9818_s29 + $0x28] sm:$0xf]  ;;  %v1179_v5 = vld [vmem:[%s9842_s23 + $0x10] sm:$0xff] }
  0x2f   : > { %v1329_v24 = vld [vmem:[%s9849_s1 + $0x19] sm:$0xf]  ;;  %v8384_v26 = vld [vmem:[%s9834_s26 + $0x28] sm:$0xf]  ;;  %vm11470_vm0 = vmand %vm4609_vm15, %vm3743_vm1  ;;  %vm14574_vm15 = vcmask 781952  }
  0x30   : > { %v8423_v27 = vld [vmem:[%s9834_s26 + $0x29] sm:$0xf]  ;;  %v8455_v29 = vld [vmem:[%s9842_s23 + $0x18] sm:$0xf]  ;;  %vm11678_vm5 = vmand %vm4698_vm4, %vm3743_vm1  ;;  %vm4696_vm4 = vcmask 913152  }
  0x31   : > { %905 = vperm.xlu1 %9353, %v880_v7   ;;  %756 = vperm.xlu0 %9352, %v731_v8   ;;  %v8403_v28 = vld [vmem:[%s9818_s29 + $0x29] sm:$0xf]  ;;  %v8439_v30 = vld [vmem:[%s9849_s1 + $0x18] sm:$0xf]  ;;  %v1030_v7 = vld [vmem:[%s9849_s1 + $0x10] sm:$0xff] }
  0x32   : > { %v735_v31 = vld [vmem:[%s9834_s26 + $0x28] sm:$0xf]  ;;  %v8471_v32 = vld [vmem:[%s9849_s1 + $0x19] sm:$0xf] }
  0x33   : > { %v2043_v33 = vld [vmem:[%s9834_s26 + $0x29] sm:$0xf]  ;;  %v8487_v41 = vld [vmem:[%s9842_s23 + $0x19] sm:$0xf] }
  0x34   : > { %v884_v34 = vld [vmem:[%s9818_s29 + $0x29] sm:$0xf]  ;;  %v886_v45 = vld [vmem:[%s9818_s29 + $0x39] sm:$0xf] }
  0x35   : > { %1203 = vperm.xlu1 %9353, %v1178_v9   ;;  %2063 = vperm.xlu0 %9352, %v2039_v10   ;;  %v1182_v35 = vld [vmem:[%s9842_s23 + $0x28] sm:$0xf]  ;;  %v737_v46 = vld [vmem:[%s9834_s26 + $0x38] sm:$0xf] }
  0x36   : > { %v8441_v36 = vld [vmem:[%s9849_s1 + $0x28] sm:$0xf]  ;;  %v8386_v49 = vld [vmem:[%s9834_s26 + $0x38] sm:$0xf] }
  0x37   : > { %v1033_v37 = vld [vmem:[%s9849_s1 + $0x28] sm:$0xf]  ;;  %v588_v50 = vld [vmem:[%s9818_s29 + $0x38] sm:$0xf] }
  0x38   : > { %v8457_v38 = vld [vmem:[%s9842_s23 + $0x28] sm:$0xf]  ;;  %v8367_v51 = vld [vmem:[%s9818_s29 + $0x38] sm:$0xf] }
  0x39   : > { %1352 = vperm.xlu1 %9353, %v1327_v11   ;;  %1054 = vperm.xlu0 %9352, %v1029_v12   ;;  %v1331_v39 = vld [vmem:[%s9849_s1 + $0x29] sm:$0xf]  ;;  %v8405_v53 = vld [vmem:[%s9818_s29 + $0x39] sm:$0xf]  ;;  %v2254_v10 = vld [vmem:[%s9842_s23 + $0x1] sm:$0xff] }
  0x3a   : > { %v8473_v42 = vld [vmem:[%s9849_s1 + $0x29] sm:$0xf]  ;;  %v2045_v54 = vld [vmem:[%s9834_s26 + $0x39] sm:$0xf]  ;;  %v9922_v12 = vld [vmem:[%s14321_s4 + $0x1] ss:$0 sm:$0xff] }
  0x3b   : > { %v2259_v43 = vld [vmem:[%s9842_s23 + $0x29] sm:$0xf]  ;;  %v1184_v55 = vld [vmem:[%s9842_s23 + $0x38] sm:$0xf] }
  0x3c   : > { %v8425_v56 = vld [vmem:[%s9834_s26 + $0x39] sm:$0xf]  ;;  %v8489_v60 = vld [vmem:[%s9842_s23 + $0x29] sm:$0xf] }
  0x3d   : > { %766 = vperm.xlu1 %9353, %v733_v13   ;;  %2279 = vperm.xlu0 %9352, %v2255_v14   ;;  %v1035_v57 = vld [vmem:[%s9849_s1 + $0x38] sm:$0xf]  ;;  %v8388_v11 = vld [vmem:[%s9834_s26 + $0x48] sm:$0xf] }
  0x3e   : > { %v1333_v58 = vld [vmem:[%s9849_s1 + $0x39] sm:$0xf] }
  0x3f   : > { %v2261_v2 = vld [vmem:[%s9842_s23 + $0x39] sm:$0xf] }
  0x41   : > { %1652 = vperm.xlu1 %9353, %v8382_v15   ;;  %915 = vperm.xlu0 %9352, %v882_v16   ;;  %v1328_v15 = vld [vmem:[%s9849_s1 + $0x11] sm:$0xff] }
  0x45   : > { %2073 = vperm.xlu1 %9353, %v2041_v17   ;;  %1502 = vperm.xlu0 %9352, %v8363_v18   ;;  %v9934_v17 = vld [vmem:[%s14321_s4] ss:$0 sm:$0xff] }
  0x49   : > { %1213 = vperm.xlu1 %9353, %v1180_v19   ;;  %1801 = vperm.xlu0 %9352, %v8401_v20  }
  0x4d   : > { %2495 = vperm.xlu1 %9353, %v8421_v21   ;;  %1064 = vperm.xlu0 %9352, %v1031_v22   ;;  %v9944_v21 = vld [vmem:[%s14321_s4 + $0x2] ss:$0 sm:$0xff]  ;;  %v8407_v22 = vld [vmem:[%s9818_s29 + $0x49] sm:$0xf] }
  0x51   : > { %2289 = vperm.xlu1 %9353, %v2257_v23   ;;  %1362 = vperm.xlu0 %9352, %v1329_v24   ;;  %v8369_v24 = vld [vmem:[%s9818_s29 + $0x48] sm:$0xf] }
  0x55   : > { %1512 = vperm.xlu1 %9353, %v8365_v25   ;;  %1662 = vperm.xlu0 %9352, %v8384_v26  }
  0x59   : > { %2505 = vperm.xlu1 %9353, %v8423_v27   ;;  %1811 = vperm.xlu0 %9352, %v8403_v28   ;;  %v9957_v28 = vld [vmem:[%s14321_s4 + $0x3] ss:$0 sm:$0xff] }
  0x5d   : > { %2995 = vperm.xlu1 %9353, %v8455_v29   ;;  %2866 = vperm.xlu0 %9352, %v8439_v30  }
  0x61   : > { %776 = vperm.xlu1 %9353, %v735_v31   ;;  %3123 = vperm.xlu0 %9352, %v8471_v32   ;;  %v9964_v31 = vld [vmem:[%s14321_s4 + $0x4] ss:$0 sm:$0xff] }
  0x65   : > { %2083 = vperm.xlu1 %9353, %v2043_v33   ;;  %925 = vperm.xlu0 %9352, %v884_v34  }
  0x69   : > { %1223 = vperm.xlu1 %9353, %v1182_v35   ;;  %2876 = vperm.xlu0 %9352, %v8441_v36   ;;  %v8427_v35 = vld [vmem:[%s9834_s26 + $0x49] sm:$0xf] }
  0x6d   : > { %1074 = vperm.xlu1 %9353, %v1033_v37   ;;  %3005 = vperm.xlu0 %9352, %v8457_v38   ;;  %v2040_v37 = vld [vmem:[%s9834_s26 + $0x11] sm:$0xff]  ;;  %v9978_v38 = vld [vmem:[%s14321_s4 + $0x5] ss:$0 sm:$0xff] }
  0x71   : > { %1372 = vperm.xlu1 %9353, %v1331_v39   ;;  %751 = vperm.xlu0 %9352, %v730_v40  }
  0x75   : > { %3539 = vperm.xlu1 %9353, %v8487_v41   ;;  %3133 = vperm.xlu0 %9352, %v8473_v42  }
  0x79   : > { %2299 = vperm.xlu1 %9353, %v2259_v43   ;;  %900 = vperm.xlu0 %9352, %v879_v44   ;;  %v9990_v43 = vld [vmem:[%s14321_s4 + $0x6] ss:$0 sm:$0xff]  ;;  %v9995_v44 = vld [vmem:[%s14321_s4 + $0x7] ss:$0 sm:$0xff] }
  0x7d   : > { %935 = vperm.xlu1 %9353, %v886_v45   ;;  %786 = vperm.xlu0 %9352, %v737_v46  }
  0x81   : > { %1198 = vperm.xlu1 %9353, %v1177_v47   ;;  %1049 = vperm.xlu0 %9352, %v1028_v48  }
  0x85   : > { %1672 = vperm.xlu1 %9353, %v8386_v49   ;;  %637 = vperm.xlu0 %9352, %v588_v50   ;;  %v8402_v49 = vld [vmem:[%s9818_s29 + $0x21] sm:$0xff] }
  0x89   : > { %1522 = vperm.xlu1 %9353, %v8367_v51   ;;  %1347 = vperm.xlu0 %9352, %v1326_v52  }
  0x8d   : > { %1821 = vperm.xlu1 %9353, %v8405_v53   ;;  %2093 = vperm.xlu0 %9352, %v2045_v54   ;;  %v10011_v53 = vld [vmem:[%s14321_s4 + $0x8] ss:$0 sm:$0xff] }
  0x91   : > { %1497 = vperm.xlu1 %9353, %v9821_v1   ;;  %1233 = vperm.xlu0 %9352, %v1184_v55  }
  0x95   : > { %2515 = vperm.xlu1 %9353, %v8425_v56   ;;  %1084 = vperm.xlu0 %9352, %v1035_v57  }
  0x99   : > { %1382 = vperm.xlu1 %9353, %v1333_v58   ;;  %761 = vperm.xlu0 %9352, %v732_v59  }
  0x9d   : > { %3549 = vperm.xlu1 %9353, %v8489_v60   ;;  %1647 = vperm.xlu0 %9352, %v732_v59   ;;  %v2256_v60 = vld [vmem:[%s9842_s23 + $0x11] sm:$0xff] }
  0xa0   : > { %v9904_v63 = vpop.permute.xlu1 %612  ;;  %v9906_v1 = vpop.permute.xlu0 %602 }
  0xa1   : > { %910 = vperm.xlu1 %9353, %v881_v61   ;;  %2058 = vperm.xlu0 %9352, %v2038_v62   ;;  %v10027_v62 = vld [vmem:[%s14322_s5] ss:$0 sm:$0xff] }
  0xa4   : > { %v9909_v3 = vpop.permute.xlu1 %617  ;;  %v608_v4 = vpop.permute.xlu0 %607 }
  0xa5   : > { %2309 = vperm.xlu1 %9353, %v2261_v2   ;;  %1796 = vperm.xlu0 %9352, %v881_v61   ;;  %v695_v20 = vmul.f32 %v9934_v17, %v608_v4  ;;  %v697_v56 = vmul.f32 %v9934_v17, %v9909_v3 }
  0xa8   : > { %v9913_v8 = vpop.permute.xlu1 %627  ;;  %v9915_v9 = vpop.permute.xlu0 %622 }
  0xa9   : > { %14636 = vst [vmem:[#allocation15_spill] sm:$0xff] %v9915_v9  ;;  %1208 = vperm.xlu1 %9353, %v1179_v5   ;;  %1059 = vperm.xlu0 %9352, %v1030_v7  }
  0xac   : > { %v9924_v13 = vpop.permute.xlu1 %905  ;;  %v9926_v14 = vpop.permute.xlu0 %756 }
  0xad   : > { %2274 = vperm.xlu1 %9353, %v2254_v10   ;;  %1682 = vperm.xlu0 %9352, %v8388_v11   ;;  %v844_v16 = vmul.f32 %v9922_v12, %v9926_v14  ;;  %v993_v27 = vmul.f32 %v9944_v21, %v9924_v13  ;;  %v8443_v11 = vld [vmem:[%s9849_s1 + $0x38] sm:$0xf] }
  0xaf   : > { %v862_v23 = vadd.f32 %v844_v16, %v695_v20  ;;  %v8440_v20 = vld [vmem:[%s9849_s1 + $0x20] sm:$0xff] }
  0xb0   : > { %v9936_v18 = vpop.permute.xlu1 %1203  ;;  %v9938_v19 = vpop.permute.xlu0 %2063 }
  0xb1   : > { %1357 = vperm.xlu1 %9353, %v1328_v15   ;;  %2861 = vperm.xlu0 %9352, %v1030_v7   ;;  %v1011_v30 = vadd.f32 %v993_v27, %v862_v23  ;;  %v1291_v36 = vmul.f32 %v9964_v31, %v9936_v18 }
  0xb4   : > { %v9948_v25 = vpop.permute.xlu1 %1352  ;;  %v9950_v26 = vpop.permute.xlu0 %1054 }
  0xb5   : > { %1831 = vperm.xlu1 %9353, %v8407_v22   ;;  %v1142_v29 = vmul.f32 %v9957_v28, %v9950_v26  ;;  %1532 = vperm.xlu0 %9352, %v8369_v24   ;;  %v1440_v42 = vmul.f32 %v9978_v38, %v9948_v25 }
  0xb7   : > { %v1160_v34 = vadd.f32 %v1142_v29, %v1011_v30  ;;  %v8456_v30 = vld [vmem:[%s9842_s23 + $0x20] sm:$0xff] }
  0xb8   : > { %v9966_v32 = vpop.permute.xlu1 %766  ;;  %v9968_v33 = vpop.permute.xlu0 %2279 }
  0xb9   : > { %1507 = vperm.xlu1 %9353, %v9829_v6   ;;  %2990 = vperm.xlu0 %9352, %v1179_v5   ;;  %v1309_v41 = vadd.f32 %v1291_v36, %v1160_v34  ;;  %v8383_v6 = vld [vmem:[%s9834_s26 + $0x20] sm:$0xff]  ;;  %v846_v50 = vmul.f32 %v9922_v12, %v9966_v32 }
  0xbb   : > { %v1458_v47 = vadd.f32 %v1440_v42, %v1309_v41  ;;  %v864_v61 = vadd.f32 %v846_v50, %v697_v56  ;;  %v3745_v42 = vld [vmem:[#allocation2 + $0x8] sm:$0x3] }
  0xbc   : > { %v9980_v39 = vpop.permute.xlu1 %1652  ;;  %v9982_v40 = vpop.permute.xlu0 %915 }
  0xbd   : > { %2525 = vperm.xlu1 %9353, %v8427_v35   ;;  %2068 = vperm.xlu0 %9352, %v2040_v37   ;;  %v1740_v51 = vmul.f32 %v9995_v44, %v9980_v39  ;;  %v995_v57 = vmul.f32 %v9944_v21, %v9982_v40 }
  0xbf   : > { %v1013_v5 = vadd.f32 %v995_v57, %v864_v61 }
  0xc0   : > { %v9997_v45 = vpop.permute.xlu1 %2073  ;;  %v9999_v46 = vpop.permute.xlu0 %1502 }
  0xc1   : > { %v1590_v48 = vmul.f32 %v9990_v43, %v9999_v46  ;;  %1657 = vperm.xlu1 %9353, %v8383_v6   ;;  %3118 = vperm.xlu0 %9352, %v1328_v15  }
  0xc3   : > { %v1608_v52 = vadd.f32 %v1590_v48, %v1458_v47  ;;  %v2042_v47 = vld [vmem:[%s9834_s26 + $0x21] sm:$0xff] }
  0xc4   : > { %v10013_v54 = vpop.permute.xlu1 %1213  ;;  %v10015_v55 = vpop.permute.xlu0 %1801 }
  0xc5   : > { %v1758_v58 = vadd.f32 %v1740_v51, %v1608_v52  ;;  %1806 = vperm.xlu1 %9353, %v8402_v49   ;;  %v1889_v59 = vmul.f32 %v10011_v53, %v10015_v55  ;;  %2490 = vperm.xlu0 %9352, %v2040_v37   ;;  %v1293_v15 = vmul.f32 %v9964_v31, %v10013_v54  ;;  %v8459_v51 = vld [vmem:[%s9842_s23 + $0x38] sm:$0xf] }
  0xc7   : > { %v1907_v2 = vadd.f32 %v1889_v59, %v1758_v58 }
  0xc8   : > { %v10029_v3 = vpop.permute.xlu1 %2495  ;;  %v10031_v4 = vpop.permute.xlu0 %1064 }
  0xc9   : > { %14637 = vst [vmem:[#allocation16_spill] sm:$0xff] %v10029_v3  ;;  %14638 = vst [vmem:[#allocation17_spill] sm:$0xff] %v10031_v4  ;;  %v1144_v7 = vmul.f32 %v9957_v28, %v10031_v4  ;;  %2284 = vperm.xlu1 %9353, %v2256_v60   ;;  %v1931_v10 = vadd.f32 %v10027_v62, %v1907_v2  ;;  %771 = vperm.xlu0 %9352, %v8383_v6   ;;  %v14640_v6 = vmov 0 }
  0xca   : > { %v14641_v6 = vsel %vm10056_vm2, 4294967295, %v14640_v6 }
  0xcb   : > { %v1162_v16 = vadd.f32 %v1144_v7, %v1013_v5  ;;  %v1949_v22 = vmax.f32 %v1931_v10, 0.0  ;;  %14642 = vst [vmem:[#allocation19_spill] sm:$0xff] %v14641_v6  ;;  %v8475_v7 = vld [vmem:[%s9849_s1 + $0x39] sm:$0xf]  ;;  %v8472_v10 = vld [vmem:[%s9849_s1 + $0x21] sm:$0xff] }
  0xcc   : > { %v10040_v23 = vpop.permute.xlu1 %2289  ;;  %v10042_v24 = vpop.permute.xlu0 %1362 }
  0xcd   : > { %v1311_v27 = vadd.f32 %v1293_v15, %v1162_v16  ;;  %2886 = vperm.xlu1 %9353, %v8443_v11   ;;  %v1442_v29 = vmul.f32 %v9978_v38, %v10042_v24  ;;  %2871 = vperm.xlu0 %9352, %v8440_v20   ;;  %v10047_v34 = vpack.c.bf16 %v1949_v22, %v1949_v22 }
  0xcf   : > { %v1460_v37 = vadd.f32 %v1442_v29, %v1311_v27  ;;  %v3746_v57 = vsel %vm10056_vm2, %v10047_v34, %v3745_v42  ;;  %v3749_v27 = vld [vmem:[#allocation2 + $0x18] sm:$0x3] }
  0xd0   : > { %v10049_v35 = vpop.permute.xlu1 %1512  ;;  %v10051_v36 = vpop.permute.xlu0 %1662  ;;  %3747 = vst [vmem:[#allocation2 + $0x8] sm:$0x3] %v3746_v57 }
  0xd1   : > { %14639 = vst [vmem:[#allocation18_spill] sm:$0xff] %v10049_v35  ;;  %v1592_v41 = vmul.f32 %v9990_v43, %v10049_v35  ;;  %3000 = vperm.xlu1 %9353, %v8456_v30   ;;  %920 = vperm.xlu0 %9352, %v8402_v49   ;;  %v1742_v50 = vmul.f32 %v9995_v44, %v10051_v36 }
  0xd2   : > { %v2183_v35 = vmul.f32 %v9957_v28, %v9936_v18 }
  0xd3   : > { %v1610_v48 = vadd.f32 %v1592_v41, %v1460_v37  ;;  %v2258_v41 = vld [vmem:[%s9842_s23 + $0x21] sm:$0xff] }
  0xd4   : > { %v10064_v52 = vpop.permute.xlu1 %2505  ;;  %v10066_v56 = vpop.permute.xlu0 %1811 }
  0xd5   : > { %v1760_v58 = vadd.f32 %v1742_v50, %v1610_v48  ;;  %2078 = vperm.xlu1 %9353, %v2042_v47   ;;  %v1891_v49 = vmul.f32 %v10011_v53, %v10066_v56  ;;  %3015 = vperm.xlu0 %9352, %v8459_v51  }
  0xd7   : > { %v1909_v59 = vadd.f32 %v1891_v49, %v1760_v58 }
  0xd8   : > { %v10073_v61 = vpop.permute.xlu1 %2995  ;;  %v10075_v2 = vpop.permute.xlu0 %2866 }
  0xd9   : > { %1069 = vperm.xlu1 %9353, %v8440_v20   ;;  %v1933_v5 = vadd.f32 %v10027_v62, %v1909_v59  ;;  %3534 = vperm.xlu0 %9352, %v2256_v60   ;;  %v8445_v59 = vld [vmem:[%s9849_s1 + $0x48] sm:$0xf] }
  0xdb   : > { %v1951_v11 = vmax.f32 %v1933_v5, 0.0 }
  0xdc   : > { %v10080_v15 = vpop.permute.xlu1 %776  ;;  %v10082_v16 = vpop.permute.xlu0 %3123 }
  0xdd   : > { %14643 = vst [vmem:[#allocation20_spill] sm:$0xff] %v10080_v15  ;;  %14644 = vst [vmem:[#allocation21_spill] sm:$0xff] %v10082_v16  ;;  %3143 = vperm.xlu1 %9353, %v8475_v7   ;;  %v10084_v22 = vpack.c.bf16 %v1951_v11, %v1951_v11  ;;  %3128 = vperm.xlu0 %9352, %v8472_v10  }
  0xdf   : > { %14645 = vst [vmem:[#allocation22_spill] sm:$0xff] %v10084_v22  ;;  %v3939_v60 = vshll.u32 %v10084_v22, 16  ;;  %v3943_v20 = vshrl.u32 %v10084_v22, 16  ;;  %v3750_v50 = vsel %vm10056_vm2, %v10084_v22, %v3749_v27  ;;  %v10119_v27 = vld [vmem:[%s9834_s26 + $0x30] sm:$0xff]  ;;  %v8477_v22 = vld [vmem:[%s9849_s1 + $0x49] sm:$0xf] }
  0xe0   : > { %v10086_v29 = vpop.permute.xlu1 %2083  ;;  %v10088_v37 = vpop.permute.xlu0 %925  ;;  %3751 = vst [vmem:[#allocation2 + $0x18] sm:$0x3] %v3750_v50  ;;  %v739_v50 = vld [vmem:[%s9834_s26 + $0x48] sm:$0xf] }
  0xe1   : > { %14646 = vst [vmem:[#allocation23_spill] sm:$0xff] %v10086_v29  ;;  %14647 = vst [vmem:[#allocation24_spill] sm:$0xff] %v10088_v37  ;;  %2500 = vperm.xlu1 %9353, %v2042_v47   ;;  %1218 = vperm.xlu0 %9352, %v8456_v30   ;;  %v10093_v42 = vrot.slane %v3939_v60, 5  ;;  %v3945_v48 = vrot.slane %v3943_v20, 4  ;;  %v4856_v47 = vld [vmem:[#allocation2 + $0xc] sm:$0x3]  ;;  %v699_v29 = vmul.f32 %v9934_v17, %v9913_v8 }
  0xe2   : > { %v10104_v30 = vld [vmem:[%s9818_s29 + $0x30] sm:$0xff] }
  0xe3   : > { %v3946_v58 = vor.u32 %v3945_v48, %v10093_v42  ;;  %v888_v48 = vld [vmem:[%s9818_s29 + $0x49] sm:$0xf] }
  0xe4   : > { %v10098_v51 = vpop.permute.xlu1 %1223  ;;  %v10100_v57 = vpop.permute.xlu0 %2876 }
  0xe5   : > { %14648 = vst [vmem:[#allocation25_spill] sm:$0xff] %v10098_v51  ;;  %14649 = vst [vmem:[#allocation26_spill] sm:$0xff] %v10100_v57  ;;  %2294 = vperm.xlu1 %9353, %v2258_v41   ;;  %1367 = vperm.xlu0 %9352, %v8472_v10   ;;  %v10106_v49 = vrot.slane %v3946_v58, 4  ;;  %v8461_v10 = vld [vmem:[%s9842_s23 + $0x48] sm:$0xf]  ;;  %v2003_v57 = vmul.f32 %v9922_v12, %v9924_v13 }
  0xe7   : > { %14650 = vst [vmem:[#allocation27_spill] sm:$0xff] %v10106_v49  ;;  %v4857_v11 = vsel %vm10056_vm2, %v10106_v49, %v4856_v47 }
  0xe8   : > { %v10109_v5 = vpop.permute.xlu1 %1074  ;;  %v10111_v7 = vpop.permute.xlu0 %3005  ;;  %4858 = vst [vmem:[#allocation2 + $0xc] sm:$0x3] %v4857_v11 }
  0xe9   : > { %14651 = vst [vmem:[#allocation28_spill] sm:$0xff] %v10109_v5  ;;  %14652 = vst [vmem:[#allocation29_spill] sm:$0xff] %v10111_v7  ;;  %1517 = vperm.xlu1 %9353, %v10104_v30   ;;  %2896 = vperm.xlu0 %9352, %v8445_v59   ;;  %v590_v59 = vld [vmem:[%s9818_s29 + $0x48] sm:$0xf] }
  0xec   : > { %v10121_v60 = vpop.permute.xlu1 %1372  ;;  %v10123_v20 = vpop.permute.xlu0 %751 }
  0xed   : > { %14653 = vst [vmem:[#allocation30_spill] sm:$0xff] %v10121_v60  ;;  %14654 = vst [vmem:[#allocation31_spill] sm:$0xff] %v10123_v20  ;;  %3025 = vperm.xlu1 %9353, %v8461_v10   ;;  %1667 = vperm.xlu0 %9352, %v10119_v27   ;;  %v848_v10 = vmul.f32 %v9922_v12, %v10080_v15  ;;  %v1146_v15 = vmul.f32 %v9957_v28, %v10109_v5  ;;  %v10170_v5 = vld [vmem:[%s9834_s26 + $0x31] sm:$0xff] }
  0xf0   : > { %v10128_v58 = vpop.permute.xlu1 %3539  ;;  %v10130_v47 = vpop.permute.xlu0 %3133 }
  0xf1   : > { %14655 = vst [vmem:[#allocation32_spill] sm:$0xff] %v10128_v58  ;;  %14656 = vst [vmem:[#allocation33_spill] sm:$0xff] %v10130_v47  ;;  %945 = vperm.xlu1 %9353, %v888_v48   ;;  %796 = vperm.xlu0 %9352, %v739_v50   ;;  %v997_v48 = vmul.f32 %v9944_v21, %v10088_v37  ;;  %v10145_v50 = vld [vmem:[%s9818_s29 + $0x31] sm:$0xff]  ;;  %v866_v58 = vadd.f32 %v848_v10, %v699_v29 }
  0xf2   : > { %v1967_v29 = vmul.f32 %v9934_v17, %v9926_v14 }
  0xf3   : > { %v1015_v8 = vadd.f32 %v997_v48, %v866_v58  ;;  %v2147_v58 = vmul.f32 %v9944_v21, %v9938_v19  ;;  %v1295_v48 = vmul.f32 %v9964_v31, %v10098_v51  ;;  %v1335_v19 = vld [vmem:[%s9849_s1 + $0x49] sm:$0xf] }
  0xf4   : > { %v10133_v11 = vpop.permute.xlu1 %2299  ;;  %v10135_v0 = vpop.permute.xlu0 %900  ;;  %v2021_v9 = vadd.f32 %v2003_v57, %v1967_v29  ;;  %v741_v29 = vld [vmem:[%s9834_s26 + $0x58] sm:$0xf] }
  0xf5   : > { %14657 = vst [vmem:[#allocation34_spill] sm:$0xff] %v10133_v11  ;;  %14658 = vst [vmem:[#allocation35_spill] sm:$0xff] %v10135_v0  ;;  %647 = vperm.xlu1 %9353, %v590_v59   ;;  %3544 = vperm.xlu0 %9352, %v2258_v41   ;;  %v2047_v41 = vld [vmem:[%s9834_s26 + $0x49] sm:$0xf]  ;;  %v8491_v59 = vld [vmem:[%s9842_s23 + $0x39] sm:$0xf]  ;;  %v1164_v10 = vadd.f32 %v1146_v15, %v1015_v8  ;;  %v1444_v15 = vmul.f32 %v9978_v38, %v10121_v60 }
  0xf6   : > { %v1037_v8 = vld [vmem:[%s9849_s1 + $0x48] sm:$0xf] }
  0xf7   : > { %v1313_v14 = vadd.f32 %v1295_v48, %v1164_v10  ;;  %v2263_v48 = vld [vmem:[%s9842_s23 + $0x49] sm:$0xf] }
  0xf8   : > { %v10147_v47 = vpop.permute.xlu1 %935  ;;  %v10149_v11 = vpop.permute.xlu0 %786 }
  0xf9   : > { %3153 = vperm.xlu1 %9353, %v8477_v22   ;;  %1816 = vperm.xlu0 %9352, %v10145_v50   ;;  %v1186_v22 = vld [vmem:[%s9842_s23 + $0x48] sm:$0xf]  ;;  %v1462_v4 = vadd.f32 %v1444_v15, %v1313_v14  ;;  %v2363_v14 = vmul.f32 %v9978_v38, %v9968_v33 }
  0xfc   : > { %v10156_v7 = vpop.permute.xlu1 %1198  ;;  %v10158_v37 = vpop.permute.xlu0 %1049 }
  0xfd   : > { %14659 = vst [vmem:[#allocation36_spill] sm:$0xff] %v10158_v37  ;;  %2103 = vperm.xlu1 %9353, %v2047_v41   ;;  %3559 = vperm.xlu0 %9352, %v8491_v59   ;;  %v2165_v41 = vadd.f32 %v2147_v58, %v2021_v9  ;;  %v2219_v9 = vmul.f32 %v9964_v31, %v9948_v25 }
  0xff   : > { %v2201_v10 = vadd.f32 %v2183_v35, %v2165_v41  ;;  %v2399_v41 = vmul.f32 %v9990_v43, %v9980_v39 }
 0x100   : > { %v10172_v49 = vpop.permute.xlu1 %1672  ;;  %v10174_v13 = vpop.permute.xlu0 %637 }
 0x101   : > { %14660 = vst [vmem:[#allocation37_spill] sm:$0xff] %v10172_v49  ;;  %1243 = vperm.xlu1 %9353, %v1186_v22   ;;  %2510 = vperm.xlu0 %9352, %v10170_v5   ;;  %v1744_v22 = vmul.f32 %v9995_v44, %v10172_v49  ;;  %v2237_v35 = vadd.f32 %v2219_v9, %v2201_v10 }
 0x102   : > { %v2579_v10 = vmul.f32 %v10011_v53, %v10029_v3 }
 0x104   : > { %v10181_v59 = vpop.permute.xlu1 %1522  ;;  %v10183_v51 = vpop.permute.xlu0 %1347 }
 0x105   : > { %14661 = vst [vmem:[#allocation38_spill] sm:$0xff] %v10181_v59  ;;  %14662 = vst [vmem:[#allocation39_spill] sm:$0xff] %v10183_v51  ;;  %v1594_v57 = vmul.f32 %v9990_v43, %v10181_v59  ;;  %1392 = vperm.xlu1 %9353, %v1335_v19   ;;  %1094 = vperm.xlu0 %9352, %v1037_v8   ;;  %v890_v8 = vld [vmem:[%s9818_s29 + $0x59] sm:$0xf] }
 0x107   : > { %v1612_v58 = vadd.f32 %v1594_v57, %v1462_v4 }
 0x108   : > { %v10195_v60 = vpop.permute.xlu1 %1821  ;;  %v10197_v16 = vpop.permute.xlu0 %2093 }
 0x109   : > { %14663 = vst [vmem:[#allocation40_spill] sm:$0xff] %v10195_v60  ;;  %14664 = vst [vmem:[#allocation41_spill] sm:$0xff] %v10197_v16  ;;  %v1762_v15 = vadd.f32 %v1744_v22, %v1612_v58  ;;  %v1893_v19 = vmul.f32 %v10011_v53, %v10195_v60  ;;  %806 = vperm.xlu1 %9353, %v741_v29   ;;  %2319 = vperm.xlu0 %9352, %v2263_v48   ;;  %v592_v48 = vld [vmem:[%s9818_s29 + $0x58] sm:$0xf] }
 0x10a   : > { %v2381_v16 = vadd.f32 %v2363_v14, %v2237_v35  ;;  %v2435_v22 = vmul.f32 %v9995_v44, %v10015_v55 }
 0x10b   : > { %v1911_v4 = vadd.f32 %v1893_v19, %v1762_v15  ;;  %v843_v15 = vmul.f32 %v9922_v12, %v10123_v20  ;;  %v8390_v20 = vld [vmem:[%s9834_s26 + $0x58] sm:$0xf] }
 0x10c   : > { %v10206_v57 = vpop.permute.xlu1 %1497  ;;  %v10208_v59 = vpop.permute.xlu0 %1233  ;;  %v2417_v29 = vadd.f32 %v2399_v41, %v2381_v16  ;;  %v694_v16 = vmul.f32 %v9934_v17, %v9906_v1  ;;  %v992_v41 = vmul.f32 %v9944_v21, %v10135_v0 }
 0x10d   : > { %14665 = vst [vmem:[#allocation42_spill] sm:$0xff] %v10206_v57  ;;  %v1935_v58 = vadd.f32 %v10027_v62, %v1911_v4  ;;  %632 = vperm.xlu1 %9353, %v10104_v30   ;;  %955 = vperm.xlu0 %9352, %v890_v8   ;;  %v3753_v30 = vld [vmem:[#allocation2 + $0x28] sm:$0x3] }
 0x10e   : > { %v2453_v35 = vadd.f32 %v2435_v22, %v2417_v29  ;;  %v8493_v8 = vld [vmem:[%s9842_s23 + $0x49] sm:$0xf]  ;;  %v861_v22 = vadd.f32 %v843_v15, %v694_v16  ;;  %v1141_v29 = vmul.f32 %v9957_v28, %v10158_v37  ;;  %v8371_v15 = vld [vmem:[%s9818_s29 + $0x58] sm:$0xf] }
 0x10f   : > { %v1953_v9 = vmax.f32 %v1935_v58, 0.0 }
 0x110   : > { %v10219_v14 = vpop.permute.xlu1 %2515  ;;  %v10221_v19 = vpop.permute.xlu0 %1084  ;;  %v2597_v58 = vadd.f32 %v2579_v10, %v2453_v35  ;;  %v1010_v10 = vadd.f32 %v992_v41, %v861_v22  ;;  %v2049_v35 = vld [vmem:[%s9834_s26 + $0x59] sm:$0xf]  ;;  %v1589_v22 = vmul.f32 %v9990_v43, %v10206_v57 }
 0x111   : > { %14666 = vst [vmem:[#allocation43_spill] sm:$0xff] %v10219_v14  ;;  %14667 = vst [vmem:[#allocation44_spill] sm:$0xff] %v10221_v19  ;;  %v10223_v4 = vpack.c.bf16 %v1953_v9, %v1953_v9  ;;  %781 = vperm.xlu1 %9353, %v10119_v27   ;;  %657 = vperm.xlu0 %9352, %v592_v48   ;;  %v8409_v41 = vld [vmem:[%s9818_s29 + $0x59] sm:$0xf] }
 0x112   : > { %v2615_v37 = vadd.f32 %v10027_v62, %v2597_v58  ;;  %v1159_v0 = vadd.f32 %v1141_v29, %v1010_v10 }
 0x113   : > { %14668 = vst [vmem:[#allocation45_spill] sm:$0xff] %v10223_v4  ;;  %v3958_v14 = vshll.u32 %v10223_v4, 16  ;;  %v3962_v1 = vshrl.u32 %v10223_v4, 16  ;;  %v3754_v48 = vsel %vm10056_vm2, %v10223_v4, %v3753_v30  ;;  %v1290_v30 = vmul.f32 %v9964_v31, %v10156_v7 }
 0x114   : > { %v10235_v27 = vpop.permute.xlu1 %1382  ;;  %v10237_v9 = vpop.permute.xlu0 %761  ;;  %3755 = vst [vmem:[#allocation2 + $0x28] sm:$0x3] %v3754_v48  ;;  %v2633_v48 = vmax.f32 %v2615_v37, 0.0  ;;  %v701_v37 = vmul.f32 %v9934_v17, %v10174_v13 }
 0x115   : > { %14669 = vst [vmem:[#allocation46_spill] sm:$0xff] %v10237_v9  ;;  %3569 = vperm.xlu1 %9353, %v8493_v8   ;;  %1692 = vperm.xlu0 %9352, %v8390_v20   ;;  %v10245_v16 = vrot.slane %v3958_v14, 5  ;;  %v3964_v3 = vrot.slane %v3962_v1, 4  ;;  %v1439_v20 = vmul.f32 %v9978_v38, %v10183_v51  ;;  %v4860_v8 = vld [vmem:[#allocation2 + $0x1c] sm:$0x3]  ;;  %v1308_v58 = vadd.f32 %v1290_v30, %v1159_v0 }
 0x116   : > { %v2005_v30 = vmul.f32 %v9922_v12, %v9982_v40  ;;  %v850_v40 = vmul.f32 %v9922_v12, %v10149_v11 }
 0x117   : > { %v3965_v14 = vor.u32 %v3964_v3, %v10245_v16  ;;  %v1034_v3 = vld [vmem:[%s9849_s1 + $0x30] sm:$0xff] }
 0x118   : > { %v10248_v60 = vpop.permute.xlu1 %3549  ;;  %v10250_v49 = vpop.permute.xlu0 %1647 }
 0x119   : > { %14670 = vst [vmem:[#allocation47_spill] sm:$0xff] %v10250_v49  ;;  %2113 = vperm.xlu1 %9353, %v2049_v35   ;;  %1542 = vperm.xlu0 %9352, %v8371_v15   ;;  %v10264_v10 = vrot.slane %v3965_v14, 4  ;;  %v1457_v35 = vadd.f32 %v1439_v20, %v1308_v58  ;;  %v1739_v15 = vmul.f32 %v9995_v44, %v10250_v49 }
 0x11a   : > { %v1969_v58 = vmul.f32 %v9934_v17, %v9966_v32  ;;  %v2185_v32 = vmul.f32 %v9957_v28, %v10013_v54 }
 0x11b   : > { %14672 = vst [vmem:[#allocation49_spill] sm:$0xff] %v10264_v10  ;;  %v4861_v0 = vsel %vm10056_vm2, %v10264_v10, %v4860_v8  ;;  %v1607_v20 = vadd.f32 %v1589_v22, %v1457_v35  ;;  %v2149_v8 = vmul.f32 %v9944_v21, %v9997_v45  ;;  %v1188_v22 = vld [vmem:[%s9842_s23 + $0x58] sm:$0xf]  ;;  %v1183_v35 = vld [vmem:[%s9842_s23 + $0x30] sm:$0xff]  ;;  %v868_v45 = vadd.f32 %v850_v40, %v701_v37 }
 0x11c   : > { %v10260_v29 = vpop.permute.xlu1 %910  ;;  %v10262_v1 = vpop.permute.xlu0 %2058  ;;  %4862 = vst [vmem:[#allocation2 + $0x1c] sm:$0x3] %v4861_v0  ;;  %v8429_v37 = vld [vmem:[%s9834_s26 + $0x59] sm:$0xf] }
 0x11d   : > { %14671 = vst [vmem:[#allocation48_spill] sm:$0xff] %v10260_v29  ;;  %1841 = vperm.xlu1 %9353, %v8409_v41   ;;  %930 = vperm.xlu0 %9352, %v10145_v50   ;;  %v8893_v50 = vpack.c.bf16 %v2633_v48, %v2633_v48  ;;  %v1757_v0 = vadd.f32 %v1739_v15, %v1607_v20 }
 0x11e   : > { %v2023_v48 = vadd.f32 %v2005_v30, %v1969_v58  ;;  %v2221_v20 = vmul.f32 %v9964_v31, %v10042_v24  ;;  %v1148_v30 = vmul.f32 %v9957_v28, %v10221_v19  ;;  %v1332_v19 = vld [vmem:[%s9849_s1 + $0x31] sm:$0xff] }
 0x120   : > { %v10277_v41 = vpop.permute.xlu1 %2309  ;;  %v10279_v14 = vpop.permute.xlu0 %1796  ;;  %v2167_v15 = vadd.f32 %v2149_v8, %v2023_v48 }
 0x121   : > { %14673 = vst [vmem:[#allocation50_spill] sm:$0xff] %v10279_v14  ;;  %1079 = vperm.xlu1 %9353, %v1034_v3   ;;  %v1888_v13 = vmul.f32 %v10011_v53, %v10279_v14  ;;  %3826 = vrot.lane.b32.xlu0 %v8893_v50, %s14404_s30  ;;  %v999_v50 = vmul.f32 %v9944_v21, %v10147_v47 }
 0x122   : > { %v2203_v40 = vadd.f32 %v2185_v32, %v2167_v15  ;;  %v1297_v32 = vmul.f32 %v9964_v31, %v10208_v59 }
 0x123   : > { %v1906_v4 = vadd.f32 %v1888_v13, %v1757_v0  ;;  %v1039_v0 = vld [vmem:[%s9849_s1 + $0x58] sm:$0xf]  ;;  %v1017_v13 = vadd.f32 %v999_v50, %v868_v45 }
 0x124   : > { %v10294_v49 = vpop.permute.xlu1 %1208  ;;  %v10296_v10 = vpop.permute.xlu0 %1059  ;;  %v2239_v48 = vadd.f32 %v2221_v20, %v2203_v40  ;;  %v2401_v20 = vmul.f32 %v9990_v43, %v10051_v36  ;;  %v1337_v40 = vld [vmem:[%s9849_s1 + $0x59] sm:$0xf] }
 0x125   : > { %14674 = vst [vmem:[#allocation51_spill] sm:$0xff] %v10294_v49  ;;  %14675 = vst [vmem:[#allocation52_spill] sm:$0xff] %v10296_v10  ;;  %1253 = vperm.xlu1 %9353, %v1188_v22   ;;  %v1930_v58 = vadd.f32 %v10027_v62, %v1906_v4  ;;  %1228 = vperm.xlu0 %9352, %v1183_v35   ;;  %v1166_v22 = vadd.f32 %v1148_v30, %v1017_v13 }
 0x126   : > { %v2365_v4 = vmul.f32 %v9978_v38, %v10040_v23  ;;  %v1446_v30 = vmul.f32 %v9978_v38, %v10235_v27  ;;  %v696_v13 = vmul.f32 %v9934_v17, %v9904_v63 }
 0x127   : > { %v1948_v14 = vmax.f32 %v1930_v58, 0.0  ;;  %v1315_v50 = vadd.f32 %v1297_v32, %v1166_v22  ;;  %v2437_v58 = vmul.f32 %v9995_v44, %v10066_v56  ;;  %v994_v22 = vmul.f32 %v9944_v21, %v10260_v29 }
 0x128   : > { %v10307_v8 = vpop.permute.xlu1 %2274  ;;  %v10309_v57 = vpop.permute.xlu0 %1682  ;;  %v2383_v15 = vadd.f32 %v2365_v4, %v2239_v48  ;;  %v2651_v29 = vmul.f32 %v9934_v17, %v9950_v26  ;;  %v2683_v26 = vmul.f32 %v9922_v12, %v9936_v18 }
 0x129   : > { %14676 = vst [vmem:[#allocation53_spill] sm:$0xff] %v10307_v8  ;;  %2535 = vperm.xlu1 %9353, %v8429_v37   ;;  %v10311_v51 = vpack.c.bf16 %v1948_v14, %v1948_v14  ;;  %1104 = vperm.xlu0 %9352, %v1039_v0   ;;  %v845_v37 = vmul.f32 %v9922_v12, %v10237_v9  ;;  %v10346_v8 = vld [vmem:[%s9818_s29 + $0x40] sm:$0xff] }
 0x12a   : > { %v2419_v48 = vadd.f32 %v2401_v20, %v2383_v15  ;;  %v1746_v63 = vmul.f32 %v9995_v44, %v10309_v57 }
 0x12b   : > { %14677 = vst [vmem:[#allocation54_spill] sm:$0xff] %v10311_v51  ;;  %3741 = vst.msk [vmem:[#allocation2] sm:$0xf] %vm14566_vm3, %v10311_v51  ;;  %v863_v51 = vadd.f32 %v845_v37, %v696_v13  ;;  %v2265_v13 = vld [vmem:[%s9842_s23 + $0x59] sm:$0xf] }
 0x12c   : > { %v10318_v45 = vpop.permute.xlu1 %1357  ;;  %v10324_v14 = vpop.permute.xlu0 %2861  ;;  %v2455_v9 = vadd.f32 %v2437_v58, %v2419_v48 }
 0x12d   : > { %14678 = vst [vmem:[#allocation55_spill] sm:$0xff] %v10318_v45  ;;  %14679 = vst [vmem:[#allocation56_spill] sm:$0xff] %v10324_v14  ;;  %1377 = vperm.xlu1 %9353, %v1332_v19   ;;  %2881 = vperm.xlu0 %9352, %v1034_v3   ;;  %v1464_v3 = vadd.f32 %v1446_v30, %v1315_v50  ;;  %v1143_v14 = vmul.f32 %v9957_v28, %v10296_v10 }
 0x12e   : > { %v1012_v50 = vadd.f32 %v994_v22, %v863_v51  ;;  %v1292_v51 = vmul.f32 %v9964_v31, %v10294_v49  ;;  %v1441_v22 = vmul.f32 %v9978_v38, %v10318_v45 }
 0x130   : > { %v10333_v0 = vpop.permute.xlu1 %1831  ;;  %v10339_v4 = vpop.permute.xlu0 %1532 }
 0x131   : > { %14680 = vst [vmem:[#allocation57_spill] sm:$0xff] %v10339_v4  ;;  %3010 = vperm.xlu1 %9353, %v1183_v35   ;;  %v1596_v32 = vmul.f32 %v9990_v43, %v10339_v4  ;;  %1402 = vperm.xlu0 %9352, %v1337_v40   ;;  %v2581_v35 = vmul.f32 %v10011_v53, %v10064_v52  ;;  %v3920_v4 = vshll.u32 %v10047_v34, 16 }
 0x132   : > { %v1895_v58 = vmul.f32 %v10011_v53, %v10333_v0  ;;  %v1161_v40 = vadd.f32 %v1143_v14, %v1012_v50 }
 0x133   : > { %v1614_v15 = vadd.f32 %v1596_v32, %v1464_v3  ;;  %v2599_v48 = vadd.f32 %v2581_v35, %v2455_v9  ;;  %v10374_v35 = vld [vmem:[%s9834_s26 + $0x40] sm:$0xff] }
 0x134   : > { %v10350_v20 = vpop.permute.xlu1 %1507  ;;  %v10354_v30 = vpop.permute.xlu0 %2990  ;;  %v1310_v14 = vadd.f32 %v1292_v51, %v1161_v40 }
 0x135   : > { %14681 = vst [vmem:[#allocation58_spill] sm:$0xff] %v10350_v20  ;;  %2088 = vperm.xlu1 %9353, %v10170_v5   ;;  %v1764_v37 = vadd.f32 %v1746_v63, %v1614_v15  ;;  %1527 = vperm.xlu0 %9352, %v10346_v8   ;;  %v8392_v15 = vld [vmem:[%s9834_s26 + $0x68] sm:$0xf]  ;;  %v1591_v9 = vmul.f32 %v9990_v43, %v10350_v20 }
 0x136   : > { %v2617_v50 = vadd.f32 %v10027_v62, %v2599_v48  ;;  %v10389_v20 = vld [vmem:[%s9818_s29 + $0x41] sm:$0xff] }
 0x137   : > { %v1913_v3 = vadd.f32 %v1895_v58, %v1764_v37 }
 0x138   : > { %v10361_v32 = vpop.permute.xlu1 %2525  ;;  %v10367_v5 = vpop.permute.xlu0 %2068  ;;  %v2635_v10 = vmax.f32 %v2617_v50, 0.0 }
 0x139   : > { %14682 = vst [vmem:[#allocation59_spill] sm:$0xff] %v10367_v5  ;;  %3138 = vperm.xlu1 %9353, %v1332_v19   ;;  %v1937_v63 = vadd.f32 %v10027_v62, %v1913_v3  ;;  %2329 = vperm.xlu0 %9352, %v2265_v13   ;;  %v3924_v19 = vshrl.u32 %v10047_v34, 16  ;;  %v1459_v3 = vadd.f32 %v1441_v22, %v1310_v14  ;;  %v10394_v34 = vrot.slane %v3920_v4, 5 }
 0x13a   : > { %v10403_v50 = vpack.c.bf16 %v2635_v10, %v2635_v10 }
 0x13b   : > { %v1955_v58 = vmax.f32 %v1937_v63, 0.0  ;;  %v1609_v48 = vadd.f32 %v1591_v9, %v1459_v3  ;;  %v8373_v63 = vld [vmem:[%s9818_s29 + $0x68] sm:$0xf]  ;;  %14687 = vst [vmem:[#allocation64_spill] sm:$0xff] %v10394_v34  ;;  %v3926_v22 = vrot.slane %v3924_v19, 4 }
 0x13c   : > { %v10377_v37 = vpop.permute.xlu1 %1657  ;;  %v10383_v40 = vpop.permute.xlu0 %3118  ;;  %v3757_v9 = vld [vmem:[#allocation2 + $0x38] sm:$0x3]  ;;  %14688 = vst [vmem:[#allocation65_spill] sm:$0xff] %v10403_v50  ;;  %v8411_v3 = vld [vmem:[%s9818_s29 + $0x69] sm:$0xf] }
 0x13d   : > { %14683 = vst [vmem:[#allocation60_spill] sm:$0xff] %v10377_v37  ;;  %v1741_v13 = vmul.f32 %v9995_v44, %v10377_v37  ;;  %14684 = vst [vmem:[#allocation61_spill] sm:$0xff] %v10383_v40  ;;  %1702 = vperm.xlu1 %9353, %v8392_v15   ;;  %v10385_v51 = vpack.c.bf16 %v1955_v58, %v1955_v58  ;;  %1677 = vperm.xlu0 %9352, %v10374_v35  }
 0x13f   : > { %14685 = vst [vmem:[#allocation62_spill] sm:$0xff] %v10385_v51  ;;  %v3977_v14 = vshll.u32 %v10385_v51, 16  ;;  %v3981_v37 = vshrl.u32 %v10385_v51, 16  ;;  %v1759_v15 = vadd.f32 %v1741_v13, %v1609_v48  ;;  %v3927_v48 = vor.u32 %v3926_v22, %v10394_v34 }
 0x140   : > { %v10392_v45 = vpop.permute.xlu1 %1806  ;;  %v10400_v49 = vpop.permute.xlu0 %2490 }
 0x141   : > { %14686 = vst [vmem:[#allocation63_spill] sm:$0xff] %v10392_v45  ;;  %v1890_v58 = vmul.f32 %v10011_v53, %v10392_v45  ;;  %1826 = vperm.xlu1 %9353, %v10389_v20   ;;  %1552 = vperm.xlu0 %9352, %v8373_v63   ;;  %v10406_v4 = vrot.slane %v3977_v14, 5  ;;  %v3983_v19 = vrot.slane %v3981_v37, 4  ;;  %v3758_v45 = vsel %vm10056_vm2, %v10385_v51, %v3757_v9  ;;  %v4864_v63 = vld [vmem:[#allocation2 + $0x2c] sm:$0x3] }
 0x142   : > { %3759 = vst [vmem:[#allocation2 + $0x38] sm:$0x3] %v3758_v45  ;;  %v2699_v14 = vadd.f32 %v2683_v26, %v2651_v29  ;;  %v2260_v29 = vld [vmem:[%s9842_s23 + $0x31] sm:$0xff]  ;;  %v8444_v26 = vld [vmem:[%s9849_s1 + $0x40] sm:$0xff] }
 0x143   : > { %v1908_v5 = vadd.f32 %v1890_v58, %v1759_v15  ;;  %v3984_v10 = vor.u32 %v3983_v19, %v10406_v4  ;;  %v3928_v58 = vrot.slane %v3927_v48, 4 }
 0x144   : > { %v10410_v13 = vpop.permute.xlu1 %2284  ;;  %v10416_v40 = vpop.permute.xlu0 %771 }
 0x145   : > { %14689 = vst [vmem:[#allocation66_spill] sm:$0xff] %v10410_v13  ;;  %14690 = vst [vmem:[#allocation67_spill] sm:$0xff] %v10416_v40  ;;  %3830 = vrot.lane.b32.xlu1 %v10403_v50, %s14404_s30  ;;  %v1932_v37 = vadd.f32 %v10027_v62, %v1908_v5  ;;  %1851 = vperm.xlu0 %9352, %v8411_v3   ;;  %v10424_v22 = vrot.slane %v3984_v10, 4  ;;  %v2715_v5 = vmul.f32 %v9944_v21, %v9948_v25  ;;  %v8460_v50 = vld [vmem:[%s9842_s23 + $0x40] sm:$0xff]  ;;  %s14465_s30 = smov 64  }
 0x146   : > { %v2747_v3 = vmul.f32 %v9957_v28, %v9999_v46 }
 0x147   : > { %14691 = vst [vmem:[#allocation68_spill] sm:$0xff] %v10424_v22  ;;  %v1950_v9 = vmax.f32 %v1932_v37, 0.0  ;;  %v4865_v45 = vsel %vm10056_vm2, %v10424_v22, %v4864_v63  ;;  %v2731_v19 = vadd.f32 %v2715_v5, %v2699_v14  ;;  %v8431_v14 = vld [vmem:[%s9834_s26 + $0x69] sm:$0xf] }
 0x148   : > { %v10426_v15 = vpop.permute.xlu1 %2886  ;;  %v10428_v51 = vpop.permute.xlu0 %2871  ;;  %4866 = vst [vmem:[#allocation2 + $0x2c] sm:$0x3] %v4865_v45 }
 0x149   : > { %14692 = vst [vmem:[#allocation69_spill] sm:$0xff] %v10426_v15  ;;  %14693 = vst [vmem:[#allocation70_spill] sm:$0xff] %v10428_v51  ;;  %642 = vperm.xlu1 %9353, %v10346_v8   ;;  %4064 = vrot.lane.b32.xlu0 %v3928_v58, %s14402_s19  ;;  %v10442_v8 = vpack.c.bf16 %v1950_v9, %v1950_v9  ;;  %v2763_v37 = vadd.f32 %v2747_v3, %v2731_v19 }
 0x14a   : > { %v2779_v58 = vmul.f32 %v9964_v31, %v9980_v39  ;;  %v2811_v19 = vmul.f32 %v9978_v38, %v10015_v55 }
 0x14b   : > { %14695 = vst [vmem:[#allocation72_spill] sm:$0xff] %v10442_v8  ;;  %v3930_v46 = vshrl.u32 %v10442_v8, 16  ;;  %v3933_v63 = vshll.u32 %v10442_v8, 16  ;;  %3748 = vst.msk [vmem:[#allocation2 + $0x10] sm:$0xf] %vm14566_vm3, %v10442_v8 }
 0x14c   : > { %v10440_v48 = vpop.permute.xlu1 %3000  ;;  %v10444_v10 = vpop.permute.xlu0 %920 }
 0x14d   : > { %14694 = vst [vmem:[#allocation71_spill] sm:$0xff] %v10440_v48  ;;  %14696 = vst [vmem:[#allocation73_spill] sm:$0xff] %v10444_v10  ;;  %2304 = vperm.xlu1 %9353, %v2260_v29   ;;  %791 = vperm.xlu0 %9352, %v10374_v35   ;;  %v3932_v45 = vrot.slane %v3930_v46, 4  ;;  %v3935_v5 = vrot.slane %v3933_v63, 5  ;;  %v2795_v35 = vadd.f32 %v2779_v58, %v2763_v37 }
 0x14e   : > { %v2940_v48 = vmul.f32 %v9990_v43, %v10075_v2  ;;  %v2046_v2 = vld [vmem:[%s9834_s26 + $0x41] sm:$0xff] }
 0x14f   : > { %v3936_v8 = vor.u32 %v3935_v5, %v3932_v45  ;;  %v2827_v37 = vadd.f32 %v2811_v19, %v2795_v35  ;;  %v3069_v5 = vmul.f32 %v9995_v44, %v10073_v61  ;;  %v14706_v19 = vld [vmem:[#allocation21_spill] sm:$0xff] }
 0x150   : > { %v10455_v9 = vpop.permute.xlu1 %2078  ;;  %v10457_v3 = vpop.permute.xlu0 %3015 }
 0x151   : > { %14697 = vst [vmem:[#allocation74_spill] sm:$0xff] %v10455_v9  ;;  %14698 = vst [vmem:[#allocation75_spill] sm:$0xff] %v10457_v3  ;;  %2891 = vperm.xlu1 %9353, %v8444_v26   ;;  %2545 = vperm.xlu0 %9352, %v8431_v14   ;;  %v3937_v46 = vrot.slane %v3936_v8, 4  ;;  %v2956_v8 = vadd.f32 %v2940_v48, %v2827_v37  ;;  %v8447_v48 = vld [vmem:[%s9849_s1 + $0x58] sm:$0xf] }
 0x153   : > { %v10476_v14 = vsel %vm10468_vm6, %v3937_v46, %v10093_v42  ;;  %v3085_v35 = vadd.f32 %v3069_v5, %v2956_v8  ;;  %v3197_v42 = vmul.f32 %v10011_v53, %v14706_v19  ;;  %v2685_v5 = vmul.f32 %v9922_v12, %v10013_v54 }
 0x154   : > { %v10464_v51 = vpop.permute.xlu1 %1069  ;;  %v10466_v63 = vpop.permute.xlu0 %3534  ;;  %14703 = vst [vmem:[#allocation78_spill] sm:$0xff] %v10476_v14  ;;  %4855 = vst.msk [vmem:[#allocation2 + $0x4] sm:$0xf] %vm14566_vm3, %v10476_v14 }
 0x155   : > { %14699 = vst [vmem:[#allocation76_spill] sm:$0xff] %v10464_v51  ;;  %14700 = vst [vmem:[#allocation77_spill] sm:$0xff] %v10466_v63  ;;  %3020 = vperm.xlu1 %9353, %v8460_v50   ;;  %940 = vperm.xlu0 %9352, %v10389_v20   ;;  %v8476_v20 = vld [vmem:[%s9849_s1 + $0x41] sm:$0xff]  ;;  %v3213_v37 = vadd.f32 %v3197_v42, %v3085_v35  ;;  %v3293_v35 = vmul.f32 %v9922_v12, %v9948_v25  ;;  %v14715_v25 = vld [vmem:[#allocation15_spill] sm:$0xff] }
 0x158   : > { %v10481_v58 = vpop.permute.xlu1 %3143  ;;  %v10483_v45 = vpop.permute.xlu0 %3128 }
 0x159   : > { %14704 = vst [vmem:[#allocation79_spill] sm:$0xff] %v10481_v58  ;;  %14705 = vst [vmem:[#allocation80_spill] sm:$0xff] %v10483_v45  ;;  %3554 = vperm.xlu1 %9353, %v2260_v29   ;;  %2098 = vperm.xlu0 %9352, %v2046_v2   ;;  %v14711_v45 = vld [vmem:[#allocation17_spill] sm:$0xff]  ;;  %v3261_v58 = vmul.f32 %v9934_v17, %v9936_v18 }
 0x15a   : > { %v2653_v8 = vmul.f32 %v9934_v17, %v14711_v45  ;;  %v847_v45 = vmul.f32 %v9922_v12, %v10416_v40  ;;  %v14718_v40 = vld [vmem:[#allocation27_spill] sm:$0xff] }
 0x15b   : > { %v3309_v12 = vadd.f32 %v3293_v35, %v3261_v58 }
 0x15c   : > { %v10490_v46 = vpop.permute.xlu1 %2500  ;;  %v10492_v22 = vpop.permute.xlu0 %1218 }
 0x15d   : > { %14707 = vst [vmem:[#allocation21_spill] sm:$0xff] %v10490_v46  ;;  %14708 = vst [vmem:[#allocation81_spill] sm:$0xff] %v10492_v22  ;;  %3148 = vperm.xlu1 %9353, %v8476_v20   ;;  %1089 = vperm.xlu0 %9352, %v8444_v26   ;;  %v2717_v46 = vmul.f32 %v9944_v21, %v10042_v24  ;;  %v3229_v26 = vadd.f32 %v10027_v62, %v3213_v37  ;;  %v8463_v37 = vld [vmem:[%s9842_s23 + $0x58] sm:$0xf] }
 0x15e   : > { %v3325_v62 = vmul.f32 %v9944_v21, %v9968_v33  ;;  %v1294_v35 = vmul.f32 %v9964_v31, %v10492_v22 }
 0x160   : > { %v10495_v14 = vpop.permute.xlu1 %2294  ;;  %v10497_v29 = vpop.permute.xlu0 %1367 }
 0x161   : > { %14709 = vst [vmem:[#allocation82_spill] sm:$0xff] %v10495_v14  ;;  %14710 = vst [vmem:[#allocation83_spill] sm:$0xff] %v10497_v29  ;;  %2906 = vperm.xlu1 %9353, %v8447_v48   ;;  %1238 = vperm.xlu0 %9352, %v8460_v50   ;;  %v2701_v48 = vadd.f32 %v2685_v5, %v2653_v8  ;;  %v14714_v14 = vld [vmem:[#allocation18_spill] sm:$0xff]  ;;  %v996_v8 = vmul.f32 %v9944_v21, %v10444_v10  ;;  %v3245_v5 = vmax.f32 %v3229_v26, 0.0 }
 0x162   : > { %v2749_v50 = vmul.f32 %v9957_v28, %v14714_v14  ;;  %v3341_v21 = vadd.f32 %v3325_v62, %v3309_v12  ;;  %v3389_v26 = vmul.f32 %v9964_v31, %v10015_v55  ;;  %v2813_v62 = vmul.f32 %v9978_v38, %v10066_v56 }
 0x164   : > { %v10506_v13 = vpop.permute.xlu1 %1517  ;;  %v10510_v42 = vpop.permute.xlu0 %2896 }
 0x165   : > { %14712 = vst [vmem:[#allocation17_spill] sm:$0xff] %v10506_v13  ;;  %14713 = vst [vmem:[#allocation84_spill] sm:$0xff] %v10510_v42  ;;  %1387 = vperm.xlu1 %9353, %v8476_v20   ;;  %2520 = vperm.xlu0 %9352, %v2046_v2   ;;  %v698_v42 = vmul.f32 %v9934_v17, %v14715_v25  ;;  %v2733_v20 = vadd.f32 %v2717_v46, %v2701_v48  ;;  %v2262_v46 = vld [vmem:[%s9842_s23 + $0x41] sm:$0xff] }
 0x166   : > { %v3357_v2 = vmul.f32 %v9957_v28, %v9980_v39  ;;  %v1145_v17 = vmul.f32 %v9957_v28, %v10464_v51  ;;  %v2781_v39 = vmul.f32 %v9964_v31, %v10051_v36  ;;  %v14719_v48 = vld [vmem:[#allocation16_spill] sm:$0xff]  ;;  %v1443_v31 = vmul.f32 %v9978_v38, %v10497_v29 }
 0x167   : > { %v2765_v33 = vadd.f32 %v2749_v50, %v2733_v20  ;;  %v865_v3 = vadd.f32 %v847_v45, %v698_v42  ;;  %v10544_v42 = vpack.c.bf16 %v3245_v5, %v3245_v5  ;;  %v3421_v50 = vmul.f32 %v9978_v38, %v14719_v48  ;;  %v14721_v5 = vld [vmem:[#allocation26_spill] sm:$0xff] }
 0x168   : > { %v10525_v14 = vpop.permute.xlu1 %3025  ;;  %v10529_v18 = vpop.permute.xlu0 %1667  ;;  %v3373_v28 = vadd.f32 %v3357_v2, %v3341_v21  ;;  %v3453_v20 = vmul.f32 %v9990_v43, %v10073_v61  ;;  %v2942_v12 = vmul.f32 %v9990_v43, %v14721_v5  ;;  %v3485_v21 = vmul.f32 %v9995_v44, %v14706_v19  ;;  %v14724_v44 = vld [vmem:[#allocation32_spill] sm:$0xff] }
 0x169   : > { %14716 = vst [vmem:[#allocation18_spill] sm:$0xff] %v10525_v14  ;;  %14717 = vst [vmem:[#allocation15_spill] sm:$0xff] %v10529_v18  ;;  %4068 = vrot.lane.b32.xlu1 %v14718_v40, %s14402_s19  ;;  %3035 = vperm.xlu0 %9352, %v8463_v37   ;;  %v1014_v58 = vadd.f32 %v996_v8, %v865_v3  ;;  %v2797_v55 = vadd.f32 %v2781_v39, %v2765_v33  ;;  %v10557_v37 = vld [vmem:[%s9818_s29 + $0x50] sm:$0xff]  ;;  %v8479_v8 = vld [vmem:[%s9849_s1 + $0x59] sm:$0xf]  ;;  %s14754_s19 = smov 16  }
 0x16a   : > { %v3405_v25 = vadd.f32 %v3389_v26, %v3373_v28  ;;  %v1593_v33 = vmul.f32 %v9990_v43, %v10506_v13  ;;  %v10576_v26 = vld [vmem:[%s14321_s4 + $0x7] ss:$0 sm:$0xff]  ;;  %v3613_v19 = vmul.f32 %v10011_v53, %v14724_v44  ;;  %v10619_v44 = vld [vmem:[%s9818_s29 + $0x51] sm:$0xff] }
 0x16b   : > { %v1163_v3 = vadd.f32 %v1145_v17, %v1014_v58  ;;  %v2829_v61 = vadd.f32 %v2813_v62, %v2797_v55  ;;  %v14723_v58 = vld [vmem:[#allocation29_spill] sm:$0xff]  ;;  %v1743_v28 = vmul.f32 %v10576_v26, %v10529_v18 }
 0x16c   : > { %v10542_v40 = vpop.permute.xlu1 %945  ;;  %v10548_v45 = vpop.permute.xlu0 %796  ;;  %v3437_v17 = vadd.f32 %v3421_v50, %v3405_v25  ;;  %v10585_v50 = vld [vmem:[%s9834_s26 + $0x50] sm:$0xff]  ;;  %v14725_v62 = vld [vmem:[#allocation33_spill] sm:$0xff] }
 0x16d   : > { %14720 = vst [vmem:[#allocation27_spill] sm:$0xff] %v10548_v45  ;;  %2314 = vperm.xlu1 %9353, %v2262_v46   ;;  %4195 = vrot.lane.b32.xlu0 %v10544_v42, %s14485_s28  ;;  %v1312_v2 = vadd.f32 %v1294_v35, %v1163_v3  ;;  %v3071_v35 = vmul.f32 %v10576_v26, %v14723_v58 }
 0x16e   : > { %v3469_v48 = vadd.f32 %v3453_v20, %v3437_v17  ;;  %v2958_v55 = vadd.f32 %v2942_v12, %v2829_v61  ;;  %v3199_v3 = vmul.f32 %v10011_v53, %v14725_v62  ;;  %v14727_v20 = vld [vmem:[#allocation24_spill] sm:$0xff]  ;;  %v10603_v53 = vld [vmem:[%s14321_s4 + $0x8] ss:$0 sm:$0xff] }
 0x16f   : > { %v1461_v43 = vadd.f32 %v1443_v31, %v1312_v2 }
 0x170   : > { %v10566_v38 = vpop.permute.xlu1 %647  ;;  %v10570_v39 = vpop.permute.xlu0 %3544  ;;  %v3501_v31 = vadd.f32 %v3485_v21, %v3469_v48  ;;  %v3087_v12 = vadd.f32 %v3071_v35, %v2958_v55  ;;  %v8449_v21 = vld [vmem:[%s9849_s1 + $0x68] sm:$0xf]  ;;  %v14729_v35 = vld [vmem:[#allocation20_spill] sm:$0xff] }
 0x171   : > { %14722 = vst [vmem:[#allocation16_spill] sm:$0xff] %v10570_v39  ;;  %1537 = vperm.xlu1 %9353, %v10557_v37   ;;  %3163 = vperm.xlu0 %9352, %v8479_v8   ;;  %v1611_v25 = vadd.f32 %v1593_v33, %v1461_v43  ;;  %v10594_v8 = vld [vmem:[%s14321_s4 + $0x1] ss:$0 sm:$0xff] }
 0x172   : > { %v2007_v2 = vmul.f32 %v10594_v8, %v14727_v20  ;;  %v3295_v43 = vmul.f32 %v10594_v8, %v10042_v24  ;;  %v3629_v48 = vadd.f32 %v3613_v19, %v3501_v31  ;;  %v3215_v55 = vadd.f32 %v3199_v3, %v3087_v12  ;;  %v10632_v19 = vld [vmem:[%s14322_s5] ss:$0 sm:$0xff] }
 0x173   : > { %v1761_v61 = vadd.f32 %v1743_v28, %v1611_v25  ;;  %v852_v34 = vmul.f32 %v10594_v8, %v10548_v45 }
 0x174   : > { %v10589_v5 = vpop.permute.xlu1 %3153  ;;  %v10598_v17 = vpop.permute.xlu0 %1816 }
 0x175   : > { %14726 = vst [vmem:[#allocation26_spill] sm:$0xff] %v10589_v5  ;;  %14728 = vst [vmem:[#allocation29_spill] sm:$0xff] %v10598_v17  ;;  %3564 = vperm.xlu1 %9353, %v2262_v46   ;;  %v1892_v33 = vmul.f32 %v10603_v53, %v10598_v17  ;;  %1687 = vperm.xlu0 %9352, %v10585_v50   ;;  %v10614_v46 = vld [vmem:[%s14321_s4] ss:$0 sm:$0xff]  ;;  %v743_v17 = vld [vmem:[%s9834_s26 + $0x68] sm:$0xf] }
 0x176   : > { %v1971_v28 = vmul.f32 %v10614_v46, %v14729_v35  ;;  %v3263_v13 = vmul.f32 %v10614_v46, %v10013_v54  ;;  %v10638_v54 = vld [vmem:[%s14321_s4 + $0x2] ss:$0 sm:$0xff]  ;;  %v703_v10 = vmul.f32 %v10614_v46, %v10566_v38  ;;  %v2051_v38 = vld [vmem:[%s9834_s26 + $0x69] sm:$0xf] }
 0x177   : > { %v1910_v20 = vadd.f32 %v1892_v33, %v1761_v61  ;;  %v3645_v61 = vadd.f32 %v10632_v19, %v3629_v48  ;;  %v10644_v33 = vld [vmem:[%s9834_s26 + $0x51] sm:$0xff] }
 0x178   : > { %v10621_v25 = vpop.permute.xlu1 %2103  ;;  %v2025_v24 = vadd.f32 %v2007_v2, %v1971_v28  ;;  %v10625_v51 = vpop.permute.xlu0 %3559  ;;  %v3311_v31 = vadd.f32 %v3295_v43, %v3263_v13  ;;  %v14732_v2 = vld [vmem:[#allocation23_spill] sm:$0xff]  ;;  %v3327_v13 = vmul.f32 %v10638_v54, %v10040_v23  ;;  %v10667_v23 = vld [vmem:[%s14321_s4 + $0x4] ss:$0 sm:$0xff]  ;;  %v870_v15 = vadd.f32 %v852_v34, %v703_v10 }
 0x179   : > { %14730 = vst [vmem:[#allocation32_spill] sm:$0xff] %v10621_v25  ;;  %14731 = vst [vmem:[#allocation33_spill] sm:$0xff] %v10625_v51  ;;  %2916 = vperm.xlu1 %9353, %v8449_v21   ;;  %1836 = vperm.xlu0 %9352, %v10619_v44   ;;  %v1934_v3 = vadd.f32 %v10632_v19, %v1910_v20  ;;  %v2151_v12 = vmul.f32 %v10638_v54, %v14732_v2  ;;  %v10654_v20 = vld [vmem:[%s14321_s4 + $0x3] ss:$0 sm:$0xff]  ;;  %v3661_v29 = vmax.f32 %v3645_v61, 0.0 }
 0x17a   : > { %v3231_v21 = vadd.f32 %v10632_v19, %v3215_v55  ;;  %v14733_v2 = vld [vmem:[#allocation25_spill] sm:$0xff]  ;;  %v3359_v55 = vmul.f32 %v10654_v20, %v10051_v36  ;;  %v3343_v18 = vadd.f32 %v3327_v13, %v3311_v31  ;;  %v3391_v36 = vmul.f32 %v10667_v23, %v10066_v56  ;;  %v8495_v34 = vld [vmem:[%s9842_s23 + $0x59] sm:$0xf] }
 0x17b   : > { %v1952_v28 = vmax.f32 %v1934_v3, 0.0  ;;  %v2169_v43 = vadd.f32 %v2151_v12, %v2025_v24  ;;  %v2187_v48 = vmul.f32 %v10654_v20, %v14733_v2  ;;  %v8465_v3 = vld [vmem:[%s9842_s23 + $0x68] sm:$0xf]  ;;  %v10685_v61 = vld [vmem:[%s14321_s4 + $0x5] ss:$0 sm:$0xff]  ;;  %v8925_v14 = vpack.c.bf16 %v3661_v29, %v3661_v29 }
 0x17c   : > { %v10647_v35 = vpop.permute.xlu1 %1243  ;;  %v10658_v25 = vpop.permute.xlu0 %2510  ;;  %v14735_v24 = vld [vmem:[#allocation30_spill] sm:$0xff] }
 0x17d   : > { %14734 = vst [vmem:[#allocation24_spill] sm:$0xff] %v10658_v25  ;;  %816 = vperm.xlu1 %9353, %v743_v17   ;;  %2530 = vperm.xlu0 %9352, %v10644_v33   ;;  %v2223_v12 = vmul.f32 %v10667_v23, %v14735_v24  ;;  %v892_v51 = vld [vmem:[%s9818_s29 + $0x69] sm:$0xf]  ;;  %v10672_v22 = vpack.c.bf16 %v1952_v28, %v1952_v28  ;;  %v3247_v25 = vmax.f32 %v3231_v21, 0.0 }
 0x17e   : > { %v2205_v5 = vadd.f32 %v2187_v48, %v2169_v43  ;;  %v14738_v28 = vld [vmem:[#allocation34_spill] sm:$0xff]  ;;  %v3375_v21 = vadd.f32 %v3359_v55, %v3343_v18  ;;  %v10692_v43 = vld [vmem:[%s14321_s4 + $0x6] ss:$0 sm:$0xff]  ;;  %v14742_v55 = vld [vmem:[#allocation40_spill] sm:$0xff] }
 0x17f   : > { %14736 = vst [vmem:[#allocation20_spill] sm:$0xff] %v10672_v22  ;;  %3752 = vst.msk [vmem:[#allocation2 + $0x20] sm:$0xf] %vm14566_vm3, %v10672_v22  ;;  %v2367_v13 = vmul.f32 %v10685_v61, %v14738_v28  ;;  %v14739_v48 = vld [vmem:[#allocation37_spill] sm:$0xff]  ;;  %v10700_v28 = vpack.c.bf16 %v3247_v25, %v3247_v25  ;;  %v3423_v25 = vmul.f32 %v10685_v61, %v10064_v52 }
 0x180   : > { %v10674_v17 = vpop.permute.xlu1 %1392  ;;  %v10678_v31 = vpop.permute.xlu0 %1094  ;;  %v2241_v56 = vadd.f32 %v2223_v12, %v2205_v5  ;;  %v3407_v29 = vadd.f32 %v3391_v36, %v3375_v21  ;;  %v2439_v12 = vmul.f32 %v10576_v26, %v14742_v55  ;;  %v3455_v36 = vmul.f32 %v10692_v43, %v14723_v58  ;;  %v594_v21 = vld [vmem:[%s9818_s29 + $0x68] sm:$0xf] }
 0x181   : > { %14737 = vst [vmem:[#allocation23_spill] sm:$0xff] %v10678_v31  ;;  %3045 = vperm.xlu1 %9353, %v8465_v3   ;;  %965 = vperm.xlu0 %9352, %v892_v51   ;;  %v2403_v3 = vmul.f32 %v10692_v43, %v14739_v48  ;;  %v3949_v51 = vshrl.u32 %v10672_v22, 16  ;;  %v3487_v52 = vmul.f32 %v10576_v26, %v14725_v62  ;;  %v8481_v62 = vld [vmem:[%s9849_s1 + $0x69] sm:$0xf] }
 0x182   : > { %v2385_v5 = vadd.f32 %v2367_v13, %v2241_v56  ;;  %v3952_v13 = vshll.u32 %v10672_v22, 16  ;;  %v3439_v48 = vadd.f32 %v3423_v25, %v3407_v29  ;;  %v3615_v29 = vmul.f32 %v10603_v53, %v10248_v60 }
 0x184   : > { %v10698_v39 = vpop.permute.xlu1 %806  ;;  %v10703_v18 = vpop.permute.xlu0 %2319  ;;  %v2421_v56 = vadd.f32 %v2403_v3, %v2385_v5  ;;  %v3954_v58 = vrot.slane %v3952_v13, 5  ;;  %v1150_v3 = vmul.f32 %v10654_v20, %v10678_v31  ;;  %v3471_v10 = vadd.f32 %v3455_v36, %v3439_v48  ;;  %v1190_v36 = vld [vmem:[%s9842_s23 + $0x68] sm:$0xf] }
 0x185   : > { %14740 = vst [vmem:[#allocation25_spill] sm:$0xff] %v10698_v39  ;;  %14741 = vst [vmem:[#allocation85_spill] sm:$0xff] %v10703_v18  ;;  %4326 = vrot.lane.b32.xlu1 %v8925_v14, %s14465_s30  ;;  %4199 = vrot.lane.b32.xlu0 %v10700_v28, %s14485_s28  ;;  %v3951_v14 = vrot.slane %v3949_v51, 4  ;;  %v14743_v18 = vld [vmem:[#allocation43_spill] sm:$0xff]  ;;  %v1001_v51 = vmul.f32 %v10638_v54, %v10542_v40 }
 0x186   : > { %v2583_v45 = vmul.f32 %v10603_v53, %v14743_v18  ;;  %v2457_v24 = vadd.f32 %v2439_v12, %v2421_v56  ;;  %v3503_v12 = vadd.f32 %v3487_v52, %v3471_v10 }
 0x187   : > { %v3955_v5 = vor.u32 %v3954_v58, %v3951_v14  ;;  %v2267_v58 = vld [vmem:[%s9842_s23 + $0x69] sm:$0xf] }
 0x188   : > { %v10721_v55 = vpop.permute.xlu1 %632  ;;  %v10725_v63 = vpop.permute.xlu0 %955  ;;  %v2601_v25 = vadd.f32 %v2583_v45, %v2457_v24  ;;  %v3631_v48 = vadd.f32 %v3615_v29, %v3503_v12  ;;  %v1299_v45 = vmul.f32 %v10667_v23, %v10647_v35 }
 0x189   : > { %14744 = vst [vmem:[#allocation43_spill] sm:$0xff] %v10725_v63  ;;  %2123 = vperm.xlu1 %9353, %v2051_v38   ;;  %667 = vperm.xlu0 %9352, %v594_v21   ;;  %v1019_v38 = vadd.f32 %v1001_v51, %v870_v15  ;;  %v3956_v31 = vrot.slane %v3955_v5, 4  ;;  %v1041_v21 = vld [vmem:[%s9849_s1 + $0x68] sm:$0xf]  ;;  %v4417_v51 = vshll.u32 %v10544_v42, 16 }
 0x18a   : > { %v2619_v15 = vadd.f32 %v10632_v19, %v2601_v25  ;;  %v745_v25 = vld [vmem:[%s9834_s26 + $0x78] sm:$0xf] }
 0x18b   : > { %v1168_v22 = vadd.f32 %v1150_v3, %v1019_v38  ;;  %v10744_v60 = vsel %vm10468_vm6, %v3956_v31, %v10245_v16  ;;  %v3647_v16 = vadd.f32 %v10632_v19, %v3631_v48  ;;  %v1339_v31 = vld [vmem:[%s9849_s1 + $0x69] sm:$0xf]  ;;  %v4421_v3 = vshrl.u32 %v10544_v42, 16 }
 0x18c   : > { %v10735_v13 = vpop.permute.xlu1 %781  ;;  %v10737_v56 = vpop.permute.xlu0 %657  ;;  %14746 = vst [vmem:[#allocation87_spill] sm:$0xff] %v10744_v60  ;;  %4859 = vst.msk [vmem:[#allocation2 + $0x14] sm:$0xf] %vm14566_vm3, %v10744_v60  ;;  %v2637_v29 = vmax.f32 %v2619_v15, 0.0  ;;  %v10769_v12 = vrot.slane %v4417_v51, 5 }
 0x18d   : > { %14745 = vst [vmem:[#allocation86_spill] sm:$0xff] %v10735_v13  ;;  %3579 = vperm.xlu1 %9353, %v8495_v34   ;;  %3173 = vperm.xlu0 %9352, %v8481_v62   ;;  %v1317_v52 = vadd.f32 %v1299_v45, %v1168_v22  ;;  %v1448_v34 = vmul.f32 %v10685_v61, %v10674_v17  ;;  %v3663_v38 = vmax.f32 %v3647_v16, 0.0  ;;  %v4423_v42 = vrot.slane %v4421_v3, 4  ;;  %v894_v51 = vld [vmem:[%s9818_s29 + $0x79] sm:$0xf] }
 0x18e   : > { %v10775_v15 = vpack.c.bf16 %v2637_v29, %v2637_v29 }
 0x18f   : > { %v1466_v5 = vadd.f32 %v1448_v34, %v1317_v52  ;;  %v8927_v16 = vpack.c.bf16 %v3663_v38, %v3663_v38  ;;  %v4424_v29 = vor.u32 %v4423_v42, %v10769_v12 }
 0x190   : > { %v10749_v24 = vpop.permute.xlu1 %3569  ;;  %v10753_v14 = vpop.permute.xlu0 %1692  ;;  %14752 = vst [vmem:[#allocation93_spill] sm:$0xff] %v10775_v15 }
 0x191   : > { %14747 = vst [vmem:[#allocation88_spill] sm:$0xff] %v10749_v24  ;;  %14748 = vst [vmem:[#allocation89_spill] sm:$0xff] %v10753_v14  ;;  %1114 = vperm.xlu1 %9353, %v1041_v21   ;;  %1263 = vperm.xlu0 %9352, %v1190_v36   ;;  %v1748_v21 = vmul.f32 %v10576_v26, %v10753_v14 }
 0x194   : > { %v10762_v10 = vpop.permute.xlu1 %2113  ;;  %v10764_v62 = vpop.permute.xlu0 %1542 }
 0x195   : > { %14749 = vst [vmem:[#allocation90_spill] sm:$0xff] %v10762_v10  ;;  %14750 = vst [vmem:[#allocation91_spill] sm:$0xff] %v10764_v62  ;;  %2339 = vperm.xlu1 %9353, %v2267_v58   ;;  %v1598_v22 = vmul.f32 %v10692_v43, %v10764_v62  ;;  %1412 = vperm.xlu0 %9352, %v1339_v31   ;;  %v14755_v31 = vmov 0 }
 0x196   : > { %v14756_v31 = vsel %vm10784_vm8, 4294967295, %v14755_v31 }
 0x197   : > { %v1616_v48 = vadd.f32 %v1598_v22, %v1466_v5  ;;  %14757 = vst [vmem:[#allocation95_spill] sm:$0xff] %v14756_v31  ;;  %v3876_v5 = vld [vmem:[#allocation2 + $0x8] sm:$0x3] }
 0x198   : > { %v10773_v36 = vpop.permute.xlu1 %1841  ;;  %v10779_v52 = vpop.permute.xlu0 %930 }
 0x199   : > { %14751 = vst [vmem:[#allocation92_spill] sm:$0xff] %v10773_v36  ;;  %v1897_v45 = vmul.f32 %v10603_v53, %v10773_v36  ;;  %14753 = vst [vmem:[#allocation94_spill] sm:$0xff] %v10779_v52  ;;  %826 = vperm.xlu1 %9353, %v745_v25   ;;  %v1766_v58 = vadd.f32 %v1748_v21, %v1616_v48  ;;  %3834 = vrot.lane.b32.xlu0 %v10775_v15, %s14754_s19  ;;  %v596_v21 = vld [vmem:[%s9818_s29 + $0x78] sm:$0xf] }
 0x19b   : > { %v1915_v3 = vadd.f32 %v1897_v45, %v1766_v58  ;;  %v4425_v45 = vrot.slane %v4424_v29, 4 }
 0x19c   : > { %v10789_v34 = vpop.permute.xlu1 %1079  ;;  %v3827_v22 = vpop.permute.xlu0 %3826 }
 0x19d   : > { %14758 = vst [vmem:[#allocation96_spill] sm:$0xff] %v10789_v34  ;;  %4330 = vrot.lane.b32.xlu1 %v8927_v16, %s14465_s30  ;;  %v1939_v25 = vadd.f32 %v10632_v19, %v1915_v3  ;;  %v3877_v38 = vsel %vm10784_vm8, %v3827_v22, %v3876_v5  ;;  %975 = vperm.xlu0 %9352, %v894_v51   ;;  %v3761_v16 = vld [vmem:[#allocation2 + $0x48] sm:$0x3]  ;;  %v8394_v3 = vld [vmem:[%s9834_s26 + $0x78] sm:$0xf]  ;;  %s14483_s30 = smov 96  }
 0x19e   : > { %3878 = vst [vmem:[#allocation2 + $0x8] sm:$0x3] %v3877_v38 }
 0x19f   : > { %v1957_v48 = vmax.f32 %v1939_v25, 0.0  ;;  %v8375_v25 = vld [vmem:[%s9818_s29 + $0x78] sm:$0xf] }
 0x1a0   : > { %v10797_v62 = vpop.permute.xlu1 %1253  ;;  %v10799_v58 = vpop.permute.xlu0 %1228 }
 0x1a1   : > { %14759 = vst [vmem:[#allocation97_spill] sm:$0xff] %v10797_v62  ;;  %14760 = vst [vmem:[#allocation98_spill] sm:$0xff] %v10799_v58  ;;  %677 = vperm.xlu1 %9353, %v596_v21   ;;  %v10801_v42 = vpack.c.bf16 %v1957_v48, %v1957_v48  ;;  %4561 = vrot.lane.b32.xlu0 %v4425_v45, %s14487_s18 }
 0x1a3   : > { %14761 = vst [vmem:[#allocation99_spill] sm:$0xff] %v10801_v42  ;;  %v3996_v51 = vshll.u32 %v10801_v42, 16  ;;  %v4000_v5 = vshrl.u32 %v10801_v42, 16  ;;  %v3762_v29 = vsel %vm10056_vm2, %v10801_v42, %v3761_v16  ;;  %v1973_v16 = vmul.f32 %v10614_v46, %v10149_v11 }
 0x1a4   : > { %v10805_v60 = vpop.permute.xlu1 %2535  ;;  %v10809_v22 = vpop.permute.xlu0 %1104  ;;  %3763 = vst [vmem:[#allocation2 + $0x48] sm:$0x3] %v3762_v29  ;;  %v14767_v29 = vld [vmem:[#allocation41_spill] sm:$0xff] }
 0x1a5   : > { %14762 = vst [vmem:[#allocation100_spill] sm:$0xff] %v10805_v60  ;;  %14763 = vst [vmem:[#allocation101_spill] sm:$0xff] %v10809_v22  ;;  %652 = vperm.xlu1 %9353, %v10557_v37   ;;  %1712 = vperm.xlu0 %9352, %v8394_v3   ;;  %v10816_v38 = vrot.slane %v3996_v51, 5  ;;  %v4002_v21 = vrot.slane %v4000_v5, 4  ;;  %v4868_v60 = vld [vmem:[#allocation2 + $0x3c] sm:$0x3]  ;;  %v2009_v37 = vmul.f32 %v10594_v8, %v10147_v47 }
 0x1a6   : > { %v8497_v3 = vld [vmem:[%s9842_s23 + $0x69] sm:$0xf]  ;;  %v2053_v5 = vld [vmem:[%s9834_s26 + $0x79] sm:$0xf]  ;;  %v849_v47 = vmul.f32 %v10594_v8, %v10735_v13 }
 0x1a7   : > { %v4003_v45 = vor.u32 %v4002_v21, %v10816_v38  ;;  %v2153_v21 = vmul.f32 %v10638_v54, %v14767_v29  ;;  %v705_v29 = vmul.f32 %v10614_v46, %v10737_v56 }
 0x1a8   : > { %v10818_v48 = vpop.permute.xlu1 %1377  ;;  %v10821_v10 = vpop.permute.xlu0 %2881 }
 0x1a9   : > { %14764 = vst [vmem:[#allocation102_spill] sm:$0xff] %v10818_v48  ;;  %14765 = vst [vmem:[#allocation103_spill] sm:$0xff] %v10821_v10  ;;  %1562 = vperm.xlu1 %9353, %v8375_v25   ;;  %801 = vperm.xlu0 %9352, %v10585_v50   ;;  %v10829_v51 = vrot.slane %v4003_v45, 4  ;;  %v2027_v50 = vadd.f32 %v2009_v37, %v1973_v16  ;;  %v2189_v45 = vmul.f32 %v10654_v20, %v10208_v59 }
 0x1aa   : > { %v2225_v37 = vmul.f32 %v10667_v23, %v10235_v27  ;;  %v854_v16 = vmul.f32 %v10594_v8, %v10698_v39 }
 0x1ab   : > { %14766 = vst [vmem:[#allocation104_spill] sm:$0xff] %v10829_v51  ;;  %v4869_v25 = vsel %vm10056_vm2, %v10829_v51, %v4868_v60  ;;  %v998_v60 = vmul.f32 %v10638_v54, %v10779_v52  ;;  %v8413_v51 = vld [vmem:[%s9818_s29 + $0x79] sm:$0xf]  ;;  %v2171_v13 = vadd.f32 %v2153_v21, %v2027_v50  ;;  %v2369_v21 = vmul.f32 %v10685_v61, %v10277_v41  ;;  %v10866_v52 = vld [vmem:[%s9849_s1 + $0x50] sm:$0xff] }
 0x1ac   : > { %v10834_v42 = vpop.permute.xlu1 %3010  ;;  %v10841_v11 = vpop.permute.xlu0 %1402  ;;  %4870 = vst [vmem:[#allocation2 + $0x3c] sm:$0x3] %v4869_v25  ;;  %v872_v50 = vadd.f32 %v854_v16, %v705_v29  ;;  %v1445_v29 = vmul.f32 %v10685_v61, %v10818_v48  ;;  %v2441_v16 = vmul.f32 %v10576_v26, %v10333_v0  ;;  %v2585_v48 = vmul.f32 %v10603_v53, %v10361_v32 }
 0x1ad   : > { %14768 = vst [vmem:[#allocation41_spill] sm:$0xff] %v10834_v42  ;;  %14769 = vst [vmem:[#allocation105_spill] sm:$0xff] %v10841_v11  ;;  %3589 = vperm.xlu1 %9353, %v8497_v3   ;;  %2133 = vperm.xlu0 %9352, %v2053_v5   ;;  %v700_v42 = vmul.f32 %v10614_v46, %v10721_v55  ;;  %v1147_v5 = vmul.f32 %v10654_v20, %v10789_v34 }
 0x1ae   : > { %v2207_v55 = vadd.f32 %v2189_v45, %v2171_v13  ;;  %v2405_v34 = vmul.f32 %v10692_v43, %v10309_v57  ;;  %v1152_v13 = vmul.f32 %v10654_v20, %v10809_v22 }
 0x1af   : > { %v867_v56 = vadd.f32 %v849_v47, %v700_v42  ;;  %v1296_v42 = vmul.f32 %v10667_v23, %v10799_v58  ;;  %v1192_v47 = vld [vmem:[%s9842_s23 + $0x78] sm:$0xf] }
 0x1b0   : > { %v10856_v3 = vpop.permute.xlu1 %2088  ;;  %v10860_v25 = vpop.permute.xlu0 %1527 }
 0x1b1   : > { %14770 = vst [vmem:[#allocation106_spill] sm:$0xff] %v10856_v3  ;;  %14771 = vst [vmem:[#allocation107_spill] sm:$0xff] %v10860_v25  ;;  %950 = vperm.xlu1 %9353, %v10619_v44   ;;  %1861 = vperm.xlu0 %9352, %v8413_v51   ;;  %v1016_v10 = vadd.f32 %v998_v60, %v867_v56  ;;  %v2243_v3 = vadd.f32 %v2225_v37, %v2207_v55  ;;  %v10887_v55 = vld [vmem:[%s9842_s23 + $0x50] sm:$0xff] }
 0x1b2   : > { %v1003_v44 = vmul.f32 %v10638_v54, %v10725_v63 }
 0x1b3   : > { %v1165_v45 = vadd.f32 %v1147_v5, %v1016_v10  ;;  %v2387_v37 = vadd.f32 %v2369_v21, %v2243_v3  ;;  %v1595_v10 = vmul.f32 %v10692_v43, %v10860_v25  ;;  %v1043_v5 = vld [vmem:[%s9849_s1 + $0x78] sm:$0xf] }
 0x1b4   : > { %v10877_v51 = vpop.permute.xlu1 %3138  ;;  %v10881_v60 = vpop.permute.xlu0 %2329  ;;  %v1021_v56 = vadd.f32 %v1003_v44, %v872_v50  ;;  %v14775_v21 = vld [vmem:[#allocation35_spill] sm:$0xff] }
 0x1b5   : > { %14772 = vst [vmem:[#allocation108_spill] sm:$0xff] %v10877_v51  ;;  %14773 = vst [vmem:[#allocation109_spill] sm:$0xff] %v10881_v60  ;;  %1099 = vperm.xlu1 %9353, %v10866_v52   ;;  %1273 = vperm.xlu0 %9352, %v1192_v47   ;;  %v1314_v58 = vadd.f32 %v1296_v42, %v1165_v45  ;;  %v2423_v22 = vadd.f32 %v2405_v34, %v2387_v37  ;;  %v1341_v37 = vld [vmem:[%s9849_s1 + $0x79] sm:$0xf] }
 0x1b6   : > { %v1170_v51 = vadd.f32 %v1152_v13, %v1021_v56  ;;  %v2002_v50 = vmul.f32 %v10594_v8, %v14775_v21  ;;  %v1301_v45 = vmul.f32 %v10667_v23, %v10797_v62  ;;  %v1450_v34 = vmul.f32 %v10685_v61, %v10841_v11  ;;  %v14777_v56 = vld [vmem:[#allocation31_spill] sm:$0xff] }
 0x1b7   : > { %v1463_v47 = vadd.f32 %v1445_v29, %v1314_v58  ;;  %v2459_v42 = vadd.f32 %v2441_v16, %v2423_v22  ;;  %v1966_v58 = vmul.f32 %v10614_v46, %v14777_v56  ;;  %v2146_v29 = vmul.f32 %v10638_v54, %v10262_v1  ;;  %v8433_v22 = vld [vmem:[%s9834_s26 + $0x79] sm:$0xf]  ;;  %v10922_v1 = vld [vmem:[%s9849_s1 + $0x51] sm:$0xff] }
 0x1b8   : > { %v10894_v3 = vpop.permute.xlu1 %1702  ;;  %v10898_v44 = vpop.permute.xlu0 %1677  ;;  %v1319_v25 = vadd.f32 %v1301_v45, %v1170_v51 }
 0x1b9   : > { %14774 = vst [vmem:[#allocation110_spill] sm:$0xff] %v10894_v3  ;;  %14776 = vst [vmem:[#allocation35_spill] sm:$0xff] %v10898_v44  ;;  %1248 = vperm.xlu1 %9353, %v10887_v55   ;;  %v1745_v13 = vmul.f32 %v10576_v26, %v10898_v44  ;;  %1124 = vperm.xlu0 %9352, %v1043_v5   ;;  %v1613_v21 = vadd.f32 %v1595_v10, %v1463_v47 }
 0x1ba   : > { %v2603_v16 = vadd.f32 %v2585_v48, %v2459_v42  ;;  %v2020_v62 = vadd.f32 %v2002_v50, %v1966_v58  ;;  %v1468_v39 = vadd.f32 %v1450_v34, %v1319_v25  ;;  %v4436_v48 = vshll.u32 %v10700_v28, 16 }
 0x1bb   : > { %v1763_v11 = vadd.f32 %v1745_v13, %v1613_v21  ;;  %v1750_v47 = vmul.f32 %v10576_v26, %v10894_v3  ;;  %v3880_v13 = vld [vmem:[#allocation2 + $0x18] sm:$0x3]  ;;  %v2182_v25 = vmul.f32 %v10654_v20, %v10156_v7  ;;  %v2682_v58 = vmul.f32 %v10594_v8, %v10156_v7 }
 0x1bc   : > { %v10913_v60 = vpop.permute.xlu1 %1826  ;;  %v10917_v5 = vpop.permute.xlu0 %1552  ;;  %v2164_v10 = vadd.f32 %v2146_v29, %v2020_v62  ;;  %v2621_v50 = vadd.f32 %v10632_v19, %v2603_v16  ;;  %v14781_v29 = vld [vmem:[#allocation36_spill] sm:$0xff]  ;;  %v14782_v16 = vmov 0 }
 0x1bd   : > { %14778 = vst [vmem:[#allocation31_spill] sm:$0xff] %v10913_v60  ;;  %v1894_v44 = vmul.f32 %v10603_v53, %v10913_v60  ;;  %14779 = vst [vmem:[#allocation111_spill] sm:$0xff] %v10917_v5  ;;  %1422 = vperm.xlu1 %9353, %v1341_v37   ;;  %v1600_v56 = vmul.f32 %v10692_v43, %v10917_v5  ;;  %2555 = vperm.xlu0 %9352, %v8433_v22   ;;  %v14783_v16 = vsel %vm10945_vm10, 4294967295, %v14782_v16  ;;  %v14786_v5 = vld [vmem:[#allocation53_spill] sm:$0xff] }
 0x1be   : > { %v2650_v21 = vmul.f32 %v10614_v46, %v14781_v29  ;;  %v2200_v22 = vadd.f32 %v2182_v25, %v2164_v10  ;;  %14784 = vst [vmem:[#allocation36_spill] sm:$0xff] %v14783_v16  ;;  %v10957_v10 = vrot.slane %v4436_v48, 5 }
 0x1bf   : > { %v1912_v51 = vadd.f32 %v1894_v44, %v1763_v11  ;;  %v1618_v42 = vadd.f32 %v1600_v56, %v1468_v39  ;;  %v4440_v11 = vshrl.u32 %v10700_v28, 16  ;;  %v2269_v28 = vld [vmem:[%s9842_s23 + $0x79] sm:$0xf] }
 0x1c0   : > { %v3831_v45 = vpop.permute.xlu1 %3830  ;;  %v10932_v62 = vpop.permute.xlu0 %1851  ;;  %v2698_v60 = vadd.f32 %v2682_v58, %v2650_v21  ;;  %v14790_v21 = vld [vmem:[#allocation42_spill] sm:$0xff] }
 0x1c1   : > { %v3881_v34 = vsel %vm10784_vm8, %v3831_v45, %v3880_v13  ;;  %14780 = vst [vmem:[#allocation112_spill] sm:$0xff] %v10932_v62  ;;  %1397 = vperm.xlu1 %9353, %v10922_v1   ;;  %v1936_v44 = vadd.f32 %v10632_v19, %v1912_v51  ;;  %v1768_v37 = vadd.f32 %v1750_v47, %v1618_v42  ;;  %v2639_v47 = vmax.f32 %v2621_v50, 0.0  ;;  %v14785_v45 = vld [vmem:[#allocation39_spill] sm:$0xff] }
 0x1c2   : > { %3882 = vst [vmem:[#allocation2 + $0x18] sm:$0x3] %v3881_v34  ;;  %v1899_v39 = vmul.f32 %v10603_v53, %v10932_v62  ;;  %2901 = vperm.xlu0 %9352, %v10866_v52   ;;  %v2218_v52 = vmul.f32 %v10667_v23, %v14785_v45  ;;  %v2714_v13 = vmul.f32 %v10638_v54, %v14785_v45  ;;  %v4114_v34 = vld [vmem:[#allocation2 + $0x8] sm:$0x3]  ;;  %v4442_v25 = vrot.slane %v4440_v11, 4 }
 0x1c3   : > { %v1954_v42 = vmax.f32 %v1936_v44, 0.0  ;;  %v3292_v58 = vmul.f32 %v10594_v8, %v14785_v45 }
 0x1c4   : > { %v1917_v56 = vadd.f32 %v1899_v39, %v1768_v37  ;;  %v10950_v51 = vpop.permute.xlu1 %642  ;;  %v4065_v29 = vpop.permute.xlu0 %4064  ;;  %v2362_v37 = vmul.f32 %v10685_v61, %v14786_v5  ;;  %v2236_v62 = vadd.f32 %v2218_v52, %v2200_v22  ;;  %v2746_v22 = vmul.f32 %v10654_v20, %v14790_v21  ;;  %v10994_v21 = vld [vmem:[%s9818_s29 + $0x60] sm:$0xff] }
 0x1c5   : > { %3030 = vperm.xlu1 %9353, %v10887_v55   ;;  %v4115_v50 = vsel %vm10945_vm10, %v4065_v29, %v4114_v34  ;;  %v10964_v44 = vpack.c.bf16 %v1954_v42, %v1954_v42  ;;  %v10968_v55 = vpack.c.bf16 %v2639_v47, %v2639_v47  ;;  %v14793_v47 = vld [vmem:[#allocation49_spill] sm:$0xff]  ;;  %v3765_v42 = vld [vmem:[#allocation2 + $0x58] sm:$0x3]  ;;  %v2730_v52 = vadd.f32 %v2714_v13, %v2698_v60 }
 0x1c6   : > { %v1941_v39 = vadd.f32 %v10632_v19, %v1917_v56  ;;  %2349 = vperm.xlu0 %9352, %v2269_v28   ;;  %4116 = vst [vmem:[#allocation2 + $0x8] sm:$0x3] %v4115_v50  ;;  %v3260_v28 = vmul.f32 %v10614_v46, %v10156_v7  ;;  %v2380_v34 = vadd.f32 %v2362_v37, %v2236_v62 }
 0x1c7   : > { %14787 = vst [vmem:[#allocation39_spill] sm:$0xff] %v10964_v44  ;;  %14789 = vst [vmem:[#allocation113_spill] sm:$0xff] %v10968_v55  ;;  %v3968_v48 = vshrl.u32 %v10964_v44, 16  ;;  %v3971_v11 = vshll.u32 %v10964_v44, 16  ;;  %v4443_v7 = vor.u32 %v4442_v25, %v10957_v10  ;;  %v3324_v50 = vmul.f32 %v10638_v54, %v14786_v5 }
 0x1c8   : > { %v1959_v3 = vmax.f32 %v1941_v39, 0.0  ;;  %v10966_v63 = vpop.permute.xlu1 %2304  ;;  %3756 = vst.msk [vmem:[#allocation2 + $0x30] sm:$0xf] %vm14566_vm3, %v10964_v44  ;;  %v10980_v56 = vpop.permute.xlu0 %791  ;;  %v14795_v39 = vld [vmem:[#allocation47_spill] sm:$0xff]  ;;  %v2762_v37 = vadd.f32 %v2746_v22, %v2730_v52  ;;  %v2578_v22 = vmul.f32 %v10603_v53, %v10400_v49 }
 0x1c9   : > { %14788 = vst [vmem:[#allocation53_spill] sm:$0xff] %v10966_v63  ;;  %14791 = vst [vmem:[#allocation42_spill] sm:$0xff] %v10980_v56  ;;  %4072 = vrot.lane.b32.xlu1 %v14793_v47, %s14792_s20  ;;  %v2778_v45 = vmul.f32 %v10667_v23, %v14795_v39  ;;  %v3970_v44 = vrot.slane %v3968_v48, 4  ;;  %v3973_v47 = vrot.slane %v3971_v11, 5  ;;  %v2398_v60 = vmul.f32 %v10692_v43, %v14795_v39  ;;  %v14798_v11 = vld [vmem:[#allocation50_spill] sm:$0xff] }
 0x1ca   : > { %v10984_v29 = vpack.c.bf16 %v1959_v3, %v1959_v3  ;;  %3838 = vrot.lane.b32.xlu0 %v10968_v55, %s14754_s19  ;;  %v3308_v55 = vadd.f32 %v3292_v58, %v3260_v28  ;;  %v2810_v63 = vmul.f32 %v10685_v61, %v14798_v11  ;;  %v4444_v24 = vrot.slane %v4443_v7, 4  ;;  %v14800_v58 = vld [vmem:[#allocation56_spill] sm:$0xff]  ;;  %v4872_v7 = vld [vmem:[#allocation2 + $0x4c] sm:$0x3] }
 0x1cb   : > { %v2416_v48 = vadd.f32 %v2398_v60, %v2380_v34  ;;  %v2794_v14 = vadd.f32 %v2778_v45, %v2762_v37  ;;  %v2434_v28 = vmul.f32 %v10576_v26, %v14798_v11  ;;  %v3068_v60 = vmul.f32 %v10576_v26, %v10354_v30 }
 0x1cc   : > { %14794 = vst [vmem:[#allocation49_spill] sm:$0xff] %v10984_v29  ;;  %v10998_v3 = vpop.permute.xlu1 %2891  ;;  %v4015_v62 = vshll.u32 %v10984_v29, 16  ;;  %v4019_v13 = vshrl.u32 %v10984_v29, 16  ;;  %v3766_v25 = vsel %vm10056_vm2, %v10984_v29, %v3765_v42  ;;  %v11005_v5 = vpop.permute.xlu0 %2545  ;;  %v3340_v36 = vadd.f32 %v3324_v50, %v3308_v55 }
 0x1cd   : > { %14796 = vst [vmem:[#allocation47_spill] sm:$0xff] %v10998_v3  ;;  %14797 = vst [vmem:[#allocation114_spill] sm:$0xff] %v11005_v5  ;;  %2108 = vperm.xlu1 %9353, %v10644_v33   ;;  %v3974_v42 = vor.u32 %v3973_v47, %v3970_v44  ;;  %v2939_v33 = vmul.f32 %v10692_v43, %v14800_v58  ;;  %v3356_v55 = vmul.f32 %v10654_v20, %v14795_v39  ;;  %v14803_v44 = vld [vmem:[#allocation22_spill] sm:$0xff]  ;;  %v14806_v58 = vld [vmem:[#allocation61_spill] sm:$0xff] }
 0x1ce   : > { %3767 = vst [vmem:[#allocation2 + $0x58] sm:$0x3] %v3766_v25  ;;  %1547 = vperm.xlu0 %9352, %v10994_v21   ;;  %v11011_v3 = vrot.slane %v4015_v62, 5  ;;  %v4021_v15 = vrot.slane %v4019_v13, 4  ;;  %v2826_v47 = vadd.f32 %v2810_v63, %v2794_v14  ;;  %v2452_v62 = vadd.f32 %v2434_v28, %v2416_v48  ;;  %v8396_v25 = vld [vmem:[%s9834_s26 + $0x88] sm:$0xf] }
 0x1cf   : > { %v3975_v50 = vrot.slane %v3974_v42, 4  ;;  %v3196_v63 = vmul.f32 %v10603_v53, %v14806_v58  ;;  %v14809_v28 = vld [vmem:[#allocation54_spill] sm:$0xff] }
 0x1d0   : > { %14799 = vst [vmem:[#allocation50_spill] sm:$0xff] %v11011_v3  ;;  %v11019_v52 = vpop.permute.xlu1 %3020  ;;  %v4022_v34 = vor.u32 %v4021_v15, %v11011_v3  ;;  %v11024_v45 = vpop.permute.xlu0 %940  ;;  %v3372_v15 = vadd.f32 %v3356_v55, %v3340_v36  ;;  %v2955_v37 = vadd.f32 %v2939_v33, %v2826_v47  ;;  %v2596_v14 = vadd.f32 %v2578_v22, %v2452_v62 }
 0x1d1   : > { %14801 = vst [vmem:[#allocation56_spill] sm:$0xff] %v11019_v52  ;;  %14802 = vst [vmem:[#allocation115_spill] sm:$0xff] %v11024_v45  ;;  %4650 = vrot.lane.b32.xlu1 %v14803_v44, %s14483_s30  ;;  %v11037_v39 = vsel %vm10468_vm6, %v3975_v50, %v10406_v4  ;;  %v3388_v4 = vmul.f32 %v10667_v23, %v14798_v11  ;;  %v3420_v36 = vmul.f32 %v10685_v61, %v10400_v49  ;;  %v8377_v50 = vld [vmem:[%s9818_s29 + $0x88] sm:$0xf]  ;;  %v4118_v52 = vld [vmem:[#allocation2 + $0x18] sm:$0x3] }
 0x1d2   : > { %4565 = vrot.lane.b32.xlu0 %v4444_v24, %s14487_s18  ;;  %v11031_v13 = vrot.slane %v4022_v34, 4  ;;  %14805 = vst [vmem:[#allocation116_spill] sm:$0xff] %v11037_v39  ;;  %4863 = vst.msk [vmem:[#allocation2 + $0x24] sm:$0xf] %vm14566_vm3, %v11037_v39  ;;  %v3911_v33 = vshrl.u32 %v14809_v28, 16  ;;  %v3914_v22 = vshll.u32 %v14809_v28, 16  ;;  %v3084_v44 = vadd.f32 %v3068_v60, %v2955_v37 }
 0x1d3   : > { %v14810_v34 = vld [vmem:[#allocation28_spill] sm:$0xff]  ;;  %v3404_v11 = vadd.f32 %v3388_v4, %v3372_v15  ;;  %v2687_v49 = vmul.f32 %v10594_v8, %v14733_v2  ;;  %v14814_v4 = vld [vmem:[#allocation38_spill] sm:$0xff]  ;;  %s14839_s30 = smov 64   ;;  %s14851_s18 = smov 80  }
 0x1d4   : > { %14804 = vst [vmem:[#allocation22_spill] sm:$0xff] %v11031_v13  ;;  %v11041_v42 = vpop.permute.xlu1 %3554  ;;  %v4873_v24 = vsel %vm10056_vm2, %v11031_v13, %v4872_v7  ;;  %v11052_v48 = vpop.permute.xlu0 %2098  ;;  %v2655_v55 = vmul.f32 %v10614_v46, %v14810_v34  ;;  %v11060_v7 = vld [vmem:[%s9834_s26 + $0x60] sm:$0xff]  ;;  %v3212_v62 = vadd.f32 %v3196_v63, %v3084_v44  ;;  %v3916_v15 = vrot.slane %v3914_v22, 5 }
 0x1d5   : > { %14807 = vst [vmem:[#allocation61_spill] sm:$0xff] %v11041_v42  ;;  %14808 = vst [vmem:[#allocation117_spill] sm:$0xff] %v11052_v48  ;;  %3158 = vperm.xlu1 %9353, %v10922_v1   ;;  %v14811_v1 = vld [vmem:[#allocation30_spill] sm:$0xff]  ;;  %v3436_v34 = vadd.f32 %v3420_v36, %v3404_v11  ;;  %v2751_v29 = vmul.f32 %v10654_v20, %v14814_v4  ;;  %v11076_v39 = vld [vmem:[%s9818_s29 + $0x61] sm:$0xff]  ;;  %v3452_v63 = vmul.f32 %v10692_v43, %v10354_v30 }
 0x1d6   : > { %4874 = vst [vmem:[#allocation2 + $0x4c] sm:$0x3] %v4873_v24  ;;  %1722 = vperm.xlu0 %9352, %v8396_v25   ;;  %v2719_v47 = vmul.f32 %v10638_v54, %v14811_v1  ;;  %v2614_v24 = vadd.f32 %v10632_v19, %v2596_v14  ;;  %v3913_v25 = vrot.slane %v3911_v33, 4  ;;  %v2703_v37 = vadd.f32 %v2687_v49, %v2655_v55  ;;  %v8415_v14 = vld [vmem:[%s9818_s29 + $0x89] sm:$0xf] }
 0x1d7   : > { %v3228_v36 = vadd.f32 %v10632_v19, %v3212_v62  ;;  %v3468_v33 = vadd.f32 %v3452_v63, %v3436_v34  ;;  %v3484_v4 = vmul.f32 %v10576_v26, %v14806_v58  ;;  %v14817_v30 = vld [vmem:[#allocation77_spill] sm:$0xff] }
 0x1d8   : > { %v11068_v28 = vpop.permute.xlu1 %3148  ;;  %v11070_v60 = vpop.permute.xlu0 %1089  ;;  %v2735_v44 = vadd.f32 %v2719_v47, %v2703_v37  ;;  %v2632_v13 = vmax.f32 %v2614_v24, 0.0  ;;  %v3917_v55 = vor.u32 %v3916_v15, %v3913_v25  ;;  %v3612_v47 = vmul.f32 %v10603_v53, %v14817_v30  ;;  %v14818_v37 = vld [vmem:[#allocation37_spill] sm:$0xff]  ;;  %v14821_v15 = vld [vmem:[#allocation40_spill] sm:$0xff] }
 0x1d9   : > { %14812 = vst [vmem:[#allocation54_spill] sm:$0xff] %v11068_v28  ;;  %14813 = vst [vmem:[#allocation28_spill] sm:$0xff] %v11070_v60  ;;  %1697 = vperm.xlu1 %9353, %v11060_v7   ;;  %v2783_v62 = vmul.f32 %v10667_v23, %v14818_v37  ;;  %v3244_v34 = vmax.f32 %v3228_v36, 0.0  ;;  %v3500_v63 = vadd.f32 %v3484_v4, %v3468_v33 }
 0x1da   : > { %1572 = vperm.xlu0 %9352, %v8377_v50   ;;  %v2767_v49 = vadd.f32 %v2751_v29, %v2735_v44  ;;  %v8435_v50 = vld [vmem:[%s9834_s26 + $0x89] sm:$0xf]  ;;  %v8892_v24 = vpack.c.bf16 %v2632_v13, %v2632_v13  ;;  %v3918_v29 = vrot.slane %v3917_v55, 4  ;;  %v14824_v55 = vld [vmem:[#allocation64_spill] sm:$0xff]  ;;  %v1149_v42 = vmul.f32 %v10654_v20, %v11070_v60 }
 0x1db   : > { %v3628_v58 = vadd.f32 %v3612_v47, %v3500_v63  ;;  %v14822_v44 = vld [vmem:[#allocation69_spill] sm:$0xff]  ;;  %v8908_v13 = vpack.c.bf16 %v3244_v34, %v3244_v34  ;;  %v11117_v34 = vld [vmem:[%s9842_s23 + $0x51] sm:$0xff] }
 0x1dc   : > { %v11082_v11 = vpop.permute.xlu1 %2906  ;;  %v11084_v22 = vpop.permute.xlu0 %1238  ;;  %v2799_v25 = vadd.f32 %v2783_v62, %v2767_v49  ;;  %v2944_v30 = vmul.f32 %v10692_v43, %v14822_v44  ;;  %v3923_v49 = vsel %vm10468_vm6, %v3918_v29, %v14824_v55  ;;  %v14826_v62 = vld [vmem:[#allocation75_spill] sm:$0xff]  ;;  %v851_v44 = vmul.f32 %v10594_v8, %v10980_v56  ;;  %v4245_v56 = vld [vmem:[#allocation2 + $0x8] sm:$0x3] }
 0x1dd   : > { %14815 = vst [vmem:[#allocation30_spill] sm:$0xff] %v11082_v11  ;;  %14816 = vst [vmem:[#allocation38_spill] sm:$0xff] %v11084_v22  ;;  %1846 = vperm.xlu1 %9353, %v11076_v39   ;;  %v3644_v29 = vadd.f32 %v10632_v19, %v3628_v58  ;;  %v702_v58 = vmul.f32 %v10614_v46, %v10950_v51  ;;  %v11147_v51 = vld [vmem:[%s9849_s1 + $0x60] sm:$0xff]  ;;  %v9358_v60 = vld [vmem:[%s14323_s6 + $0x18] sm:$0xff]  }
 0x1de   : > { %1871 = vperm.xlu0 %9352, %v8415_v14   ;;  %v2815_v14 = vmul.f32 %v10685_v61, %v14821_v15 }
 0x1df   : > { %v869_v3 = vadd.f32 %v851_v44, %v702_v58  ;;  %v14841_v58 = vld [vmem:[#allocation66_spill] sm:$0xff] }
 0x1e0   : > { %v11094_v48 = vpop.permute.xlu1 %1387  ;;  %v11096_v11 = vpop.permute.xlu0 %2520  ;;  %v2831_v47 = vadd.f32 %v2815_v14, %v2799_v25  ;;  %v14829_v25 = vmov 0 }
 0x1e1   : > { %14819 = vst [vmem:[#allocation77_spill] sm:$0xff] %v11094_v48  ;;  %14820 = vst [vmem:[#allocation37_spill] sm:$0xff] %v11096_v11  ;;  %2565 = vperm.xlu1 %9353, %v8435_v50   ;;  %v14825_v50 = vld [vmem:[#allocation48_spill] sm:$0xff]  ;;  %v14830_v25 = vsel %vm11128_vm12, 4294967295, %v14829_v25 }
 0x1e2   : > { %3824 = vrot.lane.b32.xlu0 %v8892_v24, %s14754_s19  ;;  %v2004_v4 = vmul.f32 %v10594_v8, %v14825_v50  ;;  %v3073_v24 = vmul.f32 %v10576_v26, %v14826_v62  ;;  %14831 = vst [vmem:[#allocation69_spill] sm:$0xff] %v14830_v25  ;;  %v2960_v14 = vadd.f32 %v2944_v30, %v2831_v47  ;;  %v4408_v50 = vshrl.u32 %v8908_v13, 16 }
 0x1e4   : > { %v4069_v28 = vpop.permute.xlu1 %4068  ;;  %v11105_v33 = vpop.permute.xlu0 %3035  ;;  %v3089_v30 = vadd.f32 %v3073_v24, %v2960_v14  ;;  %v4410_v6 = vrot.slane %v4408_v50, 4 }
 0x1e5   : > { %v4119_v36 = vsel %vm10945_vm10, %v4069_v28, %v4118_v52  ;;  %14823 = vst [vmem:[#allocation40_spill] sm:$0xff] %v11105_v33  ;;  %662 = vperm.xlu1 %9353, %v10994_v21   ;;  %v14827_v52 = vld [vmem:[#allocation46_spill] sm:$0xff]  ;;  %v14828_v21 = vld [vmem:[#allocation59_spill] sm:$0xff] }
 0x1e6   : > { %4120 = vst [vmem:[#allocation2 + $0x18] sm:$0x3] %v4119_v36  ;;  %4062 = vrot.lane.b32.xlu0 %v3923_v49, %s14792_s20  ;;  %v1968_v28 = vmul.f32 %v10614_v46, %v14827_v52  ;;  %v2148_v63 = vmul.f32 %v10638_v54, %v14828_v21  ;;  %v14832_v36 = vld [vmem:[#allocation79_spill] sm:$0xff]  ;;  %v4411_v52 = vshll.u32 %v8908_v13, 16  ;;  %v1000_v21 = vmul.f32 %v10638_v54, %v11024_v45 }
 0x1e7   : > { %v3201_v55 = vmul.f32 %v10603_v53, %v14832_v36 }
 0x1e8   : > { %v11134_v49 = vpop.permute.xlu1 %2314  ;;  %v4196_v33 = vpop.permute.xlu0 %4195  ;;  %v2022_v11 = vadd.f32 %v2004_v4, %v1968_v28  ;;  %v4413_v4 = vrot.slane %v4411_v52, 5  ;;  %v1018_v24 = vadd.f32 %v1000_v21, %v869_v3  ;;  %v2364_v21 = vmul.f32 %v10685_v61, %v14841_v58 }
 0x1e9   : > { %14833 = vst [vmem:[#allocation64_spill] sm:$0xff] %v11134_v49  ;;  %2324 = vperm.xlu1 %9353, %v11117_v34   ;;  %v4246_v47 = vsel %vm11128_vm12, %v4196_v33, %v4245_v56  ;;  %v3660_v49 = vmax.f32 %v3644_v29, 0.0  ;;  %v3217_v5 = vadd.f32 %v3201_v55, %v3089_v30  ;;  %v1298_v56 = vmul.f32 %v10667_v23, %v11084_v22 }
 0x1ea   : > { %811 = vperm.xlu0 %9352, %v11060_v7   ;;  %4247 = vst [vmem:[#allocation2 + $0x8] sm:$0x3] %v4246_v47  ;;  %v2166_v45 = vadd.f32 %v2148_v63, %v2022_v11  ;;  %v14836_v7 = vld [vmem:[#allocation51_spill] sm:$0xff]  ;;  %v1167_v11 = vadd.f32 %v1149_v42, %v1018_v24  ;;  %v1447_v63 = vmul.f32 %v10685_v61, %v11094_v48  ;;  %v11181_v47 = vld [vmem:[%s9842_s23 + $0x60] sm:$0xff] }
 0x1eb   : > { %v2184_v28 = vmul.f32 %v10654_v20, %v14836_v7  ;;  %v8924_v29 = vpack.c.bf16 %v3660_v49, %v3660_v49  ;;  %v3233_v3 = vadd.f32 %v10632_v19, %v3217_v5  ;;  %v4414_v55 = vor.u32 %v4413_v4, %v4410_v6  ;;  %v14840_v49 = vld [vmem:[#allocation55_spill] sm:$0xff]  ;;  %v14842_v6 = vld [vmem:[#allocation52_spill] sm:$0xff] }
 0x1ec   : > { %v11149_v16 = vpop.permute.xlu1 %1537  ;;  %v11153_v33 = vpop.permute.xlu0 %3163  ;;  %v1316_v50 = vadd.f32 %v1298_v56, %v1167_v11  ;;  %v2220_v42 = vmul.f32 %v10667_v23, %v14840_v49  ;;  %v2684_v19 = vmul.f32 %v10594_v8, %v14836_v7  ;;  %v2652_v5 = vmul.f32 %v10614_v46, %v14842_v6  ;;  %v14845_v11 = vld [vmem:[#allocation68_spill] sm:$0xff] }
 0x1ed   : > { %14834 = vst [vmem:[#allocation48_spill] sm:$0xff] %v11149_v16  ;;  %14835 = vst [vmem:[#allocation75_spill] sm:$0xff] %v11153_v33  ;;  %4193 = vrot.lane.b32.xlu1 %v8908_v13, %s14485_s28  ;;  %v2202_v44 = vadd.f32 %v2184_v28, %v2166_v45  ;;  %v1597_v13 = vmul.f32 %v10692_v43, %v11149_v16  ;;  %v4415_v56 = vrot.slane %v4414_v55, 4  ;;  %v3249_v28 = vmax.f32 %v3233_v3, 0.0  ;;  %v14846_v3 = vld [vmem:[#allocation58_spill] sm:$0xff] }
 0x1ee   : > { %2911 = vperm.xlu0 %9352, %v11147_v51   ;;  %v1465_v45 = vadd.f32 %v1447_v63, %v1316_v50  ;;  %v2716_v8 = vmul.f32 %v10638_v54, %v14840_v49  ;;  %v2748_v55 = vmul.f32 %v10654_v20, %v14846_v3  ;;  %v11216_v20 = vld [vmem:[%s14321_s4 + $0x1] ss:$0 sm:$0xff]  ;;  %v14854_v3 = vld [vmem:[#allocation63_spill] sm:$0xff]  ;;  %v4876_v33 = vld [vmem:[#allocation2 + $0x5c] sm:$0x3] }
 0x1ef   : > { %v2238_v4 = vadd.f32 %v2220_v42, %v2202_v44  ;;  %v2700_v44 = vadd.f32 %v2684_v19, %v2652_v5  ;;  %v14847_v42 = vld [vmem:[#allocation60_spill] sm:$0xff]  ;;  %v11209_v19 = vpack.c.bf16 %v3249_v28, %v3249_v28  ;;  %v14849_v5 = vmov 0  }
 0x1f0   : > { %v11162_v14 = vpop.permute.xlu1 %3564  ;;  %v11166_v52 = vpop.permute.xlu0 %1687  ;;  %v2400_v6 = vmul.f32 %v10692_v43, %v14847_v42  ;;  %v14852_v28 = vld [vmem:[#allocation44_spill] sm:$0xff] }
 0x1f1   : > { %14837 = vst [vmem:[#allocation46_spill] sm:$0xff] %v11162_v14  ;;  %14838 = vst [vmem:[#allocation59_spill] sm:$0xff] %v11166_v52  ;;  %4324 = vrot.lane.b32.xlu1 %v8924_v29, %s14839_s30  ;;  %v1747_v30 = vmul.f32 %v10576_v26, %v11166_v52  ;;  %v1615_v29 = vadd.f32 %v1597_v13, %v1465_v45  ;;  %v2382_v26 = vadd.f32 %v2364_v21, %v2238_v4  ;;  %v9355_v13 = vld [vmem:[%s14323_s6 + $0x30] sm:$0xff]   ;;  %v14859_v52 = vmov 0  ;;  %v14868_v14 = vld [vmem:[#allocation57_spill] sm:$0xff] }
 0x1f2   : > { %960 = vperm.xlu0 %9352, %v11076_v39   ;;  %v9354_v39 = vld [vmem:[%s14323_s6 + $0x38] sm:$0xff]   ;;  %v3294_v45 = vmul.f32 %v11216_v20, %v14840_v49  ;;  %v2780_v49 = vmul.f32 %v10667_v23, %v14847_v42  ;;  %v14860_v52 = vsel %vm11277_vm14, 4294967295, %v14859_v52 }
 0x1f3   : > { %v1765_v50 = vadd.f32 %v1747_v30, %v1615_v29  ;;  %4982 = vmatpush1.bf16.msra.mxu0 %v9354_v39  ;;  %5044 = vmatpush1.bf16.msra.mxu1 %v9354_v39  ;;  %v2732_v30 = vadd.f32 %v2716_v8, %v2700_v44  ;;  %v2418_v8 = vadd.f32 %v2400_v6, %v2382_v26  ;;  %v11239_v44 = vld [vmem:[%s9834_s26 + $0x61] sm:$0xff] }
 0x1f4   : > { %v11183_v24 = vpop.permute.xlu1 %2916  ;;  %v11190_v46 = vpop.permute.xlu0 %1836  ;;  %4983 = vmatprep.subr.bf16.mxu0 %v14849_v5  ;;  %5045 = vmatprep.subr.bf16.mxu1 %v14849_v5  ;;  %v11250_v26 = vld [vmem:[%s14321_s4 + $0x7] ss:$0 sm:$0xff]  ;;  %14861 = vst [vmem:[#allocation58_spill] sm:$0xff] %v14860_v52 }
 0x1f5   : > { %14843 = vst [vmem:[#allocation79_spill] sm:$0xff] %v11183_v24  ;;  %14844 = vst [vmem:[#allocation51_spill] sm:$0xff] %v11190_v46  ;;  %4076 = vrot.lane.b32.xlu1 %v14845_v11, %s14792_s20  ;;  %v1896_v63 = vmul.f32 %v10603_v53, %v11190_v46  ;;  %v4420_v53 = vsel %vm10468_vm6, %v4415_v56, %v10769_v12  ;;  %v11226_v56 = vld [vmem:[%s14321_s4] ss:$0 sm:$0xff]  ;;  %v2764_v11 = vadd.f32 %v2748_v55, %v2732_v30  ;;  %v11259_v55 = vld [vmem:[%s14321_s4 + $0x8] ss:$0 sm:$0xff] }
 0x1f6   : > { %3040 = vperm.xlu0 %9352, %v11181_v47   ;;  %v2657_v39 = vmul.f32 %v11226_v56, %v14852_v28  ;;  %v3262_v29 = vmul.f32 %v11226_v56, %v14836_v7  ;;  %v11244_v7 = vld [vmem:[%s14322_s5] ss:$0 sm:$0xff] }
 0x1f7   : > { %v1914_v12 = vadd.f32 %v1896_v63, %v1765_v50  ;;  %v3326_v63 = vmul.f32 %v10638_v54, %v14841_v58  ;;  %4984 = vmatpush1.bf16.msra.mxu0 %v9355_v13  ;;  %5046 = vmatpush1.bf16.msra.mxu1 %v9355_v13  ;;  %v2436_v54 = vmul.f32 %v11250_v26, %v14854_v3  ;;  %v14855_v50 = vld [vmem:[#allocation21_spill] sm:$0xff] }
 0x1f8   : > { %v11204_v21 = vpop.permute.xlu1 %816  ;;  %v11220_v4 = vpop.permute.xlu0 %2530  ;;  %v2812_v58 = vmul.f32 %v10685_v61, %v14854_v3  ;;  %v2580_v13 = vmul.f32 %v11259_v55, %v14855_v50  ;;  %4985 = vmatprep.subr.bf16.mxu0 %v14849_v5  ;;  %5047 = vmatprep.subr.bf16.mxu1 %v14849_v5  ;;  %v3310_v30 = vadd.f32 %v3294_v45, %v3262_v29  ;;  %v9356_v45 = vld [vmem:[%s14323_s6 + $0x28] sm:$0xff]  }
 0x1f9   : > { %14848 = vst [vmem:[#allocation55_spill] sm:$0xff] %v11204_v21  ;;  %14850 = vst [vmem:[#allocation66_spill] sm:$0xff] %v11220_v4  ;;  %4559 = vrot.lane.b32.xlu1 %v4420_v53, %s14851_s18  ;;  %v1938_v23 = vadd.f32 %v11244_v7, %v1914_v12  ;;  %v2689_v53 = vmul.f32 %v11216_v20, %v10208_v59  ;;  %v2796_v28 = vadd.f32 %v2780_v49, %v2764_v11  ;;  %v14858_v4 = vld [vmem:[#allocation70_spill] sm:$0xff]  ;;  %v14863_v11 = vld [vmem:[#allocation71_spill] sm:$0xff] }
 0x1fa   : > { %4203 = vrot.lane.b32.xlu0 %v11209_v19, %s14853_s2  ;;  %v2941_v46 = vmul.f32 %v10692_v43, %v14858_v4  ;;  %v2454_v16 = vadd.f32 %v2436_v54, %v2418_v8  ;;  %v3070_v43 = vmul.f32 %v11250_v26, %v14863_v11  ;;  %v4376_v54 = vld [vmem:[#allocation2 + $0x8] sm:$0x3] }
 0x1fb   : > { %v1956_v61 = vmax.f32 %v1938_v23, 0.0  ;;  %v2705_v29 = vadd.f32 %v2689_v53, %v2657_v39  ;;  %v2828_v49 = vadd.f32 %v2812_v58, %v2796_v28  ;;  %4986 = vmatpush1.bf16.msra.mxu0 %v9356_v45  ;;  %5048 = vmatpush1.bf16.msra.mxu1 %v9356_v45  ;;  %v4249_v58 = vld [vmem:[#allocation2 + $0x18] sm:$0x3]  ;;  %v14866_v28 = vld [vmem:[#allocation80_spill] sm:$0xff] }
 0x1fc   : > { %v11263_v6 = vpop.permute.xlu1 %3045  ;;  %v11269_v12 = vpop.permute.xlu0 %965  ;;  %v2598_v4 = vadd.f32 %v2580_v13, %v2454_v16  ;;  %4987 = vmatprep.subr.bf16.mxu0 %v14849_v5  ;;  %v9357_v16 = vld [vmem:[%s14323_s6 + $0x20] sm:$0xff]   ;;  %v3198_v45 = vmul.f32 %v11259_v55, %v14866_v28  ;;  %5049 = vmatprep.subr.bf16.mxu1 %v14849_v5 }
 0x1fd   : > { %14856 = vst [vmem:[#allocation52_spill] sm:$0xff] %v11263_v6  ;;  %14857 = vst [vmem:[#allocation68_spill] sm:$0xff] %v11269_v12  ;;  %3574 = vperm.xlu1 %9353, %v11117_v34   ;;  %v3342_v34 = vadd.f32 %v3326_v63, %v3310_v30  ;;  %v11284_v23 = vpack.c.bf16 %v1956_v61, %v1956_v61  ;;  %v11291_v6 = vld [vmem:[%s14321_s4 + $0x3] ss:$0 sm:$0xff]  ;;  %v2957_v61 = vadd.f32 %v2941_v46, %v2828_v49 }
 0x1fe   : > { %2118 = vperm.xlu0 %9352, %v11239_v44   ;;  %v3358_v39 = vmul.f32 %v11291_v6, %v14847_v42  ;;  %v14865_v30 = vld [vmem:[#allocation45_spill] sm:$0xff] }
 0x1ff   : > { %14862 = vst [vmem:[#allocation60_spill] sm:$0xff] %v11284_v23  ;;  %3760 = vst.msk [vmem:[#allocation2 + $0x40] sm:$0xf] %vm14566_vm3, %v11284_v23  ;;  %v3987_v13 = vshrl.u32 %v11284_v23, 16  ;;  %v3990_v42 = vshll.u32 %v11284_v23, 16  ;;  %4988 = vmatpush1.bf16.msra.mxu0 %v9357_v16  ;;  %5050 = vmatpush1.bf16.msra.mxu1 %v9357_v16 }
 0x200   : > { %v4327_v8 = vpop.permute.xlu1 %4326  ;;  %v4200_v53 = vpop.permute.xlu0 %4199  ;;  %v3374_v49 = vadd.f32 %v3358_v39, %v3342_v34  ;;  %v11332_v34 = vld [vmem:[%s14321_s4 + $0x4] ss:$0 sm:$0xff]  ;;  %4989 = vmatprep.subr.bf16.mxu0 %v14849_v5  ;;  %5051 = vmatprep.subr.bf16.mxu1 %v14849_v5 }
 0x201   : > { %v4377_v63 = vsel %vm11277_vm14, %v4327_v8, %v4376_v54  ;;  %4654 = vrot.lane.b32.xlu1 %v14865_v30, %s14864_s27  ;;  %v4250_v8 = vsel %vm11128_vm12, %v4200_v53, %v4249_v58  ;;  %v14867_v54 = vld [vmem:[#allocation72_spill] sm:$0xff]  ;;  %v11317_v30 = vld [vmem:[%s14321_s4 + $0x2] ss:$0 sm:$0xff]  ;;  %v3989_v23 = vrot.slane %v3987_v13, 4  ;;  %v2753_v58 = vmul.f32 %v11291_v6, %v14868_v14 }
 0x202   : > { %4378 = vst [vmem:[#allocation2 + $0x8] sm:$0x3] %v4377_v63  ;;  %4648 = vrot.lane.b32.xlu0 %v14867_v54, %s14864_s27  ;;  %v2721_v46 = vmul.f32 %v11317_v30, %v10235_v27  ;;  %4251 = vst [vmem:[#allocation2 + $0x18] sm:$0x3] %v4250_v8  ;;  %v3992_v63 = vrot.slane %v3990_v42, 5  ;;  %v3086_v53 = vadd.f32 %v3070_v43, %v2957_v61  ;;  %v11352_v61 = vld [vmem:[%s9849_s1 + $0x61] sm:$0xff] }
 0x203   : > { %v2616_v54 = vadd.f32 %v11244_v7, %v2598_v4  ;;  %v3390_v14 = vmul.f32 %v11332_v34, %v14854_v3  ;;  %v11339_v43 = vld [vmem:[%s14321_s4 + $0x5] ss:$0 sm:$0xff]  ;;  %v3297_v13 = vmul.f32 %v11216_v20, %v14811_v1  ;;  %4990 = vmatpush1.bf16.msra.mxu0 %v9358_v60  ;;  %5052 = vmatpush1.bf16.msra.mxu1 %v9358_v60 }
 0x204   : > { %v11324_v24 = vpop.permute.xlu1 %2123  ;;  %v3422_v4 = vmul.f32 %v11339_v43, %v14855_v50  ;;  %v11343_v39 = vpop.permute.xlu0 %667  ;;  %v3993_v16 = vor.u32 %v3992_v63, %v3989_v23  ;;  %v3214_v42 = vadd.f32 %v3198_v45, %v3086_v53  ;;  %v14870_v3 = vld [vmem:[#allocation65_spill] sm:$0xff]  ;;  %v2737_v50 = vadd.f32 %v2721_v46, %v2705_v29  ;;  %v14871_v23 = vld [vmem:[#allocation34_spill] sm:$0xff]  ;;  %4991 = vmatprep.subr.bf16.mxu0 %v14849_v5 }
 0x205   : > { %14869 = vst [vmem:[#allocation44_spill] sm:$0xff] %v11324_v24  ;;  %1109 = vperm.xlu1 %9353, %v11147_v51   ;;  %v3406_v8 = vadd.f32 %v3390_v14, %v3374_v49  ;;  %v8451_v24 = vld [vmem:[%s9849_s1 + $0x78] sm:$0xf]  ;;  %v3265_v51 = vmul.f32 %v11226_v56, %v14733_v2  ;;  %v3329_v63 = vmul.f32 %v11317_v30, %v14871_v23  ;;  %v2634_v45 = vmax.f32 %v2616_v54, 0.0  ;;  %v9359_v2 = vld [vmem:[%s14323_s6 + $0x10] sm:$0xff]  }
 0x206   : > { %4739 = vrot.lane.b32.xlu0 %v14870_v3, %s14563_s3  ;;  %v3994_v48 = vrot.slane %v3993_v16, 4  ;;  %v2769_v53 = vadd.f32 %v2753_v58, %v2737_v50  ;;  %v3361_v60 = vmul.f32 %v11291_v6, %v14818_v37  ;;  %v3230_v49 = vadd.f32 %v11244_v7, %v3214_v42  ;;  %5053 = vmatprep.subr.bf16.mxu1 %v14849_v5  ;;  %v8467_v50 = vld [vmem:[%s9842_s23 + $0x78] sm:$0xf] }
 0x207   : > { %v3438_v3 = vadd.f32 %v3422_v4, %v3406_v8  ;;  %v3313_v46 = vadd.f32 %v3297_v13, %v3265_v51  ;;  %v2785_v58 = vmul.f32 %v11332_v34, %v10309_v57  ;;  %v8894_v14 = vpack.c.bf16 %v2634_v45, %v2634_v45  ;;  %4992 = vmatpush1.bf16.msra.mxu0 %v9359_v2  ;;  %v9360_v4 = vld [vmem:[%s14323_s6 + $0x8] sm:$0xff]  }
 0x208   : > { %v11360_v1 = vpop.permute.xlu1 %3579  ;;  %v11362_v22 = vpop.permute.xlu0 %3173  ;;  %v11372_v29 = vsel %vm10468_vm6, %v3994_v48, %v10816_v38  ;;  %v11385_v38 = vld [vmem:[%s14321_s4 + $0x6] ss:$0 sm:$0xff]  ;;  %5054 = vmatpush1.bf16.msra.mxu1 %v9359_v2  ;;  %4993 = vmatprep.subr.bf16.mxu0 %v14849_v5  ;;  %v3246_v8 = vmax.f32 %v3230_v49, 0.0  ;;  %v3486_v51 = vmul.f32 %v11250_v26, %v14866_v28  ;;  %v2817_v23 = vmul.f32 %v11339_v43, %v10333_v0  ;;  %v14881_v49 = vld [vmem:[#allocation18_spill] sm:$0xff] }
 0x209   : > { %14872 = vst [vmem:[#allocation63_spill] sm:$0xff] %v11360_v1  ;;  %14873 = vst [vmem:[#allocation21_spill] sm:$0xff] %v11362_v22  ;;  %3168 = vperm.xlu1 %9353, %v11352_v61   ;;  %v3454_v48 = vmul.f32 %v11385_v38, %v14863_v11  ;;  %v3345_v37 = vadd.f32 %v3329_v63, %v3313_v46  ;;  %v2801_v16 = vadd.f32 %v2785_v58, %v2769_v53  ;;  %v14877_v63 = vld [vmem:[#allocation84_spill] sm:$0xff] }
 0x20a   : > { %14874 = vst [vmem:[#allocation70_spill] sm:$0xff] %v11372_v29  ;;  %2926 = vperm.xlu0 %9352, %v8451_v24   ;;  %4867 = vst.msk [vmem:[#allocation2 + $0x34] sm:$0xf] %vm14566_vm3, %v11372_v29  ;;  %v3393_v24 = vmul.f32 %v11332_v34, %v14821_v15  ;;  %v3425_v15 = vmul.f32 %v11339_v43, %v14743_v18  ;;  %v2946_v45 = vmul.f32 %v11385_v38, %v14877_v63  ;;  %v14879_v18 = vld [vmem:[#allocation73_spill] sm:$0xff] }
 0x20b   : > { %v3470_v13 = vadd.f32 %v3454_v48, %v3438_v3  ;;  %v3377_v11 = vadd.f32 %v3361_v60, %v3345_v37  ;;  %5055 = vmatprep.subr.bf16.mxu1 %v14849_v5  ;;  %v2006_v2 = vmul.f32 %v11216_v20, %v14879_v18  ;;  %4994 = vmatpush1.bf16.msra.mxu0 %v9360_v4 }
 0x20c   : > { %v11391_v54 = vpop.permute.xlu1 %1114  ;;  %v11396_v42 = vpop.permute.xlu0 %1263  ;;  %5056 = vmatpush1.bf16.msra.mxu1 %v9360_v4  ;;  %v3457_v28 = vmul.f32 %v11385_v38, %v14826_v62  ;;  %v2833_v60 = vadd.f32 %v2817_v23, %v2801_v16  ;;  %v3075_v58 = vmul.f32 %v11250_v26, %v14881_v49  ;;  %v9361_v4 = vld [vmem:[%s14323_s6] sm:$0xff]   ;;  %v14884_v23 = vld [vmem:[#allocation26_spill] sm:$0xff]  ;;  %4995 = vmatprep.subr.bf16.mxu0 %v14849_v5 }
 0x20d   : > { %14875 = vst [vmem:[#allocation71_spill] sm:$0xff] %v11391_v54  ;;  %14876 = vst [vmem:[#allocation45_spill] sm:$0xff] %v11396_v42  ;;  %1258 = vperm.xlu1 %9353, %v11181_v47   ;;  %v14878_v47 = vld [vmem:[#allocation16_spill] sm:$0xff]  ;;  %v3409_v3 = vadd.f32 %v3393_v24, %v3377_v11  ;;  %v3502_v48 = vadd.f32 %v3486_v51, %v3470_v13  ;;  %v14883_v24 = vld [vmem:[#allocation67_spill] sm:$0xff]  ;;  %v3203_v18 = vmul.f32 %v11259_v55, %v14884_v23 }
 0x20e   : > { %4737 = vrot.lane.b32.xlu0 %v8894_v14, %s14563_s3  ;;  %v3614_v53 = vmul.f32 %v11259_v55, %v14878_v47  ;;  %v1970_v11 = vmul.f32 %v11226_v56, %v14883_v24  ;;  %v8910_v47 = vpack.c.bf16 %v3246_v8, %v3246_v8  ;;  %v2962_v62 = vadd.f32 %v2946_v45, %v2833_v60  ;;  %v8483_v24 = vld [vmem:[%s9849_s1 + $0x79] sm:$0xf] }
 0x20f   : > { %v3441_v63 = vadd.f32 %v3425_v15, %v3409_v3  ;;  %5057 = vmatprep.subr.bf16.mxu1 %v14849_v5  ;;  %4996 = vmatpush1.bf16.msra.mxu0 %v9361_v4  ;;  %v707_v60 = vmul.f32 %v11226_v56, %v11343_v39 }
 0x210   : > { %v11415_v46 = vpop.permute.xlu1 %2339  ;;  %v11421_v37 = vpop.permute.xlu0 %1412  ;;  %v3630_v16 = vadd.f32 %v3614_v53, %v3502_v48  ;;  %v2024_v13 = vadd.f32 %v2006_v2, %v1970_v11  ;;  %v3091_v45 = vadd.f32 %v3075_v58, %v2962_v62  ;;  %v3884_v53 = vld [vmem:[#allocation2 + $0x28] sm:$0x3]  ;;  %5011 = vmatprep.subr.bf16.mxu0 %v14849_v5  ;;  %v3489_v2 = vmul.f32 %v11250_v26, %v14832_v36 }
 0x211   : > { %14880 = vst [vmem:[#allocation80_spill] sm:$0xff] %v11415_v46  ;;  %14882 = vst [vmem:[#allocation72_spill] sm:$0xff] %v11421_v37  ;;  %3055 = vperm.xlu1 %9353, %v8467_v50   ;;  %v14886_v50 = vld [vmem:[#allocation74_spill] sm:$0xff]  ;;  %v3473_v51 = vadd.f32 %v3457_v28, %v3441_v63  ;;  %5058 = vmatpush1.bf16.msra.mxu1 %v9361_v4  ;;  %v14887_v28 = vld [vmem:[#allocation81_spill] sm:$0xff]  ;;  %v4427_v11 = vshrl.u32 %v8910_v47, 16  ;;  %v856_v62 = vmul.f32 %v11216_v20, %v11204_v21 }
 0x212   : > { %2540 = vperm.xlu0 %9352, %v11239_v44   ;;  %v9362_v44 = vld [vmem:[%s14323_s6 + $0x40] sm:$0xff]   ;;  %v2150_v8 = vmul.f32 %v11317_v30, %v14886_v50  ;;  %v2186_v58 = vmul.f32 %v11291_v6, %v14887_v28  ;;  %v3646_v63 = vadd.f32 %v11244_v7, %v3630_v16  ;;  %5073 = vmatprep.subr.bf16.mxu1 %v14849_v5  ;;  %v4430_v4 = vshll.u32 %v8910_v47, 16  ;;  %v14889_v16 = vld [vmem:[#allocation83_spill] sm:$0xff] }
 0x213   : > { %v14888_v36 = vld [vmem:[#allocation33_spill] sm:$0xff]  ;;  %5012 = vmatpush2.bf16.msra.mxu0 %v9362_v44  ;;  %v874_v29 = vadd.f32 %v856_v62, %v707_v60 }
 0x214   : > { %v11433_v15 = vpop.permute.xlu1 %826  ;;  %v3835_v3 = vpop.permute.xlu0 %3834  ;;  %v3617_v39 = vmul.f32 %v11259_v55, %v14888_v36  ;;  %5104 = vmatprep.subr.bf16.mxu0 %v14849_v5  ;;  %v3505_v36 = vadd.f32 %v3489_v2, %v3473_v51  ;;  %v1154_v2 = vmul.f32 %v11291_v6, %v11391_v54 }
 0x215   : > { %14885 = vst [vmem:[#allocation57_spill] sm:$0xff] %v11433_v15  ;;  %3828 = vrot.lane.b32.xlu1 %v8894_v14, %s14754_s19  ;;  %v3885_v48 = vsel %vm10784_vm8, %v3835_v3, %v3884_v53  ;;  %v3219_v14 = vadd.f32 %v3203_v18, %v3091_v45  ;;  %v2168_v53 = vadd.f32 %v2150_v8, %v2024_v13  ;;  %v3662_v13 = vmax.f32 %v3646_v63, 0.0 }
 0x216   : > { %1407 = vperm.xlu0 %9352, %v11352_v61   ;;  %3886 = vst [vmem:[#allocation2 + $0x28] sm:$0x3] %v3885_v48  ;;  %v4380_v61 = vld [vmem:[#allocation2 + $0x18] sm:$0x3]  ;;  %v2222_v18 = vmul.f32 %v11332_v34, %v14889_v16  ;;  %v14891_v48 = vld [vmem:[#allocation78_spill] sm:$0xff]  ;;  %5074 = vmatpush2.bf16.msra.mxu1 %v9362_v44  ;;  %v3633_v51 = vadd.f32 %v3617_v39, %v3505_v36 }
 0x217   : > { %v2204_v46 = vadd.f32 %v2186_v58, %v2168_v53  ;;  %v3235_v8 = vadd.f32 %v11244_v7, %v3219_v14  ;;  %5165 = vmatprep.subr.bf16.mxu1 %v14849_v5  ;;  %v1005_v44 = vmul.f32 %v11317_v30, %v11269_v12  ;;  %v4432_v58 = vrot.slane %v4430_v4, 5  ;;  %v4611_v14 = vld [vmem:[#allocation2 + $0x8] sm:$0x3]  ;;  %v14895_v39 = vld [vmem:[#allocation82_spill] sm:$0xff] }
 0x218   : > { %v4331_v50 = vpop.permute.xlu1 %4330  ;;  %v11462_v3 = vpop.permute.xlu0 %975  ;;  %v2366_v53 = vmul.f32 %v11339_v43, %v14895_v39  ;;  %v8926_v54 = vpack.c.bf16 %v3662_v13, %v3662_v13  ;;  %v11493_v4 = vld [vmem:[%s9818_s29 + $0x70] sm:$0xff]  ;;  %v3267_v13 = vmul.f32 %v11226_v56, %v10208_v59  ;;  %v1452_v59 = vmul.f32 %v11339_v43, %v11421_v37 }
 0x219   : > { %v4381_v45 = vsel %vm11277_vm14, %v4331_v50, %v4380_v61  ;;  %14890 = vst [vmem:[#allocation65_spill] sm:$0xff] %v11462_v3  ;;  %4066 = vrot.lane.b32.xlu1 %v14891_v48, %s14792_s20  ;;  %v14892_v50 = vmov 0  ;;  %v11475_v61 = vld [vmem:[%s9842_s23 + $0x61] sm:$0xff]  ;;  %v4429_v48 = vrot.slane %v4427_v11, 4  ;;  %v2240_v63 = vadd.f32 %v2222_v18, %v2204_v46 }
 0x21a   : > { %4382 = vst [vmem:[#allocation2 + $0x18] sm:$0x3] %v4381_v45  ;;  %3183 = vperm.xlu0 %9352, %v8483_v24   ;;  %v14893_v50 = vsel %vm11470_vm0, 4294967295, %v14892_v50  ;;  %v1023_v62 = vadd.f32 %v1005_v44, %v874_v29  ;;  %v14896_v45 = vld [vmem:[#allocation15_spill] sm:$0xff]  ;;  %v3251_v46 = vmax.f32 %v3235_v8, 0.0  ;;  %v3649_v18 = vadd.f32 %v11244_v7, %v3633_v51  ;;  %v14899_v51 = vld [vmem:[#allocation24_spill] sm:$0xff] }
 0x21b   : > { %14894 = vst [vmem:[#allocation34_spill] sm:$0xff] %v14893_v50  ;;  %v2402_v36 = vmul.f32 %v11385_v38, %v14896_v45  ;;  %v4433_v44 = vor.u32 %v4432_v58, %v4429_v48  ;;  %v2384_v12 = vadd.f32 %v2366_v53, %v2240_v63  ;;  %v1303_v8 = vmul.f32 %v11332_v34, %v11396_v42  ;;  %v11517_v63 = vld [vmem:[%s9834_s26 + $0x70] sm:$0xff] }
 0x21c   : > { %v11482_v60 = vpop.permute.xlu1 %677  ;;  %v4562_v24 = vpop.permute.xlu0 %4561  ;;  %v1172_v29 = vadd.f32 %v1154_v2, %v1023_v62  ;;  %v3331_v48 = vmul.f32 %v11317_v30, %v10277_v41  ;;  %v2582_v2 = vmul.f32 %v11259_v55, %v14899_v51  ;;  %v11514_v58 = vpack.c.bf16 %v3251_v46, %v3251_v46 }
 0x21d   : > { %4197 = vrot.lane.b32.xlu1 %v8910_v47, %s14853_s2  ;;  %v4612_v11 = vsel %vm11470_vm0, %v4562_v24, %v4611_v14  ;;  %v3299_v14 = vmul.f32 %v11216_v20, %v10235_v27  ;;  %v14897_v24 = vld [vmem:[#allocation29_spill] sm:$0xff]  ;;  %v2420_v27 = vadd.f32 %v2402_v36, %v2384_v12  ;;  %v4434_v53 = vrot.slane %v4433_v44, 4 }
 0x21e   : > { %2334 = vperm.xlu0 %9352, %v11475_v61   ;;  %4613 = vst [vmem:[#allocation2 + $0x8] sm:$0x3] %v4612_v11  ;;  %v2438_v21 = vmul.f32 %v11250_v26, %v14897_v24  ;;  %v1321_v11 = vadd.f32 %v1303_v8, %v1172_v29  ;;  %v3363_v41 = vmul.f32 %v11291_v6, %v10309_v57 }
 0x21f   : > { %v3315_v42 = vadd.f32 %v3299_v14, %v3267_v13  ;;  %v2011_v46 = vmul.f32 %v11216_v20, %v10542_v40  ;;  %v3395_v57 = vmul.f32 %v11332_v34, %v10333_v0  ;;  %v14903_v14 = vld [vmem:[#allocation32_spill] sm:$0xff]  ;;  %v4439_v40 = vsel %vm10468_vm6, %v4434_v53, %v10957_v10 }
 0x220   : > { %v11496_v47 = vpop.permute.xlu1 %652  ;;  %v11502_v52 = vpop.permute.xlu0 %1712  ;;  %v2456_v12 = vadd.f32 %v2438_v21, %v2420_v27  ;;  %v2155_v13 = vmul.f32 %v11317_v30, %v14903_v14  ;;  %v1470_v27 = vadd.f32 %v1452_v59, %v1321_v11  ;;  %v3459_v10 = vmul.f32 %v11385_v38, %v14881_v49 }
 0x221   : > { %14898 = vst [vmem:[#allocation84_spill] sm:$0xff] %v11502_v52  ;;  %4328 = vrot.lane.b32.xlu1 %v8926_v54, %s14839_s30  ;;  %v3665_v54 = vmax.f32 %v3649_v18, 0.0  ;;  %v14902_v18 = vld [vmem:[#allocation27_spill] sm:$0xff]  ;;  %v3347_v44 = vadd.f32 %v3331_v48, %v3315_v42  ;;  %v2191_v48 = vmul.f32 %v11291_v6, %v10647_v35 }
 0x222   : > { %1557 = vperm.xlu0 %9352, %v11493_v4   ;;  %v1975_v37 = vmul.f32 %v11226_v56, %v14902_v18  ;;  %v2600_v21 = vadd.f32 %v2582_v2, %v2456_v12  ;;  %v3491_v12 = vmul.f32 %v11250_v26, %v14884_v23 }
 0x223   : > { %v8929_v8 = vpack.c.bf16 %v3665_v54, %v3665_v54  ;;  %v3379_v18 = vadd.f32 %v3363_v41, %v3347_v44  ;;  %v14909_v44 = vld [vmem:[#allocation85_spill] sm:$0xff] }
 0x224   : > { %v11521_v62 = vpop.permute.xlu1 %1562  ;;  %v11525_v36 = vpop.permute.xlu0 %801  ;;  %v2029_v0 = vadd.f32 %v2011_v46, %v1975_v37  ;;  %v2618_v59 = vadd.f32 %v11244_v7, %v2600_v21  ;;  %v1752_v37 = vmul.f32 %v11250_v26, %v11502_v52 }
 0x225   : > { %14900 = vst [vmem:[#allocation16_spill] sm:$0xff] %v11521_v62  ;;  %14901 = vst [vmem:[#allocation73_spill] sm:$0xff] %v11525_v36  ;;  %4207 = vrot.lane.b32.xlu1 %v11514_v58, %s14853_s2  ;;  %v1602_v29 = vmul.f32 %v11385_v38, %v11521_v62  ;;  %v3427_v62 = vmul.f32 %v11339_v43, %v10361_v32  ;;  %v3411_v54 = vadd.f32 %v3395_v57, %v3379_v18  ;;  %v14911_v18 = vld [vmem:[#allocation89_spill] sm:$0xff] }
 0x226   : > { %1707 = vperm.xlu0 %9352, %v11517_v63   ;;  %v2173_v11 = vadd.f32 %v2155_v13, %v2029_v0  ;;  %v2227_v32 = vmul.f32 %v11332_v34, %v10674_v17  ;;  %v2371_v57 = vmul.f32 %v11339_v43, %v14909_v44  ;;  %v11574_v13 = vld [vmem:[%s9818_s29 + $0x71] sm:$0xff]  ;;  %v2636_v23 = vmax.f32 %v2618_v59, 0.0 }
 0x227   : > { %v1620_v2 = vadd.f32 %v1602_v29, %v1470_v27  ;;  %v3443_v41 = vadd.f32 %v3427_v62, %v3411_v54  ;;  %v14908_v29 = vld [vmem:[#allocation20_spill] sm:$0xff]  ;;  %v2407_v0 = vmul.f32 %v11385_v38, %v14911_v18 }
 0x228   : > { %v11540_v1 = vpop.permute.xlu1 %3589  ;;  %v11547_v42 = vpop.permute.xlu0 %2133  ;;  %v2209_v49 = vadd.f32 %v2191_v48, %v2173_v11  ;;  %v14910_v27 = vld [vmem:[#allocation88_spill] sm:$0xff] }
 0x229   : > { %14904 = vst [vmem:[#allocation18_spill] sm:$0xff] %v11540_v1  ;;  %14905 = vst [vmem:[#allocation67_spill] sm:$0xff] %v11547_v42  ;;  %4563 = vrot.lane.b32.xlu1 %v4439_v40, %s14851_s18  ;;  %v1770_v21 = vadd.f32 %v1752_v37, %v1620_v2  ;;  %v3475_v62 = vadd.f32 %v3459_v10, %v3443_v41  ;;  %v3619_v40 = vmul.f32 %v11259_v55, %v14910_v27  ;;  %v14914_v37 = vld [vmem:[#allocation92_spill] sm:$0xff] }
 0x22a   : > { %4334 = vrot.lane.b32.xlu0 %v8929_v8, %s14839_s30  ;;  %v2245_v8 = vadd.f32 %v2227_v32, %v2209_v49  ;;  %v2443_v10 = vmul.f32 %v11250_v26, %v14914_v37  ;;  %v14915_v32 = vld [vmem:[#allocation93_spill] sm:$0xff]  ;;  %v11590_v41 = vpack.c.bf16 %v2636_v23, %v2636_v23  ;;  %v4455_v49 = vshll.u32 %v11209_v19, 16 }
 0x22c   : > { %v11560_v53 = vpop.permute.xlu1 %950  ;;  %v11564_v46 = vpop.permute.xlu0 %1861  ;;  %v2389_v11 = vadd.f32 %v2371_v57, %v2245_v8  ;;  %v14916_v57 = vld [vmem:[#allocation100_spill] sm:$0xff] }
 0x22d   : > { %14906 = vst [vmem:[#allocation26_spill] sm:$0xff] %v11560_v53  ;;  %14907 = vst [vmem:[#allocation74_spill] sm:$0xff] %v11564_v46  ;;  %4652 = vrot.lane.b32.xlu1 %v14908_v29, %s14864_s27  ;;  %v1901_v14 = vmul.f32 %v11259_v55, %v11564_v46  ;;  %v8453_v29 = vld [vmem:[%s9849_s1 + $0x88] sm:$0xf] }
 0x22e   : > { %3584 = vperm.xlu0 %9352, %v11475_v61   ;;  %v3507_v61 = vadd.f32 %v3491_v12, %v3475_v62  ;;  %v2425_v12 = vadd.f32 %v2407_v0, %v2389_v11  ;;  %v2587_v62 = vmul.f32 %v11259_v55, %v14916_v57  ;;  %v11609_v0 = vrot.slane %v4455_v49, 5  ;;  %v8485_v49 = vld [vmem:[%s9849_s1 + $0x89] sm:$0xf] }
 0x22f   : > { %v1919_v48 = vadd.f32 %v1901_v14, %v1770_v21  ;;  %v4459_v21 = vshrl.u32 %v11209_v19, 16  ;;  %v8469_v19 = vld [vmem:[%s9842_s23 + $0x88] sm:$0xf] }
 0x230   : > { %v11580_v54 = vpop.permute.xlu1 %1099  ;;  %v11582_v2 = vpop.permute.xlu0 %1273  ;;  %v3635_v14 = vadd.f32 %v3619_v40, %v3507_v61  ;;  %v2461_v23 = vadd.f32 %v2443_v10, %v2425_v12  ;;  %v11607_v40 = vld [vmem:[%s9834_s26 + $0x71] sm:$0xff] }
 0x231   : > { %14912 = vst [vmem:[#allocation81_spill] sm:$0xff] %v11580_v54  ;;  %14913 = vst [vmem:[#allocation33_spill] sm:$0xff] %v11582_v2  ;;  %1856 = vperm.xlu1 %9353, %v11574_v13   ;;  %v1943_v59 = vadd.f32 %v11244_v7, %v1919_v48  ;;  %v4461_v61 = vrot.slane %v4459_v21, 4 }
 0x232   : > { %4743 = vrot.lane.b32.xlu0 %v14915_v32, %s14563_s3  ;;  %v3651_v11 = vadd.f32 %v11244_v7, %v3635_v14 }
 0x233   : > { %v1961_v8 = vmax.f32 %v1943_v59, 0.0  ;;  %v2605_v59 = vadd.f32 %v2587_v62, %v2461_v23  ;;  %v4462_v21 = vor.u32 %v4461_v61, %v11609_v0 }
 0x234   : > { %v11597_v27 = vpop.permute.xlu1 %1248  ;;  %v11599_v48 = vpop.permute.xlu0 %1124  ;;  %v3667_v62 = vmax.f32 %v3651_v11, 0.0 }
 0x235   : > { %14917 = vst [vmem:[#allocation83_spill] sm:$0xff] %v11597_v27  ;;  %14918 = vst [vmem:[#allocation78_spill] sm:$0xff] %v11599_v48  ;;  %4741 = vrot.lane.b32.xlu1 %v11590_v41, %s14563_s3  ;;  %v11603_v32 = vpack.c.bf16 %v1961_v8, %v1961_v8  ;;  %v8499_v8 = vld [vmem:[%s9842_s23 + $0x79] sm:$0xf]  ;;  %v2623_v23 = vadd.f32 %v11244_v7, %v2605_v59  ;;  %v4463_v5 = vrot.slane %v4462_v21, 4  ;;  %s14996_s3 = smov 112  }
 0x236   : > { %2936 = vperm.xlu0 %9352, %v8453_v29   ;;  %v3769_v29 = vld [vmem:[#allocation2 + $0x68] sm:$0x3]  ;;  %v8931_v61 = vpack.c.bf16 %v3667_v62, %v3667_v62 }
 0x237   : > { %14919 = vst [vmem:[#allocation82_spill] sm:$0xff] %v11603_v32  ;;  %v4034_v42 = vshll.u32 %v11603_v32, 16  ;;  %v4038_v10 = vshrl.u32 %v11603_v32, 16  ;;  %v2641_v11 = vmax.f32 %v2623_v23, 0.0 }
 0x238   : > { %v11612_v46 = vpop.permute.xlu1 %1422  ;;  %v11616_v12 = vpop.permute.xlu0 %2555 }
 0x239   : > { %14920 = vst [vmem:[#allocation15_spill] sm:$0xff] %v11612_v46  ;;  %14921 = vst [vmem:[#allocation29_spill] sm:$0xff] %v11616_v12  ;;  %3065 = vperm.xlu1 %9353, %v8469_v19   ;;  %v11620_v52 = vrot.slane %v4034_v42, 5  ;;  %v4040_v14 = vrot.slane %v4038_v10, 4  ;;  %v3770_v12 = vsel %vm10056_vm2, %v11603_v32, %v3769_v29  ;;  %v4474_v29 = vshll.u32 %v11514_v58, 16 }
 0x23a   : > { %2550 = vperm.xlu0 %9352, %v11607_v40   ;;  %3771 = vst [vmem:[#allocation2 + $0x68] sm:$0x3] %v3770_v12  ;;  %v11648_v62 = vpack.c.bf16 %v2641_v11, %v2641_v11 }
 0x23b   : > { %14922 = vst [vmem:[#allocation24_spill] sm:$0xff] %v11620_v52  ;;  %v4041_v42 = vor.u32 %v4040_v14, %v11620_v52  ;;  %v4122_v14 = vld [vmem:[#allocation2 + $0x28] sm:$0x3]  ;;  %v11660_v11 = vrot.slane %v4474_v29, 5  ;;  %v853_v29 = vmul.f32 %v11216_v20, %v11525_v36  ;;  %v704_v52 = vmul.f32 %v11226_v56, %v11496_v47 }
 0x23c   : > { %v11625_v1 = vpop.permute.xlu1 %1397  ;;  %14929 = vst [vmem:[#allocation89_spill] sm:$0xff] %v11648_v62  ;;  %v1151_v47 = vmul.f32 %v11291_v6, %v11580_v54  ;;  %v14947_v54 = vld [vmem:[#allocation110_spill] sm:$0xff] }
 0x23d   : > { %14923 = vst [vmem:[#allocation27_spill] sm:$0xff] %v11625_v1  ;;  %v11630_v19 = vpop.permute.xlu0 %2901  ;;  %3599 = vperm.xlu1 %9353, %v8499_v8   ;;  %v11635_v59 = vrot.slane %v4041_v42, 4  ;;  %v4478_v8 = vshrl.u32 %v11514_v58, 16  ;;  %v3888_v42 = vld [vmem:[#allocation2 + $0x38] sm:$0x3]  ;;  %14931 = vst [vmem:[#allocation92_spill] sm:$0xff] %v11660_v11 }
 0x23e   : > { %14925 = vst [vmem:[#allocation32_spill] sm:$0xff] %v11630_v19  ;;  %3193 = vperm.xlu0 %9352, %v8485_v49   ;;  %v709_v49 = vmul.f32 %v11226_v56, %v11482_v60  ;;  %v8501_v60 = vld [vmem:[%s9842_s23 + $0x89] sm:$0xf] }
 0x23f   : > { %14927 = vst [vmem:[#allocation85_spill] sm:$0xff] %v11635_v59  ;;  %v4877_v12 = vsel %vm10056_vm2, %v11635_v59, %v4876_v33  ;;  %v858_v33 = vmul.f32 %v11216_v20, %v11433_v15 }
 0x240   : > { %v11633_v10 = vpop.permute.xlu1 %3030  ;;  %4878 = vst [vmem:[#allocation2 + $0x5c] sm:$0x3] %v4877_v12  ;;  %v4480_v12 = vrot.slane %v4478_v8, 4  ;;  %v1156_v8 = vmul.f32 %v11291_v6, %v11599_v48 }
 0x241   : > { %14926 = vst [vmem:[#allocation20_spill] sm:$0xff] %v11633_v10  ;;  %v11637_v57 = vpop.permute.xlu0 %2349  ;;  %4569 = vrot.lane.b32.xlu1 %v4463_v5, %s14851_s18 }
 0x242   : > { %14928 = vst [vmem:[#allocation88_spill] sm:$0xff] %v11637_v57  ;;  %4338 = vrot.lane.b32.xlu0 %v8931_v61, %s14839_s30  ;;  %v4481_v48 = vor.u32 %v4480_v12, %v11660_v11 }
 0x244   : > { %v4073_v21 = vpop.permute.xlu1 %4072 }
 0x245   : > { %v4123_v23 = vsel %vm10945_vm10, %v4073_v21, %v4122_v14  ;;  %v3839_v61 = vpop.permute.xlu0 %3838  ;;  %672 = vperm.xlu1 %9353, %v11493_v4   ;;  %v876_v21 = vadd.f32 %v858_v33, %v709_v49  ;;  %v2686_v4 = vmul.f32 %v11216_v20, %v14887_v28  ;;  %v14935_v49 = vmov 0  ;;  %v11683_v33 = vld [vmem:[%s9849_s1 + $0x70] sm:$0xff] }
 0x246   : > { %4124 = vst [vmem:[#allocation2 + $0x28] sm:$0x3] %v4123_v23  ;;  %v3889_v58 = vsel %vm10784_vm8, %v3839_v61, %v3888_v42  ;;  %3842 = vrot.lane.b32.xlu0 %v11648_v62, %s14754_s19  ;;  %v14933_v23 = vld [vmem:[#allocation43_spill] sm:$0xff]  ;;  %v1007_v61 = vmul.f32 %v11317_v30, %v11462_v3  ;;  %v14936_v49 = vsel %vm11678_vm5, 4294967295, %v14935_v49  ;;  %v1002_v62 = vmul.f32 %v11317_v30, %v11560_v53 }
 0x247   : > { %3890 = vst [vmem:[#allocation2 + $0x38] sm:$0x3] %v3889_v58  ;;  %v2013_v32 = vmul.f32 %v11216_v20, %v14933_v23  ;;  %14937 = vst [vmem:[#allocation118_spill] sm:$0xff] %v14936_v49  ;;  %v14938_v58 = vld [vmem:[#allocation76_spill] sm:$0xff]  ;;  %v14939_v23 = vld [vmem:[#allocation25_spill] sm:$0xff]  ;;  %v4482_v53 = vrot.slane %v4481_v48, 4 }
 0x248   : > { %v11662_v14 = vpop.permute.xlu1 %2108  ;;  %v1977_v59 = vmul.f32 %v11226_v56, %v14939_v23  ;;  %v1025_v31 = vadd.f32 %v1007_v61, %v876_v21  ;;  %v14941_v23 = vld [vmem:[#allocation97_spill] sm:$0xff]  ;;  %v871_v21 = vadd.f32 %v853_v29, %v704_v52  ;;  %v11713_v52 = vld [vmem:[%s9842_s23 + $0x70] sm:$0xff] }
 0x249   : > { %14932 = vst [vmem:[#allocation93_spill] sm:$0xff] %v11662_v14  ;;  %v11668_v42 = vpop.permute.xlu0 %1547  ;;  %3609 = vperm.xlu1 %9353, %v8501_v60   ;;  %v2654_v60 = vmul.f32 %v11226_v56, %v14938_v58  ;;  %v14940_v14 = vld [vmem:[#allocation90_spill] sm:$0xff]  ;;  %v4700_v58 = vld [vmem:[#allocation2 + $0x8] sm:$0x3]  ;;  %v2193_v19 = vmul.f32 %v11291_v6, %v14941_v23 }
 0x24a   : > { %14934 = vst [vmem:[#allocation43_spill] sm:$0xff] %v11668_v42  ;;  %821 = vperm.xlu0 %9352, %v11517_v63   ;;  %v2157_v57 = vmul.f32 %v11317_v30, %v14940_v14  ;;  %v2718_v63 = vmul.f32 %v11317_v30, %v14889_v16  ;;  %v2031_v15 = vadd.f32 %v2013_v32, %v1977_v59  ;;  %v4615_v14 = vld [vmem:[#allocation2 + $0x18] sm:$0x3]  ;;  %v14942_v59 = vld [vmem:[#allocation17_spill] sm:$0xff] }
 0x24b   : > { %v2702_v10 = vadd.f32 %v2686_v4, %v2654_v60  ;;  %v1174_v61 = vadd.f32 %v1156_v8, %v1025_v31  ;;  %v2750_v4 = vmul.f32 %v11291_v6, %v14942_v59  ;;  %v1020_v29 = vadd.f32 %v1002_v62, %v871_v21 }
 0x24c   : > { %v4651_v36 = vpop.permute.xlu1 %4650  ;;  %v2175_v60 = vadd.f32 %v2157_v57, %v2031_v15  ;;  %v1305_v31 = vmul.f32 %v11332_v34, %v11582_v2  ;;  %v2782_v15 = vmul.f32 %v11332_v34, %v14896_v45  ;;  %v1449_v59 = vmul.f32 %v11339_v43, %v11625_v1 }
 0x24d   : > { %v4701_v12 = vsel %vm11678_vm5, %v4651_v36, %v4700_v58  ;;  %v4566_v3 = vpop.permute.xlu0 %4565  ;;  %1119 = vperm.xlu1 %9353, %v11683_v33   ;;  %v14943_v36 = vld [vmem:[#allocation105_spill] sm:$0xff]  ;;  %v2734_v8 = vadd.f32 %v2718_v63, %v2702_v10  ;;  %v1169_v62 = vadd.f32 %v1151_v47, %v1020_v29  ;;  %v1599_v47 = vmul.f32 %v11385_v38, %v11668_v42 }
 0x24e   : > { %4702 = vst [vmem:[#allocation2 + $0x8] sm:$0x3] %v4701_v12  ;;  %v4616_v32 = vsel %vm11470_vm0, %v4566_v3, %v4615_v14  ;;  %970 = vperm.xlu0 %9352, %v11574_v13   ;;  %v2229_v58 = vmul.f32 %v11332_v34, %v14943_v36  ;;  %v1300_v3 = vmul.f32 %v11332_v34, %v11597_v27  ;;  %v14945_v12 = vld [vmem:[#allocation109_spill] sm:$0xff] }
 0x24f   : > { %4617 = vst [vmem:[#allocation2 + $0x18] sm:$0x3] %v4616_v32  ;;  %v2211_v57 = vadd.f32 %v2193_v19, %v2175_v60  ;;  %v2373_v48 = vmul.f32 %v11339_v43, %v14945_v12  ;;  %v1323_v21 = vadd.f32 %v1305_v31, %v1174_v61  ;;  %v1454_v32 = vmul.f32 %v11339_v43, %v11612_v46  ;;  %v598_v10 = vld [vmem:[%s9818_s29 + $0x88] sm:$0xf]  ;;  %v14949_v31 = vld [vmem:[#allocation103_spill] sm:$0xff] }
 0x250   : > { %v11719_v13 = vpop.permute.xlu1 %3158  ;;  %v2766_v63 = vadd.f32 %v2750_v4, %v2734_v8  ;;  %v2814_v19 = vmul.f32 %v11339_v43, %v14897_v24  ;;  %v2409_v27 = vmul.f32 %v11385_v38, %v14947_v54  ;;  %v2943_v1 = vmul.f32 %v11385_v38, %v14949_v31  ;;  %v14950_v4 = vld [vmem:[#allocation112_spill] sm:$0xff] }
 0x251   : > { %14944 = vst [vmem:[#allocation76_spill] sm:$0xff] %v11719_v13  ;;  %v11725_v14 = vpop.permute.xlu0 %1722  ;;  %4573 = vrot.lane.b32.xlu1 %v4482_v53, %s14851_s18  ;;  %v2247_v60 = vadd.f32 %v2229_v58, %v2211_v57  ;;  %v1318_v53 = vadd.f32 %v1300_v3, %v1169_v62  ;;  %v2445_v8 = vmul.f32 %v11250_v26, %v14950_v4 }
 0x252   : > { %14946 = vst [vmem:[#allocation25_spill] sm:$0xff] %v11725_v14  ;;  %1268 = vperm.xlu0 %9352, %v11713_v52   ;;  %v2798_v29 = vadd.f32 %v2782_v15, %v2766_v63  ;;  %v1472_v57 = vadd.f32 %v1454_v32, %v1323_v21  ;;  %v14952_v15 = vld [vmem:[#allocation62_spill] sm:$0xff]  ;;  %v1754_v32 = vmul.f32 %v11250_v26, %v11725_v14 }
 0x253   : > { %v2391_v46 = vadd.f32 %v2373_v48, %v2247_v60  ;;  %v1467_v58 = vadd.f32 %v1449_v59, %v1318_v53  ;;  %v3296_v48 = vmul.f32 %v11216_v20, %v14889_v16  ;;  %v14953_v60 = vld [vmem:[#allocation41_spill] sm:$0xff]  ;;  %v14954_v59 = vld [vmem:[#allocation114_spill] sm:$0xff]  ;;  %v3264_v16 = vmul.f32 %v11226_v56, %v14887_v28 }
 0x254   : > { %v11740_v61 = vpop.permute.xlu1 %1697  ;;  %v2830_v63 = vadd.f32 %v2814_v19, %v2798_v29  ;;  %v3072_v31 = vmul.f32 %v11250_v26, %v14953_v60  ;;  %v2589_v53 = vmul.f32 %v11259_v55, %v14954_v59  ;;  %v14956_v29 = vld [vmem:[#allocation108_spill] sm:$0xff]  ;;  %v896_v14 = vld [vmem:[%s9818_s29 + $0x89] sm:$0xf] }
 0x255   : > { %14948 = vst [vmem:[#allocation90_spill] sm:$0xff] %v11740_v61  ;;  %v11746_v2 = vpop.permute.xlu0 %1572  ;;  %687 = vperm.xlu1 %9353, %v598_v10   ;;  %v1749_v3 = vmul.f32 %v11250_v26, %v11740_v61  ;;  %v2427_v42 = vadd.f32 %v2409_v27, %v2391_v46  ;;  %v747_v10 = vld [vmem:[%s9834_s26 + $0x88] sm:$0xf]  ;;  %v1617_v21 = vadd.f32 %v1599_v47, %v1467_v58 }
 0x256   : > { %14951 = vst [vmem:[#allocation97_spill] sm:$0xff] %v11746_v2  ;;  %v1604_v62 = vmul.f32 %v11385_v38, %v11746_v2  ;;  %4658 = vrot.lane.b32.xlu0 %v14952_v15, %s14864_s27  ;;  %v2959_v19 = vadd.f32 %v2943_v1, %v2830_v63  ;;  %v3200_v46 = vmul.f32 %v11259_v55, %v14956_v29  ;;  %v11778_v63 = vld [vmem:[%s9849_s1 + $0x71] sm:$0xff] }
 0x257   : > { %v2463_v47 = vadd.f32 %v2445_v8, %v2427_v42  ;;  %v1767_v58 = vadd.f32 %v1749_v3, %v1617_v21  ;;  %v3312_v28 = vadd.f32 %v3296_v48, %v3264_v16  ;;  %v3328_v42 = vmul.f32 %v11317_v30, %v14895_v39  ;;  %v11790_v48 = vld [vmem:[%s9818_s29 + $0x80] sm:$0xff]  ;;  %v4704_v22 = vld [vmem:[#allocation2 + $0x18] sm:$0x3] }
 0x258   : > { %v1622_v2 = vadd.f32 %v1604_v62, %v1472_v57  ;;  %v11763_v61 = vpop.permute.xlu1 %1846  ;;  %v3088_v1 = vadd.f32 %v3072_v31, %v2959_v19 }
 0x259   : > { %14955 = vst [vmem:[#allocation17_spill] sm:$0xff] %v11763_v61  ;;  %v1898_v27 = vmul.f32 %v11259_v55, %v11763_v61  ;;  %v11771_v15 = vpop.permute.xlu0 %1871  ;;  %2921 = vperm.xlu1 %9353, %v11683_v33   ;;  %v2607_v50 = vadd.f32 %v2589_v53, %v2463_v47  ;;  %v3344_v39 = vadd.f32 %v3328_v42, %v3312_v28  ;;  %v3773_v42 = vld [vmem:[#allocation2 + $0x78] sm:$0x3] }
 0x25a   : > { %v1772_v57 = vadd.f32 %v1754_v32, %v1622_v2  ;;  %v1903_v62 = vmul.f32 %v11259_v55, %v11771_v15  ;;  %836 = vperm.xlu0 %9352, %v747_v10   ;;  %v3360_v2 = vmul.f32 %v11291_v6, %v14896_v45  ;;  %v3216_v33 = vadd.f32 %v3200_v46, %v3088_v1 }
 0x25b   : > { %v1916_v11 = vadd.f32 %v1898_v27, %v1767_v58  ;;  %v3392_v10 = vmul.f32 %v11332_v34, %v14897_v24  ;;  %v2625_v45 = vadd.f32 %v11244_v7, %v2607_v50  ;;  %v3424_v32 = vmul.f32 %v11339_v43, %v14899_v51 }
 0x25c   : > { %v1921_v61 = vadd.f32 %v1903_v62, %v1772_v57  ;;  %v11780_v13 = vpop.permute.xlu1 %2565  ;;  %v3232_v16 = vadd.f32 %v11244_v7, %v3216_v33  ;;  %v3456_v46 = vmul.f32 %v11385_v38, %v14953_v60 }
 0x25d   : > { %v3825_v8 = vpop.permute.xlu0 %3824  ;;  %985 = vperm.xlu1 %9353, %v896_v14   ;;  %v1940_v31 = vadd.f32 %v11244_v7, %v1916_v11  ;;  %v2643_v51 = vmax.f32 %v2625_v45, 0.0  ;;  %v14965_v45 = vld [vmem:[#allocation61_spill] sm:$0xff] }
 0x25e   : > { %v1945_v3 = vadd.f32 %v11244_v7, %v1921_v61  ;;  %3873 = vst.msk [vmem:[#allocation2] sm:$0xf] %vm3872_vm7, %v3825_v8  ;;  %1417 = vperm.xlu0 %9352, %v11778_v63   ;;  %v3376_v61 = vadd.f32 %v3360_v2, %v3344_v39  ;;  %v3248_v60 = vmax.f32 %v3232_v16, 0.0  ;;  %v14962_v2 = vld [vmem:[#allocation86_spill] sm:$0xff]  ;;  %v3488_v8 = vmul.f32 %v11250_v26, %v14956_v29 }
 0x25f   : > { %v1958_v14 = vmax.f32 %v1940_v31, 0.0  ;;  %v1972_v33 = vmul.f32 %v11226_v56, %v14962_v2  ;;  %v14964_v31 = vld [vmem:[#allocation106_spill] sm:$0xff] }
 0x260   : > { %v1963_v53 = vmax.f32 %v1945_v3, 0.0  ;;  %v11796_v21 = vpop.permute.xlu1 %662  ;;  %v3408_v24 = vadd.f32 %v3392_v10, %v3376_v61  ;;  %v2152_v10 = vmul.f32 %v11317_v30, %v14964_v31  ;;  %v11835_v61 = vpack.c.bf16 %v2643_v51, %v2643_v51  ;;  %v14967_v30 = vld [vmem:[#allocation104_spill] sm:$0xff]  ;;  %v1045_v51 = vld [vmem:[%s9849_s1 + $0x88] sm:$0xf] }
 0x261   : > { %v4063_v19 = vpop.permute.xlu0 %4062  ;;  %1567 = vperm.xlu1 %9353, %v11790_v48   ;;  %v11806_v50 = vpack.c.bf16 %v1958_v14, %v1958_v14 }
 0x262   : > { %v11802_v11 = vpack.c.bf16 %v1963_v53, %v1963_v53  ;;  %4111 = vst.msk [vmem:[#allocation2] sm:$0xf] %vm4110_vm9, %v4063_v19  ;;  %3050 = vperm.xlu0 %9352, %v11713_v52   ;;  %v3440_v57 = vadd.f32 %v3424_v32, %v3408_v24  ;;  %v14960_v52 = vld [vmem:[#allocation94_spill] sm:$0xff]  ;;  %v3616_v53 = vmul.f32 %v11259_v55, %v14965_v45  ;;  %14966 = vst [vmem:[#allocation62_spill] sm:$0xff] %v11835_v61  ;;  %v4126_v45 = vld [vmem:[#allocation2 + $0x38] sm:$0x3] }
 0x263   : > { %14958 = vst [vmem:[#allocation109_spill] sm:$0xff] %v11806_v50  ;;  %3764 = vst.msk [vmem:[#allocation2 + $0x50] sm:$0xf] %vm14566_vm3, %v11806_v50  ;;  %v4006_v58 = vshrl.u32 %v11806_v50, 16  ;;  %v2008_v62 = vmul.f32 %v11216_v20, %v14960_v52  ;;  %v4009_v1 = vshll.u32 %v11806_v50, 16  ;;  %v8912_v32 = vpack.c.bf16 %v3248_v60, %v3248_v60  ;;  %v14969_v52 = vld [vmem:[#allocation98_spill] sm:$0xff] }
 0x264   : > { %14957 = vst [vmem:[#allocation105_spill] sm:$0xff] %v11802_v11  ;;  %v11810_v27 = vpop.permute.xlu1 %2324  ;;  %v4053_v7 = vshll.u32 %v11802_v11, 16  ;;  %v4057_v47 = vshrl.u32 %v11802_v11, 16  ;;  %v3472_v20 = vadd.f32 %v3456_v46, %v3440_v57  ;;  %v3774_v26 = vsel %vm10056_vm2, %v11802_v11, %v3773_v42  ;;  %v4880_v19 = vld [vmem:[#allocation2 + $0x6c] sm:$0x3] }
 0x265   : > { %14959 = vst [vmem:[#allocation110_spill] sm:$0xff] %v11810_v27  ;;  %v11819_v28 = vpop.permute.xlu0 %811  ;;  %3832 = vrot.lane.b32.xlu1 %v11590_v41, %s14754_s19  ;;  %v4008_v39 = vrot.slane %v4006_v58, 4  ;;  %v4011_v56 = vrot.slane %v4009_v1, 5  ;;  %3775 = vst [vmem:[#allocation2 + $0x78] sm:$0x3] %v3774_v26  ;;  %v4446_v1 = vshrl.u32 %v8912_v32, 16 }
 0x266   : > { %14961 = vst [vmem:[#allocation103_spill] sm:$0xff] %v11819_v28  ;;  %2128 = vperm.xlu0 %9352, %v11607_v40   ;;  %v11829_v3 = vrot.slane %v4053_v7, 5  ;;  %v4059_v41 = vrot.slane %v4057_v47, 4  ;;  %v2026_v40 = vadd.f32 %v2008_v62, %v1972_v33  ;;  %v3504_v16 = vadd.f32 %v3488_v8, %v3472_v20  ;;  %v11861_v33 = vld [vmem:[%s9834_s26 + $0x80] sm:$0xff]  ;;  %v14971_v8 = vld [vmem:[#allocation50_spill] sm:$0xff] }
 0x267   : > { %v4012_v24 = vor.u32 %v4011_v56, %v4008_v39  ;;  %v2188_v62 = vmul.f32 %v11291_v6, %v14969_v52  ;;  %v4449_v42 = vshll.u32 %v8912_v32, 16 }
 0x268   : > { %14963 = vst [vmem:[#allocation112_spill] sm:$0xff] %v11829_v3  ;;  %v4194_v14 = vpop.permute.xlu1 %4193  ;;  %v4060_v55 = vor.u32 %v4059_v41, %v11829_v3  ;;  %v2170_v46 = vadd.f32 %v2152_v10, %v2026_v40  ;;  %v3632_v47 = vadd.f32 %v3616_v53, %v3504_v16  ;;  %v11875_v10 = vld [vmem:[%s14322_s5] ss:$0 sm:$0xff]  ;;  %v14974_v53 = vld [vmem:[#allocation53_spill] sm:$0xff] }
 0x269   : > { %4242 = vst.msk [vmem:[#allocation2] sm:$0xf] %vm14618_vm11, %v4194_v14  ;;  %v11841_v29 = vpop.permute.xlu0 %2911  ;;  %4080 = vrot.lane.b32.xlu1 %v14967_v30, %s14792_s20  ;;  %v4013_v57 = vrot.slane %v4012_v24, 4  ;;  %v2368_v14 = vmul.f32 %v11339_v43, %v14974_v53  ;;  %v4451_v40 = vrot.slane %v4449_v42, 5  ;;  %v14975_v30 = vld [vmem:[#allocation87_spill] sm:$0xff] }
 0x26a   : > { %3846 = vrot.lane.b32.xlu0 %v11835_v61, %s14754_s19  ;;  %v11849_v7 = vrot.slane %v4060_v55, 4  ;;  %v2206_v20 = vadd.f32 %v2188_v62, %v2170_v46  ;;  %v3648_v41 = vadd.f32 %v11875_v10, %v3632_v47  ;;  %v1194_v55 = vld [vmem:[%s9842_s23 + $0x88] sm:$0xf]  ;;  %v11891_v43 = vld [vmem:[%s14321_s4 + $0x1] ss:$0 sm:$0xff]  ;;  %v14984_v61 = vld [vmem:[#allocation47_spill] sm:$0xff] }
 0x26b   : > { %v11866_v6 = vsel %vm10468_vm6, %v4013_v57, %v14971_v8  ;;  %v4253_v47 = vld [vmem:[#allocation2 + $0x28] sm:$0x3]  ;;  %v11899_v62 = vld [vmem:[%s14321_s4] ss:$0 sm:$0xff]  ;;  %v2691_v11 = vmul.f32 %v11891_v43, %v10647_v35  ;;  %v2945_v50 = vmul.f32 %v11385_v38, %v14984_v61 }
 0x26c   : > { %14968 = vst [vmem:[#allocation41_spill] sm:$0xff] %v11849_v7  ;;  %v4325_v58 = vpop.permute.xlu1 %4324  ;;  %v4881_v2 = vsel %vm10056_vm2, %v11849_v7, %v4880_v19  ;;  %14972 = vst [vmem:[#allocation108_spill] sm:$0xff] %v11866_v6  ;;  %v2688_v19 = vmul.f32 %v11891_v43, %v14969_v52  ;;  %v3664_v24 = vmax.f32 %v3648_v41, 0.0  ;;  %v14977_v41 = vld [vmem:[#allocation35_spill] sm:$0xff]  ;;  %v3269_v61 = vmul.f32 %v11899_v62, %v10647_v35 }
 0x26d   : > { %4373 = vst.msk [vmem:[#allocation2] sm:$0xf] %vm14585_vm13, %v4325_v58  ;;  %v11854_v60 = vpop.permute.xlu0 %960  ;;  %3178 = vperm.xlu1 %9353, %v11778_v63   ;;  %4882 = vst [vmem:[#allocation2 + $0x6c] sm:$0x3] %v4881_v2  ;;  %v14973_v63 = vld [vmem:[#allocation102_spill] sm:$0xff] }
 0x26e   : > { %14970 = vst [vmem:[#allocation114_spill] sm:$0xff] %v11854_v60  ;;  %1134 = vperm.xlu0 %9352, %v1045_v51   ;;  %4871 = vst.msk [vmem:[#allocation2 + $0x44] sm:$0xf] %vm14566_vm3, %v11866_v6  ;;  %v2224_v31 = vmul.f32 %v11332_v34, %v14973_v63  ;;  %v4448_v34 = vrot.slane %v4446_v1, 4  ;;  %v14976_v1 = vld [vmem:[#allocation96_spill] sm:$0xff]  ;;  %vm4787_vm3 = vcmask 1042304  }
 0x26f   : > { %v2656_v42 = vmul.f32 %v11899_v62, %v14976_v1  ;;  %v11906_v2 = vld [vmem:[%s14321_s4 + $0x2] ss:$0 sm:$0xff]  ;;  %v11944_v1 = vld [vmem:[%s14321_s4 + $0x7] ss:$0 sm:$0xff] }
 0x270   : > { %v4077_v39 = vpop.permute.xlu1 %4076  ;;  %v2242_v16 = vadd.f32 %v2224_v31, %v2206_v20  ;;  %v4452_v57 = vor.u32 %v4451_v40, %v4448_v34  ;;  %v2720_v8 = vmul.f32 %v11906_v2, %v14973_v63  ;;  %v11914_v31 = vld [vmem:[%s9818_s29 + $0x81] sm:$0xff]  ;;  %v8928_v40 = vpack.c.bf16 %v3664_v24, %v3664_v24  ;;  %v1343_v24 = vld [vmem:[%s9849_s1 + $0x89] sm:$0xf] }
 0x271   : > { %v4127_v56 = vsel %vm10945_vm10, %v4077_v39, %v4126_v45  ;;  %v11882_v26 = vpop.permute.xlu0 %3040  ;;  %1717 = vperm.xlu1 %9353, %v11861_v33   ;;  %v2404_v39 = vmul.f32 %v11385_v38, %v14977_v41  ;;  %v2704_v45 = vadd.f32 %v2688_v19, %v2656_v42  ;;  %v11933_v19 = vld [vmem:[%s14321_s4 + $0x4] ss:$0 sm:$0xff] }
 0x272   : > { %4128 = vst [vmem:[#allocation2 + $0x38] sm:$0x3] %v4127_v56  ;;  %4070 = vrot.lane.b32.xlu0 %v14975_v30, %s14792_s20  ;;  %v2386_v51 = vadd.f32 %v2368_v14, %v2242_v16  ;;  %v11921_v14 = vld [vmem:[%s14321_s4 + $0x3] ss:$0 sm:$0xff]  ;;  %v14978_v56 = vld [vmem:[#allocation107_spill] sm:$0xff]  ;;  %v4453_v16 = vrot.slane %v4452_v57, 4 }
 0x273   : > { %v2752_v34 = vmul.f32 %v11921_v14, %v14978_v56  ;;  %v14982_v57 = vld [vmem:[#allocation31_spill] sm:$0xff]  ;;  %v11958_v56 = vld [vmem:[%s14321_s4 + $0x5] ss:$0 sm:$0xff] }
 0x274   : > { %v4560_v46 = vpop.permute.xlu1 %4559  ;;  %v2440_v42 = vmul.f32 %v11944_v1, %v14982_v57 }
 0x275   : > { %4608 = vst.msk [vmem:[#allocation2] sm:$0xf] %vm14574_vm15, %v4560_v46  ;;  %v4204_v58 = vpop.permute.xlu0 %4203  ;;  %1283 = vperm.xlu1 %9353, %v1194_v55   ;;  %v2736_v46 = vadd.f32 %v2720_v8, %v2704_v45  ;;  %v11951_v8 = vld [vmem:[%s14321_s4 + $0x8] ss:$0 sm:$0xff]  ;;  %vm11974_vm15 = vmand %vm4787_vm3, %vm3743_vm1  ;;  %vm4785_vm1 = vcmask 1044352   ;;  %vm14617_vm3 = vcmask 130048  }
 0x276   : > { %v4254_v20 = vsel %vm11128_vm12, %v4204_v58, %v4253_v47  ;;  %4201 = vrot.lane.b32.xlu0 %v8912_v32, %s14853_s2  ;;  %v2422_v32 = vadd.f32 %v2404_v39, %v2386_v51  ;;  %v2784_v47 = vmul.f32 %v11933_v19, %v14977_v41  ;;  %v14981_v58 = vld [vmem:[#allocation23_spill] sm:$0xff] }
 0x277   : > { %4255 = vst [vmem:[#allocation2 + $0x28] sm:$0x3] %v4254_v20  ;;  %v2659_v51 = vmul.f32 %v11899_v62, %v14981_v58  ;;  %v14983_v20 = vld [vmem:[#allocation37_spill] sm:$0xff]  ;;  %v2768_v45 = vadd.f32 %v2752_v34, %v2736_v46  ;;  %v4458_v34 = vsel %vm10468_vm6, %v4453_v16, %v11609_v0  ;;  %v14988_v16 = vld [vmem:[#allocation56_spill] sm:$0xff] }
 0x278   : > { %v11925_v30 = vpop.permute.xlu1 %3574  ;;  %v2584_v39 = vmul.f32 %v11951_v8, %v14983_v20  ;;  %v2458_v3 = vadd.f32 %v2440_v42, %v2422_v32  ;;  %v14991_v42 = vld [vmem:[#allocation99_spill] sm:$0xff] }
 0x279   : > { %14979 = vst [vmem:[#allocation94_spill] sm:$0xff] %v11925_v30  ;;  %v11927_v55 = vpop.permute.xlu0 %2118  ;;  %1866 = vperm.xlu1 %9353, %v11914_v31   ;;  %v2800_v46 = vadd.f32 %v2784_v47, %v2768_v45  ;;  %v2707_v5 = vadd.f32 %v2691_v11, %v2659_v51  ;;  %v3074_v47 = vmul.f32 %v11944_v1, %v14988_v16 }
 0x27a   : > { %14980 = vst [vmem:[#allocation86_spill] sm:$0xff] %v11927_v55  ;;  %4332 = vrot.lane.b32.xlu0 %v8928_v40, %s14839_s30  ;;  %v2816_v40 = vmul.f32 %v11958_v56, %v14982_v57  ;;  %v2602_v32 = vadd.f32 %v2584_v39, %v2458_v3  ;;  %v2723_v11 = vmul.f32 %v11906_v2, %v10674_v17  ;;  %v14990_v3 = vld [vmem:[#allocation91_spill] sm:$0xff] }
 0x27b   : > { %v3333_v39 = vmul.f32 %v11906_v2, %v14909_v44  ;;  %v3365_v44 = vmul.f32 %v11921_v14, %v14911_v18 }
 0x27c   : > { %v4655_v58 = vpop.permute.xlu1 %4654  ;;  %v2832_v0 = vadd.f32 %v2816_v40, %v2800_v46  ;;  %v14992_v40 = vld [vmem:[#allocation54_spill] sm:$0xff]  ;;  %v2620_v46 = vadd.f32 %v11875_v10, %v2602_v32 }
 0x27d   : > { %v4705_v6 = vsel %vm11678_vm5, %v4655_v58, %v4704_v22  ;;  %v4649_v7 = vpop.permute.xlu0 %4648  ;;  %1432 = vperm.xlu1 %9353, %v1343_v24   ;;  %v14985_v22 = vmov 0  ;;  %v3301_v24 = vmul.f32 %v11891_v43, %v10674_v17  ;;  %v3202_v58 = vmul.f32 %v11951_v8, %v14992_v40  ;;  %v14993_v17 = vld [vmem:[#allocation39_spill] sm:$0xff] }
 0x27e   : > { %4706 = vst [vmem:[#allocation2 + $0x18] sm:$0x3] %v4705_v6  ;;  %4697 = vst.msk [vmem:[#allocation2] sm:$0xf] %vm4696_vm4, %v4649_v7  ;;  %4567 = vrot.lane.b32.xlu0 %v4458_v34, %s14851_s18  ;;  %v14986_v22 = vsel %vm11974_vm15, 4294967295, %v14985_v22  ;;  %v2755_v7 = vmul.f32 %v11921_v14, %v14990_v3  ;;  %v2961_v45 = vadd.f32 %v2945_v50, %v2832_v0 }
 0x27f   : > { %14987 = vst [vmem:[#allocation106_spill] sm:$0xff] %v14986_v22  ;;  %v4789_v6 = vld [vmem:[#allocation2 + $0x8] sm:$0x3]  ;;  %v2739_v34 = vadd.f32 %v2723_v11, %v2707_v5  ;;  %v3317_v3 = vadd.f32 %v3301_v24, %v3269_v61  ;;  %v3298_v0 = vmul.f32 %v11891_v43, %v14973_v63  ;;  %v2787_v5 = vmul.f32 %v11933_v19, %v14911_v18 }
 0x280   : > { %v11982_v38 = vpop.permute.xlu1 %1109  ;;  %v14997_v24 = vld [vmem:[#allocation113_spill] sm:$0xff]  ;;  %v3266_v61 = vmul.f32 %v11899_v62, %v14969_v52  ;;  %v3330_v63 = vmul.f32 %v11906_v2, %v14974_v53  ;;  %v2638_v11 = vmax.f32 %v2620_v46, 0.0  ;;  %v2693_v52 = vmul.f32 %v11891_v43, %v14941_v23 }
 0x281   : > { %14989 = vst [vmem:[#allocation61_spill] sm:$0xff] %v11982_v38  ;;  %v4740_v51 = vpop.permute.xlu0 %4739  ;;  %4662 = vrot.lane.b32.xlu1 %v14991_v42, %s14864_s27  ;;  %v3090_v42 = vadd.f32 %v3074_v47, %v2961_v45  ;;  %v2771_v50 = vadd.f32 %v2755_v7, %v2739_v34  ;;  %v12015_v47 = vld [vmem:[%s9842_s23 + $0x71] sm:$0xff]  ;;  %v14998_v7 = vld [vmem:[#allocation101_spill] sm:$0xff]  ;;  %v2725_v53 = vmul.f32 %v11906_v2, %v14943_v36 }
 0x282   : > { %v4790_v35 = vsel %vm11974_vm15, %v4740_v51, %v4789_v6  ;;  %4656 = vrot.lane.b32.xlu0 %v14993_v17, %s14864_s27  ;;  %v3349_v51 = vadd.f32 %v3333_v39, %v3317_v3  ;;  %v3303_v34 = vmul.f32 %v11891_v43, %v14943_v36  ;;  %v3397_v3 = vmul.f32 %v11933_v19, %v14914_v37  ;;  %v12049_v36 = vld [vmem:[%s9849_s1 + $0x80] sm:$0xff] }
 0x283   : > { %4791 = vst [vmem:[#allocation2 + $0x8] sm:$0x3] %v4790_v35  ;;  %v3218_v32 = vadd.f32 %v3202_v58, %v3090_v42  ;;  %v2803_v18 = vadd.f32 %v2787_v5, %v2771_v50  ;;  %v3314_v58 = vadd.f32 %v3298_v0, %v3266_v61  ;;  %v2819_v35 = vmul.f32 %v11958_v56, %v14914_v37  ;;  %v15000_v50 = vld [vmem:[#allocation30_spill] sm:$0xff] }
 0x284   : > { %v12001_v55 = vpop.permute.xlu1 %3168  ;;  %v3381_v45 = vadd.f32 %v3365_v44, %v3349_v51  ;;  %v12042_v44 = vld [vmem:[%s14321_s4 + $0x6] ss:$0 sm:$0xff]  ;;  %v12046_v51 = vpack.c.bf16 %v2638_v11, %v2638_v11  ;;  %v3335_v37 = vmul.f32 %v11906_v2, %v14945_v12  ;;  %v3362_v11 = vmul.f32 %v11921_v14, %v14977_v41 }
 0x285   : > { %14994 = vst [vmem:[#allocation104_spill] sm:$0xff] %v12001_v55  ;;  %v12007_v6 = vpop.permute.xlu0 %2926  ;;  %682 = vperm.xlu1 %9353, %v11790_v48   ;;  %v2661_v48 = vmul.f32 %v11899_v62, %v14998_v7  ;;  %v3234_v46 = vadd.f32 %v11875_v10, %v3218_v32  ;;  %v3346_v42 = vadd.f32 %v3330_v63, %v3314_v58  ;;  %v15001_v32 = vld [vmem:[#allocation111_spill] sm:$0xff]  ;;  %v15003_v63 = vld [vmem:[#allocation100_spill] sm:$0xff] }
 0x286   : > { %14995 = vst [vmem:[#allocation98_spill] sm:$0xff] %v12007_v6  ;;  %4747 = vrot.lane.b32.xlu0 %v14997_v24, %s14996_s3  ;;  %v2948_v0 = vmul.f32 %v12042_v44, %v15000_v50  ;;  %v2757_v24 = vmul.f32 %v11921_v14, %v15001_v32  ;;  %v3429_v7 = vmul.f32 %v11958_v56, %v15003_v63  ;;  %v8379_v32 = vld [vmem:[%s9818_s29 + $0x98] sm:$0xf] }
 0x287   : > { %v2709_v5 = vadd.f32 %v2693_v52, %v2661_v48  ;;  %v2835_v58 = vadd.f32 %v2819_v35, %v2803_v18  ;;  %v3367_v48 = vmul.f32 %v11921_v14, %v14947_v54  ;;  %v3250_v63 = vmax.f32 %v3234_v46, 0.0  ;;  %v15006_v35 = vld [vmem:[#allocation75_spill] sm:$0xff] }
 0x288   : > { %v12023_v39 = vpop.permute.xlu1 %1258  ;;  %v3378_v41 = vadd.f32 %v3362_v11, %v3346_v42  ;;  %v3205_v6 = vmul.f32 %v11951_v8, %v15006_v35  ;;  %v12092_v11 = vld [vmem:[%s9842_s23 + $0x80] sm:$0xff] }
 0x289   : > { %14999 = vst [vmem:[#allocation50_spill] sm:$0xff] %v12023_v39  ;;  %v4738_v17 = vpop.permute.xlu0 %4737  ;;  %2344 = vperm.xlu1 %9353, %v12015_v47   ;;  %v2741_v52 = vadd.f32 %v2725_v53, %v2709_v5  ;;  %v2964_v18 = vadd.f32 %v2948_v0, %v2835_v58  ;;  %v2789_v0 = vmul.f32 %v11933_v19, %v14947_v54  ;;  %v15009_v58 = vld [vmem:[#allocation42_spill] sm:$0xff] }
 0x28a   : > { %4786 = vst.msk [vmem:[#allocation2] sm:$0xf] %vm4785_vm1, %v4738_v17  ;;  %831 = vperm.xlu0 %9352, %v11861_v33   ;;  %v3271_v33 = vmul.f32 %v11899_v62, %v14941_v23  ;;  %v15004_v17 = vld [vmem:[#allocation40_spill] sm:$0xff] }
 0x28b   : > { %v3077_v50 = vmul.f32 %v11944_v1, %v15004_v17  ;;  %v2773_v49 = vadd.f32 %v2757_v24, %v2741_v52  ;;  %v9365_v24 = vld [vmem:[#allocation2 + $0x4] ss:$8 sps:$4 sm:$0x3f]  }
 0x28c   : > { %v12057_v61 = vpop.permute.xlu1 %3055  ;;  %v3319_v12 = vadd.f32 %v3303_v34, %v3271_v33  ;;  %v3399_v34 = vmul.f32 %v11933_v19, %v14950_v4  ;;  %v15007_v33 = vld [vmem:[#allocation115_spill] sm:$0xff]  ;;  %8582 = vmatprep.mubr.msk.bf16.mxu0 %vm14617_vm3, %v9365_v24 }
 0x28d   : > { %15002 = vst [vmem:[#allocation102_spill] sm:$0xff] %v12057_v61  ;;  %v12065_v23 = vpop.permute.xlu0 %2540  ;;  %4745 = vrot.lane.b32.xlu1 %v12046_v51, %s14996_s3  ;;  %v3413_v61 = vadd.f32 %v3397_v3, %v3381_v45  ;;  %v2010_v5 = vmul.f32 %v11891_v43, %v15007_v33  ;;  %v3426_v45 = vmul.f32 %v11958_v56, %v14983_v20 }
 0x28e   : > { %15005 = vst [vmem:[#allocation53_spill] sm:$0xff] %v12065_v23  ;;  %2931 = vperm.xlu0 %9352, %v12049_v36   ;;  %v3351_v27 = vadd.f32 %v3335_v37, %v3319_v12  ;;  %v3394_v23 = vmul.f32 %v11933_v19, %v14982_v57  ;;  %v3093_v46 = vadd.f32 %v3077_v50, %v2964_v18  ;;  %v15010_v12 = vld [vmem:[#allocation117_spill] sm:$0xff] }
 0x28f   : > { %v12086_v42 = vadd.f32 %v3429_v7, %v3413_v61  ;;  %v12094_v20 = vpack.c.bf16 %v3250_v63, %v3250_v63  ;;  %v1974_v50 = vmul.f32 %v11899_v62, %v15009_v58  ;;  %v2154_v52 = vmul.f32 %v11906_v2, %v15010_v12  ;;  %v2055_v7 = vld [vmem:[%s9834_s26 + $0x89] sm:$0xf] }
 0x290   : > { %v3829_v53 = vpop.permute.xlu1 %3828  ;;  %v3383_v37 = vadd.f32 %v3367_v48, %v3351_v27  ;;  %v3221_v61 = vadd.f32 %v3205_v6, %v3093_v46  ;;  %v2805_v18 = vadd.f32 %v2789_v0, %v2773_v49  ;;  %v3431_v27 = vmul.f32 %v11958_v56, %v14954_v59  ;;  %v12117_v6 = vld [vmem:[%s9834_s26 + $0x81] sm:$0xff]  ;;  %v8398_v0 = vld [vmem:[%s9834_s26 + $0x98] sm:$0xf] }
 0x291   : > { %3879 = vst.msk [vmem:[#allocation2 + $0x10] sm:$0xf] %vm3872_vm7, %v3829_v53  ;;  %v12084_v3 = vpop.permute.xlu0 %1407  ;;  %1582 = vperm.xlu1 %9353, %v8379_v32   ;;  %v9363_v57 = vld [vmem:[#allocation2] ss:$8 sps:$4 sm:$0x3f]   ;;  %v3410_v32 = vadd.f32 %v3394_v23, %v3378_v41  ;;  %v2028_v63 = vadd.f32 %v2010_v5, %v1974_v50  ;;  %v15011_v53 = vld [vmem:[#allocation38_spill] sm:$0xff]  ;;  %v3458_v59 = vmul.f32 %v12042_v44, %v14988_v16 }
 0x292   : > { %15008 = vst [vmem:[#allocation87_spill] sm:$0xff] %v12084_v3  ;;  %980 = vperm.xlu0 %9352, %v11914_v31   ;;  %v3415_v54 = vadd.f32 %v3399_v34, %v3383_v37  ;;  %v2821_v31 = vmul.f32 %v11958_v56, %v14950_v4  ;;  %v2190_v33 = vmul.f32 %v11921_v14, %v15011_v53  ;;  %v4465_v23 = vshrl.u32 %v12094_v20, 16  ;;  %v12124_v34 = vld [vmem:[%s14323_s6 + $0x38] sm:$0xff]  }
 0x293   : > { %v3442_v58 = vadd.f32 %v3426_v45, %v3410_v32  ;;  %5014 = vmatmul.mubr.bf16.vlgmr.msra.gmra.mxu0 %v9363_v57  ;;  %v2690_v4 = vmul.f32 %v11891_v43, %v15011_v53  ;;  %v4468_v41 = vshll.u32 %v12094_v20, 16  ;;  %v2172_v5 = vadd.f32 %v2154_v52, %v2028_v63  ;;  %v15013_v45 = vld [vmem:[#allocation77_spill] sm:$0xff]  ;;  %v15015_v50 = vld [vmem:[#allocation28_spill] sm:$0xff] }
 0x294   : > { %v4067_v48 = vpop.permute.xlu1 %4066  ;;  %5105 = vmatpush1.bf16.msra.mxu0 %v12124_v34  ;;  %v2226_v16 = vmul.f32 %v11933_v19, %v15013_v45  ;;  %v3300_v46 = vmul.f32 %v11891_v43, %v15013_v45  ;;  %v3237_v57 = vadd.f32 %v11875_v10, %v3221_v61  ;;  %v15014_v37 = vmov 0  }
 0x295   : > { %4117 = vst.msk [vmem:[#allocation2 + $0x10] sm:$0xf] %vm4110_vm9, %v4067_v48  ;;  %v12109_v49 = vpop.permute.xlu0 %3183  ;;  %3060 = vperm.xlu1 %9353, %v12092_v11   ;;  %5106 = vmatprep.subr.bf16.mxu0 %v15014_v37  ;;  %v12134_v24 = vadd.f32 %v3431_v27, %v3415_v54  ;;  %v2658_v12 = vmul.f32 %v11899_v62, %v15015_v50  ;;  %v15017_v50 = vld [vmem:[#allocation79_spill] sm:$0xff] }
 0x296   : > { %15012 = vst [vmem:[#allocation96_spill] sm:$0xff] %v12109_v49  ;;  %2143 = vperm.xlu0 %9352, %v2055_v7   ;;  %v2722_v32 = vmul.f32 %v11906_v2, %v15013_v45  ;;  %v2837_v52 = vadd.f32 %v2821_v31, %v2805_v18  ;;  %v3268_v48 = vmul.f32 %v11899_v62, %v15011_v53  ;;  %v4467_v18 = vrot.slane %v4465_v23, 4  ;;  %v12153_v53 = vld [vmem:[%s14323_s6 + $0x30] sm:$0xff]  }
 0x297   : > { %v3474_v63 = vadd.f32 %v3458_v59, %v3442_v58  ;;  %v3461_v61 = vmul.f32 %v12042_v44, %v15004_v17  ;;  %v2208_v49 = vadd.f32 %v2190_v33, %v2172_v5  ;;  %v2706_v27 = vadd.f32 %v2690_v4, %v2658_v12  ;;  %v15018_v4 = vld [vmem:[#allocation64_spill] sm:$0xff] }
 0x298   : > { %v4198_v7 = vpop.permute.xlu1 %4197  ;;  %v2950_v45 = vmul.f32 %v12042_v44, %v15017_v50  ;;  %v4470_v31 = vrot.slane %v4468_v41, 5  ;;  %5107 = vmatpush1.bf16.msra.mxu0 %v12153_v53  ;;  %v3490_v17 = vmul.f32 %v11944_v1, %v14992_v40  ;;  %v3316_v58 = vadd.f32 %v3300_v46, %v3268_v48  ;;  %v15019_v41 = vld [vmem:[#allocation46_spill] sm:$0xff]  ;;  %v15020_v12 = vld [vmem:[#allocation52_spill] sm:$0xff] }
 0x299   : > { %4248 = vst.msk [vmem:[#allocation2 + $0x10] sm:$0xf] %vm14618_vm11, %v4198_v7  ;;  %v12145_v54 = vpop.permute.xlu0 %2334  ;;  %2138 = vperm.xlu1 %9353, %v12117_v6   ;;  %v2244_v33 = vadd.f32 %v2226_v16, %v2208_v49  ;;  %v3253_v59 = vmax.f32 %v3237_v57, 0.0  ;;  %5108 = vmatprep.subr.bf16.mxu0 %v15014_v37  ;;  %v2370_v5 = vmul.f32 %v11958_v56, %v15018_v4 }
 0x29a   : > { %15016 = vst [vmem:[#allocation35_spill] sm:$0xff] %v12145_v54  ;;  %1732 = vperm.xlu0 %9352, %v8398_v0   ;;  %v2738_v23 = vadd.f32 %v2722_v32, %v2706_v27  ;;  %v3618_v0 = vmul.f32 %v11951_v8, %v15019_v41  ;;  %v3079_v7 = vmul.f32 %v11944_v1, %v15020_v12  ;;  %v15022_v32 = vld [vmem:[#allocation21_spill] sm:$0xff] }
 0x29b   : > { %v3477_v54 = vadd.f32 %v3461_v61, %v12086_v42  ;;  %v3332_v40 = vmul.f32 %v11906_v2, %v15018_v4  ;;  %v3506_v49 = vadd.f32 %v3490_v17, %v3474_v63  ;;  %v855_v16 = vmul.f32 %v11891_v43, %v11819_v28  ;;  %v12181_v63 = vld [vmem:[%s14323_s6 + $0x28] sm:$0xff]   ;;  %v15023_v61 = vld [vmem:[#allocation59_spill] sm:$0xff] }
 0x29c   : > { %v4329_v50 = vpop.permute.xlu1 %4328  ;;  %v2966_v57 = vadd.f32 %v2950_v45, %v2837_v52  ;;  %v3207_v48 = vmul.f32 %v11951_v8, %v15022_v32  ;;  %v4471_v42 = vor.u32 %v4470_v31, %v4467_v18  ;;  %5109 = vmatpush1.bf16.msra.mxu0 %v12181_v63  ;;  %v2406_v27 = vmul.f32 %v12042_v44, %v15023_v61  ;;  %v15024_v18 = vld [vmem:[#allocation48_spill] sm:$0xff]  ;;  %v15025_v28 = vld [vmem:[#allocation51_spill] sm:$0xff] }
 0x29d   : > { %4379 = vst.msk [vmem:[#allocation2 + $0x10] sm:$0xf] %vm14585_vm13, %v4329_v50  ;;  %v12171_v46 = vpop.permute.xlu0 %1557  ;;  %3836 = vrot.lane.b32.xlu1 %v12046_v51, %s14754_s19  ;;  %v706_v51 = vmul.f32 %v11899_v62, %v11796_v21  ;;  %v1004_v52 = vmul.f32 %v11906_v2, %v11854_v60  ;;  %v12190_v45 = vpack.c.bf16 %v3253_v59, %v3253_v59  ;;  %v4257_v50 = vld [vmem:[#allocation2 + $0x38] sm:$0x3]  ;;  %vm15030_vm13 = vcmask 781952  }
 0x29e   : > { %15021 = vst [vmem:[#allocation107_spill] sm:$0xff] %v12171_v46  ;;  %3594 = vperm.xlu0 %9352, %v12015_v47   ;;  %5110 = vmatprep.subr.bf16.mxu0 %v15014_v37  ;;  %v2388_v47 = vadd.f32 %v2370_v5, %v2244_v33  ;;  %v2754_v31 = vmul.f32 %v11921_v14, %v15024_v18 }
 0x29f   : > { %v3634_v17 = vadd.f32 %v3618_v0, %v3506_v49  ;;  %v3095_v4 = vadd.f32 %v3079_v7, %v2966_v57  ;;  %v2442_v30 = vmul.f32 %v11944_v1, %v15025_v28  ;;  %v873_v21 = vadd.f32 %v855_v16, %v706_v51  ;;  %v15027_v7 = vld [vmem:[#allocation22_spill] sm:$0xff]  ;;  %v12210_v49 = vld [vmem:[%s9849_s1 + $0x81] sm:$0xff] }
 0x2a0   : > { %v4208_v41 = vpop.permute.xlu1 %4207  ;;  %v1153_v60 = vmul.f32 %v11921_v14, %v11982_v38  ;;  %v3348_v33 = vadd.f32 %v3332_v40, %v3316_v58  ;;  %v3493_v5 = vmul.f32 %v11944_v1, %v15006_v35  ;;  %v12212_v16 = vrot.slane %v4471_v42, 4  ;;  %v15028_v51 = vld [vmem:[#allocation66_spill] sm:$0xff]  ;;  %v12221_v35 = vld [vmem:[%s14323_s6 + $0x20] sm:$0xff]  }
 0x2a1   : > { %v4258_v59 = vsel %vm11128_vm12, %v4208_v41, %v4257_v50  ;;  %v12201_v55 = vpop.permute.xlu0 %1707  ;;  %4211 = vrot.lane.b32.xlu1 %v12190_v45, %s14853_s2  ;;  %v3223_v0 = vadd.f32 %v3207_v48, %v3095_v4  ;;  %v2424_v57 = vadd.f32 %v2406_v27, %v2388_v47  ;;  %v2586_v18 = vmul.f32 %v11951_v8, %v15028_v51  ;;  %v15029_v4 = vld [vmem:[#allocation63_spill] sm:$0xff]  ;;  %v15061_v38 = vld [vmem:[#allocation76_spill] sm:$0xff] }
 0x2a2   : > { %15026 = vst [vmem:[#allocation23_spill] sm:$0xff] %v12201_v55  ;;  %4259 = vst [vmem:[#allocation2 + $0x38] sm:$0x3] %v4258_v59  ;;  %4084 = vrot.lane.b32.xlu0 %v15027_v7, %s14792_s20  ;;  %v1022_v41 = vadd.f32 %v1004_v52, %v873_v21  ;;  %v1302_v58 = vmul.f32 %v11933_v19, %v12023_v39  ;;  %5111 = vmatpush1.bf16.msra.mxu0 %v12221_v35 }
 0x2a3   : > { %v2770_v40 = vadd.f32 %v2754_v31, %v2738_v23  ;;  %v3650_v48 = vadd.f32 %v11875_v10, %v3634_v17  ;;  %v2786_v42 = vmul.f32 %v11933_v19, %v15023_v61  ;;  %v3364_v27 = vmul.f32 %v11921_v14, %v15023_v61  ;;  %5112 = vmatprep.subr.bf16.mxu0 %v15014_v37  ;;  %v4384_v23 = vld [vmem:[#allocation2 + $0x28] sm:$0x3] }
 0x2a4   : > { %v4564_v52 = vpop.permute.xlu1 %4563  ;;  %v2460_v47 = vadd.f32 %v2442_v30, %v2424_v57  ;;  %v3621_v50 = vmul.f32 %v11951_v8, %v15029_v4  ;;  %v1171_v21 = vadd.f32 %v1153_v60, %v1022_v41  ;;  %v1451_v59 = vmul.f32 %v11958_v56, %v12084_v3  ;;  %v15060_v3 = vld [vmem:[#allocation84_spill] sm:$0xff]  ;;  %v15070_v30 = vld [vmem:[#allocation29_spill] sm:$0xff] }
 0x2a5   : > { %4614 = vst.msk [vmem:[#allocation2 + $0x10] sm:$0xf] %vm15030_vm13, %v4564_v52  ;;  %v4335_v31 = vpop.permute.xlu0 %4334  ;;  %3188 = vperm.xlu1 %9353, %v12210_v49   ;;  %v3509_v17 = vadd.f32 %v3493_v5, %v3477_v54  ;;  %v3396_v61 = vmul.f32 %v11933_v19, %v15025_v28  ;;  %v3239_v7 = vadd.f32 %v11875_v10, %v3223_v0  ;;  %v12249_v54 = vld [vmem:[%s14323_s6 + $0x18] sm:$0xff]   ;;  %v3666_v5 = vmax.f32 %v3650_v48, 0.0 }
 0x2a6   : > { %v4385_v57 = vsel %vm11277_vm14, %v4335_v31, %v4384_v23  ;;  %1129 = vperm.xlu0 %9352, %v12049_v36   ;;  %v2604_v60 = vadd.f32 %v2586_v18, %v2460_v47  ;;  %v2818_v41 = vmul.f32 %v11958_v56, %v15025_v28  ;;  %v1320_v52 = vadd.f32 %v1302_v58, %v1171_v21 }
 0x2a7   : > { %v1601_v4 = vmul.f32 %v12042_v44, %v12171_v46  ;;  %4386 = vst [vmem:[#allocation2 + $0x28] sm:$0x3] %v4385_v57  ;;  %5113 = vmatpush1.bf16.msra.mxu0 %v12249_v54  ;;  %v3380_v0 = vadd.f32 %v3364_v27, %v3348_v33  ;;  %v4493_v36 = vshll.u32 %v12190_v45, 16  ;;  %v4497_v18 = vshrl.u32 %v12190_v45, 16  ;;  %v15033_v45 = vld [vmem:[#allocation116_spill] sm:$0xff] }
 0x2a8   : > { %v4653_v23 = vpop.permute.xlu1 %4652  ;;  %5114 = vmatprep.subr.bf16.mxu0 %v15014_v37  ;;  %v3637_v28 = vadd.f32 %v3621_v50, %v3509_v17  ;;  %v2802_v58 = vadd.f32 %v2786_v42, %v2770_v40  ;;  %v1469_v47 = vadd.f32 %v1451_v59, %v1320_v52  ;;  %v1751_v21 = vmul.f32 %v11944_v1, %v12201_v55  ;;  %v15034_v27 = vld [vmem:[#allocation92_spill] sm:$0xff]  ;;  %v2271_v55 = vld [vmem:[%s9842_s23 + $0x89] sm:$0xf] }
 0x2a9   : > { %4703 = vst.msk [vmem:[#allocation2 + $0x10] sm:$0xf] %vm4696_vm4, %v4653_v23  ;;  %v12258_v31 = vpop.permute.xlu0 %3584  ;;  %1278 = vperm.xlu1 %9353, %v12092_v11   ;;  %v3412_v33 = vadd.f32 %v3396_v61, %v3380_v0  ;;  %v3428_v48 = vmul.f32 %v11958_v56, %v15028_v51  ;;  %v3255_v42 = vmax.f32 %v3239_v7, 0.0  ;;  %v2622_v50 = vadd.f32 %v11875_v10, %v2604_v60  ;;  %v15035_v59 = vld [vmem:[#allocation68_spill] sm:$0xff]  ;;  %v12278_v51 = vld [vmem:[%s14323_s6 + $0x10] sm:$0xff]  }
 0x2aa   : > { %15032 = vst [vmem:[#allocation31_spill] sm:$0xff] %v12258_v31  ;;  %4074 = vrot.lane.b32.xlu0 %v15033_v45, %s14792_s20  ;;  %v2015_v17 = vmul.f32 %v11891_v43, %v15035_v59  ;;  %v12272_v57 = vadd.f32 %v2818_v41, %v2802_v58  ;;  %v1619_v11 = vadd.f32 %v1601_v4, %v1469_v47  ;;  %v8417_v61 = vld [vmem:[%s9818_s29 + $0x99] sm:$0xf]  ;;  %v12285_v60 = vrot.slane %v4493_v36, 5 }
 0x2ab   : > { %5115 = vmatpush1.bf16.msra.mxu0 %v12278_v51  ;;  %v8930_v52 = vpack.c.bf16 %v3666_v5, %v3666_v5  ;;  %v15036_v0 = vld [vmem:[#allocation55_spill] sm:$0xff]  ;;  %v12287_v45 = vrot.slane %v4497_v18, 4  ;;  %v15038_v41 = vld [vmem:[#allocation44_spill] sm:$0xff]  ;;  %v3653_v58 = vadd.f32 %v11875_v10, %v3637_v28  ;;  %v12297_v36 = vadd.f32 %v3428_v48, %v3412_v33 }
 0x2ac   : > { %v1979_v7 = vmul.f32 %v11899_v62, %v15036_v0  ;;  %v12283_v23 = vpop.permute.xlu1 %1856  ;;  %5116 = vmatprep.subr.bf16.mxu0 %v15014_v37  ;;  %v2159_v4 = vmul.f32 %v11906_v2, %v15038_v41  ;;  %v1769_v47 = vadd.f32 %v1751_v21, %v1619_v11  ;;  %v4793_v59 = vld [vmem:[#allocation2 + $0x18] sm:$0x3]  ;;  %v3463_v18 = vmul.f32 %v12042_v44, %v15020_v12  ;;  %v15039_v21 = vld [vmem:[#allocation45_spill] sm:$0xff] }
 0x2ad   : > { %15037 = vst [vmem:[#allocation37_spill] sm:$0xff] %v12283_v23  ;;  %v1900_v5 = vmul.f32 %v11951_v8, %v12283_v23  ;;  %v4744_v40 = vpop.permute.xlu0 %4743  ;;  %4205 = vrot.lane.b32.xlu1 %v12094_v20, %s14853_s2  ;;  %v12303_v41 = vpack.c.bf16 %v3255_v42, %v3255_v42  ;;  %v2195_v11 = vmul.f32 %v11921_v14, %v15039_v21  ;;  %v2640_v25 = vmax.f32 %v2622_v50, 0.0  ;;  %v12310_v20 = vld [vmem:[%s14323_s6 + $0x8] sm:$0xff]   ;;  %v15040_v33 = vld [vmem:[#allocation71_spill] sm:$0xff] }
 0x2ae   : > { %v4794_v0 = vsel %vm11974_vm15, %v4744_v40, %v4793_v59  ;;  %1881 = vperm.xlu0 %9352, %v8417_v61   ;;  %v2033_v28 = vadd.f32 %v2015_v17, %v1979_v7  ;;  %v3495_v12 = vmul.f32 %v11944_v1, %v15022_v32  ;;  %v2663_v48 = vmul.f32 %v11899_v62, %v15040_v33  ;;  %v15041_v7 = vld [vmem:[#allocation72_spill] sm:$0xff]  ;;  %v15043_v33 = vld [vmem:[#allocation18_spill] sm:$0xff] }
 0x2af   : > { %4795 = vst [vmem:[#allocation2 + $0x18] sm:$0x3] %v4794_v0  ;;  %v1918_v23 = vadd.f32 %v1900_v5, %v1769_v47  ;;  %5117 = vmatpush1.bf16.msra.mxu0 %v12310_v20  ;;  %v2695_v40 = vmul.f32 %v11891_v43, %v15039_v21  ;;  %v3669_v61 = vmax.f32 %v3653_v58, 0.0  ;;  %v2231_v47 = vmul.f32 %v11933_v19, %v15041_v7 }
 0x2b0   : > { %v4742_v42 = vpop.permute.xlu1 %4741  ;;  %5118 = vmatprep.subr.bf16.mxu0 %v15014_v37  ;;  %v2177_v17 = vadd.f32 %v2159_v4, %v2033_v28  ;;  %v3479_v59 = vadd.f32 %v3463_v18, %v12134_v24  ;;  %v3305_v0 = vmul.f32 %v11891_v43, %v15041_v7  ;;  %v4512_v4 = vshll.u32 %v12303_v41, 16  ;;  %v12342_v24 = vld [vmem:[%s14323_s6] sm:$0xff]  }
 0x2b1   : > { %4792 = vst.msk [vmem:[#allocation2 + $0x10] sm:$0xf] %vm4785_vm1, %v4742_v42  ;;  %v12325_v32 = vpop.permute.xlu0 %2936  ;;  %4336 = vrot.lane.b32.xlu1 %v8930_v52, %s14839_s30  ;;  %v1942_v5 = vadd.f32 %v11875_v10, %v1918_v23  ;;  %v4516_v58 = vshrl.u32 %v12303_v41, 16  ;;  %v3623_v42 = vmul.f32 %v11951_v8, %v15043_v33  ;;  %v12337_v50 = vpack.c.bf16 %v2640_v25, %v2640_v25 }
 0x2b2   : > { %15042 = vst [vmem:[#allocation47_spill] sm:$0xff] %v12325_v32  ;;  %2560 = vperm.xlu0 %9352, %v12117_v6   ;;  %v2213_v28 = vadd.f32 %v2195_v11, %v2177_v17  ;;  %v3511_v23 = vadd.f32 %v3495_v12, %v3479_v59  ;;  %v3273_v6 = vmul.f32 %v11899_v62, %v15039_v21  ;;  %vm15052_vm13 = vcmask 125952   ;;  %v12404_v32 = vld [vmem:[%s9842_s23 + $0x81] sm:$0xff] }
 0x2b3   : > { %15044 = vst [vmem:[#allocation56_spill] sm:$0xff] %v12337_v50  ;;  %v1960_v52 = vmax.f32 %v1942_v5, 0.0  ;;  %5119 = vmatpush1.bf16.msra.mxu0 %v12342_v24  ;;  %v2727_v18 = vmul.f32 %v11906_v2, %v15041_v7  ;;  %v2711_v11 = vadd.f32 %v2695_v40, %v2663_v48  ;;  %v12352_v25 = vpack.c.bf16 %v3669_v61, %v3669_v61  ;;  %v15046_v5 = vld [vmem:[#allocation80_spill] sm:$0xff]  ;;  %v15050_v40 = vld [vmem:[#allocation65_spill] sm:$0xff] }
 0x2b4   : > { %v12349_v17 = vpop.permute.xlu1 %3065  ;;  %5134 = vmatprep.subr.bf16.mxu0 %v15014_v37  ;;  %v2375_v33 = vmul.f32 %v11958_v56, %v15046_v5  ;;  %v2249_v22 = vadd.f32 %v2231_v47, %v2213_v28  ;;  %v15048_v21 = vsel %vm10468_vm6, %v12212_v16, %v15034_v27  ;;  %v3321_v48 = vadd.f32 %v3305_v0, %v3273_v6  ;;  %v15051_v28 = vld [vmem:[#allocation32_spill] sm:$0xff] }
 0x2b5   : > { %15045 = vst [vmem:[#allocation91_spill] sm:$0xff] %v12349_v17  ;;  %v12356_v31 = vpop.permute.xlu0 %2550  ;;  %4571 = vrot.lane.b32.xlu1 %v15048_v21, %s14851_s18  ;;  %v12364_v12 = vpack.c.bf16 %v1960_v52, %v1960_v52  ;;  %v2017_v61 = vmul.f32 %v11891_v43, %v15050_v40  ;;  %v12369_v7 = vrot.slane %v4512_v4, 5  ;;  %v12371_v47 = vrot.slane %v4516_v58, 4  ;;  %v12381_v16 = vld [vmem:[%s14323_s6 + $0x40] sm:$0xff]  }
 0x2b6   : > { %15047 = vst [vmem:[#allocation99_spill] sm:$0xff] %v12356_v31  ;;  %1427 = vperm.xlu0 %9352, %v12210_v49   ;;  %v3639_v59 = vadd.f32 %v3623_v42, %v3511_v23  ;;  %v2947_v31 = vmul.f32 %v12042_v44, %v15051_v28  ;;  %15053 = vst [vmem:[#allocation39_spill] sm:$0xff] %v12381_v16  ;;  %v3337_v0 = vmul.f32 %v11906_v2, %v15046_v5  ;;  %v15054_v4 = vld [vmem:[#allocation57_spill] sm:$0xff]  ;;  %v15055_v52 = vld [vmem:[#allocation16_spill] sm:$0xff] }
 0x2b7   : > { %15049 = vst [vmem:[#allocation54_spill] sm:$0xff] %v12364_v12  ;;  %3768 = vst.msk [vmem:[#allocation2 + $0x60] sm:$0xf] %vm15052_vm13, %v12364_v12  ;;  %5135 = vmatpush2.bf16.msra.mxu0 %v12381_v16  ;;  %v4025_v49 = vshrl.u32 %v12364_v12, 16  ;;  %v4028_v27 = vshll.u32 %v12364_v12, 16  ;;  %v1981_v58 = vmul.f32 %v11899_v62, %v15054_v4  ;;  %v2743_v42 = vadd.f32 %v2727_v18, %v2711_v11  ;;  %v15057_v28 = vld [vmem:[#allocation20_spill] sm:$0xff] }
 0x2b8   : > { %v2759_v23 = vmul.f32 %v11921_v14, %v15055_v52  ;;  %v12392_v6 = vpop.permute.xlu1 %3599  ;;  %v9366_v21 = vld [vmem:[#allocation2 + $0x10] ss:$8 sps:$4 sm:$0x3f]   ;;  %5226 = vmatprep.subr.bf16.mxu0 %v15014_v37  ;;  %v2393_v40 = vadd.f32 %v2375_v33, %v2249_v22  ;;  %v3076_v12 = vmul.f32 %v11944_v1, %v15057_v28  ;;  %v15059_v5 = vld [vmem:[#allocation60_spill] sm:$0xff]  ;;  %v2411_v52 = vmul.f32 %v12042_v44, %v15060_v3 }
 0x2b9   : > { %15056 = vst [vmem:[#allocation113_spill] sm:$0xff] %v12392_v6  ;;  %v12397_v46 = vpop.permute.xlu0 %3193  ;;  %4660 = vrot.lane.b32.xlu1 %v15059_v5, %s14864_s27  ;;  %v9368_v4 = vld [vmem:[#allocation2 + $0x14] ss:$8 sps:$4 sm:$0x3f]   ;;  %v4027_v18 = vrot.slane %v4025_v49, 4  ;;  %v4030_v11 = vrot.slane %v4028_v27, 5  ;;  %v2035_v17 = vadd.f32 %v2017_v61, %v1981_v58  ;;  %v3353_v6 = vadd.f32 %v3337_v0, %v3321_v48 }
 0x2ba   : > { %15058 = vst [vmem:[#allocation101_spill] sm:$0xff] %v12397_v46  ;;  %2359 = vperm.xlu0 %9352, %v2271_v55   ;;  %v3655_v33 = vadd.f32 %v11875_v10, %v3639_v59  ;;  %v2963_v46 = vadd.f32 %v2947_v31, %v12272_v57  ;;  %v3204_v5 = vmul.f32 %v11951_v8, %v15061_v38  ;;  %v15062_v27 = vld [vmem:[#allocation67_spill] sm:$0xff]  ;;  %v4619_v59 = vld [vmem:[#allocation2 + $0x28] sm:$0x3]  ;;  %v15063_v31 = vld [vmem:[#allocation26_spill] sm:$0xff] }
 0x2bb   : > { %8585 = vmatprep.mubr.msk.bf16.mxu1 %vm14617_vm3, %v9368_v4  ;;  %v4031_v61 = vor.u32 %v4030_v11, %v4027_v18  ;;  %v2791_v49 = vmul.f32 %v11933_v19, %v15060_v3  ;;  %v3369_v55 = vmul.f32 %v11921_v14, %v15060_v3  ;;  %v2775_v48 = vadd.f32 %v2759_v23, %v2743_v42  ;;  %v4388_v11 = vld [vmem:[#allocation2 + $0x38] sm:$0x3]  ;;  %v15065_v42 = vld [vmem:[#allocation73_spill] sm:$0xff] }
 0x2bc   : > { %v2161_v0 = vmul.f32 %v11906_v2, %v15062_v27  ;;  %v4570_v58 = vpop.permute.xlu1 %4569  ;;  %5076 = vmatmul.mubr.bf16.vlgmr.msra.gmra.mxu1 %v9366_v21  ;;  %v2012_v57 = vmul.f32 %v11891_v43, %v15063_v31  ;;  %v3092_v22 = vadd.f32 %v3076_v12, %v2963_v46  ;;  %v1976_v23 = vmul.f32 %v11899_v62, %v15065_v42  ;;  %v15066_v27 = vld [vmem:[#allocation74_spill] sm:$0xff]  ;;  %v15067_v12 = vld [vmem:[#allocation89_spill] sm:$0xff]  ;;  %v15068_v31 = vld [vmem:[#allocation24_spill] sm:$0xff] }
 0x2bd   : > { %v4620_v18 = vsel %vm11470_vm0, %v4570_v58, %v4619_v59  ;;  %v4339_v39 = vpop.permute.xlu0 %4338  ;;  %2354 = vperm.xlu1 %9353, %v12404_v32   ;;  %v4032_v3 = vrot.slane %v4031_v61, 4  ;;  %5166 = vmatpush1.bf16.msra.mxu1 %v12124_v34  ;;  %v2447_v21 = vmul.f32 %v11944_v1, %v15066_v27  ;;  %v8378_v58 = vld [vmem:[%s9818_s29 + $0x90] sm:$0xff]  ;;  %v3671_v59 = vmax.f32 %v3655_v33, 0.0 }
 0x2be   : > { %4621 = vst [vmem:[#allocation2 + $0x28] sm:$0x3] %v4620_v18  ;;  %v4389_v46 = vsel %vm11277_vm14, %v4339_v39, %v4388_v11  ;;  %4751 = vrot.lane.b32.xlu0 %v15067_v12, %s14996_s3  ;;  %5167 = vmatprep.subr.bf16.mxu1 %v15014_v37  ;;  %v3401_v34 = vmul.f32 %v11933_v19, %v15066_v27 }
 0x2bf   : > { %v3220_v61 = vadd.f32 %v3204_v5, %v3092_v22  ;;  %4390 = vst [vmem:[#allocation2 + $0x38] sm:$0x3] %v4389_v46  ;;  %v12440_v42 = vsel %vm10468_vm6, %v4032_v3, %v15068_v31  ;;  %v12442_v18 = vadd.f32 %v2791_v49, %v2775_v48  ;;  %v2429_v39 = vadd.f32 %v2411_v52, %v2393_v40  ;;  %v3892_v49 = vld [vmem:[#allocation2 + $0x48] sm:$0x3] }
 0x2c0   : > { %15069 = vst [vmem:[#allocation30_spill] sm:$0xff] %v12440_v42  ;;  %v3385_v11 = vadd.f32 %v3369_v55, %v3353_v6  ;;  %v2591_v12 = vmul.f32 %v11951_v8, %v15070_v30  ;;  %v12446_v16 = vpop.permute.xlu1 %672  ;;  %4875 = vst.msk [vmem:[#allocation2 + $0x54] sm:$0xf] %vm15052_vm13, %v12440_v42  ;;  %v2179_v33 = vadd.f32 %v2161_v0, %v2035_v17  ;;  %v15072_v6 = vld [vmem:[#allocation33_spill] sm:$0xff]  ;;  %v15074_v0 = vld [vmem:[#allocation83_spill] sm:$0xff]  ;;  %vm15136_vm13 = vcmask 650752  }
 0x2c1   : > { %15071 = vst [vmem:[#allocation111_spill] sm:$0xff] %v12446_v16  ;;  %v12450_v22 = vadd.f32 %v2012_v57, %v1976_v23  ;;  %v12454_v5 = vmul.f32 %v11958_v56, %v15066_v27  ;;  %v3843_v48 = vpop.permute.xlu0 %3842  ;;  %1577 = vperm.xlu1 %9353, %v8378_v58   ;;  %5168 = vmatpush1.bf16.msra.mxu1 %v12153_v53  ;;  %v8397_v27 = vld [vmem:[%s9834_s26 + $0x90] sm:$0xff] }
 0x2c2   : > { %v2197_v40 = vmul.f32 %v11921_v14, %v15072_v6  ;;  %v2465_v52 = vadd.f32 %v2447_v21, %v2429_v39  ;;  %v3893_v3 = vsel %vm10784_vm8, %v3843_v48, %v3892_v49  ;;  %4749 = vrot.lane.b32.xlu0 %v12337_v50, %s14996_s3  ;;  %5169 = vmatprep.subr.bf16.mxu1 %v15014_v37  ;;  %v15075_v21 = vld [vmem:[#allocation81_spill] sm:$0xff]  ;;  %v15076_v58 = vld [vmem:[#allocation78_spill] sm:$0xff]  ;;  %v15077_v39 = vld [vmem:[#allocation15_spill] sm:$0xff] }
 0x2c3   : > { %v12464_v17 = vpack.c.bf16 %v3671_v59, %v3671_v59  ;;  %v2692_v57 = vmul.f32 %v11891_v43, %v15074_v0  ;;  %v12468_v23 = vadd.f32 %v3401_v34, %v3385_v11  ;;  %v3236_v53 = vadd.f32 %v11875_v10, %v3220_v61  ;;  %3894 = vst [vmem:[#allocation2 + $0x48] sm:$0x3] %v3893_v3  ;;  %v15079_v11 = vld [vmem:[#allocation27_spill] sm:$0xff] }
 0x2c4   : > { %v2660_v46 = vmul.f32 %v11899_v62, %v15075_v21  ;;  %v2665_v31 = vmul.f32 %v11899_v62, %v15076_v58  ;;  %v2233_v49 = vmul.f32 %v11933_v19, %v15077_v39  ;;  %v2609_v59 = vadd.f32 %v2591_v12, %v2465_v52  ;;  %v12478_v48 = vpop.permute.xlu1 %3609  ;;  %v15081_v58 = vld [vmem:[#allocation88_spill] sm:$0xff]  ;;  %v15082_v55 = vld [vmem:[#allocation43_spill] sm:$0xff] }
 0x2c5   : > { %15078 = vst [vmem:[#allocation100_spill] sm:$0xff] %v12478_v48  ;;  %v12482_v34 = vmul.f32 %v11899_v62, %v15072_v6  ;;  %v2697_v61 = vmul.f32 %v11891_v43, %v15072_v6  ;;  %v2724_v3 = vmul.f32 %v11906_v2, %v15079_v11  ;;  %v12488_v21 = vpop.permute.xlu0 %821  ;;  %3604 = vperm.xlu1 %9353, %v12404_v32   ;;  %v3252_v16 = vmax.f32 %v3236_v53, 0.0  ;;  %v15087_v53 = vld [vmem:[#allocation93_spill] sm:$0xff] }
 0x2c6   : > { %15080 = vst [vmem:[#allocation40_spill] sm:$0xff] %v12488_v21  ;;  %5170 = vmatpush1.bf16.msra.mxu1 %v12181_v63  ;;  %v12494_v12 = vmul.f32 %v11899_v62, %v15074_v0  ;;  %v2215_v52 = vadd.f32 %v2197_v40, %v2179_v33  ;;  %v2377_v42 = vmul.f32 %v11958_v56, %v15081_v58  ;;  %v15083_v40 = vld [vmem:[#allocation25_spill] sm:$0xff] }
 0x2c7   : > { %1727 = vperm.xlu0 %9352, %v8397_v27   ;;  %5171 = vmatprep.subr.bf16.mxu1 %v15014_v37  ;;  %v2192_v6 = vmul.f32 %v11921_v14, %v15074_v0  ;;  %v2708_v48 = vadd.f32 %v2692_v57, %v2660_v46  ;;  %v2756_v32 = vmul.f32 %v11921_v14, %v15082_v55  ;;  %v15085_v46 = vld [vmem:[#allocation90_spill] sm:$0xff] }
 0x2c8   : > { %v12503_v63 = vadd.f32 %v2697_v61, %v2665_v31  ;;  %v2627_v62 = vadd.f32 %v11875_v10, %v2609_v59  ;;  %v2251_v33 = vadd.f32 %v2233_v49, %v2215_v52  ;;  %v2413_v50 = vmul.f32 %v12042_v44, %v15083_v40  ;;  %v12508_v27 = vpop.permute.xlu1 %1119  ;;  %v8437_v59 = vld [vmem:[%s9834_s26 + $0x99] sm:$0xf] }
 0x2c9   : > { %15084 = vst [vmem:[#allocation75_spill] sm:$0xff] %v12508_v27  ;;  %v12512_v0 = vmul.f32 %v11906_v2, %v15077_v39  ;;  %v2740_v57 = vadd.f32 %v2724_v3, %v2708_v48  ;;  %v2788_v14 = vmul.f32 %v11933_v19, %v15085_v46  ;;  %v12516_v55 = vpop.permute.xlu0 %970  ;;  %4342 = vrot.lane.b32.xlu1 %v12352_v25, %s14839_s30  ;;  %v15088_v25 = vld [vmem:[#allocation17_spill] sm:$0xff]  ;;  %v4623_v27 = vld [vmem:[#allocation2 + $0x38] sm:$0x3] }
 0x2ca   : > { %15086 = vst [vmem:[#allocation115_spill] sm:$0xff] %v12516_v55  ;;  %5172 = vmatpush1.bf16.msra.mxu1 %v12221_v35  ;;  %v2395_v10 = vadd.f32 %v2377_v42, %v2251_v33  ;;  %v2156_v31 = vmul.f32 %v11906_v2, %v15087_v53  ;;  %v2449_v49 = vmul.f32 %v11944_v1, %v11771_v15  ;;  %v8416_v42 = vld [vmem:[%s9818_s29 + $0x91] sm:$0xff]  ;;  %v2645_v55 = vmax.f32 %v2627_v62, 0.0 }
 0x2cb   : > { %4215 = vrot.lane.b32.xlu0 %v12303_v41, %s14853_s2  ;;  %5173 = vmatprep.subr.bf16.mxu1 %v15014_v37  ;;  %v3307_v48 = vmul.f32 %v11891_v43, %v15077_v39  ;;  %v2772_v61 = vadd.f32 %v2756_v32, %v2740_v57  ;;  %v2820_v35 = vmul.f32 %v11958_v56, %v15088_v25 }
 0x2cc   : > { %v12534_v3 = vpack.c.bf16 %v3252_v16, %v3252_v16  ;;  %v3460_v52 = vmul.f32 %v12042_v44, %v15057_v28  ;;  %v2431_v33 = vadd.f32 %v2413_v50, %v2395_v10  ;;  %v2593_v41 = vmul.f32 %v11951_v8, %v11780_v13  ;;  %v4574_v53 = vpop.permute.xlu1 %4573  ;;  %v8436_v10 = vld [vmem:[%s9834_s26 + $0x91] sm:$0xff] }
 0x2cd   : > { %v2804_v21 = vadd.f32 %v2788_v14, %v2772_v61  ;;  %v2949_v39 = vmul.f32 %v12042_v44, %v11841_v29  ;;  %v4624_v32 = vsel %vm11470_vm0, %v4574_v53, %v4623_v27  ;;  %v12544_v16 = vpop.permute.xlu0 %1268  ;;  %2575 = vperm.xlu1 %9353, %v8437_v59   ;;  %v2228_v50 = vmul.f32 %v11933_v19, %v15079_v11  ;;  %v4708_v59 = vld [vmem:[#allocation2 + $0x28] sm:$0x3]  ;;  %v12590_v53 = vld [vmem:[%s14322_s5] ss:$0 sm:$0xff] }
 0x2ce   : > { %5174 = vmatpush1.bf16.msra.mxu1 %v12249_v54  ;;  %v3302_v28 = vmul.f32 %v11891_v43, %v15079_v11  ;;  %v2174_v62 = vadd.f32 %v2156_v31, %v12450_v22  ;;  %v2467_v57 = vadd.f32 %v2449_v49, %v2431_v33  ;;  %4625 = vst [vmem:[#allocation2 + $0x38] sm:$0x3] %v4624_v32  ;;  %v4484_v54 = vshrl.u32 %v12534_v3, 16  ;;  %v15090_v49 = vld [vmem:[#allocation104_spill] sm:$0xff] }
 0x2cf   : > { %1876 = vperm.xlu0 %9352, %v8416_v42   ;;  %v3492_v29 = vmul.f32 %v11944_v1, %v15061_v38  ;;  %v2836_v27 = vadd.f32 %v2820_v35, %v2804_v21  ;;  %v3078_v14 = vmul.f32 %v11944_v1, %v11882_v26  ;;  %5175 = vmatprep.subr.bf16.mxu1 %v15014_v37  ;;  %v4487_v31 = vshll.u32 %v12534_v3, 16 }
 0x2d0   : > { %v3339_v43 = vmul.f32 %v11906_v2, %v15081_v58  ;;  %v2611_v19 = vadd.f32 %v2593_v41, %v2467_v57  ;;  %v12561_v22 = vpop.permute.xlu1 %687  ;;  %v12563_v11 = vpack.c.bf16 %v2645_v55, %v2645_v55  ;;  %v3476_v38 = vadd.f32 %v3460_v52, %v12297_v36  ;;  %v15091_v58 = vld [vmem:[#allocation94_spill] sm:$0xff] }
 0x2d1   : > { %15089 = vst [vmem:[#allocation42_spill] sm:$0xff] %v12561_v22  ;;  %v2965_v21 = vadd.f32 %v2949_v39, %v2836_v27  ;;  %v3206_v1 = vmul.f32 %v11951_v8, %v15090_v49  ;;  %v4659_v61 = vpop.permute.xlu0 %4658  ;;  %4346 = vrot.lane.b32.xlu1 %v12464_v17, %s14839_s30  ;;  %v2210_v2 = vadd.f32 %v2192_v6, %v2174_v62  ;;  %v12583_v17 = vld [vmem:[%s14321_s4 + $0x3] ss:$0 sm:$0xff]  ;;  %v4486_v41 = vrot.slane %v4484_v54, 4  ;;  %v15095_v39 = vld [vmem:[#allocation110_spill] sm:$0xff] }
 0x2d2   : > { %5176 = vmatpush1.bf16.msra.mxu1 %v12278_v51  ;;  %v3620_v55 = vmul.f32 %v11951_v8, %v15091_v58  ;;  %v4709_v42 = vsel %vm11678_vm5, %v4659_v61, %v4708_v59  ;;  %v15093_v36 = vor.u32 %v12287_v45, %v12285_v60  ;;  %v3508_v33 = vadd.f32 %v3492_v29, %v3476_v38  ;;  %v15094_v51 = vld [vmem:[#allocation97_spill] sm:$0xff] }
 0x2d3   : > { %2570 = vperm.xlu0 %9352, %v8436_v10   ;;  %5177 = vmatprep.subr.bf16.mxu1 %v15014_v37  ;;  %v2761_v6 = vmul.f32 %v12583_v17, %v15094_v51  ;;  %v3094_v8 = vadd.f32 %v3078_v14, %v2965_v21  ;;  %4710 = vst [vmem:[#allocation2 + $0x28] sm:$0x3] %v4709_v42  ;;  %v12598_v62 = vld [vmem:[%s14321_s4 + $0x2] ss:$0 sm:$0xff]  ;;  %v4489_v27 = vrot.slane %v4487_v31, 5 }
 0x2d4   : > { %v4501_v52 = vrot.slane %v15093_v36, 4  ;;  %v2629_v45 = vadd.f32 %v12590_v53, %v2611_v19  ;;  %v2372_v32 = vmul.f32 %v11958_v56, %v15095_v39  ;;  %v3334_v57 = vmul.f32 %v12598_v62, %v15095_v39  ;;  %v12602_v29 = vpop.permute.xlu1 %2921  ;;  %v12632_v61 = vld [vmem:[%s14321_s4 + $0x4] ss:$0 sm:$0xff] }
 0x2d5   : > { %v3323_v14 = vadd.f32 %v3307_v48, %v12482_v34  ;;  %v2745_v10 = vadd.f32 %v12512_v0, %v12503_v63  ;;  %v3222_v54 = vadd.f32 %v3206_v1, %v3094_v8  ;;  %v12607_v19 = vpop.permute.xlu0 %836  ;;  %3850 = vrot.lane.b32.xlu1 %v12563_v11, %s14754_s19  ;;  %v3318_v56 = vadd.f32 %v3302_v28, %v12494_v12  ;;  %v12621_v63 = vld [vmem:[%s14321_s4 + $0x5] ss:$0 sm:$0xff] }
 0x2d6   : > { %15096 = vst [vmem:[#allocation117_spill] sm:$0xff] %v12607_v19  ;;  %5178 = vmatpush1.bf16.msra.mxu1 %v12310_v20  ;;  %v2246_v38 = vadd.f32 %v2228_v50, %v2210_v2  ;;  %v3636_v21 = vadd.f32 %v3620_v55, %v3508_v33  ;;  %v15097_v34 = vor.u32 %v12371_v47, %v12369_v7  ;;  %v2647_v47 = vmax.f32 %v2629_v45, 0.0  ;;  %v15099_v55 = vld [vmem:[#allocation49_spill] sm:$0xff]  ;;  %v15130_v19 = vld [vmem:[#allocation35_spill] sm:$0xff] }
 0x2d7   : > { %4577 = vrot.lane.b32.xlu0 %v4501_v52, %s14851_s18  ;;  %5179 = vmatprep.subr.bf16.mxu1 %v15014_v37  ;;  %v3433_v20 = vmul.f32 %v12621_v63, %v15070_v30  ;;  %v3355_v0 = vadd.f32 %v3339_v43, %v3323_v14  ;;  %v3371_v12 = vmul.f32 %v12583_v17, %v15083_v40 }
 0x2d8   : > { %v4520_v48 = vrot.slane %v15097_v34, 4  ;;  %v2777_v50 = vadd.f32 %v2761_v6, %v2745_v10  ;;  %v2390_v28 = vadd.f32 %v2372_v32, %v2246_v38  ;;  %v3350_v31 = vadd.f32 %v3334_v57, %v3318_v56  ;;  %v12627_v1 = vpop.permute.xlu1 %985  ;;  %v15103_v10 = vld [vmem:[#allocation39_spill] sm:$0xff] }
 0x2d9   : > { %15098 = vst [vmem:[#allocation38_spill] sm:$0xff] %v12627_v1  ;;  %v4490_v59 = vor.u32 %v4489_v27, %v4486_v41  ;;  %v2793_v2 = vmul.f32 %v12632_v61, %v15083_v40  ;;  %v3403_v30 = vmul.f32 %v12632_v61, %v11771_v15  ;;  %v3238_v43 = vadd.f32 %v12590_v53, %v3222_v54  ;;  %v12639_v58 = vpop.permute.xlu0 %1417  ;;  %v15102_v27 = vld [vmem:[#allocation85_spill] sm:$0xff] }
 0x2da   : > { %4666 = vrot.lane.b32.xlu1 %v15099_v55, %s14864_s27  ;;  %5180 = vmatpush1.bf16.msra.mxu1 %v12342_v24  ;;  %v2408_v42 = vmul.f32 %v12042_v44, %v15085_v46  ;;  %v3366_v36 = vmul.f32 %v12583_v17, %v15085_v46  ;;  %v3652_v40 = vadd.f32 %v12590_v53, %v3636_v21  ;;  %v15104_v21 = vld [vmem:[#allocation98_spill] sm:$0xff] }
 0x2db   : > { %v2839_v52 = vadd.f32 %v12454_v5, %v12442_v18  ;;  %4581 = vrot.lane.b32.xlu0 %v4520_v48, %s14851_s18  ;;  %v2809_v33 = vadd.f32 %v2793_v2, %v2777_v50  ;;  %v3387_v51 = vadd.f32 %v3371_v12, %v3355_v0  ;;  %v3435_v6 = vmul.f32 %v12621_v63, %v11780_v13  ;;  %v12669_v13 = vld [vmem:[%s14321_s4 + $0x1] ss:$0 sm:$0xff]  ;;  %v15105_v0 = vld [vmem:[#allocation103_spill] sm:$0xff] }
 0x2dc   : > { %v2825_v24 = vmul.f32 %v12621_v63, %v11771_v15  ;;  %5195 = vmatprep.subr.bf16.mxu1 %v15014_v37  ;;  %v2426_v8 = vadd.f32 %v2408_v42, %v2390_v28  ;;  %v3382_v41 = vadd.f32 %v3366_v36, %v3350_v31  ;;  %v12657_v46 = vpop.permute.xlu1 %1567  ;;  %v12659_v45 = vpack.c.bf16 %v2647_v47, %v2647_v47  ;;  %v15101_v15 = vld [vmem:[#allocation114_spill] sm:$0xff] }
 0x2dd   : > { %v12661_v39 = vrot.slane %v4490_v59, 4  ;;  %v12664_v18 = vadd.f32 %v3433_v20, %v12468_v23  ;;  %v3419_v5 = vadd.f32 %v3403_v30, %v3387_v51  ;;  %v2014_v32 = vmul.f32 %v12669_v13, %v15101_v15  ;;  %v12673_v57 = vpop.permute.xlu0 %3050  ;;  %v12681_v23 = vld [vmem:[%s14321_s4 + $0x7] ss:$0 sm:$0xff]  ;;  %v12697_v20 = vld [vmem:[%s14321_s4] ss:$0 sm:$0xff]  ;;  %v15107_v31 = vld [vmem:[#allocation86_spill] sm:$0xff] }
 0x2de   : > { %15100 = vst [vmem:[#allocation77_spill] sm:$0xff] %v12659_v45  ;;  %4088 = vrot.lane.b32.xlu1 %v15102_v27, %s14792_s20  ;;  %v3254_v14 = vmax.f32 %v3238_v43, 0.0  ;;  %5196 = vmatpush2.bf16.msra.mxu1 %v15103_v10  ;;  %v2444_v54 = vmul.f32 %v12681_v23, %v15088_v25  ;;  %v3398_v56 = vmul.f32 %v12632_v61, %v15088_v25  ;;  %v3668_v38 = vmax.f32 %v3652_v40, 0.0  ;;  %v12704_v25 = vld [vmem:[%s14321_s4 + $0x8] ss:$0 sm:$0xff]  ;;  %v15108_v42 = vld [vmem:[#allocation102_spill] sm:$0xff] }
 0x2df   : > { %v2952_v34 = vmul.f32 %v12042_v44, %v15104_v21  ;;  %3854 = vrot.lane.b32.xlu0 %v12659_v45, %s14754_s19  ;;  %5287 = vmatprep.subr.bf16.mxu1 %v15014_v37  ;;  %v12692_v48 = vadd.f32 %v3435_v6, %v3419_v5  ;;  %v1978_v12 = vmul.f32 %v12697_v20, %v15105_v0  ;;  %v15106_v44 = vld [vmem:[#allocation53_spill] sm:$0xff]  ;;  %v15109_v40 = vld [vmem:[#allocation40_spill] sm:$0xff]  ;;  %v15111_v6 = vld [vmem:[#allocation70_spill] sm:$0xff] }
 0x2e0   : > { %v2588_v50 = vmul.f32 %v12704_v25, %v15106_v44  ;;  %v2841_v28 = vadd.f32 %v2825_v24, %v2809_v33  ;;  %v2158_v47 = vmul.f32 %v12598_v62, %v15107_v31  ;;  %v2462_v59 = vadd.f32 %v2444_v54, %v2426_v8  ;;  %v3833_v30 = vpop.permute.xlu1 %3832  ;;  %v15112_v5 = vld [vmem:[#allocation50_spill] sm:$0xff]  ;;  %v15113_v15 = vld [vmem:[#allocation56_spill] sm:$0xff]  ;;  %v15115_v54 = vld [vmem:[#allocation111_spill] sm:$0xff] }
 0x2e1   : > { %v3414_v2 = vadd.f32 %v3398_v56, %v3382_v41  ;;  %v4496_v43 = vsel %vm10468_vm6, %v12661_v39, %v12285_v60  ;;  %v2032_v55 = vadd.f32 %v2014_v32, %v1978_v12  ;;  %v3081_v36 = vmul.f32 %v12681_v23, %v15108_v42  ;;  %3883 = vst.msk [vmem:[#allocation2 + $0x20] sm:$0xf] %vm3872_vm7, %v3833_v30  ;;  %v12719_v33 = vpop.permute.xlu0 %2128  ;;  %v15114_v27 = vld [vmem:[#allocation96_spill] sm:$0xff]  ;;  %v15117_v0 = vld [vmem:[#allocation61_spill] sm:$0xff] }
 0x2e2   : > { %v857_v51 = vmul.f32 %v12669_v13, %v15109_v40  ;;  %15110 = vst [vmem:[#allocation28_spill] sm:$0xff] %v12719_v33  ;;  %4078 = vrot.lane.b32.xlu1 %v15111_v6, %s14792_s20  ;;  %v12723_v24 = vpack.c.bf16 %v3254_v14, %v3254_v14  ;;  %v8932_v8 = vpack.c.bf16 %v3668_v38, %v3668_v38  ;;  %v15116_v14 = vld [vmem:[#allocation115_spill] sm:$0xff]  ;;  %v4130_v31 = vld [vmem:[#allocation2 + $0x48] sm:$0x3] }
 0x2e3   : > { %v2968_v41 = vadd.f32 %v2952_v34, %v2839_v52  ;;  %v2194_v60 = vmul.f32 %v12583_v17, %v15112_v5  ;;  %v3430_v39 = vmul.f32 %v12621_v63, %v15106_v44  ;;  %3840 = vrot.lane.b32.xlu0 %v15113_v15, %s14754_s19  ;;  %v2606_v32 = vadd.f32 %v2588_v50, %v2462_v59  ;;  %v12740_v52 = vld [vmem:[%s14321_s4 + $0x6] ss:$0 sm:$0xff] }
 0x2e4   : > { %v3209_v10 = vmul.f32 %v12704_v25, %v15114_v27  ;;  %v708_v56 = vmul.f32 %v12697_v20, %v15115_v54  ;;  %v1006_v38 = vmul.f32 %v12598_v62, %v15116_v14  ;;  %v3462_v21 = vmul.f32 %v12740_v52, %v11882_v26  ;;  %v4081_v50 = vpop.permute.xlu1 %4080  ;;  %v3896_v54 = vld [vmem:[#allocation2 + $0x58] sm:$0x3]  ;;  %v15132_v40 = vld [vmem:[#allocation37_spill] sm:$0xff] }
 0x2e5   : > { %v2176_v34 = vadd.f32 %v2158_v47, %v2032_v55  ;;  %v2662_v12 = vmul.f32 %v12697_v20, %v15117_v0  ;;  %v2694_v44 = vmul.f32 %v12669_v13, %v15112_v5  ;;  %v3097_v59 = vadd.f32 %v3081_v36, %v2968_v41  ;;  %v3847_v4 = vpop.permute.xlu0 %3846  ;;  %v15119_v0 = vld [vmem:[#allocation47_spill] sm:$0xff] }
 0x2e6   : > { %v875_v30 = vadd.f32 %v857_v51, %v708_v56  ;;  %v4131_v15 = vsel %vm10945_vm10, %v4081_v50, %v4130_v31  ;;  %4340 = vrot.lane.b32.xlu1 %v8932_v8, %s14839_s30  ;;  %v4503_v26 = vshrl.u32 %v12723_v24, 16  ;;  %v3494_v47 = vmul.f32 %v12681_v23, %v15090_v49  ;;  %v15122_v31 = vld [vmem:[#allocation91_spill] sm:$0xff] }
 0x2e7   : > { %v3446_v55 = vadd.f32 %v3430_v39, %v3414_v2  ;;  %v2954_v45 = vmul.f32 %v12740_v52, %v15119_v0  ;;  %4132 = vst [vmem:[#allocation2 + $0x48] sm:$0x3] %v4131_v15  ;;  %v3897_v36 = vsel %vm10784_vm8, %v3847_v4, %v3896_v54  ;;  %4209 = vrot.lane.b32.xlu0 %v12534_v3, %s14853_s2  ;;  %v15121_v2 = vld [vmem:[#allocation87_spill] sm:$0xff]  ;;  %v15127_v54 = vld [vmem:[#allocation101_spill] sm:$0xff] }
 0x2e8   : > { %v2624_v51 = vadd.f32 %v12590_v53, %v2606_v32  ;;  %v3225_v41 = vadd.f32 %v3209_v10, %v3097_v59  ;;  %v2212_v8 = vadd.f32 %v2194_v60, %v2176_v34  ;;  %v1024_v56 = vadd.f32 %v1006_v38, %v875_v30  ;;  %3898 = vst [vmem:[#allocation2 + $0x58] sm:$0x3] %v3897_v36  ;;  %v12769_v15 = vpop.permute.xlu1 %3178  ;;  %v15123_v32 = vld [vmem:[#allocation75_spill] sm:$0xff] }
 0x2e9   : > { %v12763_v49 = vmul.f32 %v12740_v52, %v15108_v42  ;;  %v2726_v39 = vmul.f32 %v12598_v62, %v15121_v2  ;;  %v2710_v50 = vadd.f32 %v2694_v44, %v2662_v12  ;;  %v3083_v4 = vmul.f32 %v12681_v23, %v15122_v31  ;;  %v12775_v10 = vpop.permute.xlu0 %1134  ;;  %v15125_v42 = vld [vmem:[#allocation109_spill] sm:$0xff]  ;;  %v15126_v44 = vld [vmem:[#allocation107_spill] sm:$0xff] }
 0x2ea   : > { %v2230_v3 = vmul.f32 %v12632_v61, %v15121_v2  ;;  %v1155_v60 = vmul.f32 %v12583_v17, %v15123_v32  ;;  %15124 = vst [vmem:[#allocation79_spill] sm:$0xff] %v12775_v10  ;;  %4664 = vrot.lane.b32.xlu1 %v15125_v42, %s14864_s27  ;;  %v12779_v38 = vrot.slane %v4503_v26, 4  ;;  %v4506_v34 = vshll.u32 %v12723_v24, 16  ;;  %v15128_v10 = vld [vmem:[#allocation23_spill] sm:$0xff] }
 0x2eb   : > { %v3478_v12 = vadd.f32 %v3462_v21, %v3446_v55  ;;  %v2758_v59 = vmul.f32 %v12583_v17, %v15126_v44  ;;  %v2970_v30 = vadd.f32 %v2954_v45, %v2841_v28  ;;  %v3211_v0 = vmul.f32 %v12704_v25, %v15127_v54  ;;  %4575 = vrot.lane.b32.xlu0 %v4496_v43, %s14851_s18  ;;  %v15129_v55 = vld [vmem:[#allocation31_spill] sm:$0xff] }
 0x2ec   : > { %v3241_v36 = vadd.f32 %v12590_v53, %v3225_v41  ;;  %v1173_v1 = vadd.f32 %v1155_v60, %v1024_v56  ;;  %v1304_v42 = vmul.f32 %v12632_v61, %v12544_v16  ;;  %v2642_v26 = vmax.f32 %v2624_v51, 0.0  ;;  %v12794_v28 = vpop.permute.xlu1 %1717  ;;  %v15131_v51 = vld [vmem:[#allocation62_spill] sm:$0xff] }
 0x2ed   : > { %v2742_v6 = vadd.f32 %v2726_v39, %v2710_v50  ;;  %v2790_v21 = vmul.f32 %v12632_v61, %v15128_v10  ;;  %v3622_v44 = vmul.f32 %v12704_v25, %v15129_v55  ;;  %v3099_v45 = vadd.f32 %v3083_v4, %v2970_v30  ;;  %v4071_v56 = vpop.permute.xlu0 %4070 }
 0x2ee   : > { %v2248_v22 = vadd.f32 %v2230_v3, %v2212_v8  ;;  %v2374_v43 = vmul.f32 %v12621_v63, %v15130_v19  ;;  %v1453_v41 = vmul.f32 %v12621_v63, %v12639_v58  ;;  %4755 = vrot.lane.b32.xlu1 %v15131_v51, %s14996_s3  ;;  %v4508_v39 = vrot.slane %v4506_v34, 5  ;;  %4121 = vst.msk [vmem:[#allocation2 + $0x20] sm:$0xf] %vm4110_vm9, %v4071_v56  ;;  %v15133_v8 = vld [vmem:[#allocation82_spill] sm:$0xff] }
 0x2ef   : > { %v2774_v50 = vadd.f32 %v2758_v59, %v2742_v6  ;;  %v3510_v60 = vadd.f32 %v3494_v47, %v3478_v12  ;;  %v3227_v33 = vadd.f32 %v3211_v0, %v3099_v45  ;;  %v2822_v4 = vmul.f32 %v12621_v63, %v15132_v40  ;;  %4670 = vrot.lane.b32.xlu0 %v15133_v8, %s14864_s27 }
 0x2f0   : > { %v2410_v3 = vmul.f32 %v12740_v52, %v15128_v10  ;;  %v1322_v30 = vadd.f32 %v1304_v42, %v1173_v1  ;;  %v1603_v55 = vmul.f32 %v12740_v52, %v12657_v46  ;;  %v3257_v51 = vmax.f32 %v3241_v36, 0.0  ;;  %v12813_v12 = vpop.permute.xlu1 %1283  ;;  %v15134_v1 = vld [vmem:[#allocation41_spill] sm:$0xff] }
 0x2f1   : > { %v3638_v34 = vadd.f32 %v3622_v44, %v3510_v60  ;;  %v2806_v6 = vadd.f32 %v2790_v21, %v2774_v50  ;;  %v2951_v47 = vmul.f32 %v12740_v52, %v12602_v29  ;;  %v8902_v59 = vpack.c.bf16 %v2642_v26, %v2642_v26  ;;  %v4202_v8 = vpop.permute.xlu0 %4201 }
 0x2f2   : > { %v2392_v0 = vadd.f32 %v2374_v43, %v2248_v22  ;;  %v1471_v45 = vadd.f32 %v1453_v41, %v1322_v30  ;;  %v1753_v56 = vmul.f32 %v12681_v23, %v12794_v28  ;;  %4092 = vrot.lane.b32.xlu1 %v15134_v1, %s14792_s20  ;;  %v4509_v42 = vor.u32 %v4508_v39, %v12779_v38  ;;  %v15135_v39 = vld [vmem:[#allocation99_spill] sm:$0xff]  ;;  %v15138_v1 = vld [vmem:[#allocation113_spill] sm:$0xff] }
 0x2f3   : > { %v2446_v36 = vmul.f32 %v12681_v23, %v15132_v40  ;;  %v3243_v21 = vadd.f32 %v12590_v53, %v3227_v33  ;;  %v2838_v29 = vadd.f32 %v2822_v4, %v2806_v6  ;;  %v3080_v26 = vmul.f32 %v12681_v23, %v12673_v57  ;;  %4252 = vst.msk [vmem:[#allocation2 + $0x20] sm:$0xf] %vm14618_vm11, %v4202_v8 }
 0x2f4   : > { %4753 = vrot.lane.b32.xlu0 %v8902_v59, %s14996_s3  ;;  %v3467_v22 = vmul.f32 %v12740_v52, %v15122_v31  ;;  %v2428_v44 = vadd.f32 %v2410_v3, %v2392_v0  ;;  %v1621_v43 = vadd.f32 %v1603_v55, %v1471_v45  ;;  %v12829_v41 = vpack.c.bf16 %v3257_v51, %v3257_v51  ;;  %v12836_v4 = vpop.permute.xlu1 %1866 }
 0x2f5   : > { %v3654_v38 = vadd.f32 %v12590_v53, %v3638_v34  ;;  %v2590_v33 = vmul.f32 %v12704_v25, %v15135_v39  ;;  %v2967_v50 = vadd.f32 %v2951_v47, %v2838_v29  ;;  %v3208_v60 = vmul.f32 %v12704_v25, %v12769_v15  ;;  %v4333_v51 = vpop.permute.xlu0 %4332 }
 0x2f6   : > { %v3481_v30 = vadd.f32 %v12763_v49, %v12664_v18  ;;  %v3499_v31 = vmul.f32 %v12681_v23, %v15127_v54  ;;  %v1771_v3 = vadd.f32 %v1753_v56, %v1621_v43  ;;  %v1902_v55 = vmul.f32 %v12704_v25, %v12836_v4  ;;  %3844 = vrot.lane.b32.xlu1 %v8902_v59, %s14754_s19  ;;  %v15137_v54 = vld [vmem:[#allocation100_spill] sm:$0xff] }
 0x2f7   : > { %v3497_v34 = vmul.f32 %v12681_v23, %v15114_v27  ;;  %v2464_v6 = vadd.f32 %v2446_v36, %v2428_v44  ;;  %v3096_v47 = vadd.f32 %v3080_v26, %v2967_v50  ;;  %4383 = vst.msk [vmem:[#allocation2 + $0x20] sm:$0xf] %vm15136_vm13, %v4333_v51  ;;  %v3259_v18 = vmax.f32 %v3243_v21, 0.0 }
 0x2f8   : > { %4219 = vrot.lane.b32.xlu0 %v12829_v41, %s14853_s2  ;;  %v3483_v49 = vadd.f32 %v3467_v22, %v12692_v48  ;;  %v3627_v0 = vmul.f32 %v12704_v25, %v15137_v54  ;;  %v4510_v45 = vrot.slane %v4509_v42, 4  ;;  %v1920_v56 = vadd.f32 %v1902_v55, %v1771_v3  ;;  %v12855_v29 = vpop.permute.xlu1 %1432  ;;  %v15140_v42 = vld [vmem:[#allocation108_spill] sm:$0xff] }
 0x2f9   : > { %v3670_v8 = vmax.f32 %v3654_v38, 0.0  ;;  %v2608_v59 = vadd.f32 %v2590_v33, %v2464_v6  ;;  %v3625_v27 = vmul.f32 %v12704_v25, %v15138_v1  ;;  %v3224_v36 = vadd.f32 %v3208_v60, %v3096_v47  ;;  %v4568_v44 = vpop.permute.xlu0 %4567  ;;  %v4797_v1 = vld [vmem:[#allocation2 + $0x28] sm:$0x3] }
 0x2fa   : > { %v3515_v26 = vadd.f32 %v3499_v31, %v3483_v49  ;;  %4213 = vrot.lane.b32.xlu1 %v12723_v24, %s14853_s2  ;;  %v1944_v48 = vadd.f32 %v12590_v53, %v1920_v56  ;;  %v3513_v21 = vadd.f32 %v3497_v34, %v3481_v30  ;;  %vm15139_vm13 = vcmask 781952   ;;  %v4712_v30 = vld [vmem:[#allocation2 + $0x38] sm:$0x3] }
 0x2fb   : > { %4618 = vst.msk [vmem:[#allocation2 + $0x20] sm:$0xf] %vm15139_vm13, %v4568_v44  ;;  %v8923_v22 = vpack.c.bf16 %v3259_v18, %v3259_v18  ;;  %v4515_v38 = vsel %vm10468_vm6, %v4510_v45, %v12369_v7  ;;  %v8934_v50 = vpack.c.bf16 %v3670_v8, %v3670_v8  ;;  %v2626_v60 = vadd.f32 %v12590_v53, %v2608_v59 }
 0x2fc   : > { %4082 = vrot.lane.b32.xlu0 %v15140_v42, %s14792_s20  ;;  %v3643_v43 = vadd.f32 %v3627_v0, %v3515_v26  ;;  %v1962_v33 = vmax.f32 %v1944_v48, 0.0  ;;  %v3641_v31 = vadd.f32 %v3625_v27, %v3513_v21  ;;  %v3240_v24 = vadd.f32 %v12590_v53, %v3224_v36  ;;  %v4663_v3 = vpop.permute.xlu1 %4662  ;;  %v15143_v21 = vld [vmem:[#allocation54_spill] sm:$0xff] }
 0x2fd   : > { %v4713_v55 = vsel %vm11678_vm5, %v4663_v3, %v4712_v30  ;;  %v4657_v51 = vpop.permute.xlu0 %4656  ;;  %v4550_v7 = vshll.u32 %v8923_v22, 16  ;;  %v4531_v6 = vshll.u32 %v12829_v41, 16  ;;  %v4554_v18 = vshrl.u32 %v8923_v22, 16 }
 0x2fe   : > { %4579 = vrot.lane.b32.xlu1 %v4515_v38, %s14851_s18  ;;  %v12871_v34 = vpack.c.bf16 %v1962_v33, %v1962_v33  ;;  %4714 = vst [vmem:[#allocation2 + $0x38] sm:$0x3] %v4713_v55  ;;  %4707 = vst.msk [vmem:[#allocation2 + $0x20] sm:$0xf] %vm4696_vm4, %v4657_v51  ;;  %v3659_v47 = vadd.f32 %v12590_v53, %v3643_v43  ;;  %vm15141_vm13 = vcmask 125952   ;;  %v3657_v0 = vadd.f32 %v12590_v53, %v3641_v31 }
 0x2ff   : > { %v2644_v56 = vmax.f32 %v2626_v60, 0.0  ;;  %v4535_v8 = vshrl.u32 %v12829_v41, 16  ;;  %v3256_v59 = vmax.f32 %v3240_v24, 0.0  ;;  %v12891_v42 = vrot.slane %v4531_v6, 5 }
 0x300   : > { %4344 = vrot.lane.b32.xlu0 %v8934_v50, %s14839_s30  ;;  %3772 = vst.msk [vmem:[#allocation2 + $0x70] sm:$0xf] %vm15141_vm13, %v12871_v34  ;;  %v4044_v49 = vshrl.u32 %v12871_v34, 16  ;;  %v4047_v54 = vshll.u32 %v12871_v34, 16  ;;  %v12882_v45 = vpop.permute.xlu1 %682  ;;  %v3675_v43 = vmax.f32 %v3659_v47, 0.0  ;;  %v12893_v38 = vrot.slane %v4550_v7, 5 }
 0x301   : > { %v4748_v27 = vpop.permute.xlu0 %4747  ;;  %v4556_v41 = vrot.slane %v4554_v18, 4  ;;  %v3673_v50 = vmax.f32 %v3657_v0, 0.0  ;;  %v4537_v31 = vrot.slane %v4535_v8, 4  ;;  %v8920_v24 = vpack.c.bf16 %v3256_v59, %v3256_v59  ;;  %v15144_v7 = vld [vmem:[#allocation112_spill] sm:$0xff] }
 0x302   : > { %4759 = vrot.lane.b32.xlu1 %v12563_v11, %s14996_s3  ;;  %v4046_v36 = vrot.slane %v4044_v49, 4  ;;  %v4049_v26 = vrot.slane %v4047_v54, 5  ;;  %v4798_v48 = vsel %vm11974_vm15, %v4748_v27, %v4797_v1  ;;  %v8904_v11 = vpack.c.bf16 %v2644_v56, %v2644_v56 }
 0x303   : > { %4799 = vst [vmem:[#allocation2 + $0x28] sm:$0x3] %v4798_v48  ;;  %v8939_v55 = vpack.c.bf16 %v3675_v43, %v3675_v43  ;;  %v4557_v51 = vor.u32 %v4556_v41, %v12893_v38  ;;  %v8937_v47 = vpack.c.bf16 %v3673_v50, %v3673_v50  ;;  %v4538_v49 = vor.u32 %v4537_v31, %v12891_v42 }
 0x304   : > { %4668 = vrot.lane.b32.xlu0 %v15143_v21, %s14864_s27  ;;  %v4050_v33 = vor.u32 %v4049_v26, %v4046_v36  ;;  %v12895_v60 = vpop.permute.xlu1 %2344  ;;  %v4522_v54 = vshrl.u32 %v8920_v24, 16  ;;  %v4525_v0 = vshll.u32 %v8920_v24, 16  ;;  %v3304_v56 = vmul.f32 %v12669_v13, %v15121_v2 }
 0x305   : > { %v12897_v3 = vpop.permute.xlu0 %831  ;;  %v3272_v8 = vmul.f32 %v12697_v20, %v15112_v5  ;;  %v4558_v59 = vrot.slane %v4557_v51, 4  ;;  %v3336_v1 = vmul.f32 %v12598_v62, %v15130_v19  ;;  %v4539_v36 = vrot.slane %v4538_v49, 4 }
 0x306   : > { %4223 = vrot.lane.b32.xlu1 %v8923_v22, %s14853_s2  ;;  %v4051_v30 = vrot.slane %v4050_v33, 4  ;;  %v4524_v26 = vrot.slane %v4522_v54, 4  ;;  %v4527_v48 = vrot.slane %v4525_v0, 5  ;;  %v3368_v2 = vmul.f32 %v12583_v17, %v15128_v10  ;;  %v9369_v33 = vld [vmem:[#allocation2 + $0x24] ss:$8 sps:$4 sm:$0x3f]  }
 0x307   : > { %v3320_v43 = vadd.f32 %v3304_v56, %v3272_v8  ;;  %v3400_v41 = vmul.f32 %v12632_v61, %v15132_v40  ;;  %v2696_v31 = vmul.f32 %v12669_v13, %v12544_v16  ;;  %v3432_v10 = vmul.f32 %v12621_v63, %v15135_v39  ;;  %8588 = vmatprep.mubr.msk.bf16.mxu0 %vm14617_vm3, %v9369_v33  ;;  %v12954_v39 = vld [vmem:[%s14323_s6 + $0x38] sm:$0xff]  }
 0x308   : > { %4757 = vrot.lane.b32.xlu0 %v8904_v11, %s14996_s3  ;;  %v12905_v6 = vsel %vm10468_vm6, %v4051_v30, %v15144_v7  ;;  %v4746_v18 = vpop.permute.xlu1 %4745  ;;  %v4528_v50 = vor.u32 %v4527_v48, %v4524_v26  ;;  %v15145_v7 = vld [vmem:[#allocation105_spill] sm:$0xff]  ;;  %v2664_v40 = vmul.f32 %v12697_v20, %v15123_v32  ;;  %v2760_v32 = vmul.f32 %v12583_v17, %v12657_v46  ;;  %v15147_v26 = vld [vmem:[#allocation40_spill] sm:$0xff] }
 0x309   : > { %4879 = vst.msk [vmem:[#allocation2 + $0x64] sm:$0xf] %vm15141_vm13, %v12905_v6  ;;  %v12911_v22 = vpop.permute.xlu0 %2931  ;;  %v3352_v5 = vadd.f32 %v3336_v1, %v3320_v43  ;;  %v2016_v8 = vmul.f32 %v12669_v13, %v15116_v14  ;;  %v15146_v1 = vld [vmem:[#allocation30_spill] sm:$0xff]  ;;  %v2792_v46 = vmul.f32 %v12632_v61, %v12794_v28  ;;  %v1980_v48 = vmul.f32 %v12697_v20, %v15147_v26  ;;  %v15148_v43 = vld [vmem:[#allocation28_spill] sm:$0xff] }
 0x30a   : > { %4796 = vst.msk [vmem:[#allocation2 + $0x20] sm:$0xf] %vm4785_vm1, %v4746_v18  ;;  %4354 = vrot.lane.b32.xlu1 %v8939_v55, %s14839_s30  ;;  %v4529_v54 = vrot.slane %v4528_v50, 4  ;;  %v2712_v0 = vadd.f32 %v2696_v31, %v2664_v40  ;;  %v2824_v33 = vmul.f32 %v12621_v63, %v12836_v4  ;;  %v2953_v40 = vmul.f32 %v12740_v52, %v12911_v22 }
 0x30b   : > { %v3384_v51 = vadd.f32 %v3368_v2, %v3352_v5  ;;  %v2160_v2 = vmul.f32 %v12598_v62, %v15148_v43  ;;  %v2034_v31 = vadd.f32 %v2016_v8, %v1980_v48  ;;  %v4261_v8 = vld [vmem:[#allocation2 + $0x48] sm:$0x3]  ;;  %v2196_v22 = vmul.f32 %v12583_v17, %v12544_v16  ;;  %v4134_v48 = vld [vmem:[#allocation2 + $0x58] sm:$0x3] }
 0x30c   : > { %4350 = vrot.lane.b32.xlu0 %v8937_v47, %s14839_s30  ;;  %v12921_v27 = vpop.permute.xlu1 %1582  ;;  %v2728_v47 = vmul.f32 %v12598_v62, %v12639_v58  ;;  %v4534_v14 = vsel %vm10468_vm6, %v4529_v54, %v12891_v42  ;;  %v15149_v42 = vld [vmem:[#allocation117_spill] sm:$0xff]  ;;  %vm15156_vm13 = vcmask 650752  }
 0x30d   : > { %v12923_v21 = vpop.permute.xlu0 %980  ;;  %v3416_v18 = vadd.f32 %v3400_v41, %v3384_v51 }
 0x30e   : > { %4589 = vrot.lane.b32.xlu1 %v4558_v59, %s14851_s18  ;;  %v3496_v59 = vmul.f32 %v12681_v23, %v12769_v15  ;;  %v12981_v15 = vld [vmem:[%s14323_s6 + $0x30] sm:$0xff]  }
 0x310   : > { %4585 = vrot.lane.b32.xlu0 %v4539_v36, %s14851_s18  ;;  %v12931_v19 = vpop.permute.xlu1 %3060  ;;  %v2744_v36 = vadd.f32 %v2728_v47, %v2712_v0  ;;  %v15150_v47 = vld [vmem:[#allocation42_spill] sm:$0xff]  ;;  %v2178_v0 = vadd.f32 %v2160_v2, %v2034_v31  ;;  %v15153_v2 = vld [vmem:[#allocation79_spill] sm:$0xff] }
 0x311   : > { %v12935_v30 = vpop.permute.xlu0 %2143  ;;  %v9371_v55 = vld [vmem:[#allocation2 + $0x20] ss:$8 sps:$4 sm:$0x3f]   ;;  %v9380_v35 = vld [vmem:[#allocation2 + $0x64] ss:$8 sps:$4 sm:$0x3f]  }
 0x312   : > { %3848 = vrot.lane.b32.xlu1 %v8904_v11, %s14754_s19  ;;  %5137 = vmatmul.mubr.bf16.vlgmr.msra.gmra.mxu0 %v9371_v55  ;;  %v3464_v11 = vmul.f32 %v12740_v52, %v12673_v57  ;;  %v3448_v57 = vadd.f32 %v3432_v10, %v3416_v18  ;;  %v2776_v41 = vadd.f32 %v2760_v32, %v2744_v36 }
 0x313   : > { %5227 = vmatpush1.bf16.msra.mxu0 %v12954_v39  ;;  %v860_v55 = vmul.f32 %v12669_v13, %v15149_v42  ;;  %v711_v18 = vmul.f32 %v12697_v20, %v15150_v47  ;;  %v3082_v36 = vmul.f32 %v12681_v23, %v12931_v19 }
 0x314   : > { %4674 = vrot.lane.b32.xlu0 %v15145_v7, %s14864_s27  ;;  %v12949_v49 = vpop.permute.xlu1 %2138  ;;  %5228 = vmatprep.subr.bf16.mxu0 %v15014_v37  ;;  %v2808_v7 = vadd.f32 %v2792_v46, %v2776_v41 }
 0x315   : > { %v12959_v56 = vpop.permute.xlu0 %1732  ;;  %v878_v43 = vadd.f32 %v860_v55, %v711_v18  ;;  %v13023_v55 = vld [vmem:[%s14323_s6 + $0x20] sm:$0xff]   ;;  %v2232_v18 = vmul.f32 %v12632_v61, %v12639_v58 }
 0x316   : > { %4217 = vrot.lane.b32.xlu1 %v8920_v24, %s14853_s2  ;;  %v3480_v24 = vadd.f32 %v3464_v11, %v3448_v57  ;;  %v15151_v11 = vld [vmem:[#allocation38_spill] sm:$0xff] }
 0x317   : > { %5229 = vmatpush1.bf16.msra.mxu0 %v12981_v15  ;;  %v1009_v54 = vmul.f32 %v12598_v62, %v15151_v11 }
 0x318   : > { %4086 = vrot.lane.b32.xlu0 %v15146_v1, %s14792_s20  ;;  %v3837_v5 = vpop.permute.xlu1 %3836  ;;  %5230 = vmatprep.subr.bf16.mxu0 %v15014_v37  ;;  %v3512_v51 = vadd.f32 %v3496_v59, %v3480_v24  ;;  %v13001_v59 = vld [vmem:[%s14323_s6 + $0x28] sm:$0xff]   ;;  %v2840_v1 = vadd.f32 %v2824_v33, %v2808_v7 }
 0x319   : > { %3887 = vst.msk [vmem:[#allocation2 + $0x30] sm:$0xf] %vm3872_vm7, %v3837_v5  ;;  %v3595_v50 = vpop.permute.xlu0 %3594  ;;  %v1158_v5 = vmul.f32 %v12583_v17, %v15153_v2  ;;  %v1027_v31 = vadd.f32 %v1009_v54, %v878_v43  ;;  %v13045_v43 = vld [vmem:[%s14323_s6 + $0x18] sm:$0xff]  }
 0x31a   : > { %4583 = vrot.lane.b32.xlu1 %v4534_v14, %s14851_s18  ;;  %v3624_v10 = vmul.f32 %v12704_v25, %v3595_v50  ;;  %v2969_v50 = vadd.f32 %v2953_v40, %v2840_v1 }
 0x31b   : > { %5231 = vmatpush1.bf16.msra.mxu0 %v13001_v59 }
 0x31c   : > { %v3640_v32 = vadd.f32 %v3624_v10, %v3512_v51  ;;  %v4212_v57 = vpop.permute.xlu1 %4211  ;;  %5232 = vmatprep.subr.bf16.mxu0 %v15014_v37  ;;  %v2214_v51 = vadd.f32 %v2196_v22, %v2178_v0  ;;  %v1307_v10 = vmul.f32 %v12632_v61, %v12813_v12  ;;  %v3098_v40 = vadd.f32 %v3082_v36, %v2969_v50 }
 0x31d   : > { %v4262_v26 = vsel %vm11128_vm12, %v4212_v57, %v4261_v8  ;;  %v4085_v24 = vpop.permute.xlu0 %4084  ;;  %v1456_v57 = vmul.f32 %v12621_v63, %v12855_v29  ;;  %v2376_v8 = vmul.f32 %v12621_v63, %v12895_v60  ;;  %v1606_v36 = vmul.f32 %v12740_v52, %v12921_v27 }
 0x31e   : > { %v3656_v14 = vadd.f32 %v12590_v53, %v3640_v32  ;;  %4263 = vst [vmem:[#allocation2 + $0x48] sm:$0x3] %v4262_v26  ;;  %v4135_v33 = vsel %vm10945_vm10, %v4085_v24, %v4134_v48  ;;  %v1176_v32 = vadd.f32 %v1158_v5, %v1027_v31  ;;  %v2250_v48 = vadd.f32 %v2232_v18, %v2214_v51  ;;  %v13062_v18 = vld [vmem:[%s14323_s6 + $0x10] sm:$0xff]  }
 0x31f   : > { %4136 = vst [vmem:[#allocation2 + $0x58] sm:$0x3] %v4135_v33  ;;  %5233 = vmatpush1.bf16.msra.mxu0 %v13023_v55  ;;  %v1756_v27 = vmul.f32 %v12681_v23, %v12959_v56  ;;  %v3306_v31 = vmul.f32 %v12669_v13, %v12639_v58  ;;  %v2412_v51 = vmul.f32 %v12740_v52, %v12794_v28 }
 0x320   : > { %v3672_v7 = vmax.f32 %v3656_v14, 0.0  ;;  %v13018_v47 = vpop.permute.xlu1 %3188  ;;  %5234 = vmatprep.subr.bf16.mxu0 %v15014_v37  ;;  %v1325_v26 = vadd.f32 %v1307_v10, %v1176_v32  ;;  %v2394_v33 = vadd.f32 %v2376_v8, %v2250_v48 }
 0x321   : > { %v3210_v54 = vmul.f32 %v12704_v25, %v13018_v47  ;;  %v13030_v0 = vpop.permute.xlu0 %1129 }
 0x322   : > { %v8936_v22 = vpack.c.bf16 %v3672_v7, %v3672_v7  ;;  %v1474_v14 = vadd.f32 %v1456_v57, %v1325_v26  ;;  %v15155_v26 = vld [vmem:[#allocation77_spill] sm:$0xff] }
 0x323   : > { %v3226_v1 = vadd.f32 %v3210_v54, %v3098_v40  ;;  %5235 = vmatpush1.bf16.msra.mxu0 %v13045_v43  ;;  %v3274_v40 = vmul.f32 %v12697_v20, %v12544_v16  ;;  %v2430_v54 = vadd.f32 %v2412_v51, %v2394_v33 }
 0x324   : > { %4348 = vrot.lane.b32.xlu0 %v8936_v22, %s14839_s30  ;;  %v13040_v24 = vpop.permute.xlu1 %1278  ;;  %5236 = vmatprep.subr.bf16.mxu0 %v15014_v37  ;;  %v1624_v10 = vadd.f32 %v1606_v36, %v1474_v14  ;;  %v2448_v22 = vmul.f32 %v12681_v23, %v12836_v4  ;;  %v13084_v36 = vld [vmem:[%s14323_s6 + $0x8] sm:$0xff]  }
 0x325   : > { %v3242_v2 = vadd.f32 %v12590_v53, %v3226_v1  ;;  %v4075_v5 = vpop.permute.xlu0 %4074  ;;  %v3322_v16 = vadd.f32 %v3306_v31, %v3274_v40  ;;  %v3370_v31 = vmul.f32 %v12583_v17, %v12794_v28  ;;  %v13098_v40 = vld [vmem:[%s14323_s6] sm:$0xff]   ;;  %v1983_v28 = vmul.f32 %v12697_v20, %v15149_v42 }
 0x326   : > { %4125 = vst.msk [vmem:[#allocation2 + $0x30] sm:$0xf] %vm4110_vm9, %v4075_v5  ;;  %v1774_v32 = vadd.f32 %v1756_v27, %v1624_v10  ;;  %v2466_v14 = vadd.f32 %v2448_v22, %v2430_v54  ;;  %v2019_v54 = vmul.f32 %v12669_v13, %v15151_v11  ;;  %v2163_v22 = vmul.f32 %v12598_v62, %v12935_v30 }
 0x327   : > { %v3258_v50 = vmax.f32 %v3242_v2, 0.0  ;;  %5237 = vmatpush1.bf16.msra.mxu0 %v13062_v18  ;;  %v3402_v11 = vmul.f32 %v12632_v61, %v12836_v4 }
 0x328   : > { %4672 = vrot.lane.b32.xlu0 %v12871_v34, %s14864_s27  ;;  %v4206_v7 = vpop.permute.xlu1 %4205  ;;  %5238 = vmatprep.subr.bf16.mxu0 %v15014_v37  ;;  %v3338_v34 = vmul.f32 %v12598_v62, %v12895_v60  ;;  %v2037_v42 = vadd.f32 %v2019_v54, %v1983_v28 }
 0x329   : > { %4256 = vst.msk [vmem:[#allocation2 + $0x30] sm:$0xf] %vm14618_vm11, %v4206_v7  ;;  %v13068_v58 = vpop.permute.xlu0 %1881  ;;  %v13075_v8 = vpack.c.bf16 %v3258_v50, %v3258_v50 }
 0x32a   : > { %v1905_v57 = vmul.f32 %v12704_v25, %v13068_v58  ;;  %v3354_v2 = vadd.f32 %v3338_v34, %v3322_v16 }
 0x32b   : > { %5239 = vmatpush1.bf16.msra.mxu0 %v13084_v36  ;;  %v4541_v27 = vshrl.u32 %v13075_v8, 16  ;;  %v4544_v50 = vshll.u32 %v13075_v8, 16 }
 0x32c   : > { %v1923_v1 = vadd.f32 %v1905_v57, %v1774_v32  ;;  %4763 = vrot.lane.b32.xlu0 %v15155_v26, %s14996_s3  ;;  %v4337_v48 = vpop.permute.xlu1 %4336  ;;  %5240 = vmatprep.subr.bf16.mxu0 %v15014_v37  ;;  %v3386_v32 = vadd.f32 %v3370_v31, %v3354_v2  ;;  %v2181_v31 = vadd.f32 %v2163_v22, %v2037_v42 }
 0x32d   : > { %4387 = vst.msk [vmem:[#allocation2 + $0x30] sm:$0xf] %vm15156_vm13, %v4337_v48  ;;  %v2561_v60 = vpop.permute.xlu0 %2560  ;;  %vm15157_vm13 = vcmask 781952   ;;  %v4546_v26 = vrot.slane %v4544_v50, 5  ;;  %v859_v22 = vmul.f32 %v12669_v13, %v12897_v3  ;;  %v710_v42 = vmul.f32 %v12697_v20, %v12882_v45 }
 0x32e   : > { %v1947_v5 = vadd.f32 %v12590_v53, %v1923_v1  ;;  %v2592_v33 = vmul.f32 %v12704_v25, %v2561_v60  ;;  %v4543_v1 = vrot.slane %v4541_v27, 4  ;;  %v3434_v2 = vmul.f32 %v12621_v63, %v2561_v60 }
 0x32f   : > { %5241 = vmatpush1.bf16.msra.mxu0 %v13098_v40  ;;  %v3418_v4 = vadd.f32 %v3402_v11, %v3386_v32  ;;  %v2199_v60 = vmul.f32 %v12583_v17, %v12813_v12  ;;  %v4884_v11 = vld [vmem:[#allocation2 + $0x7c] sm:$0x3] }
 0x330   : > { %v2610_v51 = vadd.f32 %v2592_v33, %v2466_v14  ;;  %v4572_v10 = vpop.permute.xlu1 %4571  ;;  %v1965_v7 = vmax.f32 %v1947_v5, 0.0  ;;  %5256 = vmatprep.subr.bf16.mxu0 %v15014_v37  ;;  %v13117_v14 = vld [vmem:[%s14323_s6 + $0x40] sm:$0xff]  }
 0x331   : > { %4622 = vst.msk [vmem:[#allocation2 + $0x30] sm:$0xf] %vm15157_vm13, %v4572_v10  ;;  %v13104_v34 = vpop.permute.xlu0 %1427  ;;  %v3450_v28 = vadd.f32 %v3434_v2, %v3418_v4  ;;  %v1008_v2 = vmul.f32 %v12598_v62, %v12923_v21  ;;  %vm14616_vm13 = vcmask 256000  }
 0x332   : > { %v2628_v57 = vadd.f32 %v12590_v53, %v2610_v51  ;;  %v8941_v16 = vpack.c.bf16 %v1965_v7, %v1965_v7  ;;  %v4547_v7 = vor.u32 %v4546_v26, %v4543_v1  ;;  %v3466_v26 = vmul.f32 %v12740_v52, %v12931_v19 }
 0x333   : > { %5257 = vmatpush2.bf16.msra.mxu0 %v13117_v14  ;;  %v2235_v19 = vmul.f32 %v12632_v61, %v12855_v29  ;;  %v2162_v29 = vmul.f32 %v12598_v62, %v12949_v49 }
 0x334   : > { %v4661_v48 = vpop.permute.xlu1 %4660  ;;  %v2646_v5 = vmax.f32 %v2628_v57, 0.0  ;;  %4678 = vrot.lane.b32.xlu1 %v8941_v16, %s14864_s27  ;;  %v4830_v30 = vshll.u32 %v8941_v16, 16  ;;  %v4834_v33 = vshrl.u32 %v8941_v16, 16  ;;  %5348 = vmatprep.subr.bf16.mxu0 %v15014_v37  ;;  %v4801_v16 = vld [vmem:[#allocation2 + $0x38] sm:$0x3]  ;;  %v4548_v12 = vrot.slane %v4547_v7, 4 }
 0x335   : > { %4711 = vst.msk [vmem:[#allocation2 + $0x30] sm:$0xf] %vm4696_vm4, %v4661_v48  ;;  %v2360_v27 = vpop.permute.xlu0 %2359  ;;  %v2217_v48 = vadd.f32 %v2199_v60, %v2181_v31  ;;  %v3482_v4 = vadd.f32 %v3466_v26, %v3450_v28  ;;  %v877_v7 = vadd.f32 %v859_v22, %v710_v42  ;;  %v2415_v22 = vmul.f32 %v12740_v52, %v12959_v56 }
 0x336   : > { %v8906_v50 = vpack.c.bf16 %v2646_v5, %v2646_v5  ;;  %v13124_v51 = vrot.slane %v4830_v30, 5  ;;  %v4836_v10 = vrot.slane %v4834_v33, 4  ;;  %v2018_v30 = vmul.f32 %v12669_v13, %v12923_v21 }
 0x337   : > { %v1982_v13 = vmul.f32 %v12697_v20, %v12897_v3  ;;  %v1157_v21 = vmul.f32 %v12583_v17, %v13030_v0  ;;  %v1026_v60 = vadd.f32 %v1008_v2, %v877_v7  ;;  %v1306_v20 = vmul.f32 %v12632_v61, %v13040_v24 }
 0x338   : > { %3852 = vrot.lane.b32.xlu0 %v8906_v50, %s14754_s19  ;;  %v13127_v54 = vpop.permute.xlu1 %2354  ;;  %v4837_v57 = vor.u32 %v4836_v10, %v13124_v51  ;;  %4761 = vrot.lane.b32.xlu1 %v8906_v50, %s14996_s3  ;;  %v2379_v10 = vmul.f32 %v12621_v63, %v2360_v27  ;;  %v2253_v27 = vadd.f32 %v2235_v19, %v2217_v48  ;;  %v4392_v48 = vld [vmem:[#allocation2 + $0x48] sm:$0x3]  ;;  %v4265_v19 = vld [vmem:[#allocation2 + $0x58] sm:$0x3]  ;;  %s8873_s19 = sshll.u32 %s9782_s25, 4  ;;  %s9675_s25 = smov [#allocation6]  }
 0x339   : > { %v4752_v32 = vpop.permute.xlu0 %4751  ;;  %v2036_v28 = vadd.f32 %v2018_v30, %v1982_v13  ;;  %v2198_v0 = vmul.f32 %v12583_v17, %v13040_v24  ;;  %v2234_v26 = vmul.f32 %v12632_v61, %v13104_v34  ;;  %v9372_v50 = vld [vmem:[#allocation2 + $0x34] ss:$8 sps:$4 sm:$0x3f]   ;;  %s9606_s28 = sshll.u32 %s9675_s25, 4  ;;  %s9607_s28 = int_to_ptr.vmem [resolvable:$false] %s9606_s28 }
 0x33a   : > { %v4802_v1 = vsel %vm11974_vm15, %v4752_v32, %v4801_v16  ;;  %v4838_v5 = vrot.slane %v4837_v57, 4  ;;  %v2397_v62 = vadd.f32 %v2379_v10, %v2253_v27  ;;  %v1175_v16 = vadd.f32 %v1157_v21, %v1026_v60  ;;  %8591 = vmatprep.mubr.msk.bf16.mxu1 %vm14617_vm3, %v9372_v50  ;;  %s9608_s1 = scalar_lea.vmem %s9607_s28, 32 }
 0x33b   : > { %4803 = vst [vmem:[#allocation2 + $0x38] sm:$0x3] %v4802_v1  ;;  %v2180_v32 = vadd.f32 %v2162_v29, %v2036_v28  ;;  %vm15164_vm3 = vcmask 781952  }
 0x33c   : > { %4221 = vrot.lane.b32.xlu0 %v13075_v8, %s14853_s2  ;;  %v1578_v33 = vpop.permute.xlu1 %1577  ;;  %v4885_v31 = vsel %vm10056_vm2, %v4838_v5, %v4884_v11  ;;  %4090 = vrot.lane.b32.xlu1 %v12905_v6, %s14792_s20  ;;  %v3498_v8 = vmul.f32 %v12681_v23, %v13018_v47  ;;  %v4553_v6 = vsel %vm10468_vm6, %v4548_v12, %v12893_v38  ;;  %vm14615_vm2 = vcmask 261120  }
 0x33d   : > { %v4750_v45 = vpop.permute.xlu0 %4749  ;;  %4886 = vst [vmem:[#allocation2 + $0x7c] sm:$0x3] %v4885_v31  ;;  %v1455_v38 = vmul.f32 %v12621_v63, %v13104_v34  ;;  %v1324_v1 = vadd.f32 %v1306_v20, %v1175_v16  ;;  %v1605_v17 = vmul.f32 %v12740_v52, %v1578_v33  ;;  %v2216_v5 = vadd.f32 %v2198_v0, %v2180_v32  ;;  %v9582_v0 = vld [vmem:[%s14322_s5] ss:$0 sm:$0xff] }
 0x33e   : > { %4800 = vst.msk [vmem:[#allocation2 + $0x30] sm:$0xf] %vm4785_vm1, %v4750_v45  ;;  %v3514_v49 = vadd.f32 %v3498_v8, %v3482_v4  ;;  %v2433_v12 = vadd.f32 %v2415_v22, %v2397_v62  ;;  %v2378_v31 = vmul.f32 %v12621_v63, %v13127_v54 }
 0x33f   : > { %v1473_v56 = vadd.f32 %v1455_v38, %v1324_v1  ;;  %v2252_v45 = vadd.f32 %v2234_v26, %v2216_v5 }
 0x340   : > { %4587 = vrot.lane.b32.xlu0 %v4553_v6, %s14851_s18  ;;  %v3605_v3 = vpop.permute.xlu1 %3604  ;;  %s558_s18 = scalar_lea.vmem [#allocation6], %s557_s17 }
 0x341   : > { %v3626_v47 = vmul.f32 %v12704_v25, %v3605_v3  ;;  %v1623_v7 = vadd.f32 %v1605_v17, %v1473_v56  ;;  %v2396_v27 = vadd.f32 %v2378_v31, %v2252_v45  ;;  %s8257_s2 = sshll.u32 %s558_s18, 4  ;;  %s14278_s2 = int_to_ptr.vmem [resolvable:$true] %s8257_s2 }
 0x342   : > { %v1728_v57 = vpop.permute.xlu0 %1727  ;;  %p9609_p0 = scmp.lt.s32.totalorder %s14278_s2, %s9607_s28 }
 0x343   : > { %v3642_v11 = vadd.f32 %v3626_v47, %v3514_v49  ;;  %v1755_v61 = vmul.f32 %v12681_v23, %v1728_v57  ;;  %v2414_v13 = vmul.f32 %v12740_v52, %v1728_v57 }
 0x344   : > { %v4343_v24 = vpop.permute.xlu1 %4342 }
 0x345   : > { %v3658_v42 = vadd.f32 %v12590_v53, %v3642_v11  ;;  %v4393_v30 = vsel %vm11277_vm14, %v4343_v24, %v4392_v48  ;;  %v9374_v33 = vld [vmem:[#allocation2 + $0x30] ss:$8 sps:$4 sm:$0x3f]   ;;  %v2451_v53 = vmul.f32 %v12681_v23, %v13068_v58  ;;  %v1773_v6 = vadd.f32 %v1755_v61, %v1623_v7  ;;  %v3900_v11 = vld [vmem:[#allocation2 + $0x68] sm:$0x3] }
 0x346   : > { %v4216_v4 = vpop.permute.xlu0 %4215  ;;  %4394 = vst [vmem:[#allocation2 + $0x48] sm:$0x3] %v4393_v30  ;;  %5198 = vmatmul.mubr.bf16.vlgmr.msra.gmra.mxu1 %v9374_v33  ;;  %v2432_v52 = vadd.f32 %v2414_v13, %v2396_v27 }
 0x347   : > { %v4266_v34 = vsel %vm11128_vm12, %v4216_v4, %v4265_v19  ;;  %v3674_v10 = vmax.f32 %v3658_v42, 0.0  ;;  %v2469_v54 = vadd.f32 %v2451_v53, %v2433_v12  ;;  %5288 = vmatpush1.bf16.msra.mxu1 %v12954_v39  ;;  %v13215_v4 = vld [vmem:[%s14324_s7] ss:$0 sm:$0xff] }
 0x348   : > { %4267 = vst [vmem:[#allocation2 + $0x58] sm:$0x3] %v4266_v34  ;;  %v2576_v21 = vpop.permute.xlu1 %2575  ;;  %5289 = vmatprep.subr.bf16.mxu1 %v15014_v37 }
 0x349   : > { %v8938_v63 = vpack.c.bf16 %v3674_v10, %v3674_v10  ;;  %v2595_v29 = vmul.f32 %v12704_v25, %v2576_v21 }
 0x34a   : > { %v1877_v8 = vpop.permute.xlu0 %1876 }
 0x34b   : > { %v1904_v58 = vmul.f32 %v12704_v25, %v1877_v8  ;;  %v2450_v60 = vmul.f32 %v12681_v23, %v1877_v8  ;;  %v2613_v28 = vadd.f32 %v2595_v29, %v2469_v54  ;;  %4352 = vrot.lane.b32.xlu1 %v8938_v63, %s14839_s30  ;;  %5290 = vmatpush1.bf16.msra.mxu1 %v12981_v15 }
 0x34c   : > { %v4347_v3 = vpop.permute.xlu1 %4346  ;;  %5291 = vmatprep.subr.bf16.mxu1 %v15014_v37 }
 0x34d   : > { %v1922_v20 = vadd.f32 %v1904_v58, %v1773_v6  ;;  %v2631_v62 = vadd.f32 %v9582_v0, %v2613_v28  ;;  %v2468_v57 = vadd.f32 %v2450_v60, %v2432_v52  ;;  %v4627_v5 = vld [vmem:[#allocation2 + $0x48] sm:$0x3]  ;;  %v3904_v58 = vld [vmem:[#allocation2 + $0x78] sm:$0x3] }
 0x34e   : > { %v2571_v49 = vpop.permute.xlu0 %2570 }
 0x34f   : > { %v1946_v47 = vadd.f32 %v9582_v0, %v1922_v20  ;;  %v4396_v16 = vld [vmem:[#allocation2 + $0x58] sm:$0x3]  ;;  %v2594_v23 = vmul.f32 %v12704_v25, %v2571_v49  ;;  %v2649_v38 = vmax.f32 %v2631_v62, 0.0  ;;  %5292 = vmatpush1.bf16.msra.mxu1 %v13001_v59 }
 0x350   : > { %v4397_v32 = vsel %vm11277_vm14, %v4347_v3, %v4396_v16  ;;  %v3851_v1 = vpop.permute.xlu1 %3850  ;;  %5293 = vmatprep.subr.bf16.mxu1 %v15014_v37 }
 0x351   : > { %4398 = vst [vmem:[#allocation2 + $0x58] sm:$0x3] %v4397_v32  ;;  %v2612_v22 = vadd.f32 %v2594_v23, %v2468_v57  ;;  %v1964_v26 = vmax.f32 %v1946_v47, 0.0  ;;  %v8943_v17 = vpack.c.bf16 %v2649_v38, %v2649_v38  ;;  %v3901_v48 = vsel %vm10784_vm8, %v3851_v1, %v3900_v11 }
 0x352   : > { %v4578_v12 = vpop.permute.xlu0 %4577  ;;  %3902 = vst [vmem:[#allocation2 + $0x68] sm:$0x3] %v3901_v48  ;;  %v5520_v48 = vld [vmem:[#allocation4 + $0xc] sm:$0x1] }
 0x353   : > { %v2630_v25 = vadd.f32 %v9582_v0, %v2612_v22  ;;  %v4628_v30 = vsel %vm11470_vm0, %v4578_v12, %v4627_v5  ;;  %v8940_v19 = vpack.c.bf16 %v1964_v26, %v1964_v26  ;;  %4767 = vrot.lane.b32.xlu0 %v8943_v17, %s14996_s3  ;;  %v5015_v34 = vpop.f32.mrf.mxu0  ;;  %5294 = vmatpush1.bf16.msra.mxu1 %v13023_v55 }
 0x354   : > { %4629 = vst [vmem:[#allocation2 + $0x48] sm:$0x3] %v4628_v30  ;;  %v4667_v61 = vpop.permute.xlu1 %4666  ;;  %v5016_v7 = vadd.f32 %v13215_v4, %v5015_v34  ;;  %5295 = vmatprep.subr.bf16.mxu1 %v15014_v37 }
 0x355   : > { %v2648_v50 = vmax.f32 %v2630_v25, 0.0  ;;  %4676 = vrot.lane.b32.xlu1 %v8940_v19, %s14864_s27  ;;  %v4821_v56 = vshrl.u32 %v8940_v19, 16  ;;  %v4824_v31 = vshll.u32 %v8940_v19, 16  ;;  %v5017_v21 = vpop.f32.mrf.mxu0 }
 0x356   : > { %v4582_v33 = vpop.permute.xlu0 %4581  ;;  %v5022_v54 = vmax.f32 %v5016_v7, 0.0 }
 0x357   : > { %v8942_v53 = vpack.c.bf16 %v2648_v50, %v2648_v50  ;;  %v4823_v10 = vrot.slane %v4821_v56, 4  ;;  %v4826_v45 = vrot.slane %v4824_v31, 5  ;;  %v5018_v6 = vpop.f32.mrf.mxu0  ;;  %5296 = vmatpush1.bf16.msra.mxu1 %v13045_v43 }
 0x358   : > { %v4631_v13 = vld [vmem:[#allocation2 + $0x58] sm:$0x3]  ;;  %v4089_v8 = vpop.permute.xlu1 %4088  ;;  %5025 = vst.msk [vmem:[#allocation3] sm:$0xff] %vm14615_vm2, %v5022_v54  ;;  %v5019_v3 = vadd.f32 %v13215_v4, %v5018_v6  ;;  %5297 = vmatprep.subr.bf16.mxu1 %v15014_v37  ;;  %vm15162_vm2 = vcmask 125952  }
 0x359   : > { %v4827_v63 = vor.u32 %v4826_v45, %v4823_v10  ;;  %v4632_v29 = vsel %vm11470_vm0, %v4582_v33, %v4631_v13  ;;  %4765 = vrot.lane.b32.xlu1 %v8942_v53, %s14996_s3  ;;  %v4138_v27 = vld [vmem:[#allocation2 + $0x68] sm:$0x3]  ;;  %v5020_v49 = vpop.f32.mrf.mxu0  ;;  %v9375_v54 = vld [vmem:[#allocation2 + $0x44] ss:$8 sps:$4 sm:$0x3f]   ;;  %s15202_s3 = sld [smem:[#allocation123_spill]] }
 0x35a   : > { %4633 = vst [vmem:[#allocation2 + $0x58] sm:$0x3] %v4632_v29  ;;  %v3855_v60 = vpop.permute.xlu0 %3854  ;;  %v4139_v20 = vsel %vm10945_vm10, %v4089_v8, %v4138_v27  ;;  %v5023_v57 = vmax.f32 %v5019_v3, 0.0 }
 0x35b   : > { %v4828_v28 = vrot.slane %v4827_v63, 4  ;;  %v4716_v52 = vld [vmem:[#allocation2 + $0x48] sm:$0x3]  ;;  %v3905_v0 = vsel %vm10784_vm8, %v3855_v60, %v3904_v58  ;;  %4140 = vst [vmem:[#allocation2 + $0x68] sm:$0x3] %v4139_v20  ;;  %5298 = vmatpush1.bf16.msra.mxu1 %v13062_v18  ;;  %vm15163_vm8 = vcmask 650752  }
 0x35c   : > { %v4717_v62 = vsel %vm11678_vm5, %v4667_v61, %v4716_v52  ;;  %3906 = vst [vmem:[#allocation2 + $0x78] sm:$0x3] %v3905_v0  ;;  %v4079_v16 = vpop.permute.xlu1 %4078  ;;  %5027 = vst.msk [vmem:[#allocation3 + $0x8] sm:$0x7] %vm14616_vm13, %v5023_v57  ;;  %5299 = vmatprep.subr.bf16.mxu1 %v15014_v37  ;;  %vm5518_vm13 = vsmask.f32 256 }
 0x35d   : > { %v4833_v47 = vsel %vm10468_vm6, %v4828_v28, %v13124_v51  ;;  %4718 = vst [vmem:[#allocation2 + $0x48] sm:$0x3] %v4717_v62  ;;  %vm5515_vm6 = vcmask 257024  }
 0x35e   : > { %4883 = vst.msk [vmem:[#allocation2 + $0x74] sm:$0xf] %vm15162_vm2, %v4833_v47  ;;  %v3841_v23 = vpop.permute.xlu0 %3840  ;;  %vm5517_vm2 = vcmask 253952  }
 0x35f   : > { %3891 = vst.msk [vmem:[#allocation2 + $0x40] sm:$0xf] %vm3872_vm7, %v3841_v23  ;;  %5300 = vmatpush1.bf16.msra.mxu1 %v13084_v36  ;;  %v5455_v9 = vld [vmem:[#allocation3] sm:$0xff]  ;;  %s14276_s16 = scalar_lea.hbm %s15202_s3, %s8873_s19 }
 0x360   : > { %4129 = vst.msk [vmem:[#allocation2 + $0x40] sm:$0xf] %vm4110_vm9, %v4079_v16  ;;  %v4341_v38 = vpop.permute.xlu1 %4340  ;;  %5301 = vmatprep.subr.bf16.mxu1 %v15014_v37  ;;  %v8944_v51 = vpack.c.bf16 %v5455_v9, %v5455_v9 }
 0x361   : > { %v4720_v19 = vld [vmem:[#allocation2 + $0x58] sm:$0x3] }
 0x362   : > { %v4210_v32 = vpop.permute.xlu0 %4209  ;;  %5516 = vst.msk [vmem:[#allocation4] sm:$0xf] %vm5515_vm6, %v8944_v51  ;;  %v4269_v45 = vld [vmem:[#allocation2 + $0x68] sm:$0x3] }
 0x363   : > { %4260 = vst.msk [vmem:[#allocation2 + $0x40] sm:$0xf] %vm14618_vm11, %v4210_v32  ;;  %v5544_v1 = vld [vmem:[#allocation3 + $0x9] sm:$0x1]  ;;  %5302 = vmatpush1.bf16.msra.mxu1 %v13098_v40  ;;  %vm13252_vm11 = vmand %vm5517_vm2, %vm5518_vm13  ;;  %v5456_v24 = vld [vmem:[#allocation3 + $0x8] sm:$0x1] }
 0x364   : > { %4391 = vst.msk [vmem:[#allocation2 + $0x40] sm:$0xf] %vm15163_vm8, %v4341_v38  ;;  %v4665_v22 = vpop.permute.xlu1 %4664  ;;  %v8957_v26 = vpack.c.bf16 %v5544_v1, %v5544_v1  ;;  %5317 = vmatprep.subr.bf16.mxu1 %v15014_v37  ;;  %v8945_v5 = vpack.c.bf16 %v5456_v24, %v5456_v24  ;;  %v4805_v25 = vld [vmem:[#allocation2 + $0x48] sm:$0x3]  ;;  %v4142_v34 = vld [vmem:[#allocation2 + $0x78] sm:$0x3] }
 0x365   : > { %vm15169_vm2 = vcmask 781952  }
 0x366   : > { %v4576_v11 = vpop.permute.xlu0 %4575  ;;  %5593 = vrot.lane.b32.xlu0 %v8957_v26, %s14792_s20  ;;  %v5521_v56 = vsel %vm13252_vm11, %v8945_v5, %v5520_v48  ;;  %v9378_v5 = vld [vmem:[#allocation2 + $0x54] ss:$8 sps:$4 sm:$0x3f]  }
 0x367   : > { %4626 = vst.msk [vmem:[#allocation2 + $0x40] sm:$0xf] %vm15164_vm3, %v4576_v11  ;;  %5318 = vmatpush2.bf16.msra.mxu1 %v13117_v14  ;;  %5522 = vst [vmem:[#allocation4 + $0xc] sm:$0x1] %v5521_v56  ;;  %vm15168_vm3 = vcmask 130048  }
 0x368   : > { %4715 = vst.msk [vmem:[#allocation2 + $0x40] sm:$0xf] %vm4696_vm4, %v4665_v22  ;;  %v4756_v12 = vpop.permute.xlu1 %4755  ;;  %5409 = vmatprep.subr.bf16.mxu1 %v15014_v37  ;;  %8594 = vmatprep.mubr.msk.bf16.mxu0 %vm15168_vm3, %v9375_v54  ;;  %vm15171_vm3 = vcmask 256000  }
 0x369   : > { %v4806_v30 = vsel %vm11974_vm15, %v4756_v12, %v4805_v25 }
 0x36a   : > { %v4671_v50 = vpop.permute.xlu0 %4670  ;;  %4807 = vst [vmem:[#allocation2 + $0x48] sm:$0x3] %v4806_v30 }
 0x36b   : > { %v4721_v31 = vsel %vm11678_vm5, %v4671_v50, %v4720_v19 }
 0x36c   : > { %4722 = vst [vmem:[#allocation2 + $0x58] sm:$0x3] %v4721_v31  ;;  %v4093_v61 = vpop.permute.xlu1 %4092  ;;  %v5937_v31 = vld [vmem:[#allocation4 + $0x10] sm:$0x1] }
 0x36d   : > { %v4143_v33 = vsel %vm10945_vm10, %v4093_v61, %v4142_v34  ;;  %vm15167_vm10 = vcmask 519552  }
 0x36e   : > { %v4754_v53 = vpop.permute.xlu0 %4753  ;;  %4144 = vst [vmem:[#allocation2 + $0x78] sm:$0x3] %v4143_v33 }
 0x36f   : > { %4804 = vst.msk [vmem:[#allocation2 + $0x40] sm:$0xf] %vm4785_vm1, %v4754_v53 }
 0x370   : > { %v3845_v10 = vpop.permute.xlu1 %3844 }
 0x371   : > { %3895 = vst.msk [vmem:[#allocation2 + $0x50] sm:$0xf] %vm3872_vm7, %v3845_v10  ;;  %v5524_v10 = vld [vmem:[#allocation4 + $0x24] sm:$0x1] }
 0x372   : > { %v4220_v7 = vpop.permute.xlu0 %4219 }
 0x373   : > { %v4270_v13 = vsel %vm11128_vm12, %v4220_v7, %v4269_v45  ;;  %v4809_v6 = vld [vmem:[#allocation2 + $0x58] sm:$0x3]  ;;  %v5655_v7 = vld [vmem:[#allocation3 + $0xa] sm:$0x1] }
 0x374   : > { %4271 = vst [vmem:[#allocation2 + $0x68] sm:$0x3] %v4270_v13  ;;  %v4214_v21 = vpop.permute.xlu1 %4213 }
 0x375   : > { %v4273_v49 = vld [vmem:[#allocation2 + $0x78] sm:$0x3] }
 0x376   : > { %v4083_v63 = vpop.permute.xlu0 %4082  ;;  %v9377_v41 = vld [vmem:[#allocation2 + $0x40] ss:$8 sps:$4 sm:$0x3f]  }
 0x377   : > { %4133 = vst.msk [vmem:[#allocation2 + $0x50] sm:$0xf] %vm4110_vm9, %v4083_v63  ;;  %5259 = vmatmul.mubr.bf16.vlgmr.msra.gmra.mxu0 %v9377_v41 }
 0x378   : > { %4264 = vst.msk [vmem:[#allocation2 + $0x50] sm:$0xf] %vm15167_vm10, %v4214_v21  ;;  %v4580_v29 = vpop.permute.xlu1 %4579  ;;  %5349 = vmatpush1.bf16.msra.mxu0 %v12954_v39  ;;  %vm15170_vm10 = vcmask 261120  }
 0x379   : > { %5350 = vmatprep.subr.bf16.mxu0 %v15014_v37 }
 0x37a   : > { %v4345_v8 = vpop.permute.xlu0 %4344 }
 0x37b   : > { %4395 = vst.msk [vmem:[#allocation2 + $0x50] sm:$0xf] %vm15163_vm8, %v4345_v8  ;;  %v4400_v9 = vld [vmem:[#allocation2 + $0x68] sm:$0x3] }
 0x37c   : > { %4630 = vst.msk [vmem:[#allocation2 + $0x50] sm:$0xf] %vm15169_vm2, %v4580_v29  ;;  %v4760_v27 = vpop.permute.xlu1 %4759  ;;  %v5077_v58 = vpop.f32.mrf.mxu1  ;;  %5351 = vmatpush1.bf16.msra.mxu0 %v12981_v15 }
 0x37d   : > { %v4810_v60 = vsel %vm11974_vm15, %v4760_v27, %v4809_v6  ;;  %v5078_v28 = vadd.f32 %v13215_v4, %v5077_v58  ;;  %5352 = vmatprep.subr.bf16.mxu0 %v15014_v37  ;;  %v8969_v27 = vpack.c.bf16 %v5655_v7, %v5655_v7 }
 0x37e   : > { %v4669_v52 = vpop.permute.xlu0 %4668  ;;  %4811 = vst [vmem:[#allocation2 + $0x58] sm:$0x3] %v4810_v60  ;;  %v5079_v20 = vpop.f32.mrf.mxu1 }
 0x37f   : > { %4719 = vst.msk [vmem:[#allocation2 + $0x50] sm:$0xf] %vm4696_vm4, %v4669_v52  ;;  %v5084_v3 = vmax.f32 %v5078_v28, 0.0  ;;  %v5543_v20 = vld [vmem:[#allocation3 + $0x1] sm:$0xff] }
 0x380   : > { %v5080_v0 = vpop.f32.mrf.mxu1  ;;  %v4224_v62 = vpop.permute.xlu1 %4223  ;;  %5353 = vmatpush1.bf16.msra.mxu0 %v13001_v59 }
 0x381   : > { %5087 = vst.msk [vmem:[#allocation3 + $0x10] sm:$0xff] %vm15170_vm10, %v5084_v3  ;;  %v5081_v47 = vadd.f32 %v13215_v4, %v5080_v0  ;;  %v4274_v57 = vsel %vm11128_vm12, %v4224_v62, %v4273_v49  ;;  %5354 = vmatprep.subr.bf16.mxu0 %v15014_v37  ;;  %vm15172_vm12 = vcmask 130048   ;;  %v8956_v62 = vpack.c.bf16 %v5543_v20, %v5543_v20  ;;  %v5654_v49 = vld [vmem:[#allocation3 + $0x2] sm:$0xff]  ;;  %v5528_v20 = vld [vmem:[#allocation4 + $0x3c] sm:$0x1] }
 0x382   : > { %v4758_v16 = vpop.permute.xlu0 %4757  ;;  %4275 = vst [vmem:[#allocation2 + $0x78] sm:$0x3] %v4274_v57  ;;  %v5082_v23 = vpop.f32.mrf.mxu1  ;;  %8597 = vmatprep.mubr.msk.bf16.mxu1 %vm15172_vm12, %v9378_v5  ;;  %v13375_v5 = vld [vmem:[%s14325_s8 + $0x88] sm:$0xff]  }
 0x383   : > { %4808 = vst.msk [vmem:[#allocation2 + $0x50] sm:$0xf] %vm4785_vm1, %v4758_v16  ;;  %v5085_v38 = vmax.f32 %v5081_v47, 0.0  ;;  %v8968_v47 = vpack.c.bf16 %v5654_v49, %v5654_v49 }
 0x384   : > { %v4355_v32 = vpop.permute.xlu1 %4354  ;;  %5355 = vmatpush1.bf16.msra.mxu0 %v13023_v55 }
 0x385   : > { %5088 = vst.msk [vmem:[#allocation3 + $0x18] sm:$0x7] %vm15171_vm3, %v5085_v38  ;;  %5356 = vmatprep.subr.bf16.mxu0 %v15014_v37  ;;  %v5274_v11 = vld [vmem:[#allocation2 + $0x58] sm:$0x33] }
 0x386   : > { %v4351_v51 = vpop.permute.xlu0 %4350 }
 0x387   : > { %v4401_v46 = vsel %vm11277_vm14, %v4351_v51, %v4400_v9 }
 0x388   : > { %4402 = vst [vmem:[#allocation2 + $0x68] sm:$0x3] %v4401_v46  ;;  %v4590_v22 = vpop.permute.xlu1 %4589  ;;  %v5765_v1 = vld [vmem:[#allocation3 + $0x10] sm:$0xff]  ;;  %5357 = vmatpush1.bf16.msra.mxu0 %v13045_v43 }
 0x389   : > { %v4404_v26 = vld [vmem:[#allocation2 + $0x78] sm:$0x3]  ;;  %v13298_v12 = vpack.c.bf16 %v5765_v1, %v5765_v1  ;;  %5358 = vmatprep.subr.bf16.mxu0 %v15014_v37 }
 0x38a   : > { %v4586_v24 = vpop.permute.xlu0 %4585  ;;  %v5273_v48 = vld [vmem:[#allocation2 + $0x50] sm:$0xff]  ;;  %v4405_v25 = vsel %vm11277_vm14, %v4355_v32, %v4404_v26  ;;  %vm15173_vm14 = vcmask 519552  }
 0x38b   : > { %v8595_v30 = vcombine.low %v5273_v48, %v5274_v11  ;;  %4406 = vst [vmem:[#allocation2 + $0x78] sm:$0x3] %v4405_v25  ;;  %5523 = vst.msk [vmem:[#allocation4 + $0x18] sm:$0xf] %vm5515_vm6, %v13298_v12 }
 0x38c   : > { %v3849_v19 = vpop.permute.xlu1 %3848  ;;  %v5546_v50 = vld [vmem:[#allocation3 + $0x19] sm:$0x1]  ;;  %v5961_v56 = vld [vmem:[#allocation3 + $0x1a] sm:$0x1]  ;;  %5359 = vmatpush1.bf16.msra.mxu0 %v13062_v18  ;;  %v5545_v33 = vld [vmem:[#allocation3 + $0x11] sm:$0xff] }
 0x38d   : > { %5320 = vmatmul.mubr.bf16.vlgmr.msra.gmra.mxu1 %v8595_v30  ;;  %3899 = vst.msk [vmem:[#allocation2 + $0x60] sm:$0xf] %vm3872_vm7, %v3849_v19  ;;  %v8959_v34 = vpack.c.bf16 %v5546_v50, %v5546_v50  ;;  %v9005_v2 = vpack.c.bf16 %v5961_v56, %v5961_v56  ;;  %v5877_v53 = vld [vmem:[#allocation3 + $0x19] sm:$0x1]  ;;  %5360 = vmatprep.subr.bf16.mxu0 %v15014_v37  ;;  %v5458_v63 = vld [vmem:[#allocation3 + $0x18] sm:$0x1] }
 0x38e   : > { %v4675_v61 = vpop.permute.xlu0 %4674  ;;  %5410 = vmatpush1.bf16.msra.mxu1 %v12954_v39  ;;  %v13311_v13 = vpack.c.bf16 %v5545_v33, %v5545_v33  ;;  %v8993_v21 = vpack.c.bf16 %v5877_v53, %v5877_v53  ;;  %v8947_v39 = vpack.c.bf16 %v5458_v63, %v5458_v63  ;;  %v5657_v60 = vld [vmem:[#allocation3 + $0x1a] sm:$0x1]  ;;  %v9383_v48 = vld [vmem:[#allocation2 + $0x74] ss:$8 sps:$4 sm:$0x3f]   ;;  %v13383_v56 = vld [vmem:[%s14325_s8 + $0x80] sm:$0xff]  }
 0x38f   : > { %v4635_v45 = vld [vmem:[#allocation2 + $0x68] sm:$0x3]  ;;  %5411 = vmatprep.subr.bf16.mxu1 %v15014_v37  ;;  %5597 = vrot.lane.b32.xlu0 %v8959_v34, %s14792_s20  ;;  %v5631_v53 = vld [vmem:[#allocation4 + $0xc] sm:$0x1]  ;;  %v6345_v63 = vld [vmem:[#allocation4 + $0x14] sm:$0x1] }
 0x390   : > { %v4636_v54 = vsel %vm11470_vm0, %v4586_v24, %v4635_v45  ;;  %6010 = vrot.lane.b32.xlu1 %v9005_v2, %s14792_s20  ;;  %v4218_v41 = vpop.permute.xlu1 %4217  ;;  %v5938_v29 = vsel %vm13252_vm11, %v8993_v21, %v5937_v31  ;;  %5936 = vst.msk [vmem:[#allocation4 + $0x4] sm:$0xf] %vm5515_vm6, %v13311_v13  ;;  %5361 = vmatpush1.bf16.msra.mxu0 %v13084_v36  ;;  %v9591_v34 = vld [vmem:[%s14325_s8 + $0x28] sm:$0xff]  }
 0x391   : > { %4637 = vst [vmem:[#allocation2 + $0x68] sm:$0x3] %v4636_v54  ;;  %5939 = vst [vmem:[#allocation4 + $0x10] sm:$0x1] %v5938_v29  ;;  %v5525_v6 = vsel %vm13252_vm11, %v8947_v39, %v5524_v10  ;;  %5362 = vmatprep.subr.bf16.mxu0 %v15014_v37 }
 0x392   : > { %v4087_v8 = vpop.permute.xlu0 %4086  ;;  %5412 = vmatpush1.bf16.msra.mxu1 %v12981_v15  ;;  %v4639_v58 = vld [vmem:[#allocation2 + $0x78] sm:$0x3]  ;;  %5526 = vst [vmem:[#allocation4 + $0x24] sm:$0x1] %v5525_v6  ;;  %v8971_v15 = vpack.c.bf16 %v5657_v60, %v5657_v60  ;;  %v5941_v60 = vld [vmem:[#allocation4 + $0x28] sm:$0x1] }
 0x393   : > { %4137 = vst.msk [vmem:[#allocation2 + $0x60] sm:$0xf] %vm4110_vm9, %v4087_v8  ;;  %5413 = vmatprep.subr.bf16.mxu1 %v15014_v37  ;;  %v4640_v28 = vsel %vm11470_vm0, %v4590_v22, %v4639_v58  ;;  %5704 = vrot.lane.b32.xlu0 %v8969_v27, %s14839_s30  ;;  %vm15174_vm0 = vmmov %vm15169_vm2 }
 0x394   : > { %4268 = vst.msk [vmem:[#allocation2 + $0x60] sm:$0xf] %vm15173_vm14, %v4218_v41  ;;  %4641 = vst [vmem:[#allocation2 + $0x78] sm:$0x3] %v4640_v28  ;;  %5363 = vmatpush1.bf16.msra.mxu0 %v13098_v40  ;;  %v4584_v0 = vpop.permute.xlu1 %4583 }
 0x395   : > { %5378 = vmatprep.subr.bf16.mxu0 %v15014_v37  ;;  %vm15176_vm2 = vmmov %vm15172_vm12  ;;  %vm15183_vm12 = vcmask 256000  }
 0x396   : > { %5414 = vmatpush1.bf16.msra.mxu1 %v13001_v59  ;;  %v4349_v52 = vpop.permute.xlu0 %4348  ;;  %8600 = vmatprep.mubr.msk.bf16.mxu0 %vm15176_vm2, %v9380_v35  ;;  %vm15178_vm10 = vmmov %vm15174_vm0 }
 0x397   : > { %5415 = vmatprep.subr.bf16.mxu1 %v15014_v37  ;;  %4399 = vst.msk [vmem:[#allocation2 + $0x60] sm:$0xf] %vm15163_vm8, %v4349_v52  ;;  %5708 = vrot.lane.b32.xlu0 %v8971_v15, %s14839_s30 }
 0x398   : > { %v4724_v3 = vld [vmem:[#allocation2 + $0x68] sm:$0x3]  ;;  %4634 = vst.msk [vmem:[#allocation2 + $0x60] sm:$0xf] %vm15174_vm0, %v4584_v0  ;;  %5379 = vmatpush2.bf16.msra.mxu0 %v13117_v14 }
 0x399   : > { %v4725_v42 = vsel %vm11678_vm5, %v4675_v61, %v4724_v3 }
 0x39a   : > { %4726 = vst [vmem:[#allocation2 + $0x68] sm:$0x3] %v4725_v42  ;;  %5416 = vmatpush1.bf16.msra.mxu1 %v13023_v55  ;;  %v4673_v59 = vpop.permute.xlu0 %4672 }
 0x39b   : > { %5417 = vmatprep.subr.bf16.mxu1 %v15014_v37  ;;  %4723 = vst.msk [vmem:[#allocation2 + $0x60] sm:$0xf] %vm4696_vm4, %v4673_v59  ;;  %5591 = vrot.lane.b32.xlu0 %v8956_v62, %s14792_s20  ;;  %v5656_v59 = vld [vmem:[#allocation3 + $0x12] sm:$0xff] }
 0x39e   : > { %5418 = vmatpush1.bf16.msra.mxu1 %v13045_v43  ;;  %v4764_v16 = vpop.permute.xlu0 %4763  ;;  %v4728_v43 = vld [vmem:[#allocation2 + $0x78] sm:$0x3] }
 0x39f   : > { %5419 = vmatprep.subr.bf16.mxu1 %v15014_v37  ;;  %5702 = vrot.lane.b32.xlu0 %v8968_v47, %s14839_s30 }
 0x3a1   : > { %v4813_v57 = vld [vmem:[#allocation2 + $0x68] sm:$0x3] }
 0x3a2   : > { %v4814_v55 = vsel %vm11974_vm15, %v4764_v16, %v4813_v57  ;;  %5420 = vmatpush1.bf16.msra.mxu1 %v13062_v18  ;;  %v6045_v16 = vld [vmem:[#allocation4 + $0x10] sm:$0x1] }
 0x3a3   : > { %4815 = vst [vmem:[#allocation2 + $0x68] sm:$0x3] %v4814_v55  ;;  %5421 = vmatprep.subr.bf16.mxu1 %v15014_v37 }
 0x3a6   : > { %5422 = vmatpush1.bf16.msra.mxu1 %v13084_v36  ;;  %v4679_v23 = vpop.permute.xlu1 %4678  ;;  %v9672_v36 = vmov 0.0  }
 0x3a7   : > { %5423 = vmatprep.subr.bf16.mxu1 %v15014_v37  ;;  %v4729_v38 = vsel %vm11678_vm5, %v4679_v23, %v4728_v43  ;;  %vm15175_vm5 = vmmov %vm15173_vm14  ;;  %v5635_v23 = vld [vmem:[#allocation4 + $0x24] sm:$0x1] }
 0x3a8   : > { %4730 = vst [vmem:[#allocation2 + $0x78] sm:$0x3] %v4729_v38 }
 0x3aa   : > { %5424 = vmatpush1.bf16.msra.mxu1 %v13098_v40  ;;  %v3853_v32 = vpop.permute.xlu0 %3852  ;;  %v4762_v9 = vpop.permute.xlu1 %4761 }
 0x3ab   : > { %5439 = vmatprep.subr.bf16.mxu1 %v15014_v37  ;;  %3903 = vst.msk [vmem:[#allocation2 + $0x70] sm:$0xf] %vm3872_vm7, %v3853_v32  ;;  %vm15177_vm7 = vmmov %vm15163_vm8  ;;  %vm5740_vm8 = vcmask 778752   ;;  %v9600_v32 = vld [vmem:[%s14325_s8 + $0x40] sm:$0xff]  }
 0x3ac   : > { %4812 = vst.msk [vmem:[#allocation2 + $0x60] sm:$0xf] %vm4785_vm1, %v4762_v9  ;;  %vm13435_vm0 = vmand %vm5740_vm8, %vm5518_vm13 }
 0x3ae   : > { %5440 = vmatpush2.bf16.msra.mxu1 %v13117_v14  ;;  %v4222_v18 = vpop.permute.xlu0 %4221  ;;  %v4091_v51 = vpop.permute.xlu1 %4090 }
 0x3af   : > { %9233 = vmatprep.subr.bf16.mxu1 %v9672_v36  ;;  %4141 = vst.msk [vmem:[#allocation2 + $0x70] sm:$0xf] %vm4110_vm9, %v4091_v51  ;;  %v4817_v14 = vld [vmem:[#allocation2 + $0x78] sm:$0x3]  ;;  %vm15179_vm9 = vmmov %vm15176_vm2 }
 0x3b0   : > { %4272 = vst.msk [vmem:[#allocation2 + $0x70] sm:$0xf] %vm15175_vm5, %v4222_v18  ;;  %8603 = vmatprep.mubr.msk.bf16.mxu1 %vm15179_vm9, %v9383_v48  ;;  %vm5627_vm5 = vcmask 519424  }
 0x3b2   : > { %v4588_v22 = vpop.permute.xlu0 %4587 }
 0x3b3   : > { %v9382_v40 = vld [vmem:[#allocation2 + $0x60] ss:$8 sps:$4 sm:$0x3f]  }
 0x3b4   : > { %5381 = vmatmul.mubr.bf16.vlgmr.msra.gmra.mxu0 %v9382_v40 }
 0x3bd   : > { %v4353_v46 = vpop.permute.xlu1 %4352 }
 0x3be   : > { %4403 = vst.msk [vmem:[#allocation2 + $0x70] sm:$0xf] %vm15177_vm7, %v4353_v46  ;;  %vm5738_vm7 = vcmask 781824  }
 0x3bf   : > { %4638 = vst.msk [vmem:[#allocation2 + $0x70] sm:$0xf] %vm15178_vm10, %v4588_v22  ;;  %vm15188_vm10 = vmmov %vm15183_vm12 }
 0x3c5   : > { %v4768_v11 = vpop.permute.xlu0 %4767 }
 0x3c6   : > { %v4818_v26 = vsel %vm11974_vm15, %v4768_v11, %v4817_v14  ;;  %vm5629_vm15 = vcmask 516352   ;;  %v13445_v11 = vld [vmem:[%s14325_s8 + $0x78] sm:$0xff]  }
 0x3c7   : > { %v4677_v1 = vpop.permute.xlu1 %4676  ;;  %4819 = vst [vmem:[#allocation2 + $0x78] sm:$0x3] %v4818_v26  ;;  %vm13391_vm3 = vmand %vm5629_vm15, %vm5518_vm13  ;;  %9052 = vmatprep.subr.bf16.mxu0 %v13445_v11 }
 0x3c8   : > { %4727 = vst.msk [vmem:[#allocation2 + $0x70] sm:$0xf] %vm4696_vm4, %v4677_v1  ;;  %vm9673_vm4 = vmmov 0   ;;  %vm15190_vm15 = vmmov %vm15188_vm10 }
 0x3cb   : > { %v4766_v24 = vpop.permute.xlu1 %4765 }
 0x3cc   : > { %4816 = vst.msk [vmem:[#allocation2 + $0x70] sm:$0xf] %vm4785_vm1, %v4766_v24  ;;  %vm15180_vm1 = vcmask 261120   ;;  %v13452_v24 = vld [vmem:[%s14325_s8 + $0x38] sm:$0xff]  }
 0x3cd   : > { %vm15184_vm14 = vmmov %vm15180_vm1  ;;  %9053 = vmatpush3.bf16.msra.mxu0 %v13452_v24 }
 0x3ce   : > { %vm15187_vm2 = vmmov %vm15180_vm1 }
 0x3cf   : > { %vm15189_vm9 = vmmov %vm15180_vm1 }
 0x3d0   : > { %vm15192_vm8 = vmmov %vm15180_vm1 }
 0x3d2   : > { %v5138_v25 = vpop.f32.mrf.mxu0 }
 0x3d3   : > { %v9385_v30 = vld [vmem:[#allocation2 + $0x70] ss:$8 sps:$4 sm:$0x3f]   ;;  %v5139_v19 = vadd.f32 %v13215_v4, %v5138_v25 }
 0x3d4   : > { %5442 = vmatmul.mubr.bf16.vlgmr.msra.gmra.mxu1 %v9385_v30  ;;  %v5140_v44 = vpop.f32.mrf.mxu0 }
 0x3d5   : > { %v5145_v50 = vmax.f32 %v5139_v19, 0.0  ;;  %9234 = vmatpush3.bf16.msra.mxu1 %v13375_v5  ;;  %9237 = vmatprep.mubr.msk.bf16.mxu1 %vm9673_vm4, %v9672_v36 }
 0x3d6   : > { %v5141_v31 = vpop.f32.mrf.mxu0  ;;  %9235 = vmatprep.subr.bf16.mxu1 %v9672_v36 }
 0x3d7   : > { %5148 = vst.msk [vmem:[#allocation3 + $0x20] sm:$0xff] %vm15180_vm1, %v5145_v50  ;;  %v5142_v61 = vadd.f32 %v13215_v4, %v5141_v31  ;;  %v13464_v50 = vld [vmem:[%s14325_s8 + $0x70] sm:$0xff]  }
 0x3d8   : > { %v5143_v2 = vpop.f32.mrf.mxu0  ;;  %v5594_v10 = vpop.permute.xlu0 %5593  ;;  %v13469_v31 = vld [vmem:[%s14325_s8 + $0x30] sm:$0xff]   ;;  %9054 = vmatprep.subr.bf16.mxu0 %v13464_v50 }
 0x3d9   : > { %v5146_v33 = vmax.f32 %v5142_v61, 0.0  ;;  %9236 = vmatpush3.bf16.msra.mxu1 %v13383_v56  ;;  %v5632_v45 = vsel %vm13391_vm3, %v5594_v10, %v5631_v53  ;;  %9055 = vmatpush3.bf16.msra.mxu0 %v13469_v31  ;;  %v13480_v2 = vld [vmem:[%s14325_s8 + $0x68] sm:$0xff]  }
 0x3da   : > { %5633 = vst [vmem:[#allocation4 + $0xc] sm:$0x1] %v5632_v45  ;;  %9077 = vmatprep.subr.bf16.mxu1 %v13445_v11  ;;  %9056 = vmatprep.subr.bf16.mxu0 %v13480_v2  ;;  %v6349_v45 = vld [vmem:[#allocation4 + $0x2c] sm:$0x1] }
 0x3db   : > { %5149 = vst.msk [vmem:[#allocation3 + $0x28] sm:$0x7] %vm15183_vm12, %v5146_v33  ;;  %v13485_v33 = vld [vmem:[%s14325_s8 + $0x28] sm:$0xff]   ;;  %vm15191_vm12 = vmmov %vm15188_vm10 }
 0x3dd   : > { %9057 = vmatpush3.bf16.msra.mxu0 %v13485_v33 }
 0x3de   : > { %v6068_v7 = vld [vmem:[#allocation3 + $0x20] sm:$0xff] }
 0x3df   : > { %v13399_v21 = vpack.c.bf16 %v6068_v7, %v6068_v7 }
 0x3e1   : > { %6116 = vrot.lane.b32.xlu0 %v13399_v21, %s14839_s30  ;;  %5527 = vst.msk [vmem:[#allocation4 + $0x30] sm:$0xf] %vm5515_vm6, %v13399_v21  ;;  %v5742_v9 = vld [vmem:[#allocation4 + $0xc] sm:$0x1] }
 0x3e2   : > { %v6284_v54 = vld [vmem:[#allocation3 + $0x22] sm:$0xff]  ;;  %v6285_v39 = vld [vmem:[#allocation3 + $0x2a] sm:$0x1] }
 0x3e3   : > { %v5963_v41 = vld [vmem:[#allocation3 + $0x2a] sm:$0x1]  ;;  %v13405_v29 = vpack.c.bf16 %v6284_v54, %v6284_v54  ;;  %v9041_v8 = vpack.c.bf16 %v6285_v39, %v6285_v39  ;;  %v6069_v6 = vld [vmem:[#allocation3 + $0x28] sm:$0x1]  ;;  %v5879_v15 = vld [vmem:[#allocation3 + $0x29] sm:$0x1] }
 0x3e4   : > { %v9007_v27 = vpack.c.bf16 %v5963_v41, %v5963_v41  ;;  %v6176_v58 = vld [vmem:[#allocation3 + $0x21] sm:$0xff]  ;;  %v8995_v0 = vpack.c.bf16 %v5879_v15, %v5879_v15  ;;  %v9017_v62 = vpack.c.bf16 %v6069_v6, %v6069_v6 }
 0x3e5   : > { %6344 = vst.msk [vmem:[#allocation4 + $0x8] sm:$0xf] %vm5515_vm6, %v13405_v29  ;;  %v6346_v28 = vsel %vm13252_vm11, %v9041_v8, %v6345_v63  ;;  %5813 = vrot.lane.b32.xlu0 %v13298_v12, %s14864_s27  ;;  %v5460_v52 = vld [vmem:[#allocation3 + $0x28] sm:$0x1]  ;;  %v13414_v3 = vpack.c.bf16 %v6176_v58, %v6176_v58  ;;  %v13425_v12 = vpack.c.bf16 %v5656_v59, %v5656_v59  ;;  %v5532_v58 = vld [vmem:[#allocation4 + $0x54] sm:$0x1] }
 0x3e6   : > { %6014 = vrot.lane.b32.xlu1 %v9007_v27, %s14792_s20  ;;  %6347 = vst [vmem:[#allocation4 + $0x14] sm:$0x1] %v6346_v28  ;;  %v8949_v42 = vpack.c.bf16 %v5460_v52, %v5460_v52  ;;  %v5942_v49 = vsel %vm13252_vm11, %v8995_v0, %v5941_v60  ;;  %v5548_v27 = vld [vmem:[#allocation3 + $0x29] sm:$0x1]  ;;  %v13511_v15 = vld [vmem:[%s14325_s8 + $0x60] sm:$0xff]   ;;  %v13522_v59 = vld [vmem:[%s14325_s8 + $0x58] sm:$0xff]  }
 0x3e7   : > { %5940 = vst.msk [vmem:[#allocation4 + $0x1c] sm:$0xf] %vm5515_vm6, %v13414_v3  ;;  %5943 = vst [vmem:[#allocation4 + $0x28] sm:$0x1] %v5942_v49  ;;  %9058 = vmatprep.subr.bf16.mxu0 %v13511_v15 }
 0x3e8   : > { %v5529_v47 = vsel %vm13252_vm11, %v8949_v42, %v5528_v20  ;;  %v13516_v20 = vld [vmem:[%s14325_s8 + $0x20] sm:$0xff]  }
 0x3e9   : > { %5595 = vrot.lane.b32.xlu0 %v13311_v13, %s14792_s20  ;;  %5530 = vst [vmem:[#allocation4 + $0x3c] sm:$0x1] %v5529_v47  ;;  %9059 = vmatpush3.bf16.msra.mxu0 %v13516_v20 }
 0x3ea   : > { %6118 = vrot.lane.b32.xlu1 %v9017_v62, %s14839_s30  ;;  %v5945_v62 = vld [vmem:[#allocation4 + $0x40] sm:$0x1]  ;;  %9060 = vmatprep.subr.bf16.mxu0 %v13522_v59 }
 0x3ed   : > { %5706 = vrot.lane.b32.xlu0 %v13425_v12, %s14839_s30  ;;  %v9388_v57 = vld [vmem:[#allocation4 + $0x8] ss:$12 sps:$4 sm:$0x1f]  }
 0x3ee   : > { %9238 = vmatmul.mubr.msk.bf16.vlgmr.msra.gmra.mxu1 %vm15184_vm14, %v9388_v57  ;;  %v5766_v57 = vld [vmem:[#allocation3 + $0x18] sm:$0x1]  ;;  %vm5849_vm14 = vcmask 1044224  }
 0x3ef   : > { %9078 = vmatpush3.bf16.msra.mxu1 %v13452_v24 }
 0x3f0   : > { %9079 = vmatprep.subr.bf16.mxu1 %v13464_v50 }
 0x3f3   : > { %9080 = vmatpush3.bf16.msra.mxu1 %v13469_v31 }
 0x3f4   : > { %9081 = vmatprep.subr.bf16.mxu1 %v13480_v2 }
 0x3f7   : > { %9082 = vmatpush3.bf16.msra.mxu1 %v13485_v33 }
 0x3f8   : > { %9083 = vmatprep.subr.bf16.mxu1 %v13511_v15 }
 0x3fb   : > { %9084 = vmatpush3.bf16.msra.mxu1 %v13516_v20 }
 0x3fc   : > { %9085 = vmatprep.subr.bf16.mxu1 %v13522_v59 }
 0x401   : > { %v5598_v43 = vpop.permute.xlu0 %5597 }
 0x402   : > { %v6011_v55 = vpop.permute.xlu1 %6010  ;;  %v5636_v38 = vsel %vm13391_vm3, %v5598_v43, %v5635_v23 }
 0x403   : > { %v6046_v13 = vsel %vm13391_vm3, %v6011_v55, %v6045_v16  ;;  %5637 = vst [vmem:[#allocation4 + $0x24] sm:$0x1] %v5636_v38  ;;  %v13533_v55 = vld [vmem:[%s14325_s8 + $0x18] sm:$0xff]   ;;  %v5659_v38 = vld [vmem:[#allocation3 + $0x2a] sm:$0x1] }
 0x404   : > { %6047 = vst [vmem:[#allocation4 + $0x10] sm:$0x1] %v6046_v13  ;;  %v8981_v13 = vpack.c.bf16 %v5766_v57, %v5766_v57  ;;  %9061 = vmatpush3.bf16.msra.mxu0 %v13533_v55  ;;  %9086 = vmatpush3.bf16.msra.mxu1 %v13533_v55 }
 0x405   : > { %v5705_v18 = vpop.permute.xlu0 %5704 }
 0x406   : > { %v5743_v51 = vsel %vm13435_vm0, %v5705_v18, %v5742_v9  ;;  %v5199_v35 = vpop.f32.mrf.mxu1  ;;  %v13546_v9 = vld [vmem:[%s14325_s8 + $0x50] sm:$0xff]   ;;  %v6177_v18 = vld [vmem:[#allocation3 + $0x29] sm:$0x1] }
 0x407   : > { %5744 = vst [vmem:[#allocation4 + $0xc] sm:$0x1] %v5743_v51  ;;  %v5200_v40 = vadd.f32 %v13215_v4, %v5199_v35  ;;  %9062 = vmatprep.subr.bf16.mxu0 %v13546_v9  ;;  %9087 = vmatprep.subr.bf16.mxu1 %v13546_v9  ;;  %v8973_v51 = vpack.c.bf16 %v5659_v38, %v5659_v38 }
 0x408   : > { %v5201_v14 = vpop.f32.mrf.mxu1  ;;  %v9029_v35 = vpack.c.bf16 %v6177_v18, %v6177_v18 }
 0x409   : > { %v5709_v46 = vpop.permute.xlu0 %5708  ;;  %v5206_v1 = vmax.f32 %v5200_v40, 0.0  ;;  %v13562_v40 = vld [vmem:[%s14325_s8 + $0x48] sm:$0xff]  }
 0x40a   : > { %v5746_v22 = vld [vmem:[#allocation4 + $0x24] sm:$0x1]  ;;  %v5202_v48 = vpop.f32.mrf.mxu1 }
 0x40b   : > { %v5747_v26 = vsel %vm13435_vm0, %v5709_v46, %v5746_v22  ;;  %5209 = vst.msk [vmem:[#allocation3 + $0x30] sm:$0xff] %vm15187_vm2, %v5206_v1  ;;  %v5203_v25 = vadd.f32 %v13215_v4, %v5202_v48  ;;  %v13568_v22 = vld [vmem:[%s14325_s8 + $0x8] sm:$0xff]   ;;  %v13578_v1 = vld [vmem:[%s14325_s8 + $0x40] sm:$0xff]   ;;  %vm15193_vm2 = vmmov %vm15188_vm10 }
 0x40c   : > { %5748 = vst [vmem:[#allocation4 + $0x24] sm:$0x1] %v5747_v26  ;;  %v5204_v19 = vpop.f32.mrf.mxu1  ;;  %v13584_v26 = vld [vmem:[%s14325_s8] sm:$0xff]   ;;  %v5768_v48 = vld [vmem:[#allocation3 + $0x28] sm:$0x1] }
 0x40d   : > { %v5592_v30 = vpop.permute.xlu0 %5591  ;;  %v5207_v44 = vmax.f32 %v5203_v25, 0.0  ;;  %v8983_v25 = vpack.c.bf16 %v5768_v48, %v5768_v48 }
 0x40e   : > { %5628 = vst.msk [vmem:[#allocation4] sm:$0xf] %vm5627_vm5, %v5592_v30 }
 0x40f   : > { %5210 = vst.msk [vmem:[#allocation3 + $0x38] sm:$0x7] %vm15188_vm10, %v5207_v44  ;;  %vm5851_vm10 = vcmask 1041152  }
 0x411   : > { %v5703_v61 = vpop.permute.xlu0 %5702 }
 0x412   : > { %5739 = vst.msk [vmem:[#allocation4] sm:$0xf] %vm5738_vm7, %v5703_v61  ;;  %v6070_v53 = vld [vmem:[#allocation3 + $0x30] sm:$0xff] }
 0x413   : > { %v13487_v10 = vpack.c.bf16 %v6070_v53, %v6070_v53 }
 0x415   : > { %6120 = vrot.lane.b32.xlu0 %v13487_v10, %s14839_s30  ;;  %5531 = vst.msk [vmem:[#allocation4 + $0x48] sm:$0xf] %vm5515_vm6, %v13487_v10 }
 0x416   : > { %v6286_v7 = vld [vmem:[#allocation3 + $0x32] sm:$0xff]  ;;  %v6287_v63 = vld [vmem:[#allocation3 + $0x3a] sm:$0x1] }
 0x417   : > { %v6071_v54 = vld [vmem:[#allocation3 + $0x38] sm:$0x1]  ;;  %v13497_v39 = vpack.c.bf16 %v6286_v7, %v6286_v7  ;;  %v9043_v41 = vpack.c.bf16 %v6287_v63, %v6287_v63  ;;  %v5881_v42 = vld [vmem:[#allocation3 + $0x39] sm:$0x1]  ;;  %v5661_v46 = vld [vmem:[#allocation3 + $0x3a] sm:$0x1] }
 0x418   : > { %v9019_v8 = vpack.c.bf16 %v6071_v54, %v6071_v54  ;;  %v6178_v6 = vld [vmem:[#allocation3 + $0x31] sm:$0xff]  ;;  %v8997_v49 = vpack.c.bf16 %v5881_v42, %v5881_v42  ;;  %v5550_v47 = vld [vmem:[#allocation3 + $0x39] sm:$0x1]  ;;  %v8975_v14 = vpack.c.bf16 %v5661_v46, %v5661_v46  ;;  %v5965_v53 = vld [vmem:[#allocation3 + $0x3a] sm:$0x1] }
 0x419   : > { %6348 = vst.msk [vmem:[#allocation4 + $0x20] sm:$0xf] %vm5515_vm6, %v13497_v39  ;;  %v6350_v60 = vsel %vm13252_vm11, %v9043_v41, %v6349_v45  ;;  %5817 = vrot.lane.b32.xlu0 %v13399_v21, %s14864_s27  ;;  %v13506_v28 = vpack.c.bf16 %v6178_v6, %v6178_v6  ;;  %v5462_v52 = vld [vmem:[#allocation3 + $0x38] sm:$0x1]  ;;  %v8961_v21 = vpack.c.bf16 %v5548_v27, %v5548_v27  ;;  %v6179_v30 = vld [vmem:[#allocation3 + $0x39] sm:$0x1] }
 0x41a   : > { %6122 = vrot.lane.b32.xlu1 %v9019_v8, %s14839_s30  ;;  %6351 = vst [vmem:[#allocation4 + $0x2c] sm:$0x1] %v6350_v60  ;;  %v8951_v0 = vpack.c.bf16 %v5462_v52, %v5462_v52  ;;  %v5946_v23 = vsel %vm13252_vm11, %v8997_v49, %v5945_v62  ;;  %v8963_v43 = vpack.c.bf16 %v5550_v47, %v5550_v47  ;;  %v6353_v6 = vld [vmem:[#allocation4 + $0x44] sm:$0x1]  ;;  %v5949_v49 = vld [vmem:[#allocation4 + $0x58] sm:$0x1] }
 0x41b   : > { %5944 = vst.msk [vmem:[#allocation4 + $0x34] sm:$0xf] %vm5515_vm6, %v13506_v28  ;;  %5947 = vst [vmem:[#allocation4 + $0x40] sm:$0x1] %v5946_v23  ;;  %v9031_v19 = vpack.c.bf16 %v6179_v30, %v6179_v30 }
 0x41c   : > { %v5533_v16 = vsel %vm13252_vm11, %v8951_v0, %v5532_v58 }
 0x41d   : > { %5601 = vrot.lane.b32.xlu0 %v8961_v21, %s14792_s20  ;;  %5534 = vst [vmem:[#allocation4 + $0x54] sm:$0x1] %v5533_v16 }
 0x41e   : > { %6008 = vrot.lane.b32.xlu1 %v13425_v12, %s14792_s20  ;;  %v13552_v12 = vld [vmem:[%s14325_s8 + $0x10] sm:$0xff]  }
 0x41f   : > { %9063 = vmatpush3.bf16.msra.mxu0 %v13552_v12  ;;  %9088 = vmatpush3.bf16.msra.mxu1 %v13552_v12 }
 0x420   : > { %9064 = vmatprep.subr.bf16.mxu0 %v13562_v40  ;;  %9089 = vmatprep.subr.bf16.mxu1 %v13562_v40 }
 0x421   : > { %5605 = vrot.lane.b32.xlu0 %v8963_v43, %s14792_s20  ;;  %v5536_v43 = vld [vmem:[#allocation4 + $0x6c] sm:$0x1] }
 0x422   : > { %5815 = vrot.lane.b32.xlu1 %v8981_v13, %s14864_s27 }
 0x423   : > { %9065 = vmatpush3.bf16.msra.mxu0 %v13568_v22  ;;  %9090 = vmatpush3.bf16.msra.mxu1 %v13568_v22 }
 0x424   : > { %9066 = vmatprep.subr.bf16.mxu0 %v13578_v1  ;;  %9091 = vmatprep.subr.bf16.mxu1 %v13578_v1 }
 0x425   : > { %5712 = vrot.lane.b32.xlu0 %v8973_v51, %s14839_s30  ;;  %v13631_v51 = vld [vmem:[%s14324_s7] ss:$0 sm:$0xff] }
 0x426   : > { %6226 = vrot.lane.b32.xlu1 %v9029_v35, %s14864_s27 }
 0x427   : > { %9067 = vmatpush3.bf16.msra.mxu0 %v13584_v26  ;;  %9092 = vmatpush3.bf16.msra.mxu1 %v13584_v26 }
 0x428   : > { %9241 = vmatprep.subr.bf16.mxu0 %v9672_v36  ;;  %9249 = vmatprep.subr.bf16.mxu1 %v9672_v36 }
 0x429   : > { %5716 = vrot.lane.b32.xlu0 %v8975_v14, %s14839_s30 }
 0x42a   : > { %6224 = vrot.lane.b32.xlu1 %v13414_v3, %s14864_s27 }
 0x42d   : > { %5599 = vrot.lane.b32.xlu0 %v13414_v3, %s14792_s20 }
 0x42e   : > { %6012 = vrot.lane.b32.xlu1 %v13405_v29, %s14792_s20 }
 0x431   : > { %5710 = vrot.lane.b32.xlu0 %v13405_v29, %s14839_s30  ;;  %v9009_v29 = vpack.c.bf16 %v5965_v53, %v5965_v53  ;;  %v6049_v53 = vld [vmem:[#allocation4 + $0x28] sm:$0x1] }
 0x432   : > { %5819 = vrot.lane.b32.xlu1 %v8983_v25, %s14864_s27 }
 0x436   : > { %6230 = vrot.lane.b32.xlu1 %v9031_v19, %s14864_s27 }
 0x437   : > { %v5260_v44 = vpop.f32.mrf.mxu0 }
 0x438   : > { %v5261_v3 = vadd.f32 %v13215_v4, %v5260_v44 }
 0x439   : > { %v5262_v61 = vpop.f32.mrf.mxu0 }
 0x43a   : > { %v5267_v45 = vmax.f32 %v5261_v3, 0.0  ;;  %6228 = vrot.lane.b32.xlu1 %v13506_v28, %s14864_s27 }
 0x43b   : > { %v5263_v7 = vpop.f32.mrf.mxu0 }
 0x43c   : > { %5270 = vst.msk [vmem:[#allocation3 + $0x40] sm:$0xff] %vm15189_vm9, %v5267_v45  ;;  %v5264_v63 = vadd.f32 %v13215_v4, %v5263_v7  ;;  %vm13737_vm9 = vmand %vm5851_vm10, %vm5518_vm13 }
 0x43d   : > { %v5265_v54 = vpop.f32.mrf.mxu0  ;;  %vm15196_vm13 = vmmov %vm15180_vm1 }
 0x43e   : > { %v5268_v41 = vmax.f32 %v5264_v63, 0.0  ;;  %6018 = vrot.lane.b32.xlu1 %v9009_v29, %s14792_s20 }
 0x440   : > { %5271 = vst.msk [vmem:[#allocation3 + $0x48] sm:$0x7] %vm15190_vm15, %v5268_v41  ;;  %vm15197_vm15 = vmmov %vm15193_vm2 }
 0x443   : > { %v6072_v8 = vld [vmem:[#allocation3 + $0x40] sm:$0xff] }
 0x444   : > { %v13611_v27 = vpack.c.bf16 %v6072_v8, %v6072_v8  ;;  %v6357_v8 = vld [vmem:[#allocation4 + $0x5c] sm:$0x1] }
 0x446   : > { %6124 = vrot.lane.b32.xlu0 %v13611_v27, %s14839_s30  ;;  %5535 = vst.msk [vmem:[#allocation4 + $0x60] sm:$0xf] %vm5515_vm6, %v13611_v27 }
 0x447   : > { %v6288_v58 = vld [vmem:[#allocation3 + $0x42] sm:$0xff]  ;;  %v6289_v60 = vld [vmem:[#allocation3 + $0x4a] sm:$0x1] }
 0x448   : > { %v5967_v4 = vld [vmem:[#allocation3 + $0x4a] sm:$0x1]  ;;  %v13617_v52 = vpack.c.bf16 %v6288_v58, %v6288_v58  ;;  %v9045_v0 = vpack.c.bf16 %v6289_v60, %v6289_v60  ;;  %v6073_v62 = vld [vmem:[#allocation3 + $0x48] sm:$0x1]  ;;  %v5883_v16 = vld [vmem:[#allocation3 + $0x49] sm:$0x1] }
 0x449   : > { %v9011_v42 = vpack.c.bf16 %v5967_v4, %v5967_v4  ;;  %v6180_v21 = vld [vmem:[#allocation3 + $0x41] sm:$0xff]  ;;  %v8999_v38 = vpack.c.bf16 %v5883_v16, %v5883_v16  ;;  %v9021_v46 = vpack.c.bf16 %v6073_v62, %v6073_v62  ;;  %v5552_v16 = vld [vmem:[#allocation3 + $0x49] sm:$0x1] }
 0x44a   : > { %6352 = vst.msk [vmem:[#allocation4 + $0x38] sm:$0xf] %vm5515_vm6, %v13617_v52  ;;  %v6354_v47 = vsel %vm13252_vm11, %v9045_v0, %v6353_v6  ;;  %5821 = vrot.lane.b32.xlu0 %v13487_v10, %s14864_s27  ;;  %v13626_v57 = vpack.c.bf16 %v6180_v21, %v6180_v21  ;;  %v5464_v23 = vld [vmem:[#allocation3 + $0x48] sm:$0x1]  ;;  %v6153_v6 = vld [vmem:[#allocation4 + $0x10] sm:$0x1] }
 0x44b   : > { %6022 = vrot.lane.b32.xlu1 %v9011_v42, %s14792_s20  ;;  %6355 = vst [vmem:[#allocation4 + $0x44] sm:$0x1] %v6354_v47  ;;  %v8953_v18 = vpack.c.bf16 %v5464_v23, %v5464_v23  ;;  %v5950_v14 = vsel %vm13252_vm11, %v8999_v38, %v5949_v49 }
 0x44c   : > { %5948 = vst.msk [vmem:[#allocation4 + $0x4c] sm:$0xf] %vm5515_vm6, %v13626_v57  ;;  %5951 = vst [vmem:[#allocation4 + $0x58] sm:$0x1] %v5950_v14 }
 0x44d   : > { %v5321_v13 = vpop.f32.mrf.mxu1  ;;  %v5537_v48 = vsel %vm13252_vm11, %v8953_v18, %v5536_v43  ;;  %v5540_v43 = vld [vmem:[#allocation4 + $0x84] sm:$0x1] }
 0x44e   : > { %v5322_v35 = vadd.f32 %v13631_v51, %v5321_v13  ;;  %5603 = vrot.lane.b32.xlu0 %v13506_v28, %s14792_s20  ;;  %5538 = vst [vmem:[#allocation4 + $0x6c] sm:$0x1] %v5537_v48 }
 0x44f   : > { %v5323_v10 = vpop.f32.mrf.mxu1  ;;  %6126 = vrot.lane.b32.xlu1 %v9021_v46, %s14839_s30  ;;  %v5953_v46 = vld [vmem:[#allocation4 + $0x70] sm:$0x1] }
 0x450   : > { %v5328_v25 = vmax.f32 %v5322_v35, 0.0 }
 0x451   : > { %v5324_v30 = vpop.f32.mrf.mxu1 }
 0x452   : > { %5331 = vst.msk [vmem:[#allocation3 + $0x50] sm:$0xff] %vm15180_vm1, %v5328_v25  ;;  %v5325_v19 = vadd.f32 %v13631_v51, %v5324_v30  ;;  %5714 = vrot.lane.b32.xlu0 %v13497_v39, %s14839_s30  ;;  %v8965_v25 = vpack.c.bf16 %v5552_v16, %v5552_v16  ;;  %v5770_v30 = vld [vmem:[#allocation3 + $0x38] sm:$0x1] }
 0x453   : > { %v5326_v44 = vpop.f32.mrf.mxu1  ;;  %v13647_v61 = vpop.permute.xlu0 %6116 }
 0x454   : > { %v5329_v3 = vmax.f32 %v5325_v19, 0.0 }
 0x456   : > { %5332 = vst.msk [vmem:[#allocation3 + $0x58] sm:$0x7] %vm15191_vm12, %v5329_v3  ;;  %v8985_v3 = vpack.c.bf16 %v5770_v30, %v5770_v30 }
 0x457   : > { %v5814_v28 = vpop.permute.xlu0 %5813 }
 0x458   : > { %v6015_v45 = vpop.permute.xlu1 %6014  ;;  %5850 = vst.msk [vmem:[#allocation4] sm:$0xf] %vm5849_vm14, %v5814_v28  ;;  %v5663_v28 = vld [vmem:[#allocation3 + $0x4a] sm:$0x1] }
 0x459   : > { %v6074_v7 = vld [vmem:[#allocation3 + $0x50] sm:$0xff]  ;;  %v6050_v29 = vsel %vm13391_vm3, %v6015_v45, %v6049_v53  ;;  %v6181_v45 = vld [vmem:[#allocation3 + $0x49] sm:$0x1] }
 0x45a   : > { %v5465_v63 = vld [vmem:[#allocation3 + $0x50] sm:$0xff]  ;;  %v13653_v54 = vpack.c.bf16 %v6074_v7, %v6074_v7  ;;  %6051 = vst [vmem:[#allocation4 + $0x28] sm:$0x1] %v6050_v29  ;;  %v9033_v7 = vpack.c.bf16 %v6181_v45, %v6181_v45 }
 0x45b   : > { %v8954_v41 = vpack.c.bf16 %v5465_v63, %v5465_v63  ;;  %v5596_v0 = vpop.permute.xlu0 %5595  ;;  %v8977_v63 = vpack.c.bf16 %v5663_v28, %v5663_v28 }
 0x45c   : > { %6128 = vrot.lane.b32.xlu0 %v13653_v54, %s14839_s30  ;;  %v6119_v4 = vpop.permute.xlu1 %6118  ;;  %5634 = vst.msk [vmem:[#allocation4 + $0x18] sm:$0xf] %vm5627_vm5, %v5596_v0 }
 0x45d   : > { %5539 = vst.msk [vmem:[#allocation4 + $0x78] sm:$0xf] %vm5515_vm6, %v8954_v41  ;;  %v6290_v58 = vld [vmem:[#allocation3 + $0x52] sm:$0xff]  ;;  %v6291_v60 = vld [vmem:[#allocation3 + $0x5a] sm:$0x1]  ;;  %v6154_v49 = vsel %vm13435_vm0, %v6119_v4, %v6153_v6 }
 0x45e   : > { %v6075_v42 = vld [vmem:[#allocation3 + $0x58] sm:$0x1]  ;;  %v13658_v62 = vpack.c.bf16 %v6290_v58, %v6290_v58  ;;  %v9047_v21 = vpack.c.bf16 %v6291_v60, %v6291_v60  ;;  %6155 = vst [vmem:[#allocation4 + $0x10] sm:$0x1] %v6154_v49  ;;  %v5885_v35 = vld [vmem:[#allocation3 + $0x59] sm:$0x1] }
 0x45f   : > { %v9023_v47 = vpack.c.bf16 %v6075_v42, %v6075_v42  ;;  %v6182_v23 = vld [vmem:[#allocation3 + $0x51] sm:$0xff]  ;;  %v5707_v10 = vpop.permute.xlu0 %5706  ;;  %v9001_v48 = vpack.c.bf16 %v5885_v35, %v5885_v35  ;;  %v5554_v19 = vld [vmem:[#allocation3 + $0x59] sm:$0x1]  ;;  %v5665_v29 = vld [vmem:[#allocation3 + $0x5a] sm:$0x1] }
 0x460   : > { %6356 = vst.msk [vmem:[#allocation4 + $0x50] sm:$0xf] %vm5515_vm6, %v13658_v62  ;;  %v6358_v13 = vsel %vm13252_vm11, %v9047_v21, %v6357_v8  ;;  %5825 = vrot.lane.b32.xlu0 %v13611_v27, %s14864_s27  ;;  %v13670_v38 = vpack.c.bf16 %v6182_v23, %v6182_v23  ;;  %v5466_v18 = vld [vmem:[#allocation3 + $0x58] sm:$0x1]  ;;  %v8967_v53 = vpack.c.bf16 %v5554_v19, %v5554_v19  ;;  %v5772_v41 = vld [vmem:[#allocation3 + $0x48] sm:$0x1] }
 0x461   : > { %6130 = vrot.lane.b32.xlu1 %v9023_v47, %s14839_s30  ;;  %6359 = vst [vmem:[#allocation4 + $0x5c] sm:$0x1] %v6358_v13  ;;  %v8955_v14 = vpack.c.bf16 %v5466_v18, %v5466_v18  ;;  %5745 = vst.msk [vmem:[#allocation4 + $0x18] sm:$0xf] %vm5738_vm7, %v5707_v10  ;;  %v5954_v44 = vsel %vm13252_vm11, %v9001_v48, %v5953_v46  ;;  %v8987_v8 = vpack.c.bf16 %v5772_v41, %v5772_v41  ;;  %v6183_v58 = vld [vmem:[#allocation3 + $0x59] sm:$0x1] }
 0x462   : > { %5952 = vst.msk [vmem:[#allocation4 + $0x64] sm:$0xf] %vm5515_vm6, %v13670_v38  ;;  %5955 = vst [vmem:[#allocation4 + $0x70] sm:$0x1] %v5954_v44  ;;  %v9035_v42 = vpack.c.bf16 %v6183_v58, %v6183_v58  ;;  %v5969_v16 = vld [vmem:[#allocation3 + $0x5a] sm:$0x1] }
 0x463   : > { %v5541_v27 = vsel %vm13252_vm11, %v8955_v14, %v5540_v43  ;;  %v9013_v23 = vpack.c.bf16 %v5969_v16, %v5969_v16  ;;  %v6361_v13 = vld [vmem:[#allocation4 + $0x74] sm:$0x1]  ;;  %v9428_v58 = vld [vmem:[%s14327_s10 + $0x30] ss:$8 sps:$4 sm:$0xff]  }
 0x464   : > { %5609 = vrot.lane.b32.xlu0 %v8965_v25, %s14792_s20  ;;  %5542 = vst [vmem:[#allocation4 + $0x84] sm:$0x1] %v5541_v27  ;;  %v5957_v27 = vld [vmem:[#allocation4 + $0x88] sm:$0x1] }
 0x465   : > { %6016 = vrot.lane.b32.xlu1 %v13497_v39, %s14792_s20  ;;  %v8979_v39 = vpack.c.bf16 %v5665_v29, %v5665_v29 }
 0x468   : > { %5613 = vrot.lane.b32.xlu0 %v8967_v53, %s14792_s20 }
 0x469   : > { %5823 = vrot.lane.b32.xlu1 %v8985_v3, %s14864_s27 }
 0x46c   : > { %5720 = vrot.lane.b32.xlu0 %v8977_v63, %s14839_s30  ;;  %v6157_v63 = vld [vmem:[#allocation4 + $0x28] sm:$0x1] }
 0x46d   : > { %6234 = vrot.lane.b32.xlu1 %v9033_v7, %s14864_s27 }
 0x470   : > { %5724 = vrot.lane.b32.xlu0 %v8979_v39, %s14839_s30 }
 0x471   : > { %6232 = vrot.lane.b32.xlu1 %v13626_v57, %s14864_s27 }
 0x474   : > { %5607 = vrot.lane.b32.xlu0 %v13626_v57, %s14792_s20  ;;  %v5382_v6 = vpop.f32.mrf.mxu0 }
 0x475   : > { %6020 = vrot.lane.b32.xlu1 %v13617_v52, %s14792_s20  ;;  %v5383_v60 = vadd.f32 %v13631_v51, %v5382_v6 }
 0x476   : > { %v5384_v4 = vpop.f32.mrf.mxu0 }
 0x477   : > { %v5389_v0 = vmax.f32 %v5383_v60, 0.0  ;;  %v5853_v4 = vld [vmem:[#allocation4 + $0xc] sm:$0x1] }
 0x478   : > { %5718 = vrot.lane.b32.xlu0 %v13617_v52, %s14839_s30  ;;  %v5385_v21 = vpop.f32.mrf.mxu0 }
 0x479   : > { %5827 = vrot.lane.b32.xlu1 %v8987_v8, %s14864_s27  ;;  %5392 = vst.msk [vmem:[#allocation3 + $0x60] sm:$0xff] %vm15192_vm8, %v5389_v0  ;;  %v5386_v49 = vadd.f32 %v13631_v51, %v5385_v21  ;;  %v5639_v8 = vld [vmem:[#allocation4 + $0x3c] sm:$0x1] }
 0x47a   : > { %v5387_v57 = vpop.f32.mrf.mxu0 }
 0x47b   : > { %v5390_v47 = vmax.f32 %v5386_v49, 0.0  ;;  %v5643_v49 = vld [vmem:[#allocation4 + $0x54] sm:$0x1] }
 0x47d   : > { %6238 = vrot.lane.b32.xlu1 %v9035_v42, %s14864_s27  ;;  %5393 = vst.msk [vmem:[#allocation3 + $0x68] sm:$0x7] %vm15193_vm2, %v5390_v47 }
 0x480   : > { %v6076_v52 = vld [vmem:[#allocation3 + $0x60] sm:$0xff] }
 0x481   : > { %6236 = vrot.lane.b32.xlu1 %v13670_v38, %s14864_s27  ;;  %v13704_v43 = vpack.c.bf16 %v6076_v52, %v6076_v52 }
 0x483   : > { %6132 = vrot.lane.b32.xlu0 %v13704_v43, %s14839_s30 }
 0x484   : > { %v6292_v18 = vld [vmem:[#allocation3 + $0x62] sm:$0xff]  ;;  %v6293_v35 = vld [vmem:[#allocation3 + $0x6a] sm:$0x1] }
 0x485   : > { %6026 = vrot.lane.b32.xlu1 %v9013_v23, %s14792_s20  ;;  %v5971_v46 = vld [vmem:[#allocation3 + $0x6a] sm:$0x1]  ;;  %v13708_v10 = vpack.c.bf16 %v6292_v18, %v6292_v18  ;;  %v9049_v14 = vpack.c.bf16 %v6293_v35, %v6293_v35  ;;  %v6184_v25 = vld [vmem:[#allocation3 + $0x61] sm:$0xff]  ;;  %v5887_v44 = vld [vmem:[#allocation3 + $0x69] sm:$0x1] }
 0x486   : > { %v9015_v48 = vpack.c.bf16 %v5971_v46, %v5971_v46  ;;  %v6077_v30 = vld [vmem:[#allocation3 + $0x68] sm:$0x1]  ;;  %v13710_v19 = vpack.c.bf16 %v6184_v25, %v6184_v25  ;;  %v9003_v45 = vpack.c.bf16 %v5887_v44, %v5887_v44  ;;  %v6261_v23 = vld [vmem:[#allocation4 + $0x10] sm:$0x1] }
 0x487   : > { %6360 = vst.msk [vmem:[#allocation4 + $0x68] sm:$0xf] %vm5515_vm6, %v13708_v10  ;;  %v6362_v3 = vsel %vm13252_vm11, %v9049_v14, %v6361_v13  ;;  %5829 = vrot.lane.b32.xlu0 %v13653_v54, %s14864_s27  ;;  %v6121_v53 = vpop.permute.xlu0 %6120  ;;  %v9025_v28 = vpack.c.bf16 %v6077_v30, %v6077_v30 }
 0x488   : > { %6363 = vst [vmem:[#allocation4 + $0x74] sm:$0x1] %v6362_v3  ;;  %5956 = vst.msk [vmem:[#allocation4 + $0x7c] sm:$0xf] %vm5515_vm6, %v13710_v19  ;;  %v5958_v7 = vsel %vm13252_vm11, %v9003_v45, %v5957_v27 }
 0x489   : > { %6030 = vrot.lane.b32.xlu1 %v9015_v48, %s14792_s20  ;;  %5959 = vst [vmem:[#allocation4 + $0x88] sm:$0x1] %v5958_v7 }
 0x48b   : > { %5611 = vrot.lane.b32.xlu0 %v13670_v38, %s14792_s20  ;;  %v5818_v39 = vpop.permute.xlu0 %5817 }
 0x48c   : > { %v6123_v29 = vpop.permute.xlu1 %6122  ;;  %5856 = vst.msk [vmem:[#allocation4 + $0x18] sm:$0xf] %vm5849_vm14, %v5818_v39  ;;  %v5857_v39 = vld [vmem:[#allocation4 + $0x24] sm:$0x1] }
 0x48d   : > { %6134 = vrot.lane.b32.xlu1 %v9025_v28, %s14839_s30  ;;  %v6158_v54 = vsel %vm13435_vm0, %v6123_v29, %v6157_v63  ;;  %v6365_v29 = vld [vmem:[#allocation4 + $0x8c] sm:$0x1] }
 0x48e   : > { %6159 = vst [vmem:[#allocation4 + $0x28] sm:$0x1] %v6158_v54 }
 0x48f   : > { %5722 = vrot.lane.b32.xlu0 %v13658_v62, %s14839_s30  ;;  %v5602_v6 = vpop.permute.xlu0 %5601 }
 0x490   : > { %v6009_v41 = vpop.permute.xlu1 %6008  ;;  %v5640_v38 = vsel %vm13391_vm3, %v5602_v6, %v5639_v8 }
 0x491   : > { %6044 = vst.msk [vmem:[#allocation4 + $0x4] sm:$0xf] %vm5627_vm5, %v6009_v41  ;;  %5641 = vst [vmem:[#allocation4 + $0x3c] sm:$0x1] %v5640_v38 }
 0x492   : > { %6152 = vst.msk [vmem:[#allocation4 + $0x4] sm:$0xf] %vm5738_vm7, %v13647_v61 }
 0x493   : > { %v5606_v57 = vpop.permute.xlu0 %5605 }
 0x494   : > { %v5816_v60 = vpop.permute.xlu1 %5815  ;;  %v5443_v0 = vpop.f32.mrf.mxu1  ;;  %v5644_v61 = vsel %vm13391_vm3, %v5606_v57, %v5643_v49 }
 0x495   : > { %v5854_v42 = vsel %vm13737_vm9, %v5816_v60, %v5853_v4  ;;  %v5444_v21 = vadd.f32 %v13631_v51, %v5443_v0  ;;  %5645 = vst [vmem:[#allocation4 + $0x54] sm:$0x1] %v5644_v61  ;;  %v6265_v57 = vld [vmem:[#allocation4 + $0x28] sm:$0x1] }
 0x496   : > { %5855 = vst [vmem:[#allocation4 + $0xc] sm:$0x1] %v5854_v42  ;;  %v5445_v47 = vpop.f32.mrf.mxu1 }
 0x497   : > { %v5450_v16 = vmax.f32 %v5444_v21, 0.0  ;;  %v5713_v14 = vpop.permute.xlu0 %5712 }
 0x498   : > { %v6227_v52 = vpop.permute.xlu1 %6226  ;;  %v5446_v13 = vpop.f32.mrf.mxu1  ;;  %v5750_v46 = vld [vmem:[#allocation4 + $0x3c] sm:$0x1] }
 0x499   : > { %5453 = vst.msk [vmem:[#allocation3 + $0x70] sm:$0xff] %vm15196_vm13, %v5450_v16  ;;  %v6262_v18 = vsel %vm13737_vm9, %v6227_v52, %v6261_v23  ;;  %v5447_v35 = vadd.f32 %v13631_v51, %v5446_v13  ;;  %v5751_v48 = vsel %vm13435_vm0, %v5713_v14, %v5750_v46  ;;  %v5774_v16 = vld [vmem:[#allocation3 + $0x58] sm:$0x1]  ;;  %v6185_v23 = vld [vmem:[#allocation3 + $0x69] sm:$0x1] }
 0x49a   : > { %6263 = vst [vmem:[#allocation4 + $0x10] sm:$0x1] %v6262_v18  ;;  %v5448_v25 = vpop.f32.mrf.mxu1  ;;  %5752 = vst [vmem:[#allocation4 + $0x3c] sm:$0x1] %v5751_v48  ;;  %v6053_v13 = vld [vmem:[#allocation4 + $0x40] sm:$0x1]  ;;  %v9037_v46 = vpack.c.bf16 %v6185_v23, %v6185_v23 }
 0x49b   : > { %v5451_v30 = vmax.f32 %v5447_v35, 0.0  ;;  %v5717_v44 = vpop.permute.xlu0 %5716  ;;  %v9408_v52 = vld [vmem:[#allocation4 + $0x20] ss:$12 sps:$4 sm:$0x1f]  }
 0x49c   : > { %v6225_v27 = vpop.permute.xlu1 %6224  ;;  %v5754_v3 = vld [vmem:[#allocation4 + $0x54] sm:$0x1] }
 0x49d   : > { %5454 = vst.msk [vmem:[#allocation3 + $0x78] sm:$0x7] %vm15197_vm15, %v5451_v30  ;;  %v5755_v45 = vsel %vm13435_vm0, %v5717_v44, %v5754_v3  ;;  %v9405_v21 = vld [vmem:[#allocation4] ss:$12 sps:$4 sm:$0x1f]  }
 0x49e   : > { %6260 = vst.msk [vmem:[#allocation4 + $0x4] sm:$0xf] %vm5849_vm14, %v6225_v27  ;;  %5756 = vst [vmem:[#allocation4 + $0x54] sm:$0x1] %v5755_v45  ;;  %v13800_v27 = vld [vmem:[%s14325_s8 + $0x88] sm:$0xff]  }
 0x49f   : > { %v5600_v7 = vpop.permute.xlu0 %5599  ;;  %v5776_v44 = vld [vmem:[#allocation3 + $0x68] sm:$0x1]  ;;  %v6057_v3 = vld [vmem:[#allocation4 + $0x58] sm:$0x1] }
 0x4a0   : > { %v6013_v51 = vpop.permute.xlu1 %6012  ;;  %v6078_v28 = vld [vmem:[#allocation3 + $0x70] sm:$0xff]  ;;  %5638 = vst.msk [vmem:[#allocation4 + $0x30] sm:$0xf] %vm5627_vm5, %v5600_v7  ;;  %v8991_v7 = vpack.c.bf16 %v5776_v44, %v5776_v44 }
 0x4a1   : > { %6048 = vst.msk [vmem:[#allocation4 + $0x1c] sm:$0xf] %vm5627_vm5, %v6013_v51  ;;  %v9026_v63 = vpack.c.bf16 %v6078_v28, %v6078_v28  ;;  %v13816_v28 = vld [vmem:[%s14325_s8 + $0x80] sm:$0xff]  }
 0x4a2   : > { %6156 = vst.msk [vmem:[#allocation4 + $0x1c] sm:$0xf] %vm5738_vm7, %v6121_v53 }
 0x4a3   : > { %6136 = vrot.lane.b32.xlu0 %v9026_v63, %s14839_s30  ;;  %v5711_v0 = vpop.permute.xlu0 %5710 }
 0x4a4   : > { %v6294_v54 = vld [vmem:[#allocation3 + $0x72] sm:$0xff]  ;;  %v6295_v41 = vld [vmem:[#allocation3 + $0x7a] sm:$0x1]  ;;  %v5820_v8 = vpop.permute.xlu1 %5819  ;;  %5749 = vst.msk [vmem:[#allocation4 + $0x30] sm:$0xf] %vm5738_vm7, %v5711_v0 }
 0x4a5   : > { %v6079_v6 = vld [vmem:[#allocation3 + $0x78] sm:$0x1]  ;;  %v9050_v38 = vpack.c.bf16 %v6294_v54, %v6294_v54  ;;  %v9051_v60 = vpack.c.bf16 %v6295_v41, %v6295_v41  ;;  %v5858_v4 = vsel %vm13737_vm9, %v5820_v8, %v5857_v39  ;;  %v9407_v53 = vld [vmem:[#allocation4 + $0x4] ss:$12 sps:$4 sm:$0x1f]  }
 0x4a6   : > { %v9027_v42 = vpack.c.bf16 %v6079_v6, %v6079_v6  ;;  %5859 = vst [vmem:[#allocation4 + $0x24] sm:$0x1] %v5858_v4  ;;  %6573 = vmatprep.mubr.bf16.mxu0 %v9407_v53  ;;  %v6187_v63 = vld [vmem:[#allocation3 + $0x79] sm:$0x1]  ;;  %v6186_v6 = vld [vmem:[#allocation3 + $0x71] sm:$0xff] }
 0x4a7   : > { %6364 = vst.msk [vmem:[#allocation4 + $0x80] sm:$0xf] %vm5515_vm6, %v9050_v38  ;;  %v6366_v49 = vsel %vm13252_vm11, %v9051_v60, %v6365_v29  ;;  %5833 = vrot.lane.b32.xlu0 %v13704_v43, %s14864_s27  ;;  %6574 = vmatmul.mubr.bf16.vlgmr.msra.gmra.mxu0 %v9405_v21  ;;  %v8989_v43 = vpack.c.bf16 %v5774_v16, %v5774_v16  ;;  %vm15198_vm11 = vmmov %vm15180_vm1  ;;  %v5861_v4 = vld [vmem:[#allocation4 + $0x3c] sm:$0x1]  ;;  %v5651_v0 = vld [vmem:[#allocation4 + $0x84] sm:$0x1] }
 0x4a8   : > { %6138 = vrot.lane.b32.xlu1 %v9027_v42, %s14839_s30  ;;  %6367 = vst [vmem:[#allocation4 + $0x8c] sm:$0x1] %v6366_v49  ;;  %v6231_v61 = vpop.permute.xlu1 %6230  ;;  %9242 = vmatpush3.bf16.msra.mxu0 %v13375_v5  ;;  %vm15199_vm6 = vmmov %vm15180_vm1  ;;  %v9039_v8 = vpack.c.bf16 %v6187_v63, %v6187_v63  ;;  %v9038_v38 = vpack.c.bf16 %v6186_v6, %v6186_v6  ;;  %v9587_v63 = vld [vmem:[%s14325_s8 + $0x38] sm:$0xff]  }
 0x4a9   : > { %v6266_v47 = vsel %vm13737_vm9, %v6231_v61, %v6265_v57  ;;  %9245 = vmatprep.mubr.msk.bf16.mxu0 %vm9673_vm4, %v9672_v36  ;;  %9243 = vmatprep.subr.bf16.mxu0 %v9672_v36 }
 0x4aa   : > { %6267 = vst [vmem:[#allocation4 + $0x28] sm:$0x1] %v6266_v47 }
 0x4ac   : > { %6024 = vrot.lane.b32.xlu1 %v13658_v62, %s14792_s20  ;;  %v6229_v17 = vpop.permute.xlu1 %6228  ;;  %9244 = vmatpush3.bf16.msra.mxu0 %v13383_v56 }
 0x4ad   : > { %6264 = vst.msk [vmem:[#allocation4 + $0x1c] sm:$0xf] %vm5849_vm14, %v6229_v17  ;;  %9102 = vmatprep.subr.bf16.mxu0 %v13445_v11  ;;  %v9409_v14 = vld [vmem:[#allocation4 + $0x18] ss:$12 sps:$4 sm:$0x1f]  }
 0x4ae   : > { %v13780_v5 = vpop.f32.mrf.mxu1 }
 0x4af   : > { %9246 = vmatmul.mubr.msk.bf16.vlgmr.msra.gmra.mxu0 %vm15198_vm11, %v9408_v52 }
 0x4b0   : > { %5831 = vrot.lane.b32.xlu1 %v8989_v43, %s14864_s27  ;;  %v6019_v18 = vpop.permute.xlu1 %6018  ;;  %v9239_v35 = vpop.f32.mrf.mxu1  ;;  %9103 = vmatpush3.bf16.msra.mxu0 %v13452_v24 }
 0x4b1   : > { %v6054_v62 = vsel %vm13391_vm3, %v6019_v18, %v6053_v13  ;;  %9104 = vmatprep.subr.bf16.mxu0 %v13464_v50 }
 0x4b2   : > { %6055 = vst [vmem:[#allocation4 + $0x40] sm:$0x1] %v6054_v62  ;;  %v13788_v56 = vpop.f32.mrf.mxu1  ;;  %v5865_v62 = vld [vmem:[#allocation4 + $0x54] sm:$0x1] }
 0x4b4   : > { %6242 = vrot.lane.b32.xlu1 %v9037_v46, %s14864_s27  ;;  %v9240_v48 = vpop.f32.mrf.mxu1  ;;  %v9411_v25 = vld [vmem:[#allocation4 + $0x1c] ss:$12 sps:$4 sm:$0x1f]   ;;  %9105 = vmatpush3.bf16.msra.mxu0 %v13469_v31 }
 0x4b5   : > { %6684 = vmatprep.mubr.bf16.mxu1 %v9411_v25  ;;  %9106 = vmatprep.subr.bf16.mxu0 %v13480_v2 }
 0x4b6   : > { %6685 = vmatmul.mubr.bf16.vlgmr.msra.gmra.mxu1 %v9409_v14 }
 0x4b7   : > { %9250 = vmatpush3.bf16.msra.mxu1 %v13800_v27  ;;  %9253 = vmatprep.mubr.msk.bf16.mxu1 %vm9673_vm4, %v9672_v36 }
 0x4b8   : > { %6240 = vrot.lane.b32.xlu1 %v13710_v19, %s14864_s27  ;;  %v13794_v30 = vpop.permute.xlu0 %6124  ;;  %9251 = vmatprep.subr.bf16.mxu1 %v9672_v36 }
 0x4b9   : > { %9107 = vmatpush3.bf16.msra.mxu0 %v13485_v33  ;;  %v6161_v29 = vld [vmem:[#allocation4 + $0x40] sm:$0x1] }
 0x4ba   : > { %9108 = vmatprep.subr.bf16.mxu0 %v13511_v15 }
 0x4bb   : > { %9252 = vmatpush3.bf16.msra.mxu1 %v13816_v28 }
 0x4bc   : > { %6028 = vrot.lane.b32.xlu1 %v13708_v10, %s14792_s20  ;;  %v5822_v45 = vpop.permute.xlu0 %5821  ;;  %v9412_v10 = vld [vmem:[#allocation4 + $0x38] ss:$12 sps:$4 sm:$0x1f]   ;;  %9127 = vmatprep.subr.bf16.mxu1 %v13445_v11  ;;  %s8245_s20 = scalar_lea.sflag [#allocation7], %s557_s17 }
 0x4bd   : > { %v6023_v19 = vpop.permute.xlu1 %6022  ;;  %5860 = vst.msk [vmem:[#allocation4 + $0x30] sm:$0xf] %vm5849_vm14, %v5822_v45  ;;  %9109 = vmatpush3.bf16.msra.mxu0 %v13516_v20  ;;  %v9586_v45 = vld [vmem:[%s14325_s8 + $0x78] sm:$0xff]  }
 0x4be   : > { %v6058_v51 = vsel %vm13391_vm3, %v6023_v19, %v6057_v3  ;;  %9110 = vmatprep.subr.bf16.mxu0 %v13522_v59  ;;  %9254 = vmatmul.mubr.msk.bf16.vlgmr.msra.gmra.mxu1 %vm15199_vm6, %v9412_v10  ;;  %v9416_v3 = vld [vmem:[#allocation4 + $0x50] ss:$12 sps:$4 sm:$0x1f]  }
 0x4bf   : > { %6059 = vst [vmem:[#allocation4 + $0x58] sm:$0x1] %v6058_v51  ;;  %9128 = vmatpush3.bf16.msra.mxu1 %v13452_v24  ;;  %v6061_v51 = vld [vmem:[#allocation4 + $0x70] sm:$0x1] }
 0x4c0   : > { %5835 = vrot.lane.b32.xlu1 %v8991_v7, %s14864_s27  ;;  %v5604_v54 = vpop.permute.xlu0 %5603  ;;  %9129 = vmatprep.subr.bf16.mxu1 %v13464_v50 }
 0x4c1   : > { %v6127_v39 = vpop.permute.xlu1 %6126  ;;  %5642 = vst.msk [vmem:[#allocation4 + $0x48] sm:$0xf] %vm5627_vm5, %v5604_v54  ;;  %9111 = vmatpush3.bf16.msra.mxu0 %v13533_v55 }
 0x4c2   : > { %v6162_v41 = vsel %vm13435_vm0, %v6127_v39, %v6161_v29  ;;  %9112 = vmatprep.subr.bf16.mxu0 %v13546_v9  ;;  %v9588_v39 = vld [vmem:[%s14325_s8 + $0x70] sm:$0xff]  }
 0x4c3   : > { %6163 = vst [vmem:[#allocation4 + $0x40] sm:$0x1] %v6162_v41  ;;  %9130 = vmatpush3.bf16.msra.mxu1 %v13469_v31 }
 0x4c4   : > { %6246 = vrot.lane.b32.xlu1 %v9039_v8, %s14864_s27  ;;  %v5715_v11 = vpop.permute.xlu0 %5714  ;;  %9131 = vmatprep.subr.bf16.mxu1 %v13480_v2  ;;  %v9589_v8 = vld [vmem:[%s14325_s8 + $0x30] sm:$0xff]  }
 0x4c5   : > { %5753 = vst.msk [vmem:[#allocation4 + $0x48] sm:$0xf] %vm5738_vm7, %v5715_v11  ;;  %9113 = vmatpush3.bf16.msra.mxu0 %v13552_v12  ;;  %v6065_v11 = vld [vmem:[#allocation4 + $0x88] sm:$0x1] }
 0x4c6   : > { %9114 = vmatprep.subr.bf16.mxu0 %v13562_v40  ;;  %v6165_v50 = vld [vmem:[#allocation4 + $0x58] sm:$0x1] }
 0x4c7   : > { %9132 = vmatpush3.bf16.msra.mxu1 %v13485_v33 }
 0x4c8   : > { %6244 = vrot.lane.b32.xlu1 %v9038_v38, %s14864_s27  ;;  %9133 = vmatprep.subr.bf16.mxu1 %v13511_v15  ;;  %s9602_s27 = scalar_lea.vmem %s14278_s2, 16 }
 0x4c9   : > { %9115 = vmatpush3.bf16.msra.mxu0 %v13568_v22  ;;  %p9603_p11 = scmp.ne.s32.totalorder %s14278_s2, %s9602_s27  ;;  %p9610_p1 = scmp.lt.s32.totalorder %s9608_s1, %s9602_s27 }
 0x4ca   : > { %9116 = vmatprep.subr.bf16.mxu0 %v13578_v1 }
 0x4cb   : > { %9134 = vmatpush3.bf16.msra.mxu1 %v13516_v20  ;;  %v5647_v20 = vld [vmem:[#allocation4 + $0x6c] sm:$0x1]  ;;  %p9604_p12 = pnand %p9603_p11, %p9799_p5  ;;  %p9611_p2 = por %p9610_p1, %p9609_p0 }
 0x4cc   : > { %9135 = vmatprep.subr.bf16.mxu1 %v13522_v59 }
 0x4cd   : > { %9117 = vmatpush3.bf16.msra.mxu0 %v13584_v26  ;;  %p9605_p13 = pneg %p9604_p12 }
 0x4ce   : > { %v6129_v24 = vpop.permute.xlu0 %6128  ;;  %9257 = vmatprep.subr.bf16.mxu0 %v9672_v36 }
 0x4cf   : > { %9136 = vmatpush3.bf16.msra.mxu1 %v13533_v55  ;;  %p9612_p3 = pnand %p9611_p2, %p9605_p13 }
 0x4d0   : > { %9137 = vmatprep.subr.bf16.mxu1 %v13546_v9 }
 0x4d2   : > { %v5826_v2 = vpop.permute.xlu0 %5825 }
 0x4d3   : > { %v6131_v31 = vpop.permute.xlu1 %6130  ;;  %5864 = vst.msk [vmem:[#allocation4 + $0x48] sm:$0xf] %vm5849_vm14, %v5826_v2  ;;  %9138 = vmatpush3.bf16.msra.mxu1 %v13552_v12  ;;  %v6269_v12 = vld [vmem:[#allocation4 + $0x40] sm:$0x1] }
 0x4d4   : > { %v6166_v33 = vsel %vm13435_vm0, %v6131_v31, %v6165_v50  ;;  %9139 = vmatprep.subr.bf16.mxu1 %v13562_v40 }
 0x4d5   : > { %6167 = vst [vmem:[#allocation4 + $0x58] sm:$0x1] %v6166_v33 }
 0x4d6   : > { %v5610_v60 = vpop.permute.xlu0 %5609 }
 0x4d7   : > { %v6017_v15 = vpop.permute.xlu1 %6016  ;;  %v5648_v59 = vsel %vm13391_vm3, %v5610_v60, %v5647_v20  ;;  %9140 = vmatpush3.bf16.msra.mxu1 %v13568_v22  ;;  %v9592_v20 = vld [vmem:[%s14325_s8 + $0x60] sm:$0xff]  }
 0x4d8   : > { %6052 = vst.msk [vmem:[#allocation4 + $0x34] sm:$0xf] %vm5627_vm5, %v6017_v15  ;;  %5649 = vst [vmem:[#allocation4 + $0x6c] sm:$0x1] %v5648_v59  ;;  %9141 = vmatprep.subr.bf16.mxu1 %v13578_v1 }
 0x4d9   : > { %6160 = vst.msk [vmem:[#allocation4 + $0x34] sm:$0xf] %vm5738_vm7, %v13794_v30  ;;  %v9420_v59 = vld [vmem:[#allocation4 + $0x68] ss:$12 sps:$4 sm:$0x1f]  }
 0x4da   : > { %v5614_v9 = vpop.permute.xlu0 %5613 }
 0x4db   : > { %v5824_v55 = vpop.permute.xlu1 %5823  ;;  %v5652_v21 = vsel %vm13391_vm3, %v5614_v9, %v5651_v0  ;;  %9142 = vmatpush3.bf16.msra.mxu1 %v13584_v26  ;;  %v9595_v0 = vld [vmem:[%s14325_s8 + $0x18] sm:$0xff]   ;;  %v9596_v9 = vld [vmem:[%s14325_s8 + $0x50] sm:$0xff]  }
 0x4dc   : > { %v5862_v42 = vsel %vm13737_vm9, %v5824_v55, %v5861_v4  ;;  %5653 = vst [vmem:[#allocation4 + $0x84] sm:$0x1] %v5652_v21  ;;  %9265 = vmatprep.subr.bf16.mxu1 %v9672_v36  ;;  %v6273_v25 = vld [vmem:[#allocation4 + $0x58] sm:$0x1]  ;;  %v9593_v55 = vld [vmem:[%s14325_s8 + $0x20] sm:$0xff]  }
 0x4dd   : > { %5863 = vst [vmem:[#allocation4 + $0x3c] sm:$0x1] %v5862_v42  ;;  %v9594_v4 = vld [vmem:[%s14325_s8 + $0x58] sm:$0xff]   ;;  %v9597_v42 = vld [vmem:[%s14325_s8 + $0x10] sm:$0xff]  }
 0x4de   : > { %v5721_v49 = vpop.permute.xlu0 %5720 }
 0x4df   : > { %v6235_v53 = vpop.permute.xlu1 %6234  ;;  %v5758_v61 = vld [vmem:[#allocation4 + $0x6c] sm:$0x1] }
 0x4e0   : > { %v6270_v57 = vsel %vm13737_vm9, %v6235_v53, %v6269_v12  ;;  %v5759_v47 = vsel %vm13435_vm0, %v5721_v49, %v5758_v61 }
 0x4e1   : > { %6271 = vst [vmem:[#allocation4 + $0x40] sm:$0x1] %v6270_v57  ;;  %5760 = vst [vmem:[#allocation4 + $0x6c] sm:$0x1] %v5759_v47  ;;  %v9601_v47 = vld [vmem:[%s14325_s8] sm:$0xff]  }
 0x4e2   : > { %v5725_v17 = vpop.permute.xlu0 %5724 }
 0x4e3   : > { %v6233_v16 = vpop.permute.xlu1 %6232  ;;  %v5762_v43 = vld [vmem:[#allocation4 + $0x84] sm:$0x1] }
 0x4e4   : > { %6268 = vst.msk [vmem:[#allocation4 + $0x34] sm:$0xf] %vm5849_vm14, %v6233_v16  ;;  %v5763_v23 = vsel %vm13435_vm0, %v5725_v17, %v5762_v43  ;;  %v9413_v46 = vld [vmem:[#allocation4 + $0x30] ss:$12 sps:$4 sm:$0x1f]  }
 0x4e5   : > { %5764 = vst [vmem:[#allocation4 + $0x84] sm:$0x1] %v5763_v23 }
 0x4e6   : > { %v5608_v13 = vpop.permute.xlu0 %5607 }
 0x4e7   : > { %v6021_v52 = vpop.permute.xlu1 %6020  ;;  %5646 = vst.msk [vmem:[#allocation4 + $0x60] sm:$0xf] %vm5627_vm5, %v5608_v13 }
 0x4e8   : > { %6056 = vst.msk [vmem:[#allocation4 + $0x4c] sm:$0xf] %vm5627_vm5, %v6021_v52  ;;  %v5869_v61 = vld [vmem:[#allocation4 + $0x6c] sm:$0x1] }
 0x4e9   : > { %6164 = vst.msk [vmem:[#allocation4 + $0x4c] sm:$0xf] %vm5738_vm7, %v6129_v24  ;;  %v9590_v24 = vld [vmem:[%s14325_s8 + $0x68] sm:$0xff]  }
 0x4ea   : > { %v5719_v35 = vpop.permute.xlu0 %5718 }
 0x4eb   : > { %v5828_v18 = vpop.permute.xlu1 %5827  ;;  %5757 = vst.msk [vmem:[#allocation4 + $0x60] sm:$0xf] %vm5738_vm7, %v5719_v35  ;;  %v9415_v48 = vld [vmem:[#allocation4 + $0x34] ss:$12 sps:$4 sm:$0x1f]  }
 0x4ec   : > { %v5866_v14 = vsel %vm13737_vm9, %v5828_v18, %v5865_v62  ;;  %6794 = vmatprep.mubr.bf16.mxu0 %v9415_v48  ;;  %v5873_v62 = vld [vmem:[#allocation4 + $0x84] sm:$0x1] }
 0x4ed   : > { %5867 = vst [vmem:[#allocation4 + $0x54] sm:$0x1] %v5866_v14  ;;  %6795 = vmatmul.mubr.bf16.vlgmr.msra.gmra.mxu0 %v9413_v46 }
 0x4ee   : > { %9258 = vmatpush3.bf16.msra.mxu0 %v13800_v27  ;;  %9261 = vmatprep.mubr.msk.bf16.mxu0 %vm9673_vm4, %v9672_v36 }
 0x4ef   : > { %v6239_v30 = vpop.permute.xlu1 %6238  ;;  %9259 = vmatprep.subr.bf16.mxu0 %v9672_v36 }
 0x4f0   : > { %v6274_v44 = vsel %vm13737_vm9, %v6239_v30, %v6273_v25 }
 0x4f1   : > { %6275 = vst [vmem:[#allocation4 + $0x58] sm:$0x1] %v6274_v44 }
 0x4f2   : > { %9260 = vmatpush3.bf16.msra.mxu0 %v13816_v28 }
 0x4f3   : > { %v6237_v19 = vpop.permute.xlu1 %6236  ;;  %9152 = vmatprep.subr.bf16.mxu0 %v9586_v45 }
 0x4f4   : > { %6272 = vst.msk [vmem:[#allocation4 + $0x4c] sm:$0xf] %vm5849_vm14, %v6237_v19  ;;  %v9417_v54 = vld [vmem:[#allocation4 + $0x48] ss:$12 sps:$4 sm:$0x1f]  }
 0x4f5   : > { %9262 = vmatmul.mubr.msk.bf16.vlgmr.msra.gmra.mxu0 %vm15180_vm1, %v9416_v3  ;;  %v13896_v29 = vpop.permute.xlu0 %6132  ;;  %v9424_v19 = vld [vmem:[#allocation4 + $0x80] ss:$12 sps:$4 sm:$0x1f]   ;;  %v9430_v3 = vld [vmem:[%s14327_s10 + $0x34] ss:$8 sps:$4 sm:$0xff]  }
 0x4f6   : > { %9153 = vmatpush3.bf16.msra.mxu0 %v9587_v63 }
 0x4f7   : > { %v6027_v7 = vpop.permute.xlu1 %6026  ;;  %9154 = vmatprep.subr.bf16.mxu0 %v9588_v39 }
 0x4f8   : > { %v6062_v10 = vsel %vm13391_vm3, %v6027_v7, %v6061_v51  ;;  %v9434_v7 = vld [vmem:[%s14327_s10 + $0x70] ss:$8 sps:$4 sm:$0xff]  }
 0x4f9   : > { %6063 = vst [vmem:[#allocation4 + $0x70] sm:$0x1] %v6062_v10  ;;  %v5830_v38 = vpop.permute.xlu0 %5829 }
 0x4fa   : > { %9155 = vmatpush3.bf16.msra.mxu0 %v9589_v8  ;;  %5868 = vst.msk [vmem:[#allocation4 + $0x60] sm:$0xf] %vm5849_vm14, %v5830_v38  ;;  %v9451_v38 = vld [vmem:[%s14327_s10 + $0xb4] ss:$8 sps:$4 sm:$0xff]  }
 0x4fb   : > { %v9419_v41 = vld [vmem:[#allocation4 + $0x4c] ss:$12 sps:$4 sm:$0x1f]   ;;  %v6031_v6 = vpop.permute.xlu1 %6030  ;;  %9156 = vmatprep.subr.bf16.mxu0 %v9590_v24 }
 0x4fc   : > { %v6066_v50 = vsel %vm13391_vm3, %v6031_v6, %v6065_v11  ;;  %6904 = vmatprep.mubr.bf16.mxu1 %v9419_v41  ;;  %vm15200_vm3 = vmmov %vm15180_vm1  ;;  %v9445_v41 = vld [vmem:[%s14327_s10 + $0x4] ss:$8 sps:$4 sm:$0xff]   ;;  %v9448_v6 = vld [vmem:[%s14327_s10 + $0x54] ss:$8 sps:$4 sm:$0xff]  }
 0x4fd   : > { %6067 = vst [vmem:[#allocation4 + $0x88] sm:$0x1] %v6066_v50  ;;  %6905 = vmatmul.mubr.bf16.vlgmr.msra.gmra.mxu1 %v9417_v54  ;;  %v5612_v33 = vpop.permute.xlu0 %5611  ;;  %v9440_v54 = vld [vmem:[%s14327_s10 + $0x60] ss:$8 sps:$4 sm:$0xff]   ;;  %v9446_v11 = vld [vmem:[%s14327_s10 + $0x50] ss:$8 sps:$4 sm:$0xff]  }
 0x4fe   : > { %9266 = vmatpush3.bf16.msra.mxu1 %v13800_v27  ;;  %9269 = vmatprep.mubr.msk.bf16.mxu1 %vm9673_vm4, %v9672_v36  ;;  %5650 = vst.msk [vmem:[#allocation4 + $0x78] sm:$0xf] %vm5627_vm5, %v5612_v33  ;;  %v9452_v50 = vld [vmem:[%s14327_s10 + $0x40] ss:$8 sps:$4 sm:$0xff]  }
 0x4ff   : > { %v6135_v2 = vpop.permute.xlu1 %6134  ;;  %9267 = vmatprep.subr.bf16.mxu1 %v9672_v36  ;;  %9157 = vmatpush3.bf16.msra.mxu0 %v9591_v34 }
 0x500   : > { %v6169_v31 = vld [vmem:[#allocation4 + $0x70] sm:$0x1]  ;;  %9158 = vmatprep.subr.bf16.mxu0 %v9592_v20 }
 0x501   : > { %v6170_v15 = vsel %vm13435_vm0, %v6135_v2, %v6169_v31  ;;  %v5723_v60 = vpop.permute.xlu0 %5722  ;;  %v14038_v2 = vld [vmem:[%s14326_s9] ss:$0 sm:$0xff] }
 0x502   : > { %6171 = vst [vmem:[#allocation4 + $0x70] sm:$0x1] %v6170_v15  ;;  %9268 = vmatpush3.bf16.msra.mxu1 %v13816_v28  ;;  %5761 = vst.msk [vmem:[#allocation4 + $0x78] sm:$0xf] %vm5738_vm7, %v5723_v60 }
 0x503   : > { %9159 = vmatpush3.bf16.msra.mxu0 %v9593_v55  ;;  %9177 = vmatprep.subr.bf16.mxu1 %v9586_v45  ;;  %v9436_v45 = vld [vmem:[%s14327_s10 + $0x74] ss:$8 sps:$4 sm:$0xff]  }
 0x504   : > { %9160 = vmatprep.subr.bf16.mxu0 %v9594_v4  ;;  %v6173_v12 = vld [vmem:[#allocation4 + $0x88] sm:$0x1] }
 0x505   : > { %9270 = vmatmul.mubr.msk.bf16.vlgmr.msra.gmra.mxu1 %vm15200_vm3, %v9420_v59 }
 0x506   : > { %9178 = vmatpush3.bf16.msra.mxu1 %v9587_v63  ;;  %v9439_v63 = vld [vmem:[%s14327_s10 + $0x14] ss:$8 sps:$4 sm:$0xff]  }
 0x507   : > { %9161 = vmatpush3.bf16.msra.mxu0 %v9595_v0  ;;  %9179 = vmatprep.subr.bf16.mxu1 %v9588_v39  ;;  %v9442_v39 = vld [vmem:[%s14327_s10 + $0x64] ss:$8 sps:$4 sm:$0xff]  }
 0x508   : > { %9162 = vmatprep.subr.bf16.mxu0 %v9596_v9 }
 0x509   : > { %v6277_v17 = vld [vmem:[#allocation4 + $0x70] sm:$0x1] }
 0x50a   : > { %9180 = vmatpush3.bf16.msra.mxu1 %v9589_v8  ;;  %v9443_v8 = vld [vmem:[%s14327_s10] ss:$8 sps:$4 sm:$0xff]  }
 0x50b   : > { %9163 = vmatpush3.bf16.msra.mxu0 %v9597_v42  ;;  %9181 = vmatprep.subr.bf16.mxu1 %v9590_v24  ;;  %v9454_v24 = vld [vmem:[%s14327_s10 + $0x44] ss:$8 sps:$4 sm:$0xff]  }
 0x50c   : > { %9164 = vmatprep.subr.bf16.mxu0 %v13562_v40 }
 0x50e   : > { %9182 = vmatpush3.bf16.msra.mxu1 %v9591_v34 }
 0x50f   : > { %9165 = vmatpush3.bf16.msra.mxu0 %v13568_v22  ;;  %9183 = vmatprep.subr.bf16.mxu1 %v9592_v20  ;;  %v9598_v22 = vld [vmem:[%s14325_s8 + $0x48] sm:$0xff]  }
 0x510   : > { %9166 = vmatprep.subr.bf16.mxu0 %v13578_v1 }
 0x512   : > { %9184 = vmatpush3.bf16.msra.mxu1 %v9593_v55 }
 0x513   : > { %9167 = vmatpush3.bf16.msra.mxu0 %v13584_v26  ;;  %9185 = vmatprep.subr.bf16.mxu1 %v9594_v4  ;;  %v9599_v26 = vld [vmem:[%s14325_s8 + $0x8] sm:$0xff]  }
 0x514   : > { %9273 = vmatprep.subr.bf16.mxu0 %v9672_v36 }
 0x515   : > { %v6137_v21 = vpop.permute.xlu0 %6136 }
 0x516   : > { %9186 = vmatpush3.bf16.msra.mxu1 %v9595_v0 }
 0x517   : > { %9187 = vmatprep.subr.bf16.mxu1 %v9596_v9 }
 0x519   : > { %v5834_v49 = vpop.permute.xlu0 %5833 }
 0x51a   : > { %v6139_v53 = vpop.permute.xlu1 %6138  ;;  %9188 = vmatpush3.bf16.msra.mxu1 %v9597_v42  ;;  %5872 = vst.msk [vmem:[#allocation4 + $0x78] sm:$0xf] %vm5849_vm14, %v5834_v49 }
 0x51b   : > { %v6174_v40 = vsel %vm13435_vm0, %v6139_v53, %v6173_v12  ;;  %9189 = vmatprep.subr.bf16.mxu1 %v9598_v22  ;;  %vm15201_vm0 = vmmov %vm15180_vm1 }
 0x51c   : > { %6175 = vst [vmem:[#allocation4 + $0x88] sm:$0x1] %v6174_v40 }
 0x51e   : > { %v6025_v1 = vpop.permute.xlu1 %6024  ;;  %9190 = vmatpush3.bf16.msra.mxu1 %v9599_v26 }
 0x51f   : > { %6060 = vst.msk [vmem:[#allocation4 + $0x64] sm:$0xf] %vm5627_vm5, %v6025_v1  ;;  %9191 = vmatprep.subr.bf16.mxu1 %v9600_v32 }
 0x520   : > { %6168 = vst.msk [vmem:[#allocation4 + $0x64] sm:$0xf] %vm5738_vm7, %v13896_v29  ;;  %v9437_v29 = vld [vmem:[%s14327_s10 + $0x10] ss:$8 sps:$4 sm:$0xff]  }
 0x522   : > { %v5832_v57 = vpop.permute.xlu1 %5831  ;;  %9192 = vmatpush3.bf16.msra.mxu1 %v9601_v47 }
 0x523   : > { %v5870_v16 = vsel %vm13737_vm9, %v5832_v57, %v5869_v61  ;;  %v6281_v48 = vld [vmem:[#allocation4 + $0x88] sm:$0x1]  ;;  %7390 = vmatprep.subr.bf16.mxu1 %v9436_v45 }
 0x524   : > { %5871 = vst [vmem:[#allocation4 + $0x6c] sm:$0x1] %v5870_v16 }
 0x526   : > { %v6243_v43 = vpop.permute.xlu1 %6242 }
 0x527   : > { %v6278_v23 = vsel %vm13737_vm9, %v6243_v43, %v6277_v17 }
 0x528   : > { %6279 = vst [vmem:[#allocation4 + $0x70] sm:$0x1] %v6278_v23 }
 0x52a   : > { %v6241_v52 = vpop.permute.xlu1 %6240 }
 0x52b   : > { %6276 = vst.msk [vmem:[#allocation4 + $0x64] sm:$0xf] %vm5849_vm14, %v6241_v52  ;;  %v9421_v35 = vld [vmem:[#allocation4 + $0x60] ss:$12 sps:$4 sm:$0x1f]  }
 0x52e   : > { %v6029_v13 = vpop.permute.xlu1 %6028 }
 0x52f   : > { %6064 = vst.msk [vmem:[#allocation4 + $0x7c] sm:$0xf] %vm5627_vm5, %v6029_v13  ;;  %vm6625_vm5 = vcmask 523264  }
 0x530   : > { %6172 = vst.msk [vmem:[#allocation4 + $0x7c] sm:$0xf] %vm5738_vm7, %v6137_v21  ;;  %vm6627_vm7 = vcmask 516096  }
 0x532   : > { %v5836_v18 = vpop.permute.xlu1 %5835  ;;  %v9423_v14 = vld [vmem:[#allocation4 + $0x64] ss:$12 sps:$4 sm:$0x1f]  }
 0x533   : > { %v5874_v46 = vsel %vm13737_vm9, %v5836_v18, %v5873_v62  ;;  %7014 = vmatprep.mubr.bf16.mxu0 %v9423_v14  ;;  %v9466_v18 = vld [vmem:[%s14327_s10 + $0xf4] ss:$8 sps:$4 sm:$0xff]  }
 0x534   : > { %5875 = vst [vmem:[#allocation4 + $0x84] sm:$0x1] %v5874_v46  ;;  %7015 = vmatmul.mubr.bf16.vlgmr.msra.gmra.mxu0 %v9421_v35 }
 0x535   : > { %9274 = vmatpush3.bf16.msra.mxu0 %v13800_v27  ;;  %9277 = vmatprep.mubr.msk.bf16.mxu0 %vm9673_vm4, %v9672_v36  ;;  %v9433_v27 = vld [vmem:[%s14327_s10 + $0x24] ss:$8 sps:$4 sm:$0xff]  }
 0x536   : > { %v6247_v25 = vpop.permute.xlu1 %6246  ;;  %9275 = vmatprep.subr.bf16.mxu0 %v9672_v36 }
 0x537   : > { %v6282_v30 = vsel %vm13737_vm9, %v6247_v25, %v6281_v48 }
 0x538   : > { %6283 = vst [vmem:[#allocation4 + $0x88] sm:$0x1] %v6282_v30 }
 0x539   : > { %9276 = vmatpush3.bf16.msra.mxu0 %v13816_v28  ;;  %v9431_v28 = vld [vmem:[%s14327_s10 + $0x20] ss:$8 sps:$4 sm:$0xff]  }
 0x53a   : > { %v6245_v44 = vpop.permute.xlu1 %6244  ;;  %7275 = vmatprep.subr.bf16.mxu0 %v9430_v3 }
 0x53b   : > { %6280 = vst.msk [vmem:[#allocation4 + $0x7c] sm:$0xf] %vm5849_vm14, %v6245_v44  ;;  %v9425_v51 = vld [vmem:[#allocation4 + $0x78] ss:$12 sps:$4 sm:$0x1f]  }
 0x53c   : > { %9278 = vmatmul.mubr.msk.bf16.vlgmr.msra.gmra.mxu0 %vm15201_vm0, %v9424_v19 }
 0x53d   : > { %7276 = vmatpush1.bf16.msra.mxu0 %v9428_v58  ;;  %7299 = vmatprep.mubr.bf16.mxu0 %v15014_v37 }
 0x53e   : > { %7277 = vmatprep.subr.bf16.mxu0 %v9433_v27 }
 0x541   : > { %7278 = vmatpush1.bf16.msra.mxu0 %v9431_v28 }
 0x542   : > { %v9427_v10 = vld [vmem:[#allocation4 + $0x7c] ss:$12 sps:$4 sm:$0x1f]   ;;  %7279 = vmatprep.subr.bf16.mxu0 %v9439_v63 }
 0x543   : > { %7124 = vmatprep.mubr.bf16.mxu1 %v9427_v10 }
 0x544   : > { %7125 = vmatmul.mubr.bf16.vlgmr.msra.gmra.mxu1 %v9425_v51 }
 0x545   : > { %7391 = vmatpush1.bf16.msra.mxu1 %v9434_v7  ;;  %7280 = vmatpush1.bf16.msra.mxu0 %v9437_v29 }
 0x546   : > { %7392 = vmatprep.subr.bf16.mxu1 %v9442_v39  ;;  %7414 = vmatprep.mubr.bf16.mxu1 %v15014_v37 }
 0x547   : > { %7281 = vmatprep.subr.bf16.mxu0 %v9445_v41 }
 0x549   : > { %7393 = vmatpush1.bf16.msra.mxu1 %v9440_v54  ;;  %7282 = vmatpush1.bf16.msra.mxu0 %v9443_v8 }
 0x54a   : > { %7394 = vmatprep.subr.bf16.mxu1 %v9448_v6  ;;  %7521 = vmatprep.subr.bf16.mxu0 %v9451_v38 }
 0x54d   : > { %7395 = vmatpush1.bf16.msra.mxu1 %v9446_v11 }
 0x54e   : > { %7396 = vmatprep.subr.bf16.mxu1 %v9454_v24 }
 0x551   : > { %7397 = vmatpush1.bf16.msra.mxu1 %v9452_v50 }
 0x552   : > { %7657 = vmatprep.subr.bf16.mxu1 %v9466_v18 }
 0x567   : > { %v9068_v31 = vpop.f32.mrf.mxu0 }
 0x569   : > { %v9069_v33 = vpop.f32.mrf.mxu0 }
 0x56a   : > { %v9070_v34 = vadd.f32 %v9069_v33, %v9068_v31 }
 0x56b   : > { %v9071_v15 = vpop.f32.mrf.mxu0 }
 0x56c   : > { %v6576_v20 = vadd.f32 %v9070_v34, %v14038_v2 }
 0x56d   : > { %v9072_v60 = vpop.f32.mrf.mxu0 }
 0x56e   : > { %v6617_v59 = vadd.f32 %v13780_v5, %v6576_v20  ;;  %v9073_v55 = vadd.f32 %v9072_v60, %v9071_v15 }
 0x56f   : > { %v6727_v4 = vpop.f32.mrf.mxu0 }
 0x570   : > { %v6623_v0 = vmax.f32 %v6617_v59, 0.0  ;;  %v6579_v9 = vadd.f32 %v9073_v55, %v14038_v2 }
 0x571   : > { %v9247_v42 = vpop.f32.mrf.mxu0 }
 0x572   : > { %6626 = vst.msk [vmem:[#allocation5] sm:$0xff] %vm6625_vm5, %v6623_v0  ;;  %v6620_v21 = vadd.f32 %v13788_v56, %v6579_v9 }
 0x573   : > { %v6730_v12 = vpop.f32.mrf.mxu0 }
 0x574   : > { %v6624_v53 = vmax.f32 %v6620_v21, 0.0 }
 0x575   : > { %v9248_v49 = vpop.f32.mrf.mxu0 }
 0x576   : > { %6628 = vst.msk [vmem:[#allocation5 + $0x8] sm:$0x1] %vm6627_vm7, %v6624_v53  ;;  %v9093_v40 = vpop.f32.mrf.mxu1 }
 0x578   : > { %v9094_v22 = vpop.f32.mrf.mxu1 }
 0x579   : > { %v9095_v5 = vadd.f32 %v9094_v22, %v9093_v40  ;;  %v7179_v62 = vld [vmem:[#allocation5] sm:$0xff] }
 0x57a   : > { %v9096_v1 = vpop.f32.mrf.mxu1  ;;  %v7193_v35 = vrot.slane %v7179_v62, 1  ;;  %v7196_v19 = vrot.slane %v7179_v62, 2 }
 0x57b   : > { %v6687_v26 = vadd.f32 %v9095_v5, %v14038_v2 }
 0x57c   : > { %v9097_v32 = vpop.f32.mrf.mxu1  ;;  %v7195_v25 = vmax.f32 %v7179_v62, %v7193_v35  ;;  %v9455_v62 = vld [vmem:[%s14327_s10 + $0xa0] ss:$8 sps:$4 sm:$0xff]   ;;  %v9460_v35 = vld [vmem:[%s14327_s10 + $0x94] ss:$8 sps:$4 sm:$0xff]  }
 0x57d   : > { %v6728_v57 = vadd.f32 %v6727_v4, %v6687_v26  ;;  %v9098_v61 = vadd.f32 %v9097_v32, %v9096_v1  ;;  %v7180_v54 = vld [vmem:[#allocation5 + $0x8] sm:$0x1] }
 0x57e   : > { %v6837_v47 = vpop.f32.mrf.mxu1  ;;  %v7198_v28 = vmax.f32 %v7195_v25, %v7196_v19  ;;  %v7443_v38 = vrot.slane %v7180_v54, 2  ;;  %v9449_v32 = vld [vmem:[%s14327_s10 + $0xb0] ss:$8 sps:$4 sm:$0xff]   ;;  %v9479_v54 = vld [vmem:[%s14327_s10 + $0xc0] ss:$8 sps:$4 sm:$0xff]  }
 0x57f   : > { %v6734_v16 = vmax.f32 %v6728_v57, 0.0  ;;  %v6690_v17 = vadd.f32 %v9098_v61, %v14038_v2 }
 0x580   : > { %v9255_v56 = vpop.f32.mrf.mxu1  ;;  %v7445_v34 = vmax.f32 %v7195_v25, %v7443_v38  ;;  %v9484_v38 = vld [vmem:[%s14327_s10 + $0x114] ss:$8 sps:$4 sm:$0xff]  }
 0x581   : > { %6737 = vst.msk [vmem:[#allocation5 + $0x10] sm:$0xff] %vm6625_vm5, %v6734_v16  ;;  %v6731_v43 = vadd.f32 %v6730_v12, %v6690_v17  ;;  %v9457_v16 = vld [vmem:[%s14327_s10 + $0xa4] ss:$8 sps:$4 sm:$0xff]  }
 0x582   : > { %v6840_v23 = vpop.f32.mrf.mxu1 }
 0x583   : > { %v6735_v52 = vmax.f32 %v6731_v43, 0.0 }
 0x584   : > { %v9256_v13 = vpop.f32.mrf.mxu1 }
 0x585   : > { %6738 = vst.msk [vmem:[#allocation5 + $0x18] sm:$0x1] %vm6627_vm7, %v6735_v52 }
 0x588   : > { %v7181_v58 = vld [vmem:[#allocation5 + $0x10] sm:$0xff] }
 0x589   : > { %v7199_v63 = vmax.f32 %v7198_v28, %v7181_v58  ;;  %v7201_v29 = vrot.slane %v7181_v58, 1  ;;  %v7204_v50 = vrot.slane %v7181_v58, 2  ;;  %v7446_v0 = vmax.f32 %v7445_v34, %v7181_v58  ;;  %v9467_v58 = vld [vmem:[%s14327_s10 + $0xe0] ss:$8 sps:$4 sm:$0xff]   ;;  %v9475_v28 = vld [vmem:[%s14327_s10 + $0xd4] ss:$8 sps:$4 sm:$0xff]  }
 0x58b   : > { %v7203_v11 = vmax.f32 %v7199_v63, %v7201_v29  ;;  %v7447_v1 = vmax.f32 %v7446_v0, %v7201_v29  ;;  %v9472_v63 = vld [vmem:[%s14327_s10 + $0x134] ss:$8 sps:$4 sm:$0xff]   ;;  %v9481_v29 = vld [vmem:[%s14327_s10 + $0xc4] ss:$8 sps:$4 sm:$0xff]  }
 0x58c   : > { %v7182_v60 = vld [vmem:[#allocation5 + $0x18] sm:$0x1] }
 0x58d   : > { %v7206_v33 = vmax.f32 %v7203_v11, %v7204_v50  ;;  %v7449_v53 = vrot.slane %v7182_v60, 2  ;;  %v9476_v11 = vld [vmem:[%s14327_s10 + $0x120] ss:$8 sps:$4 sm:$0xff]   ;;  %v9490_v50 = vld [vmem:[%s14327_s10 + $0x104] ss:$8 sps:$4 sm:$0xff]  }
 0x58f   : > { %v7451_v17 = vmax.f32 %v7447_v1, %v7449_v53 }
 0x5ad   : > { %v9118_v46 = vpop.f32.mrf.mxu0 }
 0x5af   : > { %v9119_v14 = vpop.f32.mrf.mxu0 }
 0x5b0   : > { %v9120_v48 = vadd.f32 %v9119_v14, %v9118_v46  ;;  %v9464_v46 = vld [vmem:[%s14327_s10 + $0xf0] ss:$8 sps:$4 sm:$0xff]  }
 0x5b1   : > { %v9121_v30 = vpop.f32.mrf.mxu0 }
 0x5b2   : > { %v6797_v44 = vadd.f32 %v9120_v48, %v14038_v2 }
 0x5b3   : > { %v9122_v3 = vpop.f32.mrf.mxu0 }
 0x5b4   : > { %v6838_v27 = vadd.f32 %v6837_v47, %v6797_v44  ;;  %v9123_v45 = vadd.f32 %v9122_v3, %v9121_v30  ;;  %v9469_v30 = vld [vmem:[%s14327_s10 + $0xe4] ss:$8 sps:$4 sm:$0xff]   ;;  %v9458_v3 = vld [vmem:[%s14327_s10 + $0x90] ss:$8 sps:$4 sm:$0xff]  }
 0x5b5   : > { %v6947_v51 = vpop.f32.mrf.mxu0 }
 0x5b6   : > { %v6844_v7 = vmax.f32 %v6838_v27, 0.0  ;;  %v6800_v10 = vadd.f32 %v9123_v45, %v14038_v2  ;;  %v9463_v27 = vld [vmem:[%s14327_s10 + $0x84] ss:$8 sps:$4 sm:$0xff]  }
 0x5b7   : > { %v9263_v39 = vpop.f32.mrf.mxu0 }
 0x5b8   : > { %6847 = vst.msk [vmem:[#allocation5 + $0x20] sm:$0xff] %vm6625_vm5, %v6844_v7  ;;  %v6841_v41 = vadd.f32 %v6840_v23, %v6800_v10  ;;  %v9473_v7 = vld [vmem:[%s14327_s10 + $0xd0] ss:$8 sps:$4 sm:$0xff]  }
 0x5b9   : > { %v6950_v8 = vpop.f32.mrf.mxu0  ;;  %v9470_v39 = vld [vmem:[%s14327_s10 + $0x130] ss:$8 sps:$4 sm:$0xff]  }
 0x5ba   : > { %v6845_v6 = vmax.f32 %v6841_v41, 0.0 }
 0x5bb   : > { %v9264_v24 = vpop.f32.mrf.mxu0 }
 0x5bc   : > { %6848 = vst.msk [vmem:[#allocation5 + $0x28] sm:$0x1] %vm6627_vm7, %v6845_v6  ;;  %v9487_v6 = vld [vmem:[%s14327_s10 + $0x174] ss:$8 sps:$4 sm:$0xff]   ;;  %v9482_v24 = vld [vmem:[%s14327_s10 + $0x110] ss:$8 sps:$4 sm:$0xff]  }
 0x5bd   : > { %v9143_v31 = vpop.f32.mrf.mxu1 }
 0x5bf   : > { %v9144_v15 = vpop.f32.mrf.mxu1  ;;  %v7183_v20 = vld [vmem:[#allocation5 + $0x20] sm:$0xff] }
 0x5c0   : > { %v9145_v59 = vadd.f32 %v9144_v15, %v9143_v31  ;;  %v7207_v55 = vmax.f32 %v7206_v33, %v7183_v20  ;;  %v7209_v4 = vrot.slane %v7183_v20, 1  ;;  %v7212_v12 = vrot.slane %v7183_v20, 2  ;;  %v9488_v31 = vld [vmem:[%s14327_s10 + $0x100] ss:$8 sps:$4 sm:$0xff]  }
 0x5c1   : > { %v9146_v9 = vpop.f32.mrf.mxu1  ;;  %v7452_v13 = vmax.f32 %v7451_v17, %v7183_v20 }
 0x5c2   : > { %v6907_v42 = vadd.f32 %v9145_v59, %v14038_v2  ;;  %v7211_v21 = vmax.f32 %v7207_v55, %v7209_v4 }
 0x5c3   : > { %v9147_v49 = vpop.f32.mrf.mxu1  ;;  %v7184_v43 = vld [vmem:[#allocation5 + $0x28] sm:$0x1]  ;;  %v7453_v19 = vmax.f32 %v7452_v13, %v7209_v4 }
 0x5c4   : > { %v6948_v40 = vadd.f32 %v6947_v51, %v6907_v42  ;;  %v9148_v22 = vadd.f32 %v9147_v49, %v9146_v9  ;;  %v7214_v5 = vmax.f32 %v7211_v21, %v7212_v12  ;;  %v7455_v25 = vrot.slane %v7184_v43, 2  ;;  %v9461_v51 = vld [vmem:[%s14327_s10 + $0x80] ss:$8 sps:$4 sm:$0xff]  }
 0x5c5   : > { %v14058_v26 = vpop.f32.mrf.mxu1 }
 0x5c6   : > { %v6954_v57 = vmax.f32 %v6948_v40, 0.0  ;;  %v6910_v61 = vadd.f32 %v9148_v22, %v14038_v2  ;;  %v7215_v47 = vpack.c.bf16 %v7214_v5, %v7214_v5  ;;  %v7457_v45 = vmax.f32 %v7453_v19, %v7455_v25 }
 0x5c7   : > { %v9271_v56 = vpop.f32.mrf.mxu1 }
 0x5c8   : > { %6957 = vst.msk [vmem:[#allocation5 + $0x30] sm:$0xff] %vm6625_vm5, %v6954_v57  ;;  %v6951_v23 = vadd.f32 %v6950_v8, %v6910_v61  ;;  %8763 = vmatmul.mubr.msk.bf16.vlgmr.msra.gmra.mxu0 %vm6625_vm5, %v7215_v47  ;;  %v7336_v52 = vshrl.u32 %v7215_v47, 16  ;;  %v7458_v10 = vpack.c.bf16 %v7457_v45, %v7457_v45  ;;  %v9478_v8 = vld [vmem:[%s14327_s10 + $0x124] ss:$8 sps:$4 sm:$0xff]  }
 0x5c9   : > { %7522 = vmatpush1.bf16.msra.mxu0 %v9449_v32  ;;  %v14069_v18 = vpop.f32.mrf.mxu1  ;;  %7545 = vmatprep.mubr.bf16.mxu0 %v15014_v37 }
 0x5ca   : > { %v6955_v14 = vmax.f32 %v6951_v23, 0.0  ;;  %7523 = vmatprep.subr.bf16.mxu0 %v9457_v16  ;;  %v7338_v48 = vrot.slane %v7336_v52, 1  ;;  %v7469_v41 = vrot.slane %v7458_v10, 3 }
 0x5cb   : > { %v9272_v44 = vpop.f32.mrf.mxu1 }
 0x5cc   : > { %6958 = vst.msk [vmem:[#allocation5 + $0x38] sm:$0x1] %vm6627_vm7, %v6955_v14  ;;  %8780 = vmatmul.mubr.msk.bf16.vlgmr.msra.gmra.mxu1 %vm6625_vm5, %v7338_v48 }
 0x5cd   : > { %7524 = vmatpush1.bf16.msra.mxu0 %v9455_v62  ;;  %7658 = vmatpush1.bf16.msra.mxu1 %v9464_v46 }
 0x5ce   : > { %7525 = vmatprep.subr.bf16.mxu0 %v9460_v35  ;;  %7659 = vmatprep.subr.bf16.mxu1 %v9469_v30 }
 0x5cf   : > { %7681 = vmatprep.mubr.bf16.mxu1 %v15014_v37  ;;  %v7185_v49 = vld [vmem:[#allocation5 + $0x30] sm:$0xff] }
 0x5d0   : > { %v7574_v5 = vrot.slane %v7185_v49, 1  ;;  %v7577_v16 = vrot.slane %v7185_v49, 2 }
 0x5d1   : > { %7526 = vmatpush1.bf16.msra.mxu0 %v9458_v3  ;;  %7660 = vmatpush1.bf16.msra.mxu1 %v9467_v58 }
 0x5d2   : > { %7527 = vmatprep.subr.bf16.mxu0 %v9463_v27  ;;  %7661 = vmatprep.subr.bf16.mxu1 %v9475_v28  ;;  %v7576_v57 = vmax.f32 %v7185_v49, %v7574_v5  ;;  %v9507_v49 = vld [vmem:[%s14329_s12 + $0x20] sm:$0xff]   ;;  %v9510_v5 = vld [vmem:[%s14329_s12 + $0x50] sm:$0xff]  }
 0x5d3   : > { %v7186_v46 = vld [vmem:[#allocation5 + $0x38] sm:$0x1] }
 0x5d4   : > { %v7579_v52 = vmax.f32 %v7576_v57, %v7577_v16  ;;  %v7825_v30 = vrot.slane %v7186_v46, 2 }
 0x5d5   : > { %7528 = vmatpush1.bf16.msra.mxu0 %v9461_v51  ;;  %7662 = vmatpush1.bf16.msra.mxu1 %v9473_v7 }
 0x5d6   : > { %7772 = vmatprep.subr.bf16.mxu0 %v9472_v63  ;;  %7663 = vmatprep.subr.bf16.mxu1 %v9481_v29  ;;  %v7827_v3 = vmax.f32 %v7576_v57, %v7825_v30  ;;  %v9514_v57 = vld [vmem:[%s14329_s12 + $0x40] sm:$0xff]  }
 0x5d8   : > { %8797 = vmatmul.mubr.msk.bf16.vlgmr.msra.gmra.mxu0 %vm6625_vm5, %v7469_v41  ;;  %v9493_v41 = vld [vmem:[%s14327_s10 + $0x164] ss:$8 sps:$4 sm:$0xff]  }
 0x5d9   : > { %7773 = vmatpush1.bf16.msra.mxu0 %v9470_v39  ;;  %7664 = vmatpush1.bf16.msra.mxu1 %v9479_v54  ;;  %v9485_v39 = vld [vmem:[%s14327_s10 + $0x170] ss:$8 sps:$4 sm:$0xff]  }
 0x5da   : > { %7774 = vmatprep.subr.bf16.mxu0 %v9478_v8  ;;  %7903 = vmatprep.subr.bf16.mxu1 %v9487_v6 }
 0x5db   : > { %7796 = vmatprep.mubr.bf16.mxu0 %v15014_v37 }
 0x5dd   : > { %7775 = vmatpush1.bf16.msra.mxu0 %v9476_v11 }
 0x5de   : > { %7776 = vmatprep.subr.bf16.mxu0 %v9484_v38 }
 0x5e1   : > { %7777 = vmatpush1.bf16.msra.mxu0 %v9482_v24  ;;  %v9500_v24 = vld [vmem:[%s14329_s12 + $0x78] sm:$0xff]  }
 0x5e2   : > { %7778 = vmatprep.subr.bf16.mxu0 %v9490_v50  ;;  %v9491_v50 = vld [vmem:[%s14327_s10 + $0x160] ss:$8 sps:$4 sm:$0xff]  }
 0x5e5   : > { %7779 = vmatpush1.bf16.msra.mxu0 %v9488_v31 }
 0x5e6   : > { %9202 = vmatprep.subr.bf16.mxu0 %v9500_v24 }
 0x5f4   : > { %v9168_v33 = vpop.f32.mrf.mxu0 }
 0x5f6   : > { %v9169_v34 = vpop.f32.mrf.mxu0 }
 0x5f7   : > { %v9170_v15 = vadd.f32 %v9169_v34, %v9168_v33  ;;  %v9496_v33 = vld [vmem:[%s14327_s10 + $0x154] ss:$8 sps:$4 sm:$0xff]  }
 0x5f8   : > { %v9171_v20 = vpop.f32.mrf.mxu0 }
 0x5f9   : > { %v7017_v60 = vadd.f32 %v9170_v15, %v14038_v2 }
 0x5fa   : > { %v9172_v59 = vpop.f32.mrf.mxu0 }
 0x5fb   : > { %v7058_v55 = vadd.f32 %v14058_v26, %v7017_v60  ;;  %v9173_v4 = vadd.f32 %v9172_v59, %v9171_v20  ;;  %v9494_v20 = vld [vmem:[%s14327_s10 + $0x150] ss:$8 sps:$4 sm:$0xff]   ;;  %v9497_v59 = vld [vmem:[%s14327_s10 + $0x140] ss:$8 sps:$4 sm:$0xff]  }
 0x5fc   : > { %v7167_v0 = vpop.f32.mrf.mxu0 }
 0x5fd   : > { %v7064_v9 = vmax.f32 %v7058_v55, 0.0  ;;  %v7020_v42 = vadd.f32 %v9173_v4, %v14038_v2 }
 0x5fe   : > { %v9279_v21 = vpop.f32.mrf.mxu0 }
 0x5ff   : > { %7067 = vst.msk [vmem:[#allocation5 + $0x40] sm:$0xff] %vm6625_vm5, %v7064_v9  ;;  %v7061_v12 = vadd.f32 %v14069_v18, %v7020_v42  ;;  %v9502_v9 = vld [vmem:[%s14329_s12 + $0x70] sm:$0xff]   ;;  %v9504_v21 = vld [vmem:[%s14329_s12 + $0x68] sm:$0xff]  }
 0x600   : > { %v7170_v53 = vpop.f32.mrf.mxu0  ;;  %v9503_v42 = vld [vmem:[%s14329_s12 + $0x30] sm:$0xff]  }
 0x601   : > { %v7065_v40 = vmax.f32 %v7061_v12, 0.0  ;;  %v9505_v12 = vld [vmem:[%s14329_s12 + $0x28] sm:$0xff]  }
 0x602   : > { %v9280_v22 = vpop.f32.mrf.mxu0 }
 0x603   : > { %7068 = vst.msk [vmem:[#allocation5 + $0x48] sm:$0x1] %vm6627_vm7, %v7065_v40  ;;  %v9508_v40 = vld [vmem:[%s14329_s12 + $0x58] sm:$0xff]  }
 0x604   : > { %v9193_v1 = vpop.f32.mrf.mxu1  ;;  %v9509_v22 = vld [vmem:[%s14329_s12 + $0x18] sm:$0xff]  }
 0x606   : > { %v9194_v32 = vpop.f32.mrf.mxu1  ;;  %v7187_v56 = vld [vmem:[#allocation5 + $0x40] sm:$0xff] }
 0x607   : > { %v9195_v26 = vadd.f32 %v9194_v32, %v9193_v1  ;;  %v7580_v62 = vmax.f32 %v7579_v52, %v7187_v56  ;;  %v7582_v35 = vrot.slane %v7187_v56, 1  ;;  %v7585_v44 = vrot.slane %v7187_v56, 2  ;;  %v9511_v1 = vld [vmem:[%s14329_s12 + $0x10] sm:$0xff]   ;;  %v9512_v32 = vld [vmem:[%s14329_s12 + $0x48] sm:$0xff]  }
 0x608   : > { %v9196_v61 = vpop.f32.mrf.mxu1  ;;  %v7828_v51 = vmax.f32 %v7827_v3, %v7187_v56  ;;  %v9516_v56 = vld [vmem:[%s14331_s14 + $0x38] sm:$0xff]  }
 0x609   : > { %v7127_v47 = vadd.f32 %v9195_v26, %v14038_v2  ;;  %v7584_v25 = vmax.f32 %v7580_v62, %v7582_v35  ;;  %v9513_v26 = vld [vmem:[%s14329_s12 + $0x8] sm:$0xff]  }
 0x60a   : > { %v9197_v17 = vpop.f32.mrf.mxu1  ;;  %v7188_v27 = vld [vmem:[#allocation5 + $0x48] sm:$0x1]  ;;  %v7829_v29 = vmax.f32 %v7828_v51, %v7582_v35 }
 0x60b   : > { %v7168_v43 = vadd.f32 %v7167_v0, %v7127_v47  ;;  %v9198_v23 = vadd.f32 %v9197_v17, %v9196_v61  ;;  %v7587_v19 = vmax.f32 %v7584_v25, %v7585_v44  ;;  %v7831_v10 = vrot.slane %v7188_v27, 2  ;;  %v9501_v0 = vld [vmem:[%s14329_s12 + $0x38] sm:$0xff]   ;;  %v9515_v61 = vld [vmem:[%s14329_s12] sm:$0xff]  }
 0x60c   : > { %v9674_v47 = vmov 1966171168   ;;  %v7314_v17 = vlaneseq  ;;  %v9520_v27 = vld [vmem:[%s14331_s14 + $0x18] sm:$0xff]  }
 0x60d   : > { %v7174_v13 = vmax.f32 %v7168_v43, 0.0  ;;  %v7130_v18 = vadd.f32 %v9198_v23, %v14038_v2  ;;  %v7833_v8 = vmax.f32 %v7829_v29, %v7831_v10  ;;  %v7312_v16 = vunpack.c.l.s4 %v9674_v47  ;;  %v9517_v43 = vld [vmem:[%s14331_s14 + $0x30] sm:$0xff]  }
 0x60e   : > { %v14233_v52 = vshrl.u32 %v7314_v17, 7 }
 0x60f   : > { %7177 = vst.msk [vmem:[#allocation5 + $0x50] sm:$0xff] %vm6625_vm5, %v7174_v13  ;;  %v7171_v14 = vadd.f32 %v7170_v53, %v7130_v18  ;;  %v9506_v53 = vld [vmem:[%s14329_s12 + $0x60] sm:$0xff]   ;;  %v7313_v23 = vunpack.c.0.s8 %v7312_v16  ;;  %v9518_v13 = vld [vmem:[%s14331_s14 + $0x28] sm:$0xff]  }
 0x611   : > { %v7175_v48 = vmax.f32 %v7171_v14, 0.0  ;;  %v7316_v62 = vsub.s32 %v7313_v23, %v14233_v52  ;;  %v9519_v14 = vld [vmem:[%s14331_s14 + $0x20] sm:$0xff]  }
 0x612   : > { %v9523_v23 = vld [vmem:[%s14331_s14] sm:$0xff]  }
 0x613   : > { %7178 = vst.msk [vmem:[#allocation5 + $0x58] sm:$0x1] %vm6627_vm7, %v7175_v48 }
 0x616   : > { %v7189_v58 = vld [vmem:[#allocation5 + $0x50] sm:$0xff] }
 0x617   : > { %v7588_v45 = vmax.f32 %v7587_v19, %v7189_v58  ;;  %v7590_v28 = vrot.slane %v7189_v58, 1  ;;  %v7593_v7 = vrot.slane %v7189_v58, 2  ;;  %v7834_v38 = vmax.f32 %v7833_v8, %v7189_v58 }
 0x619   : > { %v7592_v2 = vmax.f32 %v7588_v45, %v7590_v28  ;;  %v7835_v15 = vmax.f32 %v7834_v38, %v7590_v28  ;;  %v7191_v45 = vld [vmem:[%s14328_s11] sm:$0x3] }
 0x61a   : > { %v7190_v6 = vld [vmem:[#allocation5 + $0x58] sm:$0x1] }
 0x61b   : > { %v7595_v63 = vmax.f32 %v7592_v2, %v7593_v7  ;;  %v7837_v34 = vrot.slane %v7190_v6, 2 }
 0x61d   : > { %v7596_v54 = vpack.c.bf16 %v7595_v63, %v7595_v63  ;;  %v7839_v60 = vmax.f32 %v7835_v15, %v7837_v34  ;;  %v9521_v63 = vld [vmem:[%s14331_s14 + $0x10] sm:$0xff]  }
 0x61f   : > { %8814 = vmatmul.mubr.msk.bf16.vlgmr.msra.gmra.mxu1 %vm6625_vm5, %v7596_v54  ;;  %v7718_v11 = vshrl.u32 %v7596_v54, 16  ;;  %v7840_v55 = vpack.c.bf16 %v7839_v60, %v7839_v60 }
 0x620   : > { %7904 = vmatpush1.bf16.msra.mxu1 %v9485_v39  ;;  %7927 = vmatprep.mubr.bf16.mxu1 %v15014_v37  ;;  %v9499_v37 = vld [vmem:[%s14327_s10 + $0x144] ss:$8 sps:$4 sm:$0xff]  }
 0x621   : > { %7905 = vmatprep.subr.bf16.mxu1 %v9493_v41  ;;  %v7720_v31 = vrot.slane %v7718_v11, 1  ;;  %v7851_v4 = vrot.slane %v7840_v55, 3 }
 0x623   : > { %8831 = vmatmul.mubr.msk.bf16.vlgmr.msra.gmra.mxu0 %vm6625_vm5, %v7720_v31 }
 0x624   : > { %7906 = vmatpush1.bf16.msra.mxu1 %v9491_v50  ;;  %9203 = vmatpush3.bf16.msra.mxu0 %v9501_v0 }
 0x625   : > { %7907 = vmatprep.subr.bf16.mxu1 %v9496_v33  ;;  %9204 = vmatprep.subr.bf16.mxu0 %v9502_v9 }
 0x628   : > { %7908 = vmatpush1.bf16.msra.mxu1 %v9494_v20  ;;  %9205 = vmatpush3.bf16.msra.mxu0 %v9503_v42 }
 0x629   : > { %7909 = vmatprep.subr.bf16.mxu1 %v9499_v37  ;;  %9206 = vmatprep.subr.bf16.mxu0 %v9504_v21 }
 0x62c   : > { %7910 = vmatpush1.bf16.msra.mxu1 %v9497_v59  ;;  %9207 = vmatpush3.bf16.msra.mxu0 %v9505_v12 }
 0x62d   : > { %9281 = vmatprep.subr.bf16.mxu1 %v9672_v36  ;;  %9208 = vmatprep.subr.bf16.mxu0 %v9506_v53 }
 0x62f   : > { %8848 = vmatmul.mubr.msk.bf16.vlgmr.msra.gmra.mxu1 %vm6625_vm5, %v7851_v4 }
 0x630   : > { %9297 = vmatprep.mubr.msk.bf16.mxu1 %vm9673_vm4, %v9672_v36  ;;  %9209 = vmatpush3.bf16.msra.mxu0 %v9507_v49 }
 0x631   : > { %9210 = vmatprep.subr.bf16.mxu0 %v9508_v40  ;;  %9282 = vmatpush3.bf16.msra.mxu1 %v9516_v56 }
 0x632   : > { %9283 = vmatprep.subr.bf16.mxu1 %v9672_v36 }
 0x634   : > { %9211 = vmatpush3.bf16.msra.mxu0 %v9509_v22 }
 0x635   : > { %9212 = vmatprep.subr.bf16.mxu0 %v9510_v5  ;;  %9284 = vmatpush3.bf16.msra.mxu1 %v9517_v43  ;;  %v9522_v43 = vld [vmem:[%s14331_s14 + $0x8] sm:$0xff]  }
 0x636   : > { %9285 = vmatprep.subr.bf16.mxu1 %v9672_v36 }
 0x638   : > { %9213 = vmatpush3.bf16.msra.mxu0 %v9511_v1 }
 0x639   : > { %9214 = vmatprep.subr.bf16.mxu0 %v9512_v32  ;;  %9286 = vmatpush3.bf16.msra.mxu1 %v9518_v13  ;;  %v8000_v13 = vld [vmem:[%s14330_s13] sm:$0x1] }
 0x63a   : > { %9287 = vmatprep.subr.bf16.mxu1 %v9672_v36 }
 0x63c   : > { %9215 = vmatpush3.bf16.msra.mxu0 %v9513_v26  ;;  %v7962_v26 = vsub.s32 1, %v14233_v52 }
 0x63d   : > { %9216 = vmatprep.subr.bf16.mxu0 %v9514_v57  ;;  %9288 = vmatpush3.bf16.msra.mxu1 %v9519_v14  ;;  %v7958_v57 = vsub.s32 0, %v14233_v52 }
 0x63e   : > { %9289 = vmatprep.subr.bf16.mxu1 %v9672_v36 }
 0x640   : > { %9217 = vmatpush3.bf16.msra.mxu0 %v9515_v61 }
 0x641   : > { %9290 = vmatpush3.bf16.msra.mxu1 %v9520_v27 }
 0x642   : > { %9291 = vmatprep.subr.bf16.mxu1 %v9672_v36 }
 0x645   : > { %9292 = vmatpush3.bf16.msra.mxu1 %v9521_v63 }
 0x646   : > { %9293 = vmatprep.subr.bf16.mxu1 %v9672_v36 }
 0x649   : > { %9294 = vmatpush3.bf16.msra.mxu1 %v9522_v43 }
 0x64a   : > { %9295 = vmatprep.subr.bf16.mxu1 %v9672_v36 }
 0x64d   : > { %9296 = vmatpush3.bf16.msra.mxu1 %v9523_v23 }
 0x688   : > { %v7301_v18 = vpop.f32.mrf.mxu0 }
 0x68a   : > { %v7303_v35 = vpop.f32.mrf.mxu0 }
 0x68b   : > { %v7310_v46 = vcombine.low %v7301_v18, %v7303_v35 }
 0x68c   : > { %v7305_v48 = vpop.f32.mrf.mxu0  ;;  %v7416_v25 = vpop.f32.mrf.mxu1 }
 0x68d   : > { %v7317_v30 = vrot.slane %v7310_v46, %v7316_v62 }
 0x68e   : > { %v7306_v44 = vpop.f32.mrf.mxu0  ;;  %v7418_v19 = vpop.f32.mrf.mxu1 }
 0x68f   : > { %v7324_v3 = vrot.slane %v7317_v30, %v7316_v62  ;;  %v7425_v58 = vcombine.low %v7416_v25, %v7418_v19  ;;  %v8154_v25 = vld [vmem:[%s14332_s15] sm:$0x1] }
 0x690   : > { %v7420_v28 = vpop.f32.mrf.mxu1 }
 0x691   : > { %v7432_v51 = vrot.slane %v7425_v58, %v7316_v62  ;;  %v7326_v7 = vadd.f32 %v7324_v3, %v7191_v45 }
 0x692   : > { %v7421_v2 = vpop.f32.mrf.mxu1 }
 0x693   : > { %v7439_v10 = vrot.slane %v7432_v51, %v7316_v62 }
 0x695   : > { %v7441_v29 = vadd.f32 %v7439_v10, %v7326_v7 }
 0x698   : > { %v7547_v39 = vpop.f32.mrf.mxu0 }
 0x69a   : > { %v7549_v54 = vpop.f32.mrf.mxu0 }
 0x69b   : > { %v7556_v41 = vcombine.low %v7547_v39, %v7549_v54 }
 0x69c   : > { %v7551_v8 = vpop.f32.mrf.mxu0 }
 0x69d   : > { %v7563_v6 = vrot.slane %v7556_v41, %v7316_v62 }
 0x69e   : > { %v7552_v11 = vpop.f32.mrf.mxu0 }
 0x69f   : > { %v7570_v38 = vrot.slane %v7563_v6, %v7316_v62 }
 0x6a1   : > { %v7572_v24 = vadd.f32 %v7570_v38, %v7441_v29 }
 0x6df   : > { %v7683_v50 = vpop.f32.mrf.mxu1 }
 0x6e1   : > { %v7685_v31 = vpop.f32.mrf.mxu1 }
 0x6e2   : > { %v7692_v60 = vcombine.low %v7683_v50, %v7685_v31 }
 0x6e3   : > { %v7687_v33 = vpop.f32.mrf.mxu1  ;;  %v7798_v34 = vpop.f32.mrf.mxu0 }
 0x6e4   : > { %v7699_v4 = vrot.slane %v7692_v60, %v7316_v62 }
 0x6e5   : > { %v7688_v15 = vpop.f32.mrf.mxu1  ;;  %v7800_v20 = vpop.f32.mrf.mxu0 }
 0x6e6   : > { %v7807_v55 = vcombine.low %v7798_v34, %v7800_v20  ;;  %v7706_v42 = vrot.slane %v7699_v4, %v7316_v62 }
 0x6e7   : > { %v7802_v37 = vpop.f32.mrf.mxu0 }
 0x6e8   : > { %v7814_v0 = vrot.slane %v7807_v55, %v7316_v62  ;;  %v7708_v40 = vadd.f32 %v7706_v42, %v7572_v24 }
 0x6e9   : > { %v7803_v59 = vpop.f32.mrf.mxu0 }
 0x6ea   : > { %v7821_v12 = vrot.slane %v7814_v0, %v7316_v62 }
 0x6ec   : > { %v7823_v1 = vadd.f32 %v7821_v12, %v7708_v40 }
 0x6ef   : > { %v7929_v9 = vpop.f32.mrf.mxu1 }
 0x6f1   : > { %v7931_v21 = vpop.f32.mrf.mxu1 }
 0x6f2   : > { %v7938_v53 = vcombine.low %v7929_v9, %v7931_v21 }
 0x6f3   : > { %v7933_v49 = vpop.f32.mrf.mxu1 }
 0x6f4   : > { %v7945_v22 = vrot.slane %v7938_v53, %v7316_v62 }
 0x6f5   : > { %v7934_v5 = vpop.f32.mrf.mxu1 }
 0x6f6   : > { %v7952_v32 = vrot.slane %v7945_v22, %v7316_v62 }
 0x6f8   : > { %v7954_v61 = vadd.f32 %v7952_v32, %v7823_v1 }
 0x6fa   : > { %v7963_v47 = vrot.slane %v7954_v61, %v7962_v26  ;;  %v7959_v16 = vrot.slane %v7954_v61, %v7958_v57 }
 0x6fc   : > { %v7967_v17 = vpack.c.bf16 %v7963_v47, %v7963_v47  ;;  %v7966_v56 = vpack.c.bf16 %v7959_v16, %v7959_v16 }
 0x6fe   : > { %8129 = vmatprep.mubr.bf16.mxu0 %v7967_v17 }
 0x6ff   : > { %8130 = vmatmul.mubr.bf16.vlgmr.msra.gmra.mxu0 %v7966_v56 }
 0x7bf   : > { %v9218_v52 = vpop.f32.mrf.mxu0 }
 0x7c1   : > { %v9219_v18 = vpop.f32.mrf.mxu0 }
 0x7c2   : > { %v9220_v62 = vadd.f32 %v9219_v18, %v9218_v52 }
 0x7c3   : > { %v9221_v35 = vpop.f32.mrf.mxu0 }
 0x7c4   : > { %v8132_v46 = vadd.f32 %v9220_v62, %v8000_v13 }
 0x7c5   : > { %v9222_v14 = vpop.f32.mrf.mxu0 }
 0x7c6   : > { %v8137_v48 = vpack.c.bf16 %v8132_v46, %v8132_v46 }
 0x7c8   : > { %9298 = vmatmul.mubr.bf16.vlgmr.msra.gmra.mxu1 %v8137_v48 }
 0x888   : > { %v8237_v36 = vpop.f32.mrf.mxu1 }
 0x889   : > { %v8238_v30 = vadd.f32 %v8237_v36, %v8154_v25 }
 0x88a   : > { %v9299_v44 = vpop.f32.mrf.mxu1 }
 0x88b   : > { %8243 = vst [vmem:[%s558_s18] sm:$0x1] %v8238_v30 }
 0x88c   : > { %v8240_v19 = vpop.f32.mrf.mxu1 }
 0x88d   : > { %9615 = shalt.err (!%p9612_p3)
}
 0x88e   : > { %s9616_s21 = scalar_lea.hbm %s14276_s16, 16  ;;  %s9620_s23 = scalar_lea.hbm %s15202_s3, 32 }
 0x88f   : > { %p9617_p4 = scmp.ne.s32.totalorder %s14276_s16, %s9616_s21  ;;  %p9621_p9 = scmp.lt.s32.totalorder %s14276_s16, %s15202_s3 }
 0x890   : > { %p9622_p10 = scmp.lt.s32.totalorder %s9620_s23, %s9616_s21 }
 0x891   : > { %p9618_p7 = pnand %p9617_p4, %p9799_p5 }
 0x892   : > { %p9623_p11 = por %p9622_p10, %p9621_p9 }
 0x893   : > { %p9619_p8 = pneg %p9618_p7 }
 0x895   : > { %p9624_p12 = pnand %p9623_p11, %p9619_p8 }
 0x897   : > { %9627 = shalt.err (!%p9624_p12)
}
 0x898   : > { %9302 = dma.vmem_to_hbm [thread:$0]  (%p9799_p5), %s14278_s2, 16, %s14276_s16, %s8245_s20   ;;  %v9300_v3 = vpop.f32.mrf.mxu1 }
 0x899 PF: > { %s15203_s18 = sld [smem:[#allocation11_spill]] }
 0x89a   : > { %s15204_s30 = sld [smem:[#allocation9_spill]] }
 0x89f   : > { %p9308_p13 = scmp.ge.s32.totalorder %s15203_s18, 2 }
 0x8a0   : > { %s8269_s27 = sand.u32 1, %s15204_s30  }
 0x8a1   : > { %p9305_p0 = pnand %p9308_p13, %p9803_p6  ;;  %s8270_s25 = scalar_lea.sflag [#allocation7], %s8269_s27 }
 0x8a3   : > { %p9306_p1 = pneg %p9305_p0 }
 0x8a5   : > { %9645 = dma.done.wait (%p9306_p1), %s8270_s25, 16  }
 0x8a6   : > { %9647 = vsyncadd (%p9306_p1), %s8270_s25, 4294967280  ;;  %s15206_s24 = sld [smem:[#allocation12_spill]]  ;;  %s15209_s21 = smov %s9654_s22 }
 0x8a7   : > { %s15207_s28 = sld [smem:[#allocation10_spill]] }
 0x8a8   : > { %s15208_s23 = sld [smem:[#allocation13_spill]] }
 0x8ac   : > { %p26_p2 = scmp.ge.s32.totalorder %s15206_s24, 4  }
 0x8ad   : > { %s15210_s22 = smov %s15207_s28 }
 0x8ae   :  { %28 = sbr.rel (!%p26_p2) target bundleno = 9 (0x9), region = 161 }
 0x8b3   :  { %8274 = vsyncpa [#allocation7], 1 }
 0x8b4   :  { %8276 = vsyncpa [#allocation7 + $0x1], 1 }

</bundles_post_ra>
